<compile_context>
chip_gen: v6e
topology: v6e:2x2x1
jax: 0.10.0
libtpu: 0.0.40
codegen_flags: <defaults>
</compile_context>

<pallas_src>
import functools

import jax
import jax.numpy as jnp
from jax.experimental import pallas as pl
from jax.experimental.pallas import tpu as pltpu


# --------------------------------------------------------------------------- #
# kernel
# --------------------------------------------------------------------------- #
def _valid_taps(H, W, K, stride, pad, Ho, Wo):
    """Kernel positions (kh, kw) that touch at least one real (non-pad) pixel."""
    taps = []
    for kh in range(K):
        if kh - pad + (Ho - 1) * stride < 0 or kh - pad > H - 1:
            continue
        for kw in range(K):
            if kw - pad + (Wo - 1) * stride < 0 or kw - pad > W - 1:
                continue
            taps.append((kh, kw))
    return taps


def _make_conv_kernel(*, H, W, Ho, Wo, K, stride, pad, cin, cout,
                      depthwise, taps):
    """Build a grouped-conv kernel specialized on the static conv config."""

    def kernel(x_ref, w_ref, b_ref, o_ref, *scratch):
        # x_ref : (1, H,  W,  cin)   f32   (one batch element per grid step)
        # w_ref : (K*K, cin)               if depthwise (groups == cin == cout)
        #         (K*K, cin, cout)         otherwise (block-diag over groups)
        # b_ref : (1, cout)
        # o_ref : (1, Ho, Wo, cout)
        # scratch: optional zero-padded input buffer, only when pad > 0.
        if pad > 0:
            pad_ref = scratch[0]
            pad_ref[...] = jnp.zeros(pad_ref.shape, pad_ref.dtype)
            pad_ref[:, pl.ds(pad, H), pl.ds(pad, W), :] = x_ref[...]
            src = pad_ref
        else:
            src = x_ref

        # Hoist the whole tap weight table once (1 load instead of K*K tiny ones).
        w_all = w_ref[...]

        # Group taps by kh -> independent accumulator chains, tree-summed below
        # (breaks the serial mul/add dependence chain on the VPU).
        kh_groups = {}
        for (kh, kw) in taps:
            kh_groups.setdefault(kh, []).append(kw)

        partials = []
        for kh, kws in kh_groups.items():
            acc = None
            for kw in kws:
                t = kh * K + kw
                if stride == 1:
                    win = src[:, pl.ds(kh, Ho), pl.ds(kw, Wo), :]
                else:
                    win = src[:, pl.ds(kh, Ho, stride=stride),
                              pl.ds(kw, Wo, stride=stride), :]
                if depthwise:
                    # pure VPU taps; cout == cin
                    w_t = w_all[t:t + 1, :].reshape(1, 1, 1, cin)
                    term = win * w_t
                else:
                    # MXU matmul over the (grouped, block-diag expanded) channels
                    w_t = w_all[t]                                  # (cin, cout)
                    term = jnp.dot(win.reshape(Ho * Wo, cin), w_t,
                                   preferred_element_type=jnp.float32)
                acc = term if acc is None else acc + term
            partials.append(acc)

        # pairwise tree-sum of per-row partials
        while len(partials) > 1:
            nxt = [partials[i] + partials[i + 1]
                   for i in range(0, len(partials) - 1, 2)]
            if len(partials) % 2 == 1:
                nxt.append(partials[-1])
            partials = nxt
        total = partials[0]

        if depthwise:
            o_ref[...] = total + b_ref[...].reshape(1, 1, 1, cout)
        else:
            o_ref[...] = (total + b_ref[...]).reshape(1, Ho, Wo, cout)

    return kernel


# --------------------------------------------------------------------------- #
# wrapper (PyTorch ConvBlock.forward semantics: NCHW in, NCHW out)
# --------------------------------------------------------------------------- #
def conv_block_forward(x_nchw, w_oihw, b, *, stride, padding, groups):
    N, cin, H, W = x_nchw.shape
    cout, cin_g, KH, KW = w_oihw.shape
    assert KH == KW, "square kernels only"
    assert cin_g * groups == cin and cout % groups == 0
    K = KH
    Ho = (H + 2 * padding - K) // stride + 1
    Wo = (W + 2 * padding - K) // stride + 1
    depthwise = (groups == cin) and (cout == cin)

    # ---- one-time weight re-layout (host side) -----------------------------
    if depthwise:
        # (C, 1, K, K) -> (K*K, C): per-tap per-channel scale for the VPU path
        w_prep = jnp.transpose(w_oihw[:, 0], (1, 2, 0)).reshape(K * K, cin)
    else:
        cout_g = cout // groups
        wt = jnp.transpose(w_oihw, (2, 3, 1, 0))            # (K, K, cin_g, cout)
        if groups == 1:
            w_prep = wt.reshape(K * K, cin, cout)
        else:
            # block-diagonal expansion so any group count is one matmul per tap
            full = jnp.zeros((K, K, cin, cout), w_oihw.dtype)
            for g in range(groups):
                full = full.at[:, :, g * cin_g:(g + 1) * cin_g,
                               g * cout_g:(g + 1) * cout_g].set(
                                   wt[..., g * cout_g:(g + 1) * cout_g])
            w_prep = full.reshape(K * K, cin, cout)

    # NCHW -> NHWC (channels on the TPU lane dim)
    x = jnp.transpose(x_nchw, (0, 2, 3, 1))

    taps = _valid_taps(H, W, K, stride, padding, Ho, Wo)
    assert taps, "conv window never overlaps the input"

    kernel = _make_conv_kernel(H=H, W=W, Ho=Ho, Wo=Wo, K=K, stride=stride,
                               pad=padding, cin=cin, cout=cout,
                               depthwise=depthwise, taps=taps)

    w_spec = (pl.BlockSpec((K * K, cin), lambda n: (0, 0)) if depthwise
              else pl.BlockSpec((K * K, cin, cout), lambda n: (0, 0, 0)))
    scratch = ([pltpu.VMEM((1, H + 2 * padding, W + 2 * padding, cin),
                           jnp.float32)]
               if padding > 0 else [])

    out = pl.pallas_call(
        kernel,
        out_shape=jax.ShapeDtypeStruct((N, Ho, Wo, cout), jnp.float32),
        grid=(N,),
        in_specs=[pl.BlockSpec((1, H, W, cin), lambda n: (n, 0, 0, 0)),
                  w_spec,
                  pl.BlockSpec((1, cout), lambda n: (0, 0))],
        out_specs=pl.BlockSpec((1, Ho, Wo, cout), lambda n: (n, 0, 0, 0)),
        scratch_shapes=scratch,
        compiler_params=pltpu.CompilerParams(
            dimension_semantics=("parallel",)),   # v7x: batch across both TCs
    )(x, w_prep, b.reshape(1, cout))

    return jnp.transpose(out, (0, 3, 1, 2))        # back to NCHW


# --------------------------------------------------------------------------- #
# reference (XLA) for validation
# --------------------------------------------------------------------------- #
def conv_block_reference(x_nchw, w_oihw, b, *, stride, padding, groups):
    out = jax.lax.conv_general_dilated(
        x_nchw, w_oihw,
        window_strides=(stride, stride),
        padding=((padding, padding), (padding, padding)),
        dimension_numbers=("NCHW", "OIHW", "NCHW"),
        feature_group_count=groups,
        precision=jax.lax.Precision.HIGHEST)
    return out + b.reshape(1, -1, 1, 1)


# --------------------------------------------------------------------------- #
# main
# --------------------------------------------------------------------------- #
if __name__ == "__main__":
    key = jax.random.PRNGKey(0)
    kx, kw1, kw2, kw3 = jax.random.split(key, 4)

    # ConvBlock input (PyTorch NCHW): batch=2, in_channels=4, 16x16 spatial
    x = jax.random.normal(kx, (2, 4, 16, 16), jnp.float32)

    # Representative ConvBlock instantiations (as used throughout ConvNeXt):
    #   (out_channels, kernel_size, stride, padding, groups)
    configs = [
        (4, 7, 1, 3, 4),   # depthwise 7x7, pad 3 (groups == channels)
        (8, 3, 1, 1, 1),   # dense 3x3, stride 1, pad 1
        (8, 2, 2, 0, 1),   # 2x2 / stride-2 patch conv (downsample style)
    ]

    for (cout, k, s, p, g), wkey in zip(configs, [kw1, kw2, kw3]):
        cin = x.shape[1]
        # initializeConv(): trunc_normal_(std=0.2) weight, zero bias
        w = 0.2 * jax.random.truncated_normal(
            wkey, -2.0, 2.0, (cout, cin // g, k, k), jnp.float32)
        b = jnp.zeros((cout,), jnp.float32)

        fwd = jax.jit(functools.partial(conv_block_forward,
                                        stride=s, padding=p, groups=g))
        out = fwd(x, w, b)
        jax.block_until_ready(out)

        ref = conv_block_reference(x, w, b, stride=s, padding=p, groups=g)
        assert out.shape == ref.shape, (out.shape, ref.shape)
        assert bool(jnp.all(jnp.isfinite(out)))
        assert bool(jnp.allclose(out, ref, atol=1e-2, rtol=1e-2)), \
            f"mismatch vs XLA conv for config {(cout, k, s, p, g)}"

    print("KERNEL_OK")
</pallas_src>

<mosaic_0001>
module attributes {stable_mosaic.version = 11 : i64} {
  func.func @kernel(%arg0: i32, %arg1: memref<1x16x16x4xf32, #tpu.memory_space<vmem>>, %arg2: memref<49x4xf32, #tpu.memory_space<vmem>>, %arg3: memref<1x4xf32, #tpu.memory_space<vmem>>, %arg4: memref<1x16x16x4xf32, #tpu.memory_space<vmem>>, %arg5: memref<1x22x22x4xf32, #tpu.memory_space<vmem>>) attributes {dimension_semantics = [#tpu.dimension_semantics<parallel>], iteration_bounds = array<i64: 2>, scalar_prefetch = 0 : i64, scratch_operands = 1 : i64, tpu.core_type = #tpu.core_type<tc>, window_params = [{transform_indices = @transform_0, window_bounds = array<i64: 1, 16, 16, 4>}, {pipeline_mode = #tpu.pipeline_mode<synchronous>, transform_indices = @transform_1, window_bounds = array<i64: 49, 4>}, {pipeline_mode = #tpu.pipeline_mode<synchronous>, transform_indices = @transform_2, window_bounds = array<i64: 1, 4>}, {transform_indices = @transform_3, window_bounds = array<i64: 1, 16, 16, 4>}]} {
    %cst = arith.constant 0.000000e+00 : f32
    %0 = vector.broadcast %cst : f32 to vector<1x22x22x4xf32>
    %c0 = arith.constant 0 : index
    %c0_0 = arith.constant 0 : index
    %c0_1 = arith.constant 0 : index
    %c0_2 = arith.constant 0 : index
    %1 = vector.load %arg5[%c0, %c0_0, %c0_1, %c0_2] : memref<1x22x22x4xf32, #tpu.memory_space<vmem>>, vector<1x22x22x4xf32>
    tpu.vector_store %arg5[%c0, %c0_0, %c0_1, %c0_2], %0 {strides = array<i32>} : memref<1x22x22x4xf32, #tpu.memory_space<vmem>>, vector<1x22x22x4xf32>,
    %c0_3 = arith.constant 0 : index
    %c0_4 = arith.constant 0 : index
    %c0_5 = arith.constant 0 : index
    %c0_6 = arith.constant 0 : index
    %2 = vector.load %arg1[%c0_3, %c0_4, %c0_5, %c0_6] : memref<1x16x16x4xf32, #tpu.memory_space<vmem>>, vector<1x16x16x4xf32>
    %c0_7 = arith.constant 0 : index
    %c3 = arith.constant 3 : index
    %c3_8 = arith.constant 3 : index
    %c0_9 = arith.constant 0 : index
    %3 = vector.load %arg5[%c0_7, %c3, %c3_8, %c0_9] : memref<1x22x22x4xf32, #tpu.memory_space<vmem>>, vector<1x16x16x4xf32>
    tpu.vector_store %arg5[%c0_7, %c3, %c3_8, %c0_9], %2 {strides = array<i32>} : memref<1x22x22x4xf32, #tpu.memory_space<vmem>>, vector<1x16x16x4xf32>,
    %c0_10 = arith.constant 0 : index
    %c0_11 = arith.constant 0 : index
    %4 = vector.load %arg2[%c0_10, %c0_11] : memref<49x4xf32, #tpu.memory_space<vmem>>, vector<49x4xf32>
    %c0_12 = arith.constant 0 : index
    %c0_13 = arith.constant 0 : index
    %c0_14 = arith.constant 0 : index
    %c0_15 = arith.constant 0 : index
    %5 = vector.load %arg5[%c0_12, %c0_13, %c0_14, %c0_15] : memref<1x22x22x4xf32, #tpu.memory_space<vmem>>, vector<1x16x16x4xf32>
    %6 = vector.extract_strided_slice %4 {offsets = [0, 0], sizes = [1, 4], strides = [1, 1]} : vector<49x4xf32> to vector<1x4xf32>
    %7 = vector.shape_cast %6 : vector<1x4xf32> to vector<1x1x1x4xf32>
    %8 = vector.broadcast %7 : vector<1x1x1x4xf32> to vector<1x16x16x4xf32>
    %9 = arith.mulf %5, %8 : vector<1x16x16x4xf32>
    %c0_16 = arith.constant 0 : index
    %c0_17 = arith.constant 0 : index
    %c1 = arith.constant 1 : index
    %c0_18 = arith.constant 0 : index
    %10 = vector.load %arg5[%c0_16, %c0_17, %c1, %c0_18] : memref<1x22x22x4xf32, #tpu.memory_space<vmem>>, vector<1x16x16x4xf32>
    %11 = vector.extract_strided_slice %4 {offsets = [1, 0], sizes = [1, 4], strides = [1, 1]} : vector<49x4xf32> to vector<1x4xf32>
    %12 = vector.shape_cast %11 : vector<1x4xf32> to vector<1x1x1x4xf32>
    %13 = vector.broadcast %12 : vector<1x1x1x4xf32> to vector<1x16x16x4xf32>
    %14 = arith.mulf %10, %13 : vector<1x16x16x4xf32>
    %15 = arith.addf %9, %14 : vector<1x16x16x4xf32>
    %c0_19 = arith.constant 0 : index
    %c0_20 = arith.constant 0 : index
    %c2 = arith.constant 2 : index
    %c0_21 = arith.constant 0 : index
    %16 = vector.load %arg5[%c0_19, %c0_20, %c2, %c0_21] : memref<1x22x22x4xf32, #tpu.memory_space<vmem>>, vector<1x16x16x4xf32>
    %17 = vector.extract_strided_slice %4 {offsets = [2, 0], sizes = [1, 4], strides = [1, 1]} : vector<49x4xf32> to vector<1x4xf32>
    %18 = vector.shape_cast %17 : vector<1x4xf32> to vector<1x1x1x4xf32>
    %19 = vector.broadcast %18 : vector<1x1x1x4xf32> to vector<1x16x16x4xf32>
    %20 = arith.mulf %16, %19 : vector<1x16x16x4xf32>
    %21 = arith.addf %15, %20 : vector<1x16x16x4xf32>
    %c0_22 = arith.constant 0 : index
    %c0_23 = arith.constant 0 : index
    %c3_24 = arith.constant 3 : index
    %c0_25 = arith.constant 0 : index
    %22 = vector.load %arg5[%c0_22, %c0_23, %c3_24, %c0_25] : memref<1x22x22x4xf32, #tpu.memory_space<vmem>>, vector<1x16x16x4xf32>
    %23 = vector.extract_strided_slice %4 {offsets = [3, 0], sizes = [1, 4], strides = [1, 1]} : vector<49x4xf32> to vector<1x4xf32>
    %24 = vector.shape_cast %23 : vector<1x4xf32> to vector<1x1x1x4xf32>
    %25 = vector.broadcast %24 : vector<1x1x1x4xf32> to vector<1x16x16x4xf32>
    %26 = arith.mulf %22, %25 : vector<1x16x16x4xf32>
    %27 = arith.addf %21, %26 : vector<1x16x16x4xf32>
    %c0_26 = arith.constant 0 : index
    %c0_27 = arith.constant 0 : index
    %c4 = arith.constant 4 : index
    %c0_28 = arith.constant 0 : index
    %28 = vector.load %arg5[%c0_26, %c0_27, %c4, %c0_28] : memref<1x22x22x4xf32, #tpu.memory_space<vmem>>, vector<1x16x16x4xf32>
    %29 = vector.extract_strided_slice %4 {offsets = [4, 0], sizes = [1, 4], strides = [1, 1]} : vector<49x4xf32> to vector<1x4xf32>
    %30 = vector.shape_cast %29 : vector<1x4xf32> to vector<1x1x1x4xf32>
    %31 = vector.broadcast %30 : vector<1x1x1x4xf32> to vector<1x16x16x4xf32>
    %32 = arith.mulf %28, %31 : vector<1x16x16x4xf32>
    %33 = arith.addf %27, %32 : vector<1x16x16x4xf32>
    %c0_29 = arith.constant 0 : index
    %c0_30 = arith.constant 0 : index
    %c5 = arith.constant 5 : index
    %c0_31 = arith.constant 0 : index
    %34 = vector.load %arg5[%c0_29, %c0_30, %c5, %c0_31] : memref<1x22x22x4xf32, #tpu.memory_space<vmem>>, vector<1x16x16x4xf32>
    %35 = vector.extract_strided_slice %4 {offsets = [5, 0], sizes = [1, 4], strides = [1, 1]} : vector<49x4xf32> to vector<1x4xf32>
    %36 = vector.shape_cast %35 : vector<1x4xf32> to vector<1x1x1x4xf32>
    %37 = vector.broadcast %36 : vector<1x1x1x4xf32> to vector<1x16x16x4xf32>
    %38 = arith.mulf %34, %37 : vector<1x16x16x4xf32>
    %39 = arith.addf %33, %38 : vector<1x16x16x4xf32>
    %c0_32 = arith.constant 0 : index
    %c0_33 = arith.constant 0 : index
    %c6 = arith.constant 6 : index
    %c0_34 = arith.constant 0 : index
    %40 = vector.load %arg5[%c0_32, %c0_33, %c6, %c0_34] : memref<1x22x22x4xf32, #tpu.memory_space<vmem>>, vector<1x16x16x4xf32>
    %41 = vector.extract_strided_slice %4 {offsets = [6, 0], sizes = [1, 4], strides = [1, 1]} : vector<49x4xf32> to vector<1x4xf32>
    %42 = vector.shape_cast %41 : vector<1x4xf32> to vector<1x1x1x4xf32>
    %43 = vector.broadcast %42 : vector<1x1x1x4xf32> to vector<1x16x16x4xf32>
    %44 = arith.mulf %40, %43 : vector<1x16x16x4xf32>
    %45 = arith.addf %39, %44 : vector<1x16x16x4xf32>
    %c0_35 = arith.constant 0 : index
    %c1_36 = arith.constant 1 : index
    %c0_37 = arith.constant 0 : index
    %c0_38 = arith.constant 0 : index
    %46 = vector.load %arg5[%c0_35, %c1_36, %c0_37, %c0_38] : memref<1x22x22x4xf32, #tpu.memory_space<vmem>>, vector<1x16x16x4xf32>
    %47 = vector.extract_strided_slice %4 {offsets = [7, 0], sizes = [1, 4], strides = [1, 1]} : vector<49x4xf32> to vector<1x4xf32>
    %48 = vector.shape_cast %47 : vector<1x4xf32> to vector<1x1x1x4xf32>
    %49 = vector.broadcast %48 : vector<1x1x1x4xf32> to vector<1x16x16x4xf32>
    %50 = arith.mulf %46, %49 : vector<1x16x16x4xf32>
    %c0_39 = arith.constant 0 : index
    %c1_40 = arith.constant 1 : index
    %c1_41 = arith.constant 1 : index
    %c0_42 = arith.constant 0 : index
    %51 = vector.load %arg5[%c0_39, %c1_40, %c1_41, %c0_42] : memref<1x22x22x4xf32, #tpu.memory_space<vmem>>, vector<1x16x16x4xf32>
    %52 = vector.extract_strided_slice %4 {offsets = [8, 0], sizes = [1, 4], strides = [1, 1]} : vector<49x4xf32> to vector<1x4xf32>
    %53 = vector.shape_cast %52 : vector<1x4xf32> to vector<1x1x1x4xf32>
    %54 = vector.broadcast %53 : vector<1x1x1x4xf32> to vector<1x16x16x4xf32>
    %55 = arith.mulf %51, %54 : vector<1x16x16x4xf32>
    %56 = arith.addf %50, %55 : vector<1x16x16x4xf32>
    %c0_43 = arith.constant 0 : index
    %c1_44 = arith.constant 1 : index
    %c2_45 = arith.constant 2 : index
    %c0_46 = arith.constant 0 : index
    %57 = vector.load %arg5[%c0_43, %c1_44, %c2_45, %c0_46] : memref<1x22x22x4xf32, #tpu.memory_space<vmem>>, vector<1x16x16x4xf32>
    %58 = vector.extract_strided_slice %4 {offsets = [9, 0], sizes = [1, 4], strides = [1, 1]} : vector<49x4xf32> to vector<1x4xf32>
    %59 = vector.shape_cast %58 : vector<1x4xf32> to vector<1x1x1x4xf32>
    %60 = vector.broadcast %59 : vector<1x1x1x4xf32> to vector<1x16x16x4xf32>
    %61 = arith.mulf %57, %60 : vector<1x16x16x4xf32>
    %62 = arith.addf %56, %61 : vector<1x16x16x4xf32>
    %c0_47 = arith.constant 0 : index
    %c1_48 = arith.constant 1 : index
    %c3_49 = arith.constant 3 : index
    %c0_50 = arith.constant 0 : index
    %63 = vector.load %arg5[%c0_47, %c1_48, %c3_49, %c0_50] : memref<1x22x22x4xf32, #tpu.memory_space<vmem>>, vector<1x16x16x4xf32>
    %64 = vector.extract_strided_slice %4 {offsets = [10, 0], sizes = [1, 4], strides = [1, 1]} : vector<49x4xf32> to vector<1x4xf32>
    %65 = vector.shape_cast %64 : vector<1x4xf32> to vector<1x1x1x4xf32>
    %66 = vector.broadcast %65 : vector<1x1x1x4xf32> to vector<1x16x16x4xf32>
    %67 = arith.mulf %63, %66 : vector<1x16x16x4xf32>
    %68 = arith.addf %62, %67 : vector<1x16x16x4xf32>
    %c0_51 = arith.constant 0 : index
    %c1_52 = arith.constant 1 : index
    %c4_53 = arith.constant 4 : index
    %c0_54 = arith.constant 0 : index
    %69 = vector.load %arg5[%c0_51, %c1_52, %c4_53, %c0_54] : memref<1x22x22x4xf32, #tpu.memory_space<vmem>>, vector<1x16x16x4xf32>
    %70 = vector.extract_strided_slice %4 {offsets = [11, 0], sizes = [1, 4], strides = [1, 1]} : vector<49x4xf32> to vector<1x4xf32>
    %71 = vector.shape_cast %70 : vector<1x4xf32> to vector<1x1x1x4xf32>
    %72 = vector.broadcast %71 : vector<1x1x1x4xf32> to vector<1x16x16x4xf32>
    %73 = arith.mulf %69, %72 : vector<1x16x16x4xf32>
    %74 = arith.addf %68, %73 : vector<1x16x16x4xf32>
    %c0_55 = arith.constant 0 : index
    %c1_56 = arith.constant 1 : index
    %c5_57 = arith.constant 5 : index
    %c0_58 = arith.constant 0 : index
    %75 = vector.load %arg5[%c0_55, %c1_56, %c5_57, %c0_58] : memref<1x22x22x4xf32, #tpu.memory_space<vmem>>, vector<1x16x16x4xf32>
    %76 = vector.extract_strided_slice %4 {offsets = [12, 0], sizes = [1, 4], strides = [1, 1]} : vector<49x4xf32> to vector<1x4xf32>
    %77 = vector.shape_cast %76 : vector<1x4xf32> to vector<1x1x1x4xf32>
    %78 = vector.broadcast %77 : vector<1x1x1x4xf32> to vector<1x16x16x4xf32>
    %79 = arith.mulf %75, %78 : vector<1x16x16x4xf32>
    %80 = arith.addf %74, %79 : vector<1x16x16x4xf32>
    %c0_59 = arith.constant 0 : index
    %c1_60 = arith.constant 1 : index
    %c6_61 = arith.constant 6 : index
    %c0_62 = arith.constant 0 : index
    %81 = vector.load %arg5[%c0_59, %c1_60, %c6_61, %c0_62] : memref<1x22x22x4xf32, #tpu.memory_space<vmem>>, vector<1x16x16x4xf32>
    %82 = vector.extract_strided_slice %4 {offsets = [13, 0], sizes = [1, 4], strides = [1, 1]} : vector<49x4xf32> to vector<1x4xf32>
    %83 = vector.shape_cast %82 : vector<1x4xf32> to vector<1x1x1x4xf32>
    %84 = vector.broadcast %83 : vector<1x1x1x4xf32> to vector<1x16x16x4xf32>
    %85 = arith.mulf %81, %84 : vector<1x16x16x4xf32>
    %86 = arith.addf %80, %85 : vector<1x16x16x4xf32>
    %c0_63 = arith.constant 0 : index
    %c2_64 = arith.constant 2 : index
    %c0_65 = arith.constant 0 : index
    %c0_66 = arith.constant 0 : index
    %87 = vector.load %arg5[%c0_63, %c2_64, %c0_65, %c0_66] : memref<1x22x22x4xf32, #tpu.memory_space<vmem>>, vector<1x16x16x4xf32>
    %88 = vector.extract_strided_slice %4 {offsets = [14, 0], sizes = [1, 4], strides = [1, 1]} : vector<49x4xf32> to vector<1x4xf32>
    %89 = vector.shape_cast %88 : vector<1x4xf32> to vector<1x1x1x4xf32>
    %90 = vector.broadcast %89 : vector<1x1x1x4xf32> to vector<1x16x16x4xf32>
    %91 = arith.mulf %87, %90 : vector<1x16x16x4xf32>
    %c0_67 = arith.constant 0 : index
    %c2_68 = arith.constant 2 : index
    %c1_69 = arith.constant 1 : index
    %c0_70 = arith.constant 0 : index
    %92 = vector.load %arg5[%c0_67, %c2_68, %c1_69, %c0_70] : memref<1x22x22x4xf32, #tpu.memory_space<vmem>>, vector<1x16x16x4xf32>
    %93 = vector.extract_strided_slice %4 {offsets = [15, 0], sizes = [1, 4], strides = [1, 1]} : vector<49x4xf32> to vector<1x4xf32>
    %94 = vector.shape_cast %93 : vector<1x4xf32> to vector<1x1x1x4xf32>
    %95 = vector.broadcast %94 : vector<1x1x1x4xf32> to vector<1x16x16x4xf32>
    %96 = arith.mulf %92, %95 : vector<1x16x16x4xf32>
    %97 = arith.addf %91, %96 : vector<1x16x16x4xf32>
    %c0_71 = arith.constant 0 : index
    %c2_72 = arith.constant 2 : index
    %c2_73 = arith.constant 2 : index
    %c0_74 = arith.constant 0 : index
    %98 = vector.load %arg5[%c0_71, %c2_72, %c2_73, %c0_74] : memref<1x22x22x4xf32, #tpu.memory_space<vmem>>, vector<1x16x16x4xf32>
    %99 = vector.extract_strided_slice %4 {offsets = [16, 0], sizes = [1, 4], strides = [1, 1]} : vector<49x4xf32> to vector<1x4xf32>
    %100 = vector.shape_cast %99 : vector<1x4xf32> to vector<1x1x1x4xf32>
    %101 = vector.broadcast %100 : vector<1x1x1x4xf32> to vector<1x16x16x4xf32>
    %102 = arith.mulf %98, %101 : vector<1x16x16x4xf32>
    %103 = arith.addf %97, %102 : vector<1x16x16x4xf32>
    %c0_75 = arith.constant 0 : index
    %c2_76 = arith.constant 2 : index
    %c3_77 = arith.constant 3 : index
    %c0_78 = arith.constant 0 : index
    %104 = vector.load %arg5[%c0_75, %c2_76, %c3_77, %c0_78] : memref<1x22x22x4xf32, #tpu.memory_space<vmem>>, vector<1x16x16x4xf32>
    %105 = vector.extract_strided_slice %4 {offsets = [17, 0], sizes = [1, 4], strides = [1, 1]} : vector<49x4xf32> to vector<1x4xf32>
    %106 = vector.shape_cast %105 : vector<1x4xf32> to vector<1x1x1x4xf32>
    %107 = vector.broadcast %106 : vector<1x1x1x4xf32> to vector<1x16x16x4xf32>
    %108 = arith.mulf %104, %107 : vector<1x16x16x4xf32>
    %109 = arith.addf %103, %108 : vector<1x16x16x4xf32>
    %c0_79 = arith.constant 0 : index
    %c2_80 = arith.constant 2 : index
    %c4_81 = arith.constant 4 : index
    %c0_82 = arith.constant 0 : index
    %110 = vector.load %arg5[%c0_79, %c2_80, %c4_81, %c0_82] : memref<1x22x22x4xf32, #tpu.memory_space<vmem>>, vector<1x16x16x4xf32>
    %111 = vector.extract_strided_slice %4 {offsets = [18, 0], sizes = [1, 4], strides = [1, 1]} : vector<49x4xf32> to vector<1x4xf32>
    %112 = vector.shape_cast %111 : vector<1x4xf32> to vector<1x1x1x4xf32>
    %113 = vector.broadcast %112 : vector<1x1x1x4xf32> to vector<1x16x16x4xf32>
    %114 = arith.mulf %110, %113 : vector<1x16x16x4xf32>
    %115 = arith.addf %109, %114 : vector<1x16x16x4xf32>
    %c0_83 = arith.constant 0 : index
    %c2_84 = arith.constant 2 : index
    %c5_85 = arith.constant 5 : index
    %c0_86 = arith.constant 0 : index
    %116 = vector.load %arg5[%c0_83, %c2_84, %c5_85, %c0_86] : memref<1x22x22x4xf32, #tpu.memory_space<vmem>>, vector<1x16x16x4xf32>
    %117 = vector.extract_strided_slice %4 {offsets = [19, 0], sizes = [1, 4], strides = [1, 1]} : vector<49x4xf32> to vector<1x4xf32>
    %118 = vector.shape_cast %117 : vector<1x4xf32> to vector<1x1x1x4xf32>
    %119 = vector.broadcast %118 : vector<1x1x1x4xf32> to vector<1x16x16x4xf32>
    %120 = arith.mulf %116, %119 : vector<1x16x16x4xf32>
    %121 = arith.addf %115, %120 : vector<1x16x16x4xf32>
    %c0_87 = arith.constant 0 : index
    %c2_88 = arith.constant 2 : index
    %c6_89 = arith.constant 6 : index
    %c0_90 = arith.constant 0 : index
    %122 = vector.load %arg5[%c0_87, %c2_88, %c6_89, %c0_90] : memref<1x22x22x4xf32, #tpu.memory_space<vmem>>, vector<1x16x16x4xf32>
    %123 = vector.extract_strided_slice %4 {offsets = [20, 0], sizes = [1, 4], strides = [1, 1]} : vector<49x4xf32> to vector<1x4xf32>
    %124 = vector.shape_cast %123 : vector<1x4xf32> to vector<1x1x1x4xf32>
    %125 = vector.broadcast %124 : vector<1x1x1x4xf32> to vector<1x16x16x4xf32>
    %126 = arith.mulf %122, %125 : vector<1x16x16x4xf32>
    %127 = arith.addf %121, %126 : vector<1x16x16x4xf32>
    %c0_91 = arith.constant 0 : index
    %c3_92 = arith.constant 3 : index
    %c0_93 = arith.constant 0 : index
    %c0_94 = arith.constant 0 : index
    %128 = vector.load %arg5[%c0_91, %c3_92, %c0_93, %c0_94] : memref<1x22x22x4xf32, #tpu.memory_space<vmem>>, vector<1x16x16x4xf32>
    %129 = vector.extract_strided_slice %4 {offsets = [21, 0], sizes = [1, 4], strides = [1, 1]} : vector<49x4xf32> to vector<1x4xf32>
    %130 = vector.shape_cast %129 : vector<1x4xf32> to vector<1x1x1x4xf32>
    %131 = vector.broadcast %130 : vector<1x1x1x4xf32> to vector<1x16x16x4xf32>
    %132 = arith.mulf %128, %131 : vector<1x16x16x4xf32>
    %c0_95 = arith.constant 0 : index
    %c3_96 = arith.constant 3 : index
    %c1_97 = arith.constant 1 : index
    %c0_98 = arith.constant 0 : index
    %133 = vector.load %arg5[%c0_95, %c3_96, %c1_97, %c0_98] : memref<1x22x22x4xf32, #tpu.memory_space<vmem>>, vector<1x16x16x4xf32>
    %134 = vector.extract_strided_slice %4 {offsets = [22, 0], sizes = [1, 4], strides = [1, 1]} : vector<49x4xf32> to vector<1x4xf32>
    %135 = vector.shape_cast %134 : vector<1x4xf32> to vector<1x1x1x4xf32>
    %136 = vector.broadcast %135 : vector<1x1x1x4xf32> to vector<1x16x16x4xf32>
    %137 = arith.mulf %133, %136 : vector<1x16x16x4xf32>
    %138 = arith.addf %132, %137 : vector<1x16x16x4xf32>
    %c0_99 = arith.constant 0 : index
    %c3_100 = arith.constant 3 : index
    %c2_101 = arith.constant 2 : index
    %c0_102 = arith.constant 0 : index
    %139 = vector.load %arg5[%c0_99, %c3_100, %c2_101, %c0_102] : memref<1x22x22x4xf32, #tpu.memory_space<vmem>>, vector<1x16x16x4xf32>
    %140 = vector.extract_strided_slice %4 {offsets = [23, 0], sizes = [1, 4], strides = [1, 1]} : vector<49x4xf32> to vector<1x4xf32>
    %141 = vector.shape_cast %140 : vector<1x4xf32> to vector<1x1x1x4xf32>
    %142 = vector.broadcast %141 : vector<1x1x1x4xf32> to vector<1x16x16x4xf32>
    %143 = arith.mulf %139, %142 : vector<1x16x16x4xf32>
    %144 = arith.addf %138, %143 : vector<1x16x16x4xf32>
    %c0_103 = arith.constant 0 : index
    %c3_104 = arith.constant 3 : index
    %c3_105 = arith.constant 3 : index
    %c0_106 = arith.constant 0 : index
    %145 = vector.load %arg5[%c0_103, %c3_104, %c3_105, %c0_106] : memref<1x22x22x4xf32, #tpu.memory_space<vmem>>, vector<1x16x16x4xf32>
    %146 = vector.extract_strided_slice %4 {offsets = [24, 0], sizes = [1, 4], strides = [1, 1]} : vector<49x4xf32> to vector<1x4xf32>
    %147 = vector.shape_cast %146 : vector<1x4xf32> to vector<1x1x1x4xf32>
    %148 = vector.broadcast %147 : vector<1x1x1x4xf32> to vector<1x16x16x4xf32>
    %149 = arith.mulf %145, %148 : vector<1x16x16x4xf32>
    %150 = arith.addf %144, %149 : vector<1x16x16x4xf32>
    %c0_107 = arith.constant 0 : index
    %c3_108 = arith.constant 3 : index
    %c4_109 = arith.constant 4 : index
    %c0_110 = arith.constant 0 : index
    %151 = vector.load %arg5[%c0_107, %c3_108, %c4_109, %c0_110] : memref<1x22x22x4xf32, #tpu.memory_space<vmem>>, vector<1x16x16x4xf32>
    %152 = vector.extract_strided_slice %4 {offsets = [25, 0], sizes = [1, 4], strides = [1, 1]} : vector<49x4xf32> to vector<1x4xf32>
    %153 = vector.shape_cast %152 : vector<1x4xf32> to vector<1x1x1x4xf32>
    %154 = vector.broadcast %153 : vector<1x1x1x4xf32> to vector<1x16x16x4xf32>
    %155 = arith.mulf %151, %154 : vector<1x16x16x4xf32>
    %156 = arith.addf %150, %155 : vector<1x16x16x4xf32>
    %c0_111 = arith.constant 0 : index
    %c3_112 = arith.constant 3 : index
    %c5_113 = arith.constant 5 : index
    %c0_114 = arith.constant 0 : index
    %157 = vector.load %arg5[%c0_111, %c3_112, %c5_113, %c0_114] : memref<1x22x22x4xf32, #tpu.memory_space<vmem>>, vector<1x16x16x4xf32>
    %158 = vector.extract_strided_slice %4 {offsets = [26, 0], sizes = [1, 4], strides = [1, 1]} : vector<49x4xf32> to vector<1x4xf32>
    %159 = vector.shape_cast %158 : vector<1x4xf32> to vector<1x1x1x4xf32>
    %160 = vector.broadcast %159 : vector<1x1x1x4xf32> to vector<1x16x16x4xf32>
    %161 = arith.mulf %157, %160 : vector<1x16x16x4xf32>
    %162 = arith.addf %156, %161 : vector<1x16x16x4xf32>
    %c0_115 = arith.constant 0 : index
    %c3_116 = arith.constant 3 : index
    %c6_117 = arith.constant 6 : index
    %c0_118 = arith.constant 0 : index
    %163 = vector.load %arg5[%c0_115, %c3_116, %c6_117, %c0_118] : memref<1x22x22x4xf32, #tpu.memory_space<vmem>>, vector<1x16x16x4xf32>
    %164 = vector.extract_strided_slice %4 {offsets = [27, 0], sizes = [1, 4], strides = [1, 1]} : vector<49x4xf32> to vector<1x4xf32>
    %165 = vector.shape_cast %164 : vector<1x4xf32> to vector<1x1x1x4xf32>
    %166 = vector.broadcast %165 : vector<1x1x1x4xf32> to vector<1x16x16x4xf32>
    %167 = arith.mulf %163, %166 : vector<1x16x16x4xf32>
    %168 = arith.addf %162, %167 : vector<1x16x16x4xf32>
    %c0_119 = arith.constant 0 : index
    %c4_120 = arith.constant 4 : index
    %c0_121 = arith.constant 0 : index
    %c0_122 = arith.constant 0 : index
    %169 = vector.load %arg5[%c0_119, %c4_120, %c0_121, %c0_122] : memref<1x22x22x4xf32, #tpu.memory_space<vmem>>, vector<1x16x16x4xf32>
    %170 = vector.extract_strided_slice %4 {offsets = [28, 0], sizes = [1, 4], strides = [1, 1]} : vector<49x4xf32> to vector<1x4xf32>
    %171 = vector.shape_cast %170 : vector<1x4xf32> to vector<1x1x1x4xf32>
    %172 = vector.broadcast %171 : vector<1x1x1x4xf32> to vector<1x16x16x4xf32>
    %173 = arith.mulf %169, %172 : vector<1x16x16x4xf32>
    %c0_123 = arith.constant 0 : index
    %c4_124 = arith.constant 4 : index
    %c1_125 = arith.constant 1 : index
    %c0_126 = arith.constant 0 : index
    %174 = vector.load %arg5[%c0_123, %c4_124, %c1_125, %c0_126] : memref<1x22x22x4xf32, #tpu.memory_space<vmem>>, vector<1x16x16x4xf32>
    %175 = vector.extract_strided_slice %4 {offsets = [29, 0], sizes = [1, 4], strides = [1, 1]} : vector<49x4xf32> to vector<1x4xf32>
    %176 = vector.shape_cast %175 : vector<1x4xf32> to vector<1x1x1x4xf32>
    %177 = vector.broadcast %176 : vector<1x1x1x4xf32> to vector<1x16x16x4xf32>
    %178 = arith.mulf %174, %177 : vector<1x16x16x4xf32>
    %179 = arith.addf %173, %178 : vector<1x16x16x4xf32>
    %c0_127 = arith.constant 0 : index
    %c4_128 = arith.constant 4 : index
    %c2_129 = arith.constant 2 : index
    %c0_130 = arith.constant 0 : index
    %180 = vector.load %arg5[%c0_127, %c4_128, %c2_129, %c0_130] : memref<1x22x22x4xf32, #tpu.memory_space<vmem>>, vector<1x16x16x4xf32>
    %181 = vector.extract_strided_slice %4 {offsets = [30, 0], sizes = [1, 4], strides = [1, 1]} : vector<49x4xf32> to vector<1x4xf32>
    %182 = vector.shape_cast %181 : vector<1x4xf32> to vector<1x1x1x4xf32>
    %183 = vector.broadcast %182 : vector<1x1x1x4xf32> to vector<1x16x16x4xf32>
    %184 = arith.mulf %180, %183 : vector<1x16x16x4xf32>
    %185 = arith.addf %179, %184 : vector<1x16x16x4xf32>
    %c0_131 = arith.constant 0 : index
    %c4_132 = arith.constant 4 : index
    %c3_133 = arith.constant 3 : index
    %c0_134 = arith.constant 0 : index
    %186 = vector.load %arg5[%c0_131, %c4_132, %c3_133, %c0_134] : memref<1x22x22x4xf32, #tpu.memory_space<vmem>>, vector<1x16x16x4xf32>
    %187 = vector.extract_strided_slice %4 {offsets = [31, 0], sizes = [1, 4], strides = [1, 1]} : vector<49x4xf32> to vector<1x4xf32>
    %188 = vector.shape_cast %187 : vector<1x4xf32> to vector<1x1x1x4xf32>
    %189 = vector.broadcast %188 : vector<1x1x1x4xf32> to vector<1x16x16x4xf32>
    %190 = arith.mulf %186, %189 : vector<1x16x16x4xf32>
    %191 = arith.addf %185, %190 : vector<1x16x16x4xf32>
    %c0_135 = arith.constant 0 : index
    %c4_136 = arith.constant 4 : index
    %c4_137 = arith.constant 4 : index
    %c0_138 = arith.constant 0 : index
    %192 = vector.load %arg5[%c0_135, %c4_136, %c4_137, %c0_138] : memref<1x22x22x4xf32, #tpu.memory_space<vmem>>, vector<1x16x16x4xf32>
    %193 = vector.extract_strided_slice %4 {offsets = [32, 0], sizes = [1, 4], strides = [1, 1]} : vector<49x4xf32> to vector<1x4xf32>
    %194 = vector.shape_cast %193 : vector<1x4xf32> to vector<1x1x1x4xf32>
    %195 = vector.broadcast %194 : vector<1x1x1x4xf32> to vector<1x16x16x4xf32>
    %196 = arith.mulf %192, %195 : vector<1x16x16x4xf32>
    %197 = arith.addf %191, %196 : vector<1x16x16x4xf32>
    %c0_139 = arith.constant 0 : index
    %c4_140 = arith.constant 4 : index
    %c5_141 = arith.constant 5 : index
    %c0_142 = arith.constant 0 : index
    %198 = vector.load %arg5[%c0_139, %c4_140, %c5_141, %c0_142] : memref<1x22x22x4xf32, #tpu.memory_space<vmem>>, vector<1x16x16x4xf32>
    %199 = vector.extract_strided_slice %4 {offsets = [33, 0], sizes = [1, 4], strides = [1, 1]} : vector<49x4xf32> to vector<1x4xf32>
    %200 = vector.shape_cast %199 : vector<1x4xf32> to vector<1x1x1x4xf32>
    %201 = vector.broadcast %200 : vector<1x1x1x4xf32> to vector<1x16x16x4xf32>
    %202 = arith.mulf %198, %201 : vector<1x16x16x4xf32>
    %203 = arith.addf %197, %202 : vector<1x16x16x4xf32>
    %c0_143 = arith.constant 0 : index
    %c4_144 = arith.constant 4 : index
    %c6_145 = arith.constant 6 : index
    %c0_146 = arith.constant 0 : index
    %204 = vector.load %arg5[%c0_143, %c4_144, %c6_145, %c0_146] : memref<1x22x22x4xf32, #tpu.memory_space<vmem>>, vector<1x16x16x4xf32>
    %205 = vector.extract_strided_slice %4 {offsets = [34, 0], sizes = [1, 4], strides = [1, 1]} : vector<49x4xf32> to vector<1x4xf32>
    %206 = vector.shape_cast %205 : vector<1x4xf32> to vector<1x1x1x4xf32>
    %207 = vector.broadcast %206 : vector<1x1x1x4xf32> to vector<1x16x16x4xf32>
    %208 = arith.mulf %204, %207 : vector<1x16x16x4xf32>
    %209 = arith.addf %203, %208 : vector<1x16x16x4xf32>
    %c0_147 = arith.constant 0 : index
    %c5_148 = arith.constant 5 : index
    %c0_149 = arith.constant 0 : index
    %c0_150 = arith.constant 0 : index
    %210 = vector.load %arg5[%c0_147, %c5_148, %c0_149, %c0_150] : memref<1x22x22x4xf32, #tpu.memory_space<vmem>>, vector<1x16x16x4xf32>
    %211 = vector.extract_strided_slice %4 {offsets = [35, 0], sizes = [1, 4], strides = [1, 1]} : vector<49x4xf32> to vector<1x4xf32>
    %212 = vector.shape_cast %211 : vector<1x4xf32> to vector<1x1x1x4xf32>
    %213 = vector.broadcast %212 : vector<1x1x1x4xf32> to vector<1x16x16x4xf32>
    %214 = arith.mulf %210, %213 : vector<1x16x16x4xf32>
    %c0_151 = arith.constant 0 : index
    %c5_152 = arith.constant 5 : index
    %c1_153 = arith.constant 1 : index
    %c0_154 = arith.constant 0 : index
    %215 = vector.load %arg5[%c0_151, %c5_152, %c1_153, %c0_154] : memref<1x22x22x4xf32, #tpu.memory_space<vmem>>, vector<1x16x16x4xf32>
    %216 = vector.extract_strided_slice %4 {offsets = [36, 0], sizes = [1, 4], strides = [1, 1]} : vector<49x4xf32> to vector<1x4xf32>
    %217 = vector.shape_cast %216 : vector<1x4xf32> to vector<1x1x1x4xf32>
    %218 = vector.broadcast %217 : vector<1x1x1x4xf32> to vector<1x16x16x4xf32>
    %219 = arith.mulf %215, %218 : vector<1x16x16x4xf32>
    %220 = arith.addf %214, %219 : vector<1x16x16x4xf32>
    %c0_155 = arith.constant 0 : index
    %c5_156 = arith.constant 5 : index
    %c2_157 = arith.constant 2 : index
    %c0_158 = arith.constant 0 : index
    %221 = vector.load %arg5[%c0_155, %c5_156, %c2_157, %c0_158] : memref<1x22x22x4xf32, #tpu.memory_space<vmem>>, vector<1x16x16x4xf32>
    %222 = vector.extract_strided_slice %4 {offsets = [37, 0], sizes = [1, 4], strides = [1, 1]} : vector<49x4xf32> to vector<1x4xf32>
    %223 = vector.shape_cast %222 : vector<1x4xf32> to vector<1x1x1x4xf32>
    %224 = vector.broadcast %223 : vector<1x1x1x4xf32> to vector<1x16x16x4xf32>
    %225 = arith.mulf %221, %224 : vector<1x16x16x4xf32>
    %226 = arith.addf %220, %225 : vector<1x16x16x4xf32>
    %c0_159 = arith.constant 0 : index
    %c5_160 = arith.constant 5 : index
    %c3_161 = arith.constant 3 : index
    %c0_162 = arith.constant 0 : index
    %227 = vector.load %arg5[%c0_159, %c5_160, %c3_161, %c0_162] : memref<1x22x22x4xf32, #tpu.memory_space<vmem>>, vector<1x16x16x4xf32>
    %228 = vector.extract_strided_slice %4 {offsets = [38, 0], sizes = [1, 4], strides = [1, 1]} : vector<49x4xf32> to vector<1x4xf32>
    %229 = vector.shape_cast %228 : vector<1x4xf32> to vector<1x1x1x4xf32>
    %230 = vector.broadcast %229 : vector<1x1x1x4xf32> to vector<1x16x16x4xf32>
    %231 = arith.mulf %227, %230 : vector<1x16x16x4xf32>
    %232 = arith.addf %226, %231 : vector<1x16x16x4xf32>
    %c0_163 = arith.constant 0 : index
    %c5_164 = arith.constant 5 : index
    %c4_165 = arith.constant 4 : index
    %c0_166 = arith.constant 0 : index
    %233 = vector.load %arg5[%c0_163, %c5_164, %c4_165, %c0_166] : memref<1x22x22x4xf32, #tpu.memory_space<vmem>>, vector<1x16x16x4xf32>
    %234 = vector.extract_strided_slice %4 {offsets = [39, 0], sizes = [1, 4], strides = [1, 1]} : vector<49x4xf32> to vector<1x4xf32>
    %235 = vector.shape_cast %234 : vector<1x4xf32> to vector<1x1x1x4xf32>
    %236 = vector.broadcast %235 : vector<1x1x1x4xf32> to vector<1x16x16x4xf32>
    %237 = arith.mulf %233, %236 : vector<1x16x16x4xf32>
    %238 = arith.addf %232, %237 : vector<1x16x16x4xf32>
    %c0_167 = arith.constant 0 : index
    %c5_168 = arith.constant 5 : index
    %c5_169 = arith.constant 5 : index
    %c0_170 = arith.constant 0 : index
    %239 = vector.load %arg5[%c0_167, %c5_168, %c5_169, %c0_170] : memref<1x22x22x4xf32, #tpu.memory_space<vmem>>, vector<1x16x16x4xf32>
    %240 = vector.extract_strided_slice %4 {offsets = [40, 0], sizes = [1, 4], strides = [1, 1]} : vector<49x4xf32> to vector<1x4xf32>
    %241 = vector.shape_cast %240 : vector<1x4xf32> to vector<1x1x1x4xf32>
    %242 = vector.broadcast %241 : vector<1x1x1x4xf32> to vector<1x16x16x4xf32>
    %243 = arith.mulf %239, %242 : vector<1x16x16x4xf32>
    %244 = arith.addf %238, %243 : vector<1x16x16x4xf32>
    %c0_171 = arith.constant 0 : index
    %c5_172 = arith.constant 5 : index
    %c6_173 = arith.constant 6 : index
    %c0_174 = arith.constant 0 : index
    %245 = vector.load %arg5[%c0_171, %c5_172, %c6_173, %c0_174] : memref<1x22x22x4xf32, #tpu.memory_space<vmem>>, vector<1x16x16x4xf32>
    %246 = vector.extract_strided_slice %4 {offsets = [41, 0], sizes = [1, 4], strides = [1, 1]} : vector<49x4xf32> to vector<1x4xf32>
    %247 = vector.shape_cast %246 : vector<1x4xf32> to vector<1x1x1x4xf32>
    %248 = vector.broadcast %247 : vector<1x1x1x4xf32> to vector<1x16x16x4xf32>
    %249 = arith.mulf %245, %248 : vector<1x16x16x4xf32>
    %250 = arith.addf %244, %249 : vector<1x16x16x4xf32>
    %c0_175 = arith.constant 0 : index
    %c6_176 = arith.constant 6 : index
    %c0_177 = arith.constant 0 : index
    %c0_178 = arith.constant 0 : index
    %251 = vector.load %arg5[%c0_175, %c6_176, %c0_177, %c0_178] : memref<1x22x22x4xf32, #tpu.memory_space<vmem>>, vector<1x16x16x4xf32>
    %252 = vector.extract_strided_slice %4 {offsets = [42, 0], sizes = [1, 4], strides = [1, 1]} : vector<49x4xf32> to vector<1x4xf32>
    %253 = vector.shape_cast %252 : vector<1x4xf32> to vector<1x1x1x4xf32>
    %254 = vector.broadcast %253 : vector<1x1x1x4xf32> to vector<1x16x16x4xf32>
    %255 = arith.mulf %251, %254 : vector<1x16x16x4xf32>
    %c0_179 = arith.constant 0 : index
    %c6_180 = arith.constant 6 : index
    %c1_181 = arith.constant 1 : index
    %c0_182 = arith.constant 0 : index
    %256 = vector.load %arg5[%c0_179, %c6_180, %c1_181, %c0_182] : memref<1x22x22x4xf32, #tpu.memory_space<vmem>>, vector<1x16x16x4xf32>
    %257 = vector.extract_strided_slice %4 {offsets = [43, 0], sizes = [1, 4], strides = [1, 1]} : vector<49x4xf32> to vector<1x4xf32>
    %258 = vector.shape_cast %257 : vector<1x4xf32> to vector<1x1x1x4xf32>
    %259 = vector.broadcast %258 : vector<1x1x1x4xf32> to vector<1x16x16x4xf32>
    %260 = arith.mulf %256, %259 : vector<1x16x16x4xf32>
    %261 = arith.addf %255, %260 : vector<1x16x16x4xf32>
    %c0_183 = arith.constant 0 : index
    %c6_184 = arith.constant 6 : index
    %c2_185 = arith.constant 2 : index
    %c0_186 = arith.constant 0 : index
    %262 = vector.load %arg5[%c0_183, %c6_184, %c2_185, %c0_186] : memref<1x22x22x4xf32, #tpu.memory_space<vmem>>, vector<1x16x16x4xf32>
    %263 = vector.extract_strided_slice %4 {offsets = [44, 0], sizes = [1, 4], strides = [1, 1]} : vector<49x4xf32> to vector<1x4xf32>
    %264 = vector.shape_cast %263 : vector<1x4xf32> to vector<1x1x1x4xf32>
    %265 = vector.broadcast %264 : vector<1x1x1x4xf32> to vector<1x16x16x4xf32>
    %266 = arith.mulf %262, %265 : vector<1x16x16x4xf32>
    %267 = arith.addf %261, %266 : vector<1x16x16x4xf32>
    %c0_187 = arith.constant 0 : index
    %c6_188 = arith.constant 6 : index
    %c3_189 = arith.constant 3 : index
    %c0_190 = arith.constant 0 : index
    %268 = vector.load %arg5[%c0_187, %c6_188, %c3_189, %c0_190] : memref<1x22x22x4xf32, #tpu.memory_space<vmem>>, vector<1x16x16x4xf32>
    %269 = vector.extract_strided_slice %4 {offsets = [45, 0], sizes = [1, 4], strides = [1, 1]} : vector<49x4xf32> to vector<1x4xf32>
    %270 = vector.shape_cast %269 : vector<1x4xf32> to vector<1x1x1x4xf32>
    %271 = vector.broadcast %270 : vector<1x1x1x4xf32> to vector<1x16x16x4xf32>
    %272 = arith.mulf %268, %271 : vector<1x16x16x4xf32>
    %273 = arith.addf %267, %272 : vector<1x16x16x4xf32>
    %c0_191 = arith.constant 0 : index
    %c6_192 = arith.constant 6 : index
    %c4_193 = arith.constant 4 : index
    %c0_194 = arith.constant 0 : index
    %274 = vector.load %arg5[%c0_191, %c6_192, %c4_193, %c0_194] : memref<1x22x22x4xf32, #tpu.memory_space<vmem>>, vector<1x16x16x4xf32>
    %275 = vector.extract_strided_slice %4 {offsets = [46, 0], sizes = [1, 4], strides = [1, 1]} : vector<49x4xf32> to vector<1x4xf32>
    %276 = vector.shape_cast %275 : vector<1x4xf32> to vector<1x1x1x4xf32>
    %277 = vector.broadcast %276 : vector<1x1x1x4xf32> to vector<1x16x16x4xf32>
    %278 = arith.mulf %274, %277 : vector<1x16x16x4xf32>
    %279 = arith.addf %273, %278 : vector<1x16x16x4xf32>
    %c0_195 = arith.constant 0 : index
    %c6_196 = arith.constant 6 : index
    %c5_197 = arith.constant 5 : index
    %c0_198 = arith.constant 0 : index
    %280 = vector.load %arg5[%c0_195, %c6_196, %c5_197, %c0_198] : memref<1x22x22x4xf32, #tpu.memory_space<vmem>>, vector<1x16x16x4xf32>
    %281 = vector.extract_strided_slice %4 {offsets = [47, 0], sizes = [1, 4], strides = [1, 1]} : vector<49x4xf32> to vector<1x4xf32>
    %282 = vector.shape_cast %281 : vector<1x4xf32> to vector<1x1x1x4xf32>
    %283 = vector.broadcast %282 : vector<1x1x1x4xf32> to vector<1x16x16x4xf32>
    %284 = arith.mulf %280, %283 : vector<1x16x16x4xf32>
    %285 = arith.addf %279, %284 : vector<1x16x16x4xf32>
    %c0_199 = arith.constant 0 : index
    %c6_200 = arith.constant 6 : index
    %c6_201 = arith.constant 6 : index
    %c0_202 = arith.constant 0 : index
    %286 = vector.load %arg5[%c0_199, %c6_200, %c6_201, %c0_202] : memref<1x22x22x4xf32, #tpu.memory_space<vmem>>, vector<1x16x16x4xf32>
    %287 = vector.extract_strided_slice %4 {offsets = [48, 0], sizes = [1, 4], strides = [1, 1]} : vector<49x4xf32> to vector<1x4xf32>
    %288 = vector.shape_cast %287 : vector<1x4xf32> to vector<1x1x1x4xf32>
    %289 = vector.broadcast %288 : vector<1x1x1x4xf32> to vector<1x16x16x4xf32>
    %290 = arith.mulf %286, %289 : vector<1x16x16x4xf32>
    %291 = arith.addf %285, %290 : vector<1x16x16x4xf32>
    %292 = arith.addf %45, %86 : vector<1x16x16x4xf32>
    %293 = arith.addf %127, %168 : vector<1x16x16x4xf32>
    %294 = arith.addf %209, %250 : vector<1x16x16x4xf32>
    %295 = arith.addf %292, %293 : vector<1x16x16x4xf32>
    %296 = arith.addf %294, %291 : vector<1x16x16x4xf32>
    %297 = arith.addf %295, %296 : vector<1x16x16x4xf32>
    %c0_203 = arith.constant 0 : index
    %c0_204 = arith.constant 0 : index
    %298 = vector.load %arg3[%c0_203, %c0_204] : memref<1x4xf32, #tpu.memory_space<vmem>>, vector<1x4xf32>
    %299 = vector.shape_cast %298 : vector<1x4xf32> to vector<1x1x1x4xf32>
    %300 = vector.broadcast %299 : vector<1x1x1x4xf32> to vector<1x16x16x4xf32>
    %301 = arith.addf %297, %300 : vector<1x16x16x4xf32>
    %c0_205 = arith.constant 0 : index
    %c0_206 = arith.constant 0 : index
    %c0_207 = arith.constant 0 : index
    %c0_208 = arith.constant 0 : index
    %302 = vector.load %arg4[%c0_205, %c0_206, %c0_207, %c0_208] : memref<1x16x16x4xf32, #tpu.memory_space<vmem>>, vector<1x16x16x4xf32>
    tpu.vector_store %arg4[%c0_205, %c0_206, %c0_207, %c0_208], %301 {strides = array<i32>} : memref<1x16x16x4xf32, #tpu.memory_space<vmem>>, vector<1x16x16x4xf32>,
    return
  }
  func.func @transform_0(%arg0: i32) -> (i32, i32, i32, i32) {
    %c0_i32 = arith.constant 0 : i32
    %c0_i32_0 = arith.constant 0 : i32
    %c0_i32_1 = arith.constant 0 : i32
    %c0_i32_2 = arith.constant 0 : i32
    return %arg0, %c0_i32, %c0_i32_0, %c0_i32_1 : i32, i32, i32, i32
  }
  func.func @transform_1(%arg0: i32) -> (i32, i32) {
    %c0_i32 = arith.constant 0 : i32
    %c0_i32_0 = arith.constant 0 : i32
    %c0_i32_1 = arith.constant 0 : i32
    return %c0_i32, %c0_i32_0 : i32, i32
  }
  func.func @transform_2(%arg0: i32) -> (i32, i32) {
    %c0_i32 = arith.constant 0 : i32
    %c0_i32_0 = arith.constant 0 : i32
    %c0_i32_1 = arith.constant 0 : i32
    return %c0_i32, %c0_i32_0 : i32, i32
  }
  func.func @transform_3(%arg0: i32) -> (i32, i32, i32, i32) {
    %c0_i32 = arith.constant 0 : i32
    %c0_i32_0 = arith.constant 0 : i32
    %c0_i32_1 = arith.constant 0 : i32
    %c0_i32_2 = arith.constant 0 : i32
    return %arg0, %c0_i32, %c0_i32_0, %c0_i32_1 : i32, i32, i32, i32
  }
}

</mosaic_0001>

<bundles_post_ra>
// kernel: conv_block_forward.1
= control target key start
LH: loop header
LB: loop body
LE: loop exit
PB: predicated region body
PF: predicated region fallthrough
CT: control target
= control target key end

     0   :  { %s5375_s12 = smov 0   ;;  %s10257_s0 = inlined_call_operand.vmem [shape: f32[2,16,16,4], index: 0, kind: input, shape index: {}]   ;;  %s10258_s1 = inlined_call_operand.vmem [shape: f32[49,4], index: 1, kind: input, shape index: {}]   ;;  %s10259_s2 = inlined_call_operand.vmem [shape: f32[1,4], index: 2, kind: input, shape index: {}]   ;;  %s10260_s3 = inlined_call_operand.vmem [shape: f32[2,16,16,4], index: 3, kind: output, shape index: {}]  }
   0x1 LB: > { %s5310_s13 = sadd.s32 4294967295, %s5352_s12   ;;  %p5314_p0 = scmp.ge.s32.totalorder %s5352_s12, 1  ;;  %s5352_s12 = sphi %s5375_s12, %s13_s12  }
   0x2   : > { %p137_p1 = scmp.lt.s32.totalorder %s5352_s12, 3 }
   0x4   : > { %p138_p2 = pnand %p5314_p0, %p137_p1 }
   0x6   : > { %141 = sbr.rel (%p138_p2) target bundleno = 1001 (0x3e9), region = 32 }
   0xb   : > { %vm171_vm0 = vcmask 31744   ;;  %vm174_vm1 = vcmask 29696   ;;  %p5385_p3 = scmp.lt.s32.totalorder %s5310_s13, 1  ;;  %v343_v0 = vlaneseq  ;;  %v5354_v1 = vmov 0.0   ;;  %v304_v3 = vld [vmem:[%s10258_s1] sm:$0xff]  ;;  %v305_v6 = vld [vmem:[%s10258_s1 + $0x8] sm:$0xff] }
   0xc   : > { %172 = vst.msk [vmem:[#allocation2] sm:$0xff] %vm171_vm0, %v5354_v1  ;;  %173 = vst.msk [vmem:[#allocation2 + $0x8] sm:$0xff] %vm171_vm0, %v5354_v1  ;;  %v5558_v13 = vld [vmem:[%s10258_s1 + $0x10] sm:$0xff]  ;;  %v5608_v33 = vld [vmem:[%s10258_s1 + $0x18] sm:$0xff] }
   0xd   : > { %176 = vst.msk [vmem:[#allocation2 + $0x18] sm:$0xff] %vm171_vm0, %v5354_v1  ;;  %177 = vst.msk [vmem:[#allocation2 + $0x20] sm:$0xff] %vm171_vm0, %v5354_v1  ;;  %s13135_s13 = smov (!%p5385_p3, %s5310_s13), 1  ;;  %v344_v2 = vshrl.u32 %v343_v0, 7  ;;  %v308_v48 = vld [vmem:[%s10258_s1 + $0x20] sm:$0xff]  ;;  %v5695_v63 = vld [vmem:[%s10258_s1 + $0x28] sm:$0xff] }
   0xe   : > { %179 = vst.msk [vmem:[#allocation2 + $0x30] sm:$0xff] %vm171_vm0, %v5354_v1  ;;  %180 = vst.msk [vmem:[#allocation2 + $0x38] sm:$0xff] %vm171_vm0, %v5354_v1  ;;  %s5323_s15 = sshll.u32 %s13135_s13, 8 }
   0xf   : > { %182 = vst.msk [vmem:[#allocation2 + $0x48] sm:$0xff] %vm171_vm0, %v5354_v1  ;;  %183 = vst.msk [vmem:[#allocation2 + $0x50] sm:$0xff] %vm171_vm0, %v5354_v1  ;;  %v5532_v4 = vsub.s32 0, %v344_v2  ;;  %v5534_v5 = vsub.s32 1, %v344_v2  ;;  %s5541_s20 = scalar_lea.vmem %s10257_s0, %s5323_s15  ;;  %v5546_v7 = vsub.s32 2, %v344_v2  ;;  %v5548_v8 = vsub.s32 3, %v344_v2  ;;  %s6091_s10 = scalar_lea.vmem %s10260_s3, %s5323_s15 }
  0x10   : > { %185 = vst.msk [vmem:[#allocation2 + $0x60] sm:$0xff] %vm171_vm0, %v5354_v1  ;;  %186 = vst.msk [vmem:[#allocation2 + $0x68] sm:$0xff] %vm171_vm0, %v5354_v1  ;;  %v5550_v9 = vsub.s32 7, %v344_v2  ;;  %v239_v10 = vld [vmem:[%s5541_s20] sm:$0xff]  ;;  %v240_v11 = vld [vmem:[%s5541_s20 + $0x8] sm:$0xff]  ;;  %v5560_v14 = vsub.s32 4, %v344_v2 }
  0x11   : > { %188 = vst.msk [vmem:[#allocation2 + $0x78] sm:$0xff] %vm171_vm0, %v5354_v1  ;;  %189 = vst.msk [vmem:[#allocation2 + $0x80] sm:$0xff] %vm171_vm0, %v5354_v1  ;;  %v241_v12 = vld [vmem:[%s5541_s20 + $0x10] sm:$0xff]  ;;  %v5562_v15 = vsub.s32 5, %v344_v2  ;;  %v5564_v16 = vsub.s32 6, %v344_v2  ;;  %v242_v17 = vld [vmem:[%s5541_s20 + $0x18] sm:$0xff]  ;;  %v5573_v20 = vrot.slane %v304_v3, %v5532_v4  ;;  %v5576_v21 = vrot.slane %v304_v3, %v5534_v5 }
  0x12   : > { %191 = vst.msk [vmem:[#allocation2 + $0x90] sm:$0xff] %vm171_vm0, %v5354_v1  ;;  %192 = vst.msk [vmem:[#allocation2 + $0x98] sm:$0xff] %vm171_vm0, %v5354_v1  ;;  %v243_v18 = vld [vmem:[%s5541_s20 + $0x20] sm:$0xff]  ;;  %v244_v19 = vld [vmem:[%s5541_s20 + $0x28] sm:$0xff]  ;;  %v5579_v22 = vrot.slane %v304_v3, %v5546_v7  ;;  %v5588_v26 = vrot.slane %v304_v3, %v5548_v8  ;;  %v5591_v27 = vrot.slane %v304_v3, %v5560_v14 }
  0x13   : > { %194 = vst.msk [vmem:[#allocation2 + $0xa8] sm:$0xff] %vm171_vm0, %v5354_v1  ;;  %195 = vst.msk [vmem:[#allocation2 + $0xb0] sm:$0xff] %vm171_vm0, %v5354_v1  ;;  %v245_v23 = vld [vmem:[%s5541_s20 + $0x30] sm:$0xff]  ;;  %v246_v24 = vld [vmem:[%s5541_s20 + $0x38] sm:$0xff]  ;;  %v5594_v28 = vrot.slane %v304_v3, %v5562_v15  ;;  %v5597_v29 = vrot.slane %v304_v3, %v5564_v16  ;;  %v5611_v34 = vrot.slane %v304_v3, %v5550_v9 }
  0x14   : > { %197 = vst.msk [vmem:[#allocation2 + $0xc0] sm:$0xff] %vm171_vm0, %v5354_v1  ;;  %198 = vst.msk [vmem:[#allocation2 + $0xc8] sm:$0xff] %vm171_vm0, %v5354_v1  ;;  %v247_v25 = vld [vmem:[%s5541_s20 + $0x40] sm:$0xff]  ;;  %v248_v30 = vld [vmem:[%s5541_s20 + $0x48] sm:$0xff]  ;;  %v5614_v35 = vrot.slane %v305_v6, %v5532_v4  ;;  %v5617_v36 = vrot.slane %v305_v6, %v5534_v5  ;;  %v5620_v37 = vrot.slane %v305_v6, %v5546_v7 }
  0x15   : > { %200 = vst.msk [vmem:[#allocation2 + $0xd8] sm:$0xff] %vm171_vm0, %v5354_v1  ;;  %201 = vst.msk [vmem:[#allocation2 + $0xe0] sm:$0xff] %vm171_vm0, %v5354_v1  ;;  %v249_v31 = vld [vmem:[%s5541_s20 + $0x50] sm:$0xff]  ;;  %v250_v32 = vld [vmem:[%s5541_s20 + $0x58] sm:$0xff]  ;;  %v5629_v41 = vrot.slane %v305_v6, %v5548_v8  ;;  %v5632_v42 = vrot.slane %v305_v6, %v5560_v14  ;;  %v5635_v43 = vrot.slane %v305_v6, %v5562_v15 }
  0x16   : > { %203 = vst.msk [vmem:[#allocation2 + $0xf0] sm:$0xff] %vm171_vm0, %v5354_v1  ;;  %204 = vst.msk [vmem:[#allocation2 + $0xf8] sm:$0xff] %vm171_vm0, %v5354_v1  ;;  %v251_v38 = vld [vmem:[%s5541_s20 + $0x60] sm:$0xff]  ;;  %v252_v39 = vld [vmem:[%s5541_s20 + $0x68] sm:$0xff]  ;;  %v5638_v44 = vrot.slane %v305_v6, %v5564_v16  ;;  %v5650_v49 = vrot.slane %v305_v6, %v5550_v9  ;;  %v5654_v50 = vrot.slane %v5558_v13, %v5532_v4 }
  0x17   : > { %206 = vst.msk [vmem:[#allocation2 + $0x108] sm:$0xff] %vm171_vm0, %v5354_v1  ;;  %207 = vst.msk [vmem:[#allocation2 + $0x110] sm:$0xff] %vm171_vm0, %v5354_v1  ;;  %v253_v40 = vld [vmem:[%s5541_s20 + $0x70] sm:$0xff]  ;;  %v254_v45 = vld [vmem:[%s5541_s20 + $0x78] sm:$0xff]  ;;  %v5658_v51 = vrot.slane %v5558_v13, %v5534_v5  ;;  %v5662_v52 = vrot.slane %v5558_v13, %v5546_v7  ;;  %v5672_v56 = vrot.slane %v5558_v13, %v5548_v8 }
  0x18   : > { %209 = vst.msk [vmem:[#allocation2 + $0x120] sm:$0xff] %vm171_vm0, %v5354_v1  ;;  %210 = vst.msk [vmem:[#allocation2 + $0x128] sm:$0xff] %vm171_vm0, %v5354_v1  ;;  %v255_v46 = vld [vmem:[%s5541_s20 + $0x80] sm:$0xff]  ;;  %v256_v47 = vld [vmem:[%s5541_s20 + $0x88] sm:$0xff]  ;;  %v5676_v57 = vrot.slane %v5558_v13, %v5560_v14  ;;  %v5680_v58 = vrot.slane %v5558_v13, %v5562_v15  ;;  %v5684_v59 = vrot.slane %v5558_v13, %v5564_v16 }
  0x19   : > { %212 = vst.msk [vmem:[#allocation2 + $0x138] sm:$0xff] %vm171_vm0, %v5354_v1  ;;  %213 = vst.msk [vmem:[#allocation2 + $0x140] sm:$0xff] %vm171_vm0, %v5354_v1  ;;  %v257_v53 = vld [vmem:[%s5541_s20 + $0x90] sm:$0xff]  ;;  %v258_v54 = vld [vmem:[%s5541_s20 + $0x98] sm:$0xff]  ;;  %v5699_v0 = vrot.slane %v5558_v13, %v5550_v9  ;;  %v5707_v2 = vrot.slane %v5608_v33, %v5534_v5  ;;  %v5711_v3 = vrot.slane %v5608_v33, %v5546_v7 }
  0x1a   : > { %215 = vst.msk [vmem:[#allocation2 + $0x150] sm:$0xff] %vm171_vm0, %v5354_v1  ;;  %216 = vst.msk [vmem:[#allocation2 + $0x158] sm:$0xff] %vm171_vm0, %v5354_v1  ;;  %v259_v55 = vld [vmem:[%s5541_s20 + $0xa0] sm:$0xff]  ;;  %v260_v60 = vld [vmem:[%s5541_s20 + $0xa8] sm:$0xff]  ;;  %v5725_v13 = vrot.slane %v5608_v33, %v5560_v14 }
  0x1b   : > { %218 = vst.msk [vmem:[#allocation2 + $0x168] sm:$0xff] %vm171_vm0, %v5354_v1  ;;  %219 = vst.msk [vmem:[#allocation2 + $0x170] sm:$0xff] %vm171_vm0, %v5354_v1  ;;  %v261_v61 = vld [vmem:[%s5541_s20 + $0xb0] sm:$0xff]  ;;  %v262_v62 = vld [vmem:[%s5541_s20 + $0xb8] sm:$0xff] }
  0x1c   : > { %221 = vst.msk [vmem:[#allocation2 + $0x180] sm:$0xff] %vm171_vm0, %v5354_v1  ;;  %222 = vst.msk [vmem:[#allocation2 + $0x188] sm:$0xff] %vm171_vm0, %v5354_v1  ;;  %v263_v6 = vld [vmem:[%s5541_s20 + $0xc0] sm:$0xff] }
  0x1d   : > { %224 = vst.msk [vmem:[#allocation2 + $0x198] sm:$0xff] %vm171_vm0, %v5354_v1  ;;  %225 = vst.msk [vmem:[#allocation2 + $0x1a0] sm:$0xff] %vm171_vm0, %v5354_v1 }
  0x1e   : > { %227 = vst.msk [vmem:[#allocation2 + $0x1b0] sm:$0xff] %vm171_vm0, %v5354_v1  ;;  %228 = vst.msk [vmem:[#allocation2 + $0x1b8] sm:$0xff] %vm171_vm0, %v5354_v1 }
  0x1f   : > { %230 = vst.msk [vmem:[#allocation2 + $0x1c8] sm:$0xff] %vm171_vm0, %v5354_v1  ;;  %231 = vst.msk [vmem:[#allocation2 + $0x1d0] sm:$0xff] %vm171_vm0, %v5354_v1 }
  0x20   : > { %233 = vst.msk [vmem:[#allocation2 + $0x1e0] sm:$0xff] %vm171_vm0, %v5354_v1  ;;  %234 = vst.msk [vmem:[#allocation2 + $0x1e8] sm:$0xff] %vm171_vm0, %v5354_v1 }
  0x21   : > { %236 = vst.msk [vmem:[#allocation2 + $0x1f8] sm:$0xff] %vm171_vm0, %v5354_v1  ;;  %237 = vst.msk [vmem:[#allocation2 + $0x200] sm:$0xff] %vm171_vm0, %v5354_v1 }
  0x22   : > { %175 = vst.msk [vmem:[#allocation2 + $0x10] sm:$0x3f] %vm174_vm1, %v5354_v1  ;;  %178 = vst.msk [vmem:[#allocation2 + $0x28] sm:$0x3f] %vm174_vm1, %v5354_v1 }
  0x23   : > { %181 = vst.msk [vmem:[#allocation2 + $0x40] sm:$0x3f] %vm174_vm1, %v5354_v1  ;;  %184 = vst.msk [vmem:[#allocation2 + $0x58] sm:$0x3f] %vm174_vm1, %v5354_v1 }
  0x24   : > { %187 = vst.msk [vmem:[#allocation2 + $0x70] sm:$0x3f] %vm174_vm1, %v5354_v1  ;;  %190 = vst.msk [vmem:[#allocation2 + $0x88] sm:$0x3f] %vm174_vm1, %v5354_v1 }
  0x25   : > { %193 = vst.msk [vmem:[#allocation2 + $0xa0] sm:$0x3f] %vm174_vm1, %v5354_v1  ;;  %196 = vst.msk [vmem:[#allocation2 + $0xb8] sm:$0x3f] %vm174_vm1, %v5354_v1 }
  0x26   : > { %199 = vst.msk [vmem:[#allocation2 + $0xd0] sm:$0x3f] %vm174_vm1, %v5354_v1  ;;  %202 = vst.msk [vmem:[#allocation2 + $0xe8] sm:$0x3f] %vm174_vm1, %v5354_v1 }
  0x27   : > { %205 = vst.msk [vmem:[#allocation2 + $0x100] sm:$0x3f] %vm174_vm1, %v5354_v1  ;;  %208 = vst.msk [vmem:[#allocation2 + $0x118] sm:$0x3f] %vm174_vm1, %v5354_v1 }
  0x28   : > { %211 = vst.msk [vmem:[#allocation2 + $0x130] sm:$0x3f] %vm174_vm1, %v5354_v1  ;;  %214 = vst.msk [vmem:[#allocation2 + $0x148] sm:$0x3f] %vm174_vm1, %v5354_v1 }
  0x29   : > { %217 = vst.msk [vmem:[#allocation2 + $0x160] sm:$0x3f] %vm174_vm1, %v5354_v1  ;;  %220 = vst.msk [vmem:[#allocation2 + $0x178] sm:$0x3f] %vm174_vm1, %v5354_v1 }
  0x2a   : > { %223 = vst.msk [vmem:[#allocation2 + $0x190] sm:$0x3f] %vm174_vm1, %v5354_v1  ;;  %226 = vst.msk [vmem:[#allocation2 + $0x1a8] sm:$0x3f] %vm174_vm1, %v5354_v1 }
  0x2b   : > { %229 = vst.msk [vmem:[#allocation2 + $0x1c0] sm:$0x3f] %vm174_vm1, %v5354_v1  ;;  %232 = vst.msk [vmem:[#allocation2 + $0x1d8] sm:$0x3f] %vm174_vm1, %v5354_v1 }
  0x2c   : > { %235 = vst.msk [vmem:[#allocation2 + $0x1f0] sm:$0x3f] %vm174_vm1, %v5354_v1  ;;  %238 = vst.msk [vmem:[#allocation2 + $0x208] sm:$0x3f] %vm174_vm1, %v5354_v1  ;;  %v5703_v1 = vrot.slane %v5608_v33, %v5532_v4 }
  0x2d   : > { %272 = vst.msk [vmem:[#allocation2 + $0x4b] sm:$0xff] %vm171_vm0, %v239_v10  ;;  %273 = vst.msk [vmem:[#allocation2 + $0x53] sm:$0xff] %vm171_vm0, %v240_v11  ;;  %v264_v10 = vld [vmem:[%s5541_s20 + $0xc8] sm:$0xff]  ;;  %v265_v11 = vld [vmem:[%s5541_s20 + $0xd0] sm:$0xff] }
  0x2e   : > { %274 = vst.msk [vmem:[#allocation2 + $0x63] sm:$0xff] %vm171_vm0, %v241_v12  ;;  %11193 = vst [vmem:[#allocation3_spill] sm:$0xff] %v5573_v20  ;;  %v5721_v12 = vrot.slane %v5608_v33, %v5548_v8 }
  0x2f   : > { %11194 = vst [vmem:[#allocation4_spill] sm:$0xff] %v5576_v21  ;;  %11195 = vst [vmem:[#allocation5_spill] sm:$0xff] %v5579_v22 }
  0x30   : > { %275 = vst.msk [vmem:[#allocation2 + $0x6b] sm:$0xff] %vm171_vm0, %v242_v17  ;;  %276 = vst.msk [vmem:[#allocation2 + $0x7b] sm:$0xff] %vm171_vm0, %v243_v18  ;;  %v5729_v17 = vrot.slane %v5608_v33, %v5562_v15  ;;  %v5733_v18 = vrot.slane %v5608_v33, %v5564_v16 }
  0x31   : > { %277 = vst.msk [vmem:[#allocation2 + $0x83] sm:$0xff] %vm171_vm0, %v244_v19  ;;  %11196 = vst [vmem:[#allocation6_spill] sm:$0xff] %v5588_v26  ;;  %v266_v19 = vld [vmem:[%s5541_s20 + $0xd8] sm:$0xff] }
  0x32   : > { %11197 = vst [vmem:[#allocation7_spill] sm:$0xff] %v5591_v27  ;;  %11198 = vst [vmem:[#allocation8_spill] sm:$0xff] %v5594_v28 }
  0x33   : > { %11199 = vst [vmem:[#allocation9_spill] sm:$0xff] %v5597_v29  ;;  %278 = vst.msk [vmem:[#allocation2 + $0x93] sm:$0xff] %vm171_vm0, %v245_v23  ;;  %v267_v23 = vld [vmem:[%s5541_s20 + $0xe0] sm:$0xff] }
  0x34   : > { %279 = vst.msk [vmem:[#allocation2 + $0x9b] sm:$0xff] %vm171_vm0, %v246_v24  ;;  %280 = vst.msk [vmem:[#allocation2 + $0xab] sm:$0xff] %vm171_vm0, %v247_v25  ;;  %v268_v24 = vld [vmem:[%s5541_s20 + $0xe8] sm:$0xff]  ;;  %v5743_v25 = vrot.slane %v5608_v33, %v5550_v9  ;;  %v5760_v33 = vrot.slane %v308_v48, %v5548_v8 }
  0x35   : > { %11200 = vst [vmem:[#allocation10_spill] sm:$0xff] %v5611_v34  ;;  %11201 = vst [vmem:[#allocation11_spill] sm:$0xff] %v5614_v35 }
  0x36   : > { %11202 = vst [vmem:[#allocation12_spill] sm:$0xff] %v5617_v36  ;;  %281 = vst.msk [vmem:[#allocation2 + $0xb3] sm:$0xff] %vm171_vm0, %v248_v30  ;;  %v5746_v30 = vrot.slane %v308_v48, %v5532_v4 }
  0x37   : > { %282 = vst.msk [vmem:[#allocation2 + $0xc3] sm:$0xff] %vm171_vm0, %v249_v31  ;;  %283 = vst.msk [vmem:[#allocation2 + $0xcb] sm:$0xff] %vm171_vm0, %v250_v32  ;;  %v5749_v31 = vrot.slane %v308_v48, %v5534_v5  ;;  %v5752_v32 = vrot.slane %v308_v48, %v5546_v7 }
  0x38   : > { %11203 = vst [vmem:[#allocation13_spill] sm:$0xff] %v5632_v42  ;;  %11204 = vst [vmem:[#allocation14_spill] sm:$0xff] %v5635_v43 }
  0x39   : > { %284 = vst.msk [vmem:[#allocation2 + $0xdb] sm:$0xff] %vm171_vm0, %v251_v38  ;;  %285 = vst.msk [vmem:[#allocation2 + $0xe3] sm:$0xff] %vm171_vm0, %v252_v39  ;;  %v269_v38 = vld [vmem:[%s5541_s20 + $0xf0] sm:$0xff]  ;;  %v270_v39 = vld [vmem:[%s5541_s20 + $0xf8] sm:$0xff] }
  0x3a   : > { %286 = vst.msk [vmem:[#allocation2 + $0xf3] sm:$0xff] %vm171_vm0, %v253_v40  ;;  %11205 = vst [vmem:[#allocation15_spill] sm:$0xff] %v5654_v50  ;;  %v311_v40 = vld [vmem:[#allocation2] sm:$0xff] }
  0x3b   : > { %11206 = vst [vmem:[#allocation16_spill] sm:$0xff] %v5662_v52  ;;  %287 = vst.msk [vmem:[#allocation2 + $0xfb] sm:$0xff] %vm171_vm0, %v254_v45  ;;  %v5763_v45 = vrot.slane %v308_v48, %v5560_v14 }
  0x3c   : > { %288 = vst.msk [vmem:[#allocation2 + $0x10b] sm:$0xff] %vm171_vm0, %v255_v46  ;;  %289 = vst.msk [vmem:[#allocation2 + $0x113] sm:$0xff] %vm171_vm0, %v256_v47  ;;  %v5766_v46 = vrot.slane %v308_v48, %v5562_v15  ;;  %v5769_v47 = vrot.slane %v308_v48, %v5564_v16 }
  0x3d   : > { %11207 = vst [vmem:[#allocation17_spill] sm:$0xff] %v5672_v56  ;;  %11208 = vst [vmem:[#allocation18_spill] sm:$0xff] %v5676_v57 }
  0x3e   : > { %11209 = vst [vmem:[#allocation19_spill] sm:$0xff] %v5680_v58  ;;  %11210 = vst [vmem:[#allocation20_spill] sm:$0xff] %v5684_v59 }
  0x3f   : > { %290 = vst.msk [vmem:[#allocation2 + $0x123] sm:$0xff] %vm171_vm0, %v257_v53  ;;  %291 = vst.msk [vmem:[#allocation2 + $0x12b] sm:$0xff] %vm171_vm0, %v258_v54  ;;  %v347_v53 = vmul.f32 %v5573_v20, %v311_v40  ;;  %v379_v54 = vld [vmem:[#allocation2 + $0x1] sm:$0xff] }
  0x40   : > { %292 = vst.msk [vmem:[#allocation2 + $0x13b] sm:$0xff] %vm171_vm0, %v259_v55  ;;  %11211 = vst [vmem:[#allocation21_spill] sm:$0xff] %v5699_v0  ;;  %v479_v55 = vld [vmem:[#allocation2 + $0x2] sm:$0xff]  ;;  %v5798_v40 = vld [vmem:[#allocation2 + $0x1a] sm:$0xff] }
  0x41   : > { %11212 = vst [vmem:[#allocation22_spill] sm:$0xff] %v5703_v1  ;;  %11213 = vst [vmem:[#allocation23_spill] sm:$0xff] %v5707_v2 }
  0x42   : > { %11214 = vst [vmem:[#allocation24_spill] sm:$0xff] %v5711_v3  ;;  %293 = vst.msk [vmem:[#allocation2 + $0x143] sm:$0xff] %vm171_vm0, %v260_v60  ;;  %v579_v60 = vld [vmem:[#allocation2 + $0x3] sm:$0xff] }
  0x43   : > { %294 = vst.msk [vmem:[#allocation2 + $0x153] sm:$0xff] %vm171_vm0, %v261_v61  ;;  %295 = vst.msk [vmem:[#allocation2 + $0x15b] sm:$0xff] %vm171_vm0, %v262_v62  ;;  %v5775_v61 = vrot.slane %v308_v48, %v5550_v9  ;;  %v5779_v62 = vrot.slane %v5695_v63, %v5532_v4  ;;  %v5793_v48 = vrot.slane %v5695_v63, %v5548_v8 }
  0x44   : > { %11215 = vst [vmem:[#allocation25_spill] sm:$0xff] %v5721_v12  ;;  %11216 = vst [vmem:[#allocation26_spill] sm:$0xff] %v5725_v13  ;;  %v615_v4 = vmul.f32 %v5588_v26, %v579_v60 }
  0x45   : > { %11217 = vst [vmem:[#allocation27_spill] sm:$0xff] %v5729_v17  ;;  %11218 = vst [vmem:[#allocation28_spill] sm:$0xff] %v5733_v18 }
  0x46   : > { %296 = vst.msk [vmem:[#allocation2 + $0x16b] sm:$0xff] %vm171_vm0, %v263_v6  ;;  %297 = vst.msk [vmem:[#allocation2 + $0x173] sm:$0xff] %vm171_vm0, %v264_v10  ;;  %v5783_v6 = vrot.slane %v5695_v63, %v5534_v5  ;;  %v415_v10 = vmul.f32 %v5576_v21, %v379_v54  ;;  %v5796_v5 = vld [vmem:[#allocation2 + $0x19] sm:$0xff]  ;;  %v5802_v54 = vrot.slane %v5695_v63, %v5560_v14 }
  0x47   : > { %298 = vst.msk [vmem:[#allocation2 + $0x183] sm:$0xff] %vm171_vm0, %v265_v11  ;;  %11219 = vst [vmem:[#allocation29_spill] sm:$0xff] %v5743_v25  ;;  %v515_v11 = vmul.f32 %v5579_v22, %v479_v55  ;;  %v5806_v55 = vrot.slane %v5695_v63, %v5562_v15  ;;  %v1084_v26 = vmul.f32 %v5614_v35, %v5796_v5  ;;  %v5817_v21 = vld [vmem:[#allocation2 + $0x1b] sm:$0xff] }
  0x48   : > { %11220 = vst [vmem:[#allocation30_spill] sm:$0xff] %v5746_v30  ;;  %11221 = vst [vmem:[#allocation31_spill] sm:$0xff] %v5749_v31  ;;  %v447_v8 = vadd.f32 %v415_v10, %v347_v53  ;;  %v1184_v22 = vmul.f32 %v5617_v36, %v5798_v40  ;;  %v5819_v14 = vld [vmem:[#allocation2 + $0x1c] sm:$0xff] }
  0x49   : > { %11222 = vst [vmem:[#allocation32_spill] sm:$0xff] %v5752_v32  ;;  %299 = vst.msk [vmem:[#allocation2 + $0x18b] sm:$0xff] %vm171_vm0, %v266_v19  ;;  %v679_v19 = vld [vmem:[#allocation2 + $0x4] sm:$0xff] }
  0x4a   : > { %300 = vst.msk [vmem:[#allocation2 + $0x19b] sm:$0xff] %vm171_vm0, %v267_v23  ;;  %301 = vst.msk [vmem:[#allocation2 + $0x1a3] sm:$0xff] %vm171_vm0, %v268_v24  ;;  %v779_v23 = vld [vmem:[#allocation2 + $0x5] sm:$0xff]  ;;  %v715_v15 = vmul.f32 %v5591_v27, %v679_v19  ;;  %v547_v36 = vadd.f32 %v515_v11, %v447_v8  ;;  %v1284_v19 = vmul.f32 %v5620_v37, %v5817_v21  ;;  %v5856_v11 = vld [vmem:[#allocation2 + $0x35] sm:$0xff] }
  0x4b   : > { %11223 = vst [vmem:[#allocation33_spill] sm:$0xff] %v5760_v33  ;;  %11224 = vst [vmem:[#allocation34_spill] sm:$0xff] %v5763_v45  ;;  %v879_v24 = vld [vmem:[#allocation2 + $0x6] sm:$0xff]  ;;  %v5828_v10 = vld [vmem:[#allocation2 + $0x1e] sm:$0xff] }
  0x4c   : > { %11225 = vst [vmem:[#allocation35_spill] sm:$0xff] %v5766_v46  ;;  %11226 = vst [vmem:[#allocation36_spill] sm:$0xff] %v5769_v47  ;;  %v5826_v53 = vmul.f32 %v5597_v29, %v879_v24  ;;  %v5842_v24 = vld [vmem:[#allocation2 + $0x32] sm:$0xff]  ;;  %v5858_v8 = vld [vmem:[#allocation2 + $0x48] sm:$0xff] }
  0x4d   : > { %302 = vst.msk [vmem:[#allocation2 + $0x1b3] sm:$0xff] %vm171_vm0, %v269_v38  ;;  %303 = vst.msk [vmem:[#allocation2 + $0x1bb] sm:$0xff] %vm171_vm0, %v270_v39  ;;  %v5789_v38 = vrot.slane %v5695_v63, %v5546_v7  ;;  %v980_v39 = vld [vmem:[#allocation2 + $0x18] sm:$0xff]  ;;  %v5810_v7 = vrot.slane %v5695_v63, %v5564_v16  ;;  %v815_v16 = vmul.f32 %v5594_v28, %v779_v23 }
  0x4e   : > { %11227 = vst [vmem:[#allocation37_spill] sm:$0xff] %v5775_v61  ;;  %11228 = vst [vmem:[#allocation38_spill] sm:$0xff] %v5779_v62  ;;  %v1016_v60 = vmul.f32 %v5611_v34, %v980_v39  ;;  %v5830_v34 = vld [vmem:[#allocation2 + $0x30] sm:$0xff]  ;;  %v1384_v28 = vmul.f32 %v5629_v41, %v5819_v14 }
  0x4f   : > { %11229 = vst [vmem:[#allocation39_spill] sm:$0xff] %v5783_v6  ;;  %11230 = vst [vmem:[#allocation40_spill] sm:$0xff] %v5789_v38  ;;  %v1685_v23 = vmul.f32 %v5638_v44, %v5830_v34  ;;  %v5844_v29 = vld [vmem:[#allocation2 + $0x33] sm:$0xff] }
  0x50   : > { %11231 = vst [vmem:[#allocation41_spill] sm:$0xff] %v5793_v48  ;;  %11232 = vst [vmem:[#allocation42_spill] sm:$0xff] %v5796_v5  ;;  %v5832_v5 = vld [vmem:[#allocation2 + $0x31] sm:$0xff]  ;;  %v1116_v35 = vadd.f32 %v1084_v26, %v1016_v60  ;;  %v1853_v26 = vmul.f32 %v5654_v50, %v5842_v24  ;;  %v647_v60 = vadd.f32 %v615_v4, %v547_v36 }
  0x51   : > { %11233 = vst [vmem:[#allocation43_spill] sm:$0xff] %v5798_v40  ;;  %11234 = vst [vmem:[#allocation44_spill] sm:$0xff] %v5802_v54  ;;  %v5821_v54 = vld [vmem:[#allocation2 + $0x1d] sm:$0xff]  ;;  %v5836_v40 = vrot.slane %v5695_v63, %v5550_v9  ;;  %v1753_v9 = vmul.f32 %v5650_v49, %v5832_v5  ;;  %v5854_v63 = vld [vmem:[#allocation2 + $0x34] sm:$0xff]  ;;  %v1953_v50 = vmul.f32 %v5658_v51, %v5844_v29 }
  0x52   : > { %11235 = vst [vmem:[#allocation45_spill] sm:$0xff] %v5806_v55  ;;  %11236 = vst [vmem:[#allocation46_spill] sm:$0xff] %v5810_v7  ;;  %v1484_v27 = vmul.f32 %v5632_v42, %v5821_v54  ;;  %v5879_v36 = vld [vmem:[#allocation2 + $0x4b] sm:$0xff]  ;;  %v747_v4 = vadd.f32 %v715_v15, %v647_v60  ;;  %v5899_v60 = vld [vmem:[#allocation2 + $0x62] sm:$0xff] }
  0x53   : > { %11237 = vst [vmem:[#allocation47_spill] sm:$0xff] %v5817_v21  ;;  %11238 = vst [vmem:[#allocation48_spill] sm:$0xff] %v5819_v14  ;;  %v5862_v14 = vmul.f32 %v5635_v43, %v5828_v10  ;;  %v5864_v21 = vld [vmem:[#allocation2 + $0x36] sm:$0xff]  ;;  %v1785_v42 = vadd.f32 %v1753_v9, %v1685_v23  ;;  %v2053_v43 = vmul.f32 %v5662_v52, %v5854_v63  ;;  %v5885_v23 = vld [vmem:[#allocation2 + $0x4c] sm:$0xff] }
  0x54   : > { %11239 = vst [vmem:[#allocation49_spill] sm:$0xff] %v5821_v54  ;;  %11240 = vst [vmem:[#allocation50_spill] sm:$0xff] %v5828_v10  ;;  %v5866_v54 = vld [vmem:[#allocation2 + $0x49] sm:$0xff]  ;;  %v5887_v9 = vld [vmem:[#allocation2 + $0x60] sm:$0xff] }
  0x55   : > { %11241 = vst [vmem:[#allocation51_spill] sm:$0xff] %v5830_v34  ;;  %11242 = vst [vmem:[#allocation52_spill] sm:$0xff] %v5832_v5  ;;  %v1216_v34 = vadd.f32 %v1184_v22, %v1116_v35  ;;  %v5868_v5 = vld [vmem:[#allocation2 + $0x4a] sm:$0xff]  ;;  %v2353_v22 = vmul.f32 %v5680_v58, %v5858_v8  ;;  %v2421_v35 = vmul.f32 %v5684_v59, %v5866_v54 }
  0x56   : > { %11243 = vst [vmem:[#allocation53_spill] sm:$0xff] %v5836_v40  ;;  %11244 = vst [vmem:[#allocation54_spill] sm:$0xff] %v5842_v24  ;;  %v5871_v24 = vmul.f32 %v980_v39, %v5573_v20  ;;  %v2153_v39 = vmul.f32 %v5672_v56, %v5856_v11  ;;  %v5895_v15 = vld [vmem:[#allocation2 + $0x4d] sm:$0xff]  ;;  %v3022_v56 = vmul.f32 %v5725_v13, %v5887_v9 }
  0x57   : > { %11245 = vst [vmem:[#allocation55_spill] sm:$0xff] %v5844_v29  ;;  %11246 = vst [vmem:[#allocation56_spill] sm:$0xff] %v5854_v63  ;;  %v1316_v10 = vadd.f32 %v1284_v19, %v1216_v34  ;;  %v5889_v29 = vld [vmem:[#allocation2 + $0x61] sm:$0xff]  ;;  %v2521_v34 = vmul.f32 %v5699_v0, %v5868_v5  ;;  %v5897_v19 = vld [vmem:[#allocation2 + $0x4e] sm:$0xff] }
  0x58   : > { %11247 = vst [vmem:[#allocation57_spill] sm:$0xff] %v5856_v11  ;;  %11248 = vst [vmem:[#allocation58_spill] sm:$0xff] %v5858_v8  ;;  %v1885_v8 = vadd.f32 %v1853_v26, %v1785_v42  ;;  %v847_v11 = vadd.f32 %v815_v16, %v747_v4  ;;  %v3090_v42 = vmul.f32 %v5729_v17, %v5889_v29  ;;  %v5905_v26 = vld [vmem:[#allocation2 + $0x63] sm:$0xff]  ;;  %v5911_v0 = vld [vmem:[#allocation2 + $0x78] sm:$0xff] }
  0x59   : > { %11249 = vst [vmem:[#allocation59_spill] sm:$0xff] %v5864_v21  ;;  %11250 = vst [vmem:[#allocation60_spill] sm:$0xff] %v5866_v54  ;;  %v2253_v54 = vmul.f32 %v5676_v57, %v5864_v21  ;;  %v1416_v63 = vadd.f32 %v1384_v28, %v1316_v10  ;;  %v2621_v21 = vmul.f32 %v5703_v1, %v5879_v36  ;;  %v5913_v16 = vld [vmem:[#allocation2 + $0x79] sm:$0xff] }
  0x5a   : > { %11251 = vst [vmem:[#allocation61_spill] sm:$0xff] %v5868_v5  ;;  %11252 = vst [vmem:[#allocation62_spill] sm:$0xff] %v5871_v24  ;;  %v2453_v24 = vadd.f32 %v2421_v35, %v2353_v22  ;;  %v1985_v22 = vadd.f32 %v1953_v50, %v1885_v8  ;;  %v2721_v5 = vmul.f32 %v5707_v2, %v5885_v23  ;;  %v5923_v8 = vld [vmem:[#allocation2 + $0x65] sm:$0xff] }
  0x5b   : > { %11253 = vst [vmem:[#allocation63_spill] sm:$0xff] %v5879_v36  ;;  %11254 = vst [vmem:[#allocation64_spill] sm:$0xff] %v5885_v23  ;;  %v2821_v28 = vmul.f32 %v5711_v3, %v5895_v15  ;;  %v2921_v10 = vmul.f32 %v5721_v12, %v5897_v19  ;;  %v3122_v4 = vadd.f32 %v3090_v42, %v3022_v56  ;;  %v5927_v36 = vld [vmem:[#allocation2 + $0x66] sm:$0xff]  ;;  %v5936_v12 = vld [vmem:[#allocation2 + $0x7b] sm:$0xff] }
  0x5c   : > { %11255 = vst [vmem:[#allocation65_spill] sm:$0xff] %v5887_v9  ;;  %11256 = vst [vmem:[#allocation66_spill] sm:$0xff] %v5889_v29  ;;  %v2553_v35 = vadd.f32 %v2521_v34, %v2453_v24  ;;  %v3190_v50 = vmul.f32 %v5733_v18, %v5899_v60  ;;  %v5921_v24 = vld [vmem:[#allocation2 + $0x64] sm:$0xff]  ;;  %v1516_v34 = vadd.f32 %v1484_v27, %v1416_v63  ;;  %v5938_v27 = vld [vmem:[#allocation2 + $0x90] sm:$0xff] }
  0x5d   : > { %11257 = vst [vmem:[#allocation67_spill] sm:$0xff] %v5895_v15  ;;  %11258 = vst [vmem:[#allocation68_spill] sm:$0xff] %v5897_v19  ;;  %v2085_v23 = vadd.f32 %v2053_v43, %v1985_v22  ;;  %v3290_v9 = vmul.f32 %v5743_v25, %v5905_v26  ;;  %v5929_v15 = vld [vmem:[#allocation2 + $0x7a] sm:$0xff]  ;;  %v947_v19 = vadd.f32 %v5826_v53, %v847_v11  ;;  %v5946_v11 = vld [vmem:[#allocation2 + $0x91] sm:$0xff] }
  0x5e   : > { %11259 = vst [vmem:[#allocation69_spill] sm:$0xff] %v5899_v60  ;;  %11260 = vst [vmem:[#allocation70_spill] sm:$0xff] %v5905_v26  ;;  %v2653_v29 = vadd.f32 %v2621_v21, %v2553_v35  ;;  %v3222_v56 = vadd.f32 %v3190_v50, %v3122_v4  ;;  %v3691_v42 = vmul.f32 %v5760_v33, %v5911_v0  ;;  %v5944_v53 = vld [vmem:[#allocation2 + $0x7c] sm:$0xff] }
  0x5f   : > { %11261 = vst [vmem:[#allocation71_spill] sm:$0xff] %v5911_v0  ;;  %11262 = vst [vmem:[#allocation72_spill] sm:$0xff] %v5913_v16  ;;  %v3759_v60 = vmul.f32 %v5763_v45, %v5913_v16  ;;  %v2185_v21 = vadd.f32 %v2153_v39, %v2085_v23  ;;  %v3390_v63 = vmul.f32 %v5746_v30, %v5921_v24  ;;  %v5952_v39 = vld [vmem:[#allocation2 + $0x7d] sm:$0xff] }
  0x60   : > { %11263 = vst [vmem:[#allocation73_spill] sm:$0xff] %v5921_v24  ;;  %11264 = vst [vmem:[#allocation74_spill] sm:$0xff] %v5923_v8  ;;  %v2753_v43 = vadd.f32 %v2721_v5, %v2653_v29  ;;  %v3490_v22 = vmul.f32 %v5749_v31, %v5923_v8  ;;  %v3322_v35 = vadd.f32 %v3290_v9, %v3222_v56  ;;  %v5954_v29 = vld [vmem:[#allocation2 + $0x7e] sm:$0xff]  ;;  %v5961_v56 = vld [vmem:[#allocation2 + $0x92] sm:$0xff] }
  0x61   : > { %11265 = vst [vmem:[#allocation75_spill] sm:$0xff] %v5927_v36  ;;  %11266 = vst [vmem:[#allocation76_spill] sm:$0xff] %v5929_v15  ;;  %v3590_v4 = vmul.f32 %v5752_v32, %v5927_v36  ;;  %v3791_v50 = vadd.f32 %v3759_v60, %v3691_v42  ;;  %v3859_v16 = vmul.f32 %v5766_v46, %v5929_v15  ;;  %v5963_v36 = vld [vmem:[#allocation2 + $0x93] sm:$0xff] }
  0x62   : > { %11267 = vst [vmem:[#allocation77_spill] sm:$0xff] %v5936_v12  ;;  %11268 = vst [vmem:[#allocation78_spill] sm:$0xff] %v5938_v27  ;;  %v1616_v5 = vadd.f32 %v5862_v14, %v1516_v34  ;;  %v2853_v23 = vadd.f32 %v2821_v28, %v2753_v43  ;;  %v3959_v8 = vmul.f32 %v5769_v47, %v5936_v12  ;;  %v5969_v14 = vld [vmem:[#allocation2 + $0x94] sm:$0xff]  ;;  %v312_v28 = vld [vmem:[#allocation2 + $0x8] sm:$0xff] }
  0x63   : > { %11269 = vst [vmem:[#allocation79_spill] sm:$0xff] %v5944_v53  ;;  %11270 = vst [vmem:[#allocation80_spill] sm:$0xff] %v5946_v11  ;;  %v4360_v9 = vmul.f32 %v5789_v38, %v5938_v27  ;;  %v3422_v60 = vadd.f32 %v3390_v63, %v3322_v35  ;;  %v3891_v42 = vadd.f32 %v3859_v16, %v3791_v50  ;;  %v380_v34 = vld [vmem:[#allocation2 + $0x9] sm:$0xff] }
  0x64   : > { %11271 = vst [vmem:[#allocation81_spill] sm:$0xff] %v5952_v39  ;;  %11272 = vst [vmem:[#allocation82_spill] sm:$0xff] %v5954_v29  ;;  %v4059_v15 = vmul.f32 %v5775_v61, %v5944_v53  ;;  %v4428_v24 = vmul.f32 %v5793_v48, %v5946_v11  ;;  %v2285_v43 = vadd.f32 %v2253_v54, %v2185_v21  ;;  %v480_v63 = vld [vmem:[#allocation2 + $0xa] sm:$0xff]  ;;  %v11276_v53 = vld [vmem:[#allocation44_spill] sm:$0xff] }
  0x65   : > { %11273 = vst [vmem:[#allocation83_spill] sm:$0xff] %v5961_v56  ;;  %11274 = vst [vmem:[#allocation84_spill] sm:$0xff] %v5963_v36  ;;  %v2953_v12 = vadd.f32 %v2921_v10, %v2853_v23  ;;  %v4159_v27 = vmul.f32 %v5779_v62, %v5952_v39  ;;  %v4259_v0 = vmul.f32 %v5783_v6, %v5954_v29  ;;  %v5977_v11 = vld [vmem:[#allocation2 + $0x95] sm:$0xff]  ;;  %v580_v61 = vld [vmem:[#allocation2 + $0xb] sm:$0xff] }
  0x66   : > { %11275 = vst [vmem:[#allocation85_spill] sm:$0xff] %v5969_v14  ;;  %v3522_v16 = vadd.f32 %v3490_v22, %v3422_v60  ;;  %v3991_v35 = vadd.f32 %v3959_v8, %v3891_v42  ;;  %v4460_v50 = vadd.f32 %v4428_v24, %v4360_v9  ;;  %v4528_v26 = vmul.f32 %v11276_v53, %v5961_v56  ;;  %v11278_v23 = vld [vmem:[#allocation4_spill] sm:$0xff]  ;;  %v680_v39 = vld [vmem:[#allocation2 + $0xc] sm:$0xff]  ;;  %v11279_v9 = vld [vmem:[#allocation5_spill] sm:$0xff] }
  0x67   : > { %11277 = vst [vmem:[#allocation86_spill] sm:$0xff] %v5977_v11  ;;  %v4628_v54 = vmul.f32 %v5806_v55, %v5963_v36  ;;  %v4728_v10 = vmul.f32 %v5810_v7, %v5969_v14  ;;  %v348_v21 = vmul.f32 %v5573_v20, %v312_v28  ;;  %v416_v29 = vmul.f32 %v11278_v23, %v380_v34  ;;  %v5986_v42 = vld [vmem:[#allocation2 + $0x20] sm:$0xff]  ;;  %v5995_v14 = vld [vmem:[%s10258_s1 + $0x30] ss:$0 sm:$0xff]  ;;  %v5999_v34 = vld [vmem:[#allocation2 + $0x96] sm:$0xff] }
  0x68   : > { %v4091_v22 = vadd.f32 %v4059_v15, %v3991_v35  ;;  %v4560_v8 = vadd.f32 %v4528_v26, %v4460_v50  ;;  %v5024_v24 = vadd.f32 %v2953_v12, %v2285_v43  ;;  %v516_v60 = vmul.f32 %v11279_v9, %v480_v63  ;;  %11280 = vst [vmem:[#allocation87_spill] sm:$0xff] %v5986_v42  ;;  %v5988_v56 = vld [vmem:[#allocation2 + $0x21] sm:$0xff]  ;;  %v11285_v20 = vld [vmem:[#allocation7_spill] sm:$0xff] }
  0x69   : > { %11281 = vst [vmem:[#allocation88_spill] sm:$0xff] %v5988_v56  ;;  %v5990_v53 = vld [vmem:[#allocation2 + $0x22] sm:$0xff]  ;;  %v4828_v28 = vmul.f32 %v5836_v40, %v5977_v11  ;;  %11283 = vst [vmem:[#allocation90_spill] sm:$0xff] %v5999_v34  ;;  %v4992_v15 = vadd.f32 %v1616_v5, %v947_v19  ;;  %v448_v12 = vadd.f32 %v416_v29, %v348_v21  ;;  %v780_v9 = vld [vmem:[#allocation2 + $0xd] sm:$0xff] }
  0x6a   : > { %11282 = vst [vmem:[#allocation89_spill] sm:$0xff] %v5990_v53  ;;  %v11284_v26 = vld [vmem:[#allocation6_spill] sm:$0xff]  ;;  %v3622_v63 = vadd.f32 %v3590_v4, %v3522_v16  ;;  %v4191_v35 = vadd.f32 %v4159_v27, %v4091_v22  ;;  %v4660_v50 = vadd.f32 %v4628_v54, %v4560_v8  ;;  %v716_v36 = vmul.f32 %v11285_v20, %v680_v39  ;;  %v11288_v11 = vld [vmem:[#allocation11_spill] sm:$0xff]  ;;  %v11289_v19 = vld [vmem:[#allocation12_spill] sm:$0xff] }
  0x6b   : > { %v616_v43 = vmul.f32 %v11284_v26, %v580_v61  ;;  %v6003_v7 = vld [vmem:[#allocation2 + $0x23] sm:$0xff]  ;;  %v548_v23 = vadd.f32 %v516_v60, %v448_v12  ;;  %v1085_v40 = vmul.f32 %v11288_v11, %v5988_v56  ;;  %v1185_v29 = vmul.f32 %v11289_v19, %v5990_v53  ;;  %v6011_v5 = vld [vmem:[#allocation2 + $0x38] sm:$0xff]  ;;  %v880_v12 = vld [vmem:[#allocation2 + $0xe] sm:$0xff] }
  0x6c   : > { %11286 = vst [vmem:[#allocation6_spill] sm:$0xff] %v6003_v7  ;;  %v11287_v55 = vld [vmem:[#allocation10_spill] sm:$0xff]  ;;  %11290 = vst [vmem:[#allocation7_spill] sm:$0xff] %v6011_v5  ;;  %v6013_v61 = vld [vmem:[#allocation2 + $0x39] sm:$0xff]  ;;  %v4291_v27 = vadd.f32 %v4259_v0, %v4191_v35  ;;  %v4760_v4 = vadd.f32 %v4728_v10, %v4660_v50  ;;  %v4928_v39 = vmul.f32 %v5995_v14, %v5999_v34 }
  0x6d   : > { %v1017_v6 = vmul.f32 %v11287_v55, %v5986_v42  ;;  %11291 = vst [vmem:[#allocation10_spill] sm:$0xff] %v6013_v61  ;;  %v5088_v16 = vadd.f32 %v5024_v24, %v4992_v15  ;;  %v6017_v54 = vld [vmem:[#allocation2 + $0x24] sm:$0xff]  ;;  %v6019_v21 = vld [vmem:[#allocation2 + $0x3a] sm:$0xff]  ;;  %v648_v22 = vadd.f32 %v616_v43, %v548_v23  ;;  %v1285_v53 = vmul.f32 %v5620_v37, %v6003_v7  ;;  %v6032_v23 = vld [vmem:[#allocation2 + $0x50] sm:$0xff] }
  0x6e   : > { %11292 = vst [vmem:[#allocation11_spill] sm:$0xff] %v6017_v54  ;;  %11293 = vst [vmem:[#allocation12_spill] sm:$0xff] %v6019_v21  ;;  %v11294_v8 = vld [vmem:[#allocation8_spill] sm:$0xff]  ;;  %v4860_v0 = vadd.f32 %v4828_v28, %v4760_v4  ;;  %v5056_v10 = vadd.f32 %v4291_v27, %v3622_v63  ;;  %v6026_v35 = vld [vmem:[#allocation2 + $0x25] sm:$0xff]  ;;  %v1686_v24 = vmul.f32 %v5638_v44, %v6011_v5 }
  0x6f   : > { %v816_v60 = vmul.f32 %v11294_v8, %v780_v9  ;;  %v1117_v56 = vadd.f32 %v1085_v40, %v1017_v6  ;;  %v6024_v42 = vld [vmem:[#allocation2 + $0x3b] sm:$0xff]  ;;  %11296 = vst [vmem:[#allocation91_spill] sm:$0xff] %v6026_v35  ;;  %v1754_v15 = vmul.f32 %v5650_v49, %v6013_v61  ;;  %11297 = vst [vmem:[#allocation92_spill] sm:$0xff] %v6032_v23  ;;  %v11298_v40 = vld [vmem:[#allocation15_spill] sm:$0xff] }
  0x70   : > { %11295 = vst [vmem:[#allocation8_spill] sm:$0xff] %v6024_v42  ;;  %v748_v9 = vadd.f32 %v716_v36, %v648_v22  ;;  %v1385_v6 = vmul.f32 %v5629_v41, %v6017_v54  ;;  %v1854_v50 = vmul.f32 %v11298_v40, %v6019_v21  ;;  %v6038_v28 = vld [vmem:[#allocation2 + $0x3c] sm:$0xff]  ;;  %v6040_v63 = vld [vmem:[#allocation2 + $0x51] sm:$0xff]  ;;  %v4960_v27 = vadd.f32 %v4928_v39, %v4860_v0  ;;  %v6043_v7 = vld [vmem:[#allocation2 + $0x26] sm:$0xff] }
  0x71   : > { %v1217_v43 = vadd.f32 %v1185_v29, %v1117_v56  ;;  %11299 = vst [vmem:[#allocation93_spill] sm:$0xff] %v6038_v28  ;;  %11300 = vst [vmem:[#allocation94_spill] sm:$0xff] %v6040_v63  ;;  %v11301_v4 = vld [vmem:[#allocation9_spill] sm:$0xff]  ;;  %v1786_v61 = vadd.f32 %v1754_v15, %v1686_v24  ;;  %v1954_v36 = vmul.f32 %v5658_v51, %v6024_v42  ;;  %v6055_v0 = vld [vmem:[#allocation2 + $0x52] sm:$0xff] }
  0x72   : > { %v916_v5 = vmul.f32 %v11301_v4, %v880_v12  ;;  %11302 = vst [vmem:[#allocation9_spill] sm:$0xff] %v6043_v7  ;;  %v6047_v56 = vld [vmem:[#allocation2 + $0x3d] sm:$0xff]  ;;  %v848_v22 = vadd.f32 %v816_v60, %v748_v9  ;;  %v2354_v39 = vmul.f32 %v5680_v58, %v6032_v23  ;;  %11306 = vst [vmem:[#allocation97_spill] sm:$0xff] %v6055_v0  ;;  %v6061_v42 = vld [vmem:[#allocation2 + $0x68] sm:$0xff] }
  0x73   : > { %11303 = vst [vmem:[#allocation95_spill] sm:$0xff] %v6047_v56  ;;  %v6049_v29 = vld [vmem:[#allocation2 + $0x3e] sm:$0xff]  ;;  %v1317_v54 = vadd.f32 %v1285_v53, %v1217_v43  ;;  %v5120_v12 = vadd.f32 %v5056_v10, %v4960_v27  ;;  %v1886_v40 = vadd.f32 %v1854_v50, %v1786_v61  ;;  %v2054_v24 = vmul.f32 %v5662_v52, %v6038_v28  ;;  %v6063_v53 = vld [vmem:[#allocation2 + $0x69] sm:$0xff]  ;;  %v6076_v28 = vld [vmem:[#allocation2 + $0x53] sm:$0xff] }
  0x74   : > { %11304 = vst [vmem:[#allocation96_spill] sm:$0xff] %v6049_v29  ;;  %v11305_v21 = vld [vmem:[#allocation13_spill] sm:$0xff]  ;;  %v2422_v15 = vmul.f32 %v5684_v59, %v6040_v63  ;;  %11307 = vst [vmem:[#allocation98_spill] sm:$0xff] %v6061_v42  ;;  %v11310_v10 = vld [vmem:[#allocation14_spill] sm:$0xff]  ;;  %v2254_v27 = vmul.f32 %v5676_v57, %v6049_v29  ;;  %v6093_v29 = vadd.f32 %v916_v5, %v848_v22 }
  0x75   : > { %v1485_v34 = vmul.f32 %v11305_v21, %v6026_v35  ;;  %11308 = vst [vmem:[#allocation99_spill] sm:$0xff] %v6063_v53  ;;  %v6068_v60 = vld [vmem:[%s10259_s2] ss:$0 sm:$0xff]  ;;  %v1417_v9 = vadd.f32 %v1385_v6, %v1317_v54  ;;  %v1585_v61 = vmul.f32 %v11310_v10, %v6043_v7  ;;  %11312 = vst [vmem:[#allocation101_spill] sm:$0xff] %v6076_v28  ;;  %v6080_v58 = vld [vmem:[#allocation2 + $0x54] sm:$0xff] }
  0x76   : > { %11309 = vst [vmem:[#allocation100_spill] sm:$0xff] %v6068_v60  ;;  %v11311_v43 = vld [vmem:[#allocation17_spill] sm:$0xff]  ;;  %v5152_v63 = vadd.f32 %v5120_v12, %v5088_v16  ;;  %v1986_v23 = vadd.f32 %v1954_v36, %v1886_v40  ;;  %v2454_v35 = vadd.f32 %v2422_v15, %v2354_v39  ;;  %11314 = vst [vmem:[#allocation102_spill] sm:$0xff] %v6080_v58  ;;  %v6082_v54 = vld [vmem:[#allocation2 + $0x55] sm:$0xff] }
  0x77   : > { %v2154_v50 = vmul.f32 %v11311_v43, %v6047_v56  ;;  %v11313_v52 = vld [vmem:[#allocation21_spill] sm:$0xff]  ;;  %11315 = vst [vmem:[#allocation103_spill] sm:$0xff] %v6082_v54  ;;  %v6084_v6 = vld [vmem:[#allocation2 + $0x6a] sm:$0xff]  ;;  %v1517_v16 = vadd.f32 %v1485_v34, %v1417_v9  ;;  %v6095_v40 = vld [vmem:[#allocation2 + $0x56] sm:$0xff]  ;;  %v3023_v36 = vmul.f32 %v5725_v13, %v6061_v42  ;;  %v3091_v39 = vmul.f32 %v5729_v17, %v6063_v53 }
  0x78   : > { %v2522_v59 = vmul.f32 %v11313_v52, %v6055_v0  ;;  %11316 = vst [vmem:[#allocation104_spill] sm:$0xff] %v6084_v6  ;;  %11317 = vst [vmem:[#allocation105_spill] sm:$0xff] %v6095_v40  ;;  %v5191_v12 = vadd.f32 %v6068_v60, %v5152_v63  ;;  %v2086_v15 = vadd.f32 %v2054_v24, %v1986_v23  ;;  %v6104_v7 = vld [vmem:[#allocation2 + $0x6b] sm:$0xff]  ;;  %v6106_v5 = vld [vmem:[#allocation2 + $0x80] sm:$0xff] }
  0x79   : > { %v2622_v56 = vmul.f32 %v5703_v1, %v6076_v28  ;;  %11318 = vst [vmem:[#allocation106_spill] sm:$0xff] %v6104_v7  ;;  %11319 = vst [vmem:[#allocation107_spill] sm:$0xff] %v6106_v5  ;;  %v6108_v34 = vld [vmem:[#allocation2 + $0x81] sm:$0xff]  ;;  %v2722_v22 = vmul.f32 %v5707_v2, %v6080_v58  ;;  %v2822_v9 = vmul.f32 %v5711_v3, %v6082_v54  ;;  %v6120_v63 = vld [vmem:[#allocation2 + $0x6e] sm:$0xff] }
  0x7a   : > { %v2554_v0 = vadd.f32 %v2522_v59, %v2454_v35  ;;  %11320 = vst [vmem:[#allocation108_spill] sm:$0xff] %v6108_v34  ;;  %v3123_v53 = vadd.f32 %v3091_v39, %v3023_v36  ;;  %v3191_v23 = vmul.f32 %v5733_v18, %v6084_v6  ;;  %v6116_v59 = vld [vmem:[#allocation2 + $0x6c] sm:$0xff]  ;;  %11323 = vst [vmem:[#allocation111_spill] sm:$0xff] %v6120_v63  ;;  %v11324_v58 = vld [vmem:[#allocation25_spill] sm:$0xff] }
  0x7b   : > { %11321 = vst [vmem:[#allocation109_spill] sm:$0xff] %v6116_v59  ;;  %v6118_v35 = vld [vmem:[#allocation2 + $0x6d] sm:$0xff]  ;;  %5223 = vst.msk [vmem:[%s6091_s10] sm:$0xff] %vm171_vm0, %v5191_v12  ;;  %v1617_v24 = vadd.f32 %v1585_v61, %v1517_v16  ;;  %v2186_v28 = vadd.f32 %v2154_v50, %v2086_v15  ;;  %v2922_v2 = vmul.f32 %v11324_v58, %v6095_v40  ;;  %v6126_v17 = vld [vmem:[#allocation2 + $0x82] sm:$0xff] }
  0x7c   : > { %11322 = vst [vmem:[#allocation110_spill] sm:$0xff] %v6118_v35  ;;  %v2654_v42 = vadd.f32 %v2622_v56, %v2554_v0  ;;  %11325 = vst [vmem:[#allocation112_spill] sm:$0xff] %v6126_v17  ;;  %v3223_v36 = vadd.f32 %v3191_v23, %v3123_v53  ;;  %v3291_v39 = vmul.f32 %v5743_v25, %v6104_v7  ;;  %v6134_v18 = vld [vmem:[#allocation2 + $0x83] sm:$0xff]  ;;  %v6136_v61 = vld [vmem:[#allocation2 + $0x98] sm:$0xff] }
  0x7d   : > { %v3692_v6 = vmul.f32 %v5760_v33, %v6106_v5  ;;  %v3760_v54 = vmul.f32 %v5763_v45, %v6108_v34  ;;  %11326 = vst [vmem:[#allocation113_spill] sm:$0xff] %v6134_v18  ;;  %11327 = vst [vmem:[#allocation114_spill] sm:$0xff] %v6136_v61  ;;  %v6138_v56 = vld [vmem:[#allocation2 + $0x99] sm:$0xff]  ;;  %v3391_v50 = vmul.f32 %v5746_v30, %v6116_v59  ;;  %v6146_v12 = vld [vmem:[#allocation2 + $0x84] sm:$0xff] }
  0x7e   : > { %11328 = vst [vmem:[#allocation115_spill] sm:$0xff] %v6138_v56  ;;  %v2754_v0 = vadd.f32 %v2722_v22, %v2654_v42  ;;  %v3491_v53 = vmul.f32 %v5749_v31, %v6118_v35  ;;  %v3591_v16 = vmul.f32 %v5752_v32, %v6120_v63  ;;  %11329 = vst [vmem:[#allocation116_spill] sm:$0xff] %v6146_v12  ;;  %v6148_v15 = vld [vmem:[#allocation2 + $0x85] sm:$0xff]  ;;  %v6154_v22 = vld [vmem:[#allocation2 + $0x9a] sm:$0xff] }
  0x7f   : > { %11330 = vst [vmem:[#allocation117_spill] sm:$0xff] %v6148_v15  ;;  %v2286_v23 = vadd.f32 %v2254_v27, %v2186_v28  ;;  %v3323_v7 = vadd.f32 %v3291_v39, %v3223_v36  ;;  %v3792_v34 = vadd.f32 %v3760_v54, %v3692_v6  ;;  %v3860_v5 = vmul.f32 %v5766_v46, %v6126_v17  ;;  %v6152_v42 = vld [vmem:[#allocation2 + $0x86] sm:$0xff]  ;;  %v6162_v28 = vld [vmem:[#allocation2 + $0x9b] sm:$0xff] }
  0x80   : > { %11331 = vst [vmem:[#allocation118_spill] sm:$0xff] %v6152_v42  ;;  %11332 = vst [vmem:[#allocation119_spill] sm:$0xff] %v6154_v22  ;;  %v2854_v59 = vadd.f32 %v2822_v9, %v2754_v0  ;;  %v3960_v35 = vmul.f32 %v5769_v47, %v6134_v18  ;;  %v4361_v63 = vmul.f32 %v5789_v38, %v6136_v61  ;;  %v11334_v6 = vld [vmem:[#allocation37_spill] sm:$0xff]  ;;  %v11336_v18 = vld [vmem:[#allocation39_spill] sm:$0xff] }
  0x81   : > { %v4429_v40 = vmul.f32 %v5793_v48, %v6138_v56  ;;  %11333 = vst [vmem:[#allocation120_spill] sm:$0xff] %v6162_v28  ;;  %v3423_v27 = vadd.f32 %v3391_v50, %v3323_v7  ;;  %v3892_v54 = vadd.f32 %v3860_v5, %v3792_v34  ;;  %v4060_v36 = vmul.f32 %v11334_v6, %v6146_v12  ;;  %v6168_v9 = vld [vmem:[#allocation2 + $0x9c] sm:$0xff]  ;;  %v11341_v6 = vld [vmem:[#allocation42_spill] sm:$0xff] }
  0x82   : > { %v4160_v39 = vmul.f32 %v5779_v62, %v6148_v15  ;;  %11335 = vst [vmem:[#allocation121_spill] sm:$0xff] %v6168_v9  ;;  %v2954_v0 = vadd.f32 %v2922_v2, %v2854_v59  ;;  %v4260_v17 = vmul.f32 %v11336_v18, %v6152_v42  ;;  %v11337_v47 = vld [vmem:[#allocation44_spill] sm:$0xff]  ;;  %v11339_v34 = vld [vmem:[#allocation45_spill] sm:$0xff]  ;;  %v11342_v2 = vld [vmem:[#allocation46_spill] sm:$0xff] }
  0x83   : > { %v4461_v61 = vadd.f32 %v4429_v40, %v4361_v63  ;;  %v4529_v56 = vmul.f32 %v11337_v47, %v6154_v22  ;;  %v6174_v48 = vld [vmem:[#allocation2 + $0x9d] sm:$0xff]  ;;  %v3523_v7 = vadd.f32 %v3491_v53, %v3423_v27  ;;  %v3992_v5 = vadd.f32 %v3960_v35, %v3892_v54  ;;  %v11344_v40 = vld [vmem:[#allocation43_spill] sm:$0xff]  ;;  %v11347_v35 = vld [vmem:[#allocation62_spill] sm:$0xff] }
  0x84   : > { %11338 = vst [vmem:[#allocation122_spill] sm:$0xff] %v6174_v48  ;;  %v4629_v50 = vmul.f32 %v11339_v34, %v6162_v28  ;;  %v11340_v12 = vld [vmem:[#allocation4_spill] sm:$0xff]  ;;  %v4729_v59 = vmul.f32 %v11342_v2, %v6168_v9  ;;  %v5025_v38 = vadd.f32 %v2954_v0, %v2286_v23  ;;  %v11343_v42 = vld [vmem:[#allocation5_spill] sm:$0xff]  ;;  %v11348_v54 = vld [vmem:[#allocation47_spill] sm:$0xff] }
  0x85   : > { %v417_v15 = vmul.f32 %v11341_v6, %v11340_v12  ;;  %v4561_v62 = vadd.f32 %v4529_v56, %v4461_v61  ;;  %v517_v63 = vmul.f32 %v11344_v40, %v11343_v42  ;;  %v4092_v18 = vadd.f32 %v4060_v36, %v3992_v5  ;;  %v11345_v22 = vld [vmem:[#allocation53_spill] sm:$0xff]  ;;  %v11349_v23 = vld [vmem:[#allocation48_spill] sm:$0xff]  ;;  %v11350_v36 = vld [vmem:[#allocation51_spill] sm:$0xff] }
  0x86   : > { %v4829_v47 = vmul.f32 %v11345_v22, %v6174_v48  ;;  %v6186_v53 = vld [vmem:[#allocation2 + $0x9e] sm:$0xff]  ;;  %v617_v28 = vmul.f32 %v11348_v54, %v11284_v26  ;;  %v3623_v6 = vadd.f32 %v3591_v16, %v3523_v7  ;;  %v4993_v56 = vadd.f32 %v1617_v24, %v6093_v29 }
  0x87   : > { %11346 = vst [vmem:[#allocation42_spill] sm:$0xff] %v6186_v53  ;;  %v449_v27 = vadd.f32 %v417_v15, %v11347_v35  ;;  %v4661_v61 = vadd.f32 %v4629_v50, %v4561_v62  ;;  %v717_v0 = vmul.f32 %v11349_v23, %v11285_v20  ;;  %v4192_v9 = vadd.f32 %v4160_v39, %v4092_v18  ;;  %v11351_v48 = vld [vmem:[#allocation52_spill] sm:$0xff]  ;;  %v11352_v62 = vld [vmem:[#allocation54_spill] sm:$0xff]  ;;  %v11353_v18 = vld [vmem:[#allocation55_spill] sm:$0xff] }
  0x88   : > { %v1018_v5 = vmul.f32 %v11350_v36, %v11287_v55  ;;  %v1086_v42 = vmul.f32 %v11351_v48, %v11288_v11  ;;  %v4929_v15 = vmul.f32 %v5995_v14, %v6186_v53  ;;  %v5089_v35 = vadd.f32 %v5025_v38, %v4993_v56  ;;  %v11355_v48 = vld [vmem:[#allocation58_spill] sm:$0xff]  ;;  %v11356_v54 = vld [vmem:[#allocation60_spill] sm:$0xff]  ;;  %v11360_v36 = vld [vmem:[#allocation61_spill] sm:$0xff] }
  0x89   : > { %v549_v40 = vadd.f32 %v517_v63, %v449_v27  ;;  %v4761_v22 = vadd.f32 %v4729_v59, %v4661_v61  ;;  %v1186_v16 = vmul.f32 %v11352_v62, %v11289_v19  ;;  %v4292_v29 = vadd.f32 %v4260_v17, %v4192_v9  ;;  %v11354_v63 = vld [vmem:[#allocation49_spill] sm:$0xff]  ;;  %v11357_v17 = vld [vmem:[#allocation56_spill] sm:$0xff]  ;;  %v11358_v9 = vld [vmem:[#allocation50_spill] sm:$0xff] }
  0x8a   : > { %v1118_v7 = vadd.f32 %v1086_v42, %v1018_v5  ;;  %v1286_v39 = vmul.f32 %v11353_v18, %v5620_v37  ;;  %v817_v27 = vmul.f32 %v11354_v63, %v11294_v8  ;;  %v1687_v59 = vmul.f32 %v11355_v48, %v5638_v44  ;;  %v11361_v18 = vld [vmem:[#allocation57_spill] sm:$0xff]  ;;  %v11362_v48 = vld [vmem:[#allocation59_spill] sm:$0xff] }
  0x8b   : > { %v649_v24 = vadd.f32 %v617_v28, %v549_v40  ;;  %v4861_v50 = vadd.f32 %v4829_v47, %v4761_v22  ;;  %v1755_v61 = vmul.f32 %v11356_v54, %v5650_v49  ;;  %v5057_v38 = vadd.f32 %v4292_v29, %v3623_v6  ;;  %v11359_v22 = vld [vmem:[#allocation15_spill] sm:$0xff]  ;;  %v11366_v54 = vld [vmem:[#allocation20_spill] sm:$0xff] }
  0x8c   : > { %v1218_v23 = vadd.f32 %v1186_v16, %v1118_v7  ;;  %v1386_v28 = vmul.f32 %v11357_v17, %v5629_v41  ;;  %v917_v40 = vmul.f32 %v11358_v9, %v11301_v4  ;;  %v1855_v5 = vmul.f32 %v11360_v36, %v11359_v22  ;;  %v11365_v7 = vld [vmem:[#allocation65_spill] sm:$0xff] }
  0x8d   : > { %v749_v56 = vadd.f32 %v717_v0, %v649_v24  ;;  %v4961_v42 = vadd.f32 %v4929_v15, %v4861_v50  ;;  %v1787_v47 = vadd.f32 %v1755_v61, %v1687_v59  ;;  %v1486_v63 = vmul.f32 %v11361_v18, %v11305_v21  ;;  %v11363_v0 = vld [vmem:[#allocation63_spill] sm:$0xff]  ;;  %v11367_v59 = vld [vmem:[#allocation66_spill] sm:$0xff] }
  0x8e   : > { %v1318_v62 = vadd.f32 %v1286_v39, %v1218_v23  ;;  %v1586_v6 = vmul.f32 %v11362_v48, %v11310_v10  ;;  %v1955_v16 = vmul.f32 %v11363_v0, %v5658_v51  ;;  %v11364_v15 = vld [vmem:[#allocation19_spill] sm:$0xff]  ;;  %v2423_v61 = vmul.f32 %v11367_v59, %v11366_v54  ;;  %v11368_v39 = vld [vmem:[#allocation16_spill] sm:$0xff] }
  0x8f   : > { %v5121_v29 = vadd.f32 %v5057_v38, %v4961_v42  ;;  %v1887_v24 = vadd.f32 %v1855_v5, %v1787_v47  ;;  %v2355_v50 = vmul.f32 %v11365_v7, %v11364_v15  ;;  %v849_v17 = vadd.f32 %v817_v27, %v749_v56  ;;  %v11369_v23 = vld [vmem:[#allocation64_spill] sm:$0xff]  ;;  %v11370_v18 = vld [vmem:[#allocation67_spill] sm:$0xff]  ;;  %v11371_v38 = vld [vmem:[#allocation69_spill] sm:$0xff] }
  0x90   : > { %v1418_v9 = vadd.f32 %v1386_v28, %v1318_v62  ;;  %v2055_v36 = vmul.f32 %v11369_v23, %v11368_v39  ;;  %v2155_v53 = vmul.f32 %v11370_v18, %v11311_v43  ;;  %v2523_v42 = vmul.f32 %v11371_v38, %v11313_v52  ;;  %v11372_v5 = vld [vmem:[#allocation68_spill] sm:$0xff]  ;;  %v11373_v27 = vld [vmem:[#allocation70_spill] sm:$0xff]  ;;  %v11374_v28 = vld [vmem:[#allocation71_spill] sm:$0xff] }
  0x91   : > { %v5153_v48 = vadd.f32 %v5121_v29, %v5089_v35  ;;  %v1987_v10 = vadd.f32 %v1955_v16, %v1887_v24  ;;  %v2455_v0 = vadd.f32 %v2423_v61, %v2355_v50  ;;  %v2255_v7 = vmul.f32 %v11372_v5, %v5676_v57  ;;  %v11375_v29 = vld [vmem:[#allocation27_spill] sm:$0xff]  ;;  %v11376_v16 = vld [vmem:[#allocation72_spill] sm:$0xff]  ;;  %v11378_v18 = vld [vmem:[#allocation73_spill] sm:$0xff] }
  0x92   : > { %v1518_v47 = vadd.f32 %v1486_v63, %v1418_v9  ;;  %v2623_v56 = vmul.f32 %v11373_v27, %v5703_v1  ;;  %v3024_v62 = vmul.f32 %v11374_v28, %v5725_v13  ;;  %v3092_v24 = vmul.f32 %v11376_v16, %v11375_v29  ;;  %v11377_v61 = vld [vmem:[#allocation23_spill] sm:$0xff]  ;;  %v11379_v9 = vld [vmem:[#allocation74_spill] sm:$0xff] }
  0x93   : > { %v5192_v59 = vadd.f32 %v6068_v60, %v5153_v48  ;;  %v2087_v23 = vadd.f32 %v2055_v36, %v1987_v10  ;;  %v2555_v35 = vadd.f32 %v2523_v42, %v2455_v0  ;;  %v949_v50 = vadd.f32 %v917_v40, %v849_v17  ;;  %v11380_v5 = vld [vmem:[#allocation75_spill] sm:$0xff]  ;;  %v11381_v10 = vld [vmem:[#allocation28_spill] sm:$0xff]  ;;  %v11383_v40 = vld [vmem:[#allocation77_spill] sm:$0xff] }
  0x94   : > { %v2723_v63 = vmul.f32 %v11378_v18, %v11377_v61  ;;  %v2823_v38 = vmul.f32 %v11379_v9, %v5711_v3  ;;  %v2923_v27 = vmul.f32 %v11380_v5, %v11324_v58  ;;  %v3124_v48 = vadd.f32 %v3092_v24, %v3024_v62  ;;  %v11382_v36 = vld [vmem:[#allocation76_spill] sm:$0xff]  ;;  %v11384_v16 = vld [vmem:[#allocation78_spill] sm:$0xff]  ;;  %v11388_v62 = vld [vmem:[#allocation79_spill] sm:$0xff] }
  0x95   : > { %5224 = vst.msk [vmem:[%s6091_s10 + $0x8] sm:$0xff] %vm171_vm0, %v5192_v59  ;;  %v2187_v28 = vadd.f32 %v2155_v53, %v2087_v23  ;;  %v2655_v1 = vadd.f32 %v2623_v56, %v2555_v35  ;;  %v3192_v0 = vmul.f32 %v11382_v36, %v11381_v10  ;;  %v1618_v42 = vadd.f32 %v1586_v6, %v1518_v47  ;;  %v11385_v9 = vld [vmem:[#allocation80_spill] sm:$0xff]  ;;  %v6257_v61 = vld [vmem:[#allocation2 + $0xa8] sm:$0xff]  ;;  %v11389_v6 = vld [vmem:[#allocation81_spill] sm:$0xff] }
  0x96   : > { %v3292_v17 = vmul.f32 %v11383_v40, %v5743_v25  ;;  %v3693_v18 = vmul.f32 %v11384_v16, %v5760_v33  ;;  %v3761_v3 = vmul.f32 %v11385_v9, %v5763_v45  ;;  %11386 = vst [vmem:[#allocation43_spill] sm:$0xff] %v6257_v61  ;;  %v6259_v5 = vld [vmem:[#allocation2 + $0xa9] sm:$0xff]  ;;  %v3392_v59 = vmul.f32 %v11388_v62, %v5746_v30 }
  0x97   : > { %11387 = vst [vmem:[#allocation62_spill] sm:$0xff] %v6259_v5  ;;  %v2755_v53 = vadd.f32 %v2723_v63, %v2655_v1  ;;  %v3224_v56 = vadd.f32 %v3192_v0, %v3124_v48  ;;  %v3492_v47 = vmul.f32 %v11389_v6, %v5749_v31  ;;  %v2287_v23 = vadd.f32 %v2255_v7, %v2187_v28  ;;  %v11390_v35 = vld [vmem:[#allocation82_spill] sm:$0xff]  ;;  %v11391_v40 = vld [vmem:[#allocation83_spill] sm:$0xff]  ;;  %v11393_v1 = vld [vmem:[#allocation40_spill] sm:$0xff] }
  0x98   : > { %v3592_v24 = vmul.f32 %v11390_v35, %v5752_v32  ;;  %v3793_v36 = vadd.f32 %v3761_v3, %v3693_v18  ;;  %v3861_v16 = vmul.f32 %v11391_v40, %v5766_v46  ;;  %v6269_v9 = vld [vmem:[#allocation2 + $0xaa] sm:$0xff]  ;;  %v4362_v63 = vmul.f32 %v11393_v1, %v6257_v61  ;;  %v11394_v48 = vld [vmem:[#allocation41_spill] sm:$0xff]  ;;  %v11396_v28 = vld [vmem:[#allocation36_spill] sm:$0xff] }
  0x99   : > { %11392 = vst [vmem:[#allocation47_spill] sm:$0xff] %v6269_v9  ;;  %v2855_v45 = vadd.f32 %v2823_v38, %v2755_v53  ;;  %v3324_v25 = vadd.f32 %v3292_v17, %v3224_v56  ;;  %v4430_v0 = vmul.f32 %v11394_v48, %v6259_v5  ;;  %v6275_v62 = vld [vmem:[#allocation2 + $0xab] sm:$0xff]  ;;  %v11397_v6 = vld [vmem:[#allocation84_spill] sm:$0xff]  ;;  %v11398_v3 = vld [vmem:[#allocation37_spill] sm:$0xff] }
  0x9a   : > { %11395 = vst [vmem:[#allocation48_spill] sm:$0xff] %v6275_v62  ;;  %v3893_v7 = vadd.f32 %v3861_v16, %v3793_v36  ;;  %v3961_v35 = vmul.f32 %v11397_v6, %v11396_v28  ;;  %v11399_v18 = vld [vmem:[#allocation85_spill] sm:$0xff]  ;;  %v11400_v40 = vld [vmem:[#allocation38_spill] sm:$0xff]  ;;  %v11403_v61 = vld [vmem:[#allocation44_spill] sm:$0xff] }
  0x9b   : > { %v4061_v32 = vmul.f32 %v11399_v18, %v11398_v3  ;;  %v11401_v46 = vld [vmem:[#allocation86_spill] sm:$0xff]  ;;  %v2955_v17 = vadd.f32 %v2923_v27, %v2855_v45  ;;  %v3424_v53 = vadd.f32 %v3392_v59, %v3324_v25  ;;  %v4462_v56 = vadd.f32 %v4430_v0, %v4362_v63  ;;  %v11405_v16 = vld [vmem:[#allocation39_spill] sm:$0xff]  ;;  %v11409_v45 = vld [vmem:[#allocation88_spill] sm:$0xff] }
  0x9c   : > { %v4161_v31 = vmul.f32 %v11401_v46, %v11400_v40  ;;  %v6283_v38 = vld [vmem:[#allocation2 + $0xac] sm:$0xff]  ;;  %v4530_v5 = vmul.f32 %v11403_v61, %v6269_v9  ;;  %v3993_v36 = vadd.f32 %v3961_v35, %v3893_v7  ;;  %v4630_v18 = vmul.f32 %v11339_v34, %v6275_v62  ;;  %v11410_v63 = vld [vmem:[#allocation53_spill] sm:$0xff] }
  0x9d   : > { %11402 = vst [vmem:[#allocation51_spill] sm:$0xff] %v6283_v38  ;;  %v6287_v48 = vld [vmem:[#allocation2 + $0xad] sm:$0xff]  ;;  %v3524_v40 = vadd.f32 %v3492_v47, %v3424_v53  ;;  %v4730_v25 = vmul.f32 %v11342_v2, %v6283_v38  ;;  %v418_v27 = vmul.f32 %v11409_v45, %v11340_v12  ;;  %v5026_v7 = vadd.f32 %v2955_v17, %v2287_v23  ;;  %v11412_v35 = vld [vmem:[#allocation89_spill] sm:$0xff] }
  0x9e   : > { %11404 = vst [vmem:[#allocation52_spill] sm:$0xff] %v6287_v48  ;;  %v11406_v1 = vld [vmem:[#allocation90_spill] sm:$0xff]  ;;  %v11407_v3 = vld [vmem:[#allocation3_spill] sm:$0xff]  ;;  %v4562_v30 = vadd.f32 %v4530_v5, %v4462_v56  ;;  %v4093_v59 = vadd.f32 %v4061_v32, %v3993_v36  ;;  %v4830_v0 = vmul.f32 %v11410_v63, %v6287_v48 }
  0x9f   : > { %v4261_v6 = vmul.f32 %v11406_v1, %v11405_v16  ;;  %v11408_v28 = vld [vmem:[#allocation87_spill] sm:$0xff]  ;;  %v11411_v1 = vld [vmem:[#allocation5_spill] sm:$0xff]  ;;  %v11414_v5 = vld [vmem:[#allocation6_spill] sm:$0xff]  ;;  %v3624_v56 = vadd.f32 %v3592_v24, %v3524_v40 }
  0xa0   : > { %v350_v46 = vmul.f32 %v11408_v28, %v11407_v3  ;;  %v518_v9 = vmul.f32 %v11412_v35, %v11411_v1  ;;  %v4662_v62 = vadd.f32 %v4630_v18, %v4562_v30  ;;  %v6303_v34 = vld [vmem:[#allocation2 + $0xae] sm:$0xff]  ;;  %v4994_v28 = vadd.f32 %v1618_v42, %v949_v50  ;;  %v11418_v18 = vld [vmem:[#allocation12_spill] sm:$0xff] }
  0xa1   : > { %11413 = vst [vmem:[#allocation54_spill] sm:$0xff] %v6303_v34  ;;  %v618_v53 = vmul.f32 %v11414_v5, %v11284_v26  ;;  %v4193_v38 = vadd.f32 %v4161_v31, %v4093_v59  ;;  %v11415_v45 = vld [vmem:[#allocation11_spill] sm:$0xff]  ;;  %v11417_v35 = vld [vmem:[#allocation10_spill] sm:$0xff]  ;;  %v1187_v50 = vmul.f32 %v11418_v18, %v11289_v19  ;;  %v11419_v59 = vld [vmem:[#allocation8_spill] sm:$0xff] }
  0xa2   : > { %v450_v47 = vadd.f32 %v418_v27, %v350_v46  ;;  %v718_v32 = vmul.f32 %v11415_v45, %v11285_v20  ;;  %v11416_v36 = vld [vmem:[#allocation7_spill] sm:$0xff]  ;;  %v4762_v23 = vadd.f32 %v4730_v25, %v4662_v62  ;;  %v1087_v30 = vmul.f32 %v11417_v35, %v11288_v11  ;;  %v11421_v25 = vld [vmem:[#allocation92_spill] sm:$0xff] }
  0xa3   : > { %v1019_v48 = vmul.f32 %v11416_v36, %v11287_v55  ;;  %v4293_v42 = vadd.f32 %v4261_v6, %v4193_v38  ;;  %v4930_v46 = vmul.f32 %v5995_v14, %v6303_v34  ;;  %v5090_v24 = vadd.f32 %v5026_v7, %v4994_v28  ;;  %v11422_v36 = vld [vmem:[#allocation94_spill] sm:$0xff] }
  0xa4   : > { %v550_v17 = vadd.f32 %v518_v9, %v450_v47  ;;  %v4862_v31 = vadd.f32 %v4830_v0, %v4762_v23  ;;  %v1287_v5 = vmul.f32 %v11419_v59, %v5620_v37  ;;  %v11420_v9 = vld [vmem:[#allocation91_spill] sm:$0xff]  ;;  %v1688_v47 = vmul.f32 %v11421_v25, %v5638_v44  ;;  %v11423_v0 = vld [vmem:[#allocation93_spill] sm:$0xff]  ;;  %v11428_v25 = vld [vmem:[#allocation96_spill] sm:$0xff] }
  0xa5   : > { %v1119_v27 = vadd.f32 %v1087_v30, %v1019_v48  ;;  %v5058_v45 = vadd.f32 %v4293_v42, %v3624_v56  ;;  %v818_v62 = vmul.f32 %v11420_v9, %v11294_v8  ;;  %v1756_v38 = vmul.f32 %v11422_v36, %v5650_v49  ;;  %v11424_v48 = vld [vmem:[#allocation9_spill] sm:$0xff]  ;;  %v11427_v9 = vld [vmem:[#allocation14_spill] sm:$0xff] }
  0xa6   : > { %v650_v40 = vadd.f32 %v618_v53, %v550_v17  ;;  %v4962_v6 = vadd.f32 %v4930_v46, %v4862_v31  ;;  %v1387_v7 = vmul.f32 %v11423_v0, %v5629_v41  ;;  %v918_v28 = vmul.f32 %v11424_v48, %v11301_v4  ;;  %v11425_v53 = vld [vmem:[#allocation95_spill] sm:$0xff]  ;;  %v11426_v17 = vld [vmem:[#allocation97_spill] sm:$0xff] }
  0xa7   : > { %v1219_v18 = vadd.f32 %v1187_v50, %v1119_v27  ;;  %v1487_v56 = vmul.f32 %v11425_v53, %v11305_v21  ;;  %v1788_v23 = vadd.f32 %v1756_v38, %v1688_v47  ;;  %v1856_v30 = vmul.f32 %v11426_v17, %v11359_v22  ;;  %v11430_v27 = vld [vmem:[#allocation101_spill] sm:$0xff]  ;;  %v11431_v0 = vld [vmem:[#allocation99_spill] sm:$0xff] }
  0xa8   : > { %v750_v35 = vadd.f32 %v718_v32, %v650_v40  ;;  %v5122_v42 = vadd.f32 %v5058_v45, %v4962_v6  ;;  %v1587_v46 = vmul.f32 %v11428_v25, %v11427_v9  ;;  %v11429_v32 = vld [vmem:[#allocation98_spill] sm:$0xff]  ;;  %v1956_v36 = vmul.f32 %v11430_v27, %v5658_v51  ;;  %v11433_v6 = vld [vmem:[#allocation103_spill] sm:$0xff]  ;;  %v11434_v17 = vld [vmem:[#allocation105_spill] sm:$0xff] }
  0xa9   : > { %v1319_v59 = vadd.f32 %v1287_v5, %v1219_v18  ;;  %v2356_v50 = vmul.f32 %v11429_v32, %v11364_v15  ;;  %v1888_v40 = vadd.f32 %v1856_v30, %v1788_v23  ;;  %v2424_v48 = vmul.f32 %v11431_v0, %v11366_v54  ;;  %v11432_v45 = vld [vmem:[#allocation102_spill] sm:$0xff]  ;;  %v11435_v23 = vld [vmem:[#allocation104_spill] sm:$0xff] }
  0xaa   : > { %v850_v31 = vadd.f32 %v818_v62, %v750_v35  ;;  %v5154_v47 = vadd.f32 %v5122_v42, %v5090_v24  ;;  %v2056_v5 = vmul.f32 %v11432_v45, %v11368_v39  ;;  %v2156_v18 = vmul.f32 %v11433_v6, %v11311_v43  ;;  %v11436_v24 = vld [vmem:[#allocation107_spill] sm:$0xff]  ;;  %v11437_v42 = vld [vmem:[#allocation108_spill] sm:$0xff]  ;;  %v11439_v45 = vld [vmem:[#allocation106_spill] sm:$0xff] }
  0xab   : > { %v1419_v38 = vadd.f32 %v1387_v7, %v1319_v59  ;;  %v1988_v53 = vadd.f32 %v1956_v36, %v1888_v40  ;;  %v2256_v62 = vmul.f32 %v11434_v17, %v5676_v57  ;;  %v2456_v35 = vadd.f32 %v2424_v48, %v2356_v50  ;;  %v11438_v36 = vld [vmem:[#allocation22_spill] sm:$0xff]  ;;  %v11440_v50 = vld [vmem:[#allocation23_spill] sm:$0xff]  ;;  %v11441_v48 = vld [vmem:[#allocation109_spill] sm:$0xff] }
  0xac   : > { %v2524_v30 = vmul.f32 %v11435_v23, %v11313_v52  ;;  %v5193_v25 = vadd.f32 %v6068_v60, %v5154_v47  ;;  %v3025_v7 = vmul.f32 %v11436_v24, %v5725_v13  ;;  %v3093_v59 = vmul.f32 %v11437_v42, %v11375_v29  ;;  %v11442_v47 = vld [vmem:[#allocation24_spill] sm:$0xff]  ;;  %v315_v60 = vld [vmem:[#allocation2 + $0x30] sm:$0xff] }
  0xad   : > { %v1519_v32 = vadd.f32 %v1487_v56, %v1419_v38  ;;  %v6354_v27 = vadd.f32 %v918_v28, %v850_v31  ;;  %v2088_v0 = vadd.f32 %v2056_v5, %v1988_v53  ;;  %v2624_v6 = vmul.f32 %v11439_v45, %v11438_v36  ;;  %v11443_v56 = vld [vmem:[#allocation110_spill] sm:$0xff]  ;;  %v11444_v24 = vld [vmem:[#allocation112_spill] sm:$0xff]  ;;  %v11445_v31 = vld [vmem:[#allocation111_spill] sm:$0xff] }
  0xae   : > { %v2556_v40 = vadd.f32 %v2524_v30, %v2456_v35  ;;  %5225 = vst.msk [vmem:[%s6091_s10 + $0x10] sm:$0xff] %vm171_vm0, %v5193_v25  ;;  %v2724_v17 = vmul.f32 %v11441_v48, %v11440_v50  ;;  %v2824_v38 = vmul.f32 %v11443_v56, %v11442_v47  ;;  %v3125_v23 = vadd.f32 %v3093_v59, %v3025_v7  ;;  %v11446_v53 = vld [vmem:[#allocation114_spill] sm:$0xff]  ;;  %v6370_v30 = vld [vmem:[#allocation2 + $0xb0] sm:$0xff]  ;;  %v11448_v48 = vld [vmem:[#allocation29_spill] sm:$0xff] }
  0xaf   : > { %v3193_v34 = vmul.f32 %v11444_v24, %v11381_v10  ;;  %v2188_v42 = vadd.f32 %v2156_v18, %v2088_v0  ;;  %v2924_v5 = vmul.f32 %v11445_v31, %v11324_v58  ;;  %v3694_v35 = vmul.f32 %v11446_v53, %v5760_v33  ;;  %11447 = vst [vmem:[#allocation55_spill] sm:$0xff] %v6370_v30  ;;  %v11449_v50 = vld [vmem:[#allocation113_spill] sm:$0xff]  ;;  %v11450_v56 = vld [vmem:[#allocation34_spill] sm:$0xff]  ;;  %v11451_v7 = vld [vmem:[#allocation115_spill] sm:$0xff] }
  0xb0   : > { %v2656_v28 = vadd.f32 %v2624_v6, %v2556_v40  ;;  %v1619_v25 = vadd.f32 %v1587_v46, %v1519_v32  ;;  %v3293_v57 = vmul.f32 %v11449_v50, %v11448_v48  ;;  %v3762_v59 = vmul.f32 %v11451_v7, %v11450_v56  ;;  %v6376_v47 = vld [vmem:[#allocation2 + $0xb1] sm:$0xff]  ;;  %v11453_v0 = vld [vmem:[#allocation30_spill] sm:$0xff]  ;;  %v11456_v31 = vld [vmem:[#allocation117_spill] sm:$0xff] }
  0xb1   : > { %v3225_v45 = vadd.f32 %v3193_v34, %v3125_v23  ;;  %11452 = vst [vmem:[#allocation49_spill] sm:$0xff] %v6376_v47  ;;  %v11454_v40 = vld [vmem:[#allocation116_spill] sm:$0xff]  ;;  %v11455_v24 = vld [vmem:[#allocation31_spill] sm:$0xff]  ;;  %v11458_v33 = vld [vmem:[#allocation118_spill] sm:$0xff] }
  0xb2   : > { %v2756_v18 = vadd.f32 %v2724_v17, %v2656_v28  ;;  %v3393_v6 = vmul.f32 %v11454_v40, %v11453_v0  ;;  %v3493_v10 = vmul.f32 %v11456_v31, %v11455_v24  ;;  %v11457_v53 = vld [vmem:[#allocation32_spill] sm:$0xff]  ;;  %v3794_v34 = vadd.f32 %v3762_v59, %v3694_v35  ;;  %v11459_v32 = vld [vmem:[#allocation35_spill] sm:$0xff]  ;;  %v11465_v31 = vld [vmem:[#allocation41_spill] sm:$0xff] }
  0xb3   : > { %v3593_v58 = vmul.f32 %v11458_v33, %v11457_v53  ;;  %v3325_v46 = vadd.f32 %v3293_v57, %v3225_v45  ;;  %v11460_v23 = vld [vmem:[#allocation119_spill] sm:$0xff]  ;;  %v11461_v48 = vld [vmem:[#allocation40_spill] sm:$0xff]  ;;  %v2288_v17 = vadd.f32 %v2256_v62, %v2188_v42  ;;  %v4431_v24 = vmul.f32 %v11465_v31, %v6376_v47  ;;  %v11466_v45 = vld [vmem:[#allocation37_spill] sm:$0xff] }
  0xb4   : > { %v3862_v50 = vmul.f32 %v11460_v23, %v11459_v32  ;;  %v4363_v7 = vmul.f32 %v11461_v48, %v6370_v30  ;;  %v6388_v56 = vld [vmem:[#allocation2 + $0xb2] sm:$0xff]  ;;  %v2856_v28 = vadd.f32 %v2824_v38, %v2756_v18  ;;  %v11467_v59 = vld [vmem:[#allocation121_spill] sm:$0xff]  ;;  %v11468_v32 = vld [vmem:[#allocation38_spill] sm:$0xff] }
  0xb5   : > { %11462 = vst [vmem:[#allocation58_spill] sm:$0xff] %v6388_v56  ;;  %v11463_v29 = vld [vmem:[#allocation36_spill] sm:$0xff]  ;;  %v3425_v57 = vadd.f32 %v3393_v6, %v3325_v46  ;;  %v4062_v23 = vmul.f32 %v11467_v59, %v11466_v45  ;;  %v11469_v53 = vld [vmem:[#allocation122_spill] sm:$0xff]  ;;  %v4531_v47 = vmul.f32 %v11403_v61, %v6388_v56 }
  0xb6   : > { %v11464_v40 = vld [vmem:[#allocation120_spill] sm:$0xff]  ;;  %v3894_v35 = vadd.f32 %v3862_v50, %v3794_v34  ;;  %v4162_v30 = vmul.f32 %v11469_v53, %v11468_v32  ;;  %v2956_v38 = vadd.f32 %v2924_v5, %v2856_v28  ;;  %v11471_v42 = vld [vmem:[#allocation42_spill] sm:$0xff]  ;;  %v351_v50 = vmul.f32 %v11407_v3, %v315_v60  ;;  %v11473_v5 = vld [vmem:[#allocation45_spill] sm:$0xff] }
  0xb7   : > { %v3962_v0 = vmul.f32 %v11464_v40, %v11463_v29  ;;  %v383_v33 = vld [vmem:[#allocation2 + $0x31] sm:$0xff]  ;;  %v4262_v18 = vmul.f32 %v11471_v42, %v11405_v16  ;;  %v4463_v40 = vadd.f32 %v4431_v24, %v4363_v7  ;;  %v3525_v46 = vadd.f32 %v3493_v10, %v3425_v57  ;;  %v6411_v7 = vld [vmem:[#allocation2 + $0x48] sm:$0xff] }
  0xb8   : > { %v6398_v48 = vld [vmem:[#allocation2 + $0xb3] sm:$0xff]  ;;  %v419_v53 = vmul.f32 %v11340_v12, %v383_v33  ;;  %v5027_v45 = vadd.f32 %v2956_v38, %v2288_v17  ;;  %11474 = vst [vmem:[#allocation50_spill] sm:$0xff] %v6411_v7  ;;  %v6413_v42 = vld [vmem:[#allocation2 + $0x49] sm:$0xff]  ;;  %v4995_v17 = vadd.f32 %v1619_v25, %v6354_v27 }
  0xb9   : > { %11470 = vst [vmem:[#allocation60_spill] sm:$0xff] %v6398_v48  ;;  %v483_v62 = vld [vmem:[#allocation2 + $0x32] sm:$0xff]  ;;  %v3994_v34 = vadd.f32 %v3962_v0, %v3894_v35  ;;  %v4563_v32 = vadd.f32 %v4531_v47, %v4463_v40  ;;  %v4631_v28 = vmul.f32 %v11473_v5, %v6398_v48  ;;  %11475 = vst [vmem:[#allocation15_spill] sm:$0xff] %v6413_v42  ;;  %v6424_v38 = vld [vmem:[#allocation2 + $0x4a] sm:$0xff] }
  0xba   : > { %v6404_v29 = vld [vmem:[#allocation2 + $0xb4] sm:$0xff]  ;;  %v519_v24 = vmul.f32 %v11411_v1, %v483_v62  ;;  %v451_v33 = vadd.f32 %v419_v53, %v351_v50  ;;  %v3625_v57 = vadd.f32 %v3593_v58, %v3525_v46  ;;  %11478 = vst [vmem:[#allocation59_spill] sm:$0xff] %v6424_v38  ;;  %v1088_v48 = vmul.f32 %v11288_v11, %v6413_v42  ;;  %v6430_v50 = vld [vmem:[#allocation2 + $0x60] sm:$0xff] }
  0xbb   : > { %11472 = vst [vmem:[#allocation56_spill] sm:$0xff] %v6404_v29  ;;  %v583_v6 = vld [vmem:[#allocation2 + $0x33] sm:$0xff]  ;;  %v4094_v56 = vadd.f32 %v4062_v23, %v3994_v34  ;;  %v4731_v10 = vmul.f32 %v11342_v2, %v6404_v29  ;;  %v4663_v35 = vadd.f32 %v4631_v28, %v4563_v32  ;;  %v1020_v29 = vmul.f32 %v11287_v55, %v6411_v7 }
  0xbc   : > { %v683_v59 = vld [vmem:[#allocation2 + $0x34] sm:$0xff]  ;;  %v619_v47 = vmul.f32 %v11284_v26, %v583_v6  ;;  %v551_v23 = vadd.f32 %v519_v24, %v451_v33  ;;  %11479 = vst [vmem:[#allocation63_spill] sm:$0xff] %v6430_v50  ;;  %v6432_v6 = vld [vmem:[#allocation2 + $0x61] sm:$0xff]  ;;  %v1188_v28 = vmul.f32 %v11289_v19, %v6424_v38 }
  0xbd   : > { %v6417_v0 = vld [vmem:[#allocation2 + $0xb5] sm:$0xff]  ;;  %v719_v62 = vmul.f32 %v11285_v20, %v683_v59  ;;  %v4194_v40 = vadd.f32 %v4162_v30, %v4094_v56  ;;  %11480 = vst [vmem:[#allocation19_spill] sm:$0xff] %v6432_v6  ;;  %v4763_v58 = vadd.f32 %v4731_v10, %v4663_v35  ;;  %v5091_v30 = vadd.f32 %v5027_v45, %v4995_v17  ;;  %v6438_v56 = vld [vmem:[#allocation2 + $0x4b] sm:$0xff]  ;;  %v6442_v24 = vld [vmem:[#allocation2 + $0x62] sm:$0xff] }
  0xbe   : > { %11476 = vst [vmem:[#allocation61_spill] sm:$0xff] %v6417_v0  ;;  %v6419_v60 = vld [vmem:[#allocation2 + $0xb6] sm:$0xff]  ;;  %v4831_v27 = vmul.f32 %v11410_v63, %v6417_v0  ;;  %11481 = vst [vmem:[#allocation65_spill] sm:$0xff] %v6438_v56  ;;  %v651_v46 = vadd.f32 %v619_v47, %v551_v23  ;;  %v1120_v59 = vadd.f32 %v1088_v48, %v1020_v29  ;;  %v6445_v35 = vld [vmem:[#allocation2 + $0x4c] sm:$0xff] }
  0xbf   : > { %11477 = vst [vmem:[#allocation57_spill] sm:$0xff] %v6419_v60  ;;  %v783_v34 = vld [vmem:[#allocation2 + $0x35] sm:$0xff]  ;;  %v4931_v25 = vmul.f32 %v5995_v14, %v6419_v60  ;;  %v4294_v32 = vadd.f32 %v4262_v18, %v4194_v40  ;;  %11482 = vst [vmem:[#allocation20_spill] sm:$0xff] %v6442_v24  ;;  %v6447_v42 = vld [vmem:[#allocation2 + $0x4d] sm:$0xff]  ;;  %v1689_v14 = vmul.f32 %v5638_v44, %v6430_v50 }
  0xc0   : > { %v883_v53 = vld [vmem:[#allocation2 + $0x36] sm:$0xff]  ;;  %v4863_v33 = vadd.f32 %v4831_v27, %v4763_v58  ;;  %v819_v10 = vmul.f32 %v11294_v8, %v783_v34  ;;  %11483 = vst [vmem:[#allocation66_spill] sm:$0xff] %v6445_v35  ;;  %11484 = vst [vmem:[#allocation64_spill] sm:$0xff] %v6447_v42  ;;  %v1757_v45 = vmul.f32 %v5650_v49, %v6432_v6  ;;  %v6453_v18 = vld [vmem:[#allocation2 + $0x63] sm:$0xff] }
  0xc1   : > { %11485 = vst [vmem:[#allocation67_spill] sm:$0xff] %v6453_v18  ;;  %v5059_v29 = vadd.f32 %v4294_v32, %v3625_v57  ;;  %v751_v48 = vadd.f32 %v719_v62, %v651_v46  ;;  %v1220_v47 = vadd.f32 %v1188_v28, %v1120_v59  ;;  %v1288_v17 = vmul.f32 %v5620_v37, %v6438_v56  ;;  %v6457_v40 = vld [vmem:[#allocation2 + $0x78] sm:$0xff]  ;;  %v6462_v27 = vld [vmem:[#allocation2 + $0x4e] sm:$0xff]  ;;  %v6466_v38 = vld [vmem:[#allocation2 + $0x64] sm:$0xff] }
  0xc2   : > { %11486 = vst [vmem:[#allocation69_spill] sm:$0xff] %v6457_v40  ;;  %v6459_v23 = vld [vmem:[#allocation2 + $0x79] sm:$0xff]  ;;  %v4963_v34 = vadd.f32 %v4931_v25, %v4863_v33  ;;  %v919_v58 = vmul.f32 %v11301_v4, %v883_v53  ;;  %11488 = vst [vmem:[#allocation70_spill] sm:$0xff] %v6462_v27  ;;  %v1789_v50 = vadd.f32 %v1757_v45, %v1689_v14  ;;  %v6476_v28 = vld [vmem:[#allocation2 + $0x65] sm:$0xff] }
  0xc3   : > { %11487 = vst [vmem:[#allocation68_spill] sm:$0xff] %v6459_v23  ;;  %v1857_v6 = vmul.f32 %v11359_v22, %v6442_v24  ;;  %11489 = vst [vmem:[#allocation71_spill] sm:$0xff] %v6466_v38  ;;  %v1320_v57 = vadd.f32 %v1288_v17, %v1220_v47  ;;  %v1388_v62 = vmul.f32 %v5629_v41, %v6445_v35  ;;  %v6474_v46 = vld [vmem:[#allocation2 + $0x7a] sm:$0xff]  ;;  %v6484_v47 = vld [vmem:[#allocation2 + $0x90] sm:$0xff] }
  0xc4   : > { %v1488_v32 = vmul.f32 %v11305_v21, %v6447_v42  ;;  %v1957_v25 = vmul.f32 %v5658_v51, %v6453_v18  ;;  %11490 = vst [vmem:[#allocation72_spill] sm:$0xff] %v6474_v46  ;;  %v5123_v53 = vadd.f32 %v5059_v29, %v4963_v34  ;;  %11491 = vst [vmem:[#allocation73_spill] sm:$0xff] %v6476_v28  ;;  %v6482_v45 = vld [vmem:[#allocation2 + $0x7b] sm:$0xff] }
  0xc5   : > { %v1889_v59 = vadd.f32 %v1857_v6, %v1789_v50  ;;  %v2357_v33 = vmul.f32 %v11364_v15, %v6457_v40  ;;  %v2425_v14 = vmul.f32 %v11366_v54, %v6459_v23  ;;  %11492 = vst [vmem:[#allocation74_spill] sm:$0xff] %v6482_v45  ;;  %11493 = vst [vmem:[#allocation75_spill] sm:$0xff] %v6484_v47  ;;  %v6490_v6 = vld [vmem:[#allocation2 + $0x91] sm:$0xff]  ;;  %v6492_v40 = vld [vmem:[#allocation2 + $0x66] sm:$0xff] }
  0xc6   : > { %v851_v17 = vadd.f32 %v819_v10, %v751_v48  ;;  %v1420_v42 = vadd.f32 %v1388_v62, %v1320_v57  ;;  %v1588_v18 = vmul.f32 %v11427_v9, %v6462_v27  ;;  %v2057_v50 = vmul.f32 %v11368_v39, %v6466_v38  ;;  %11494 = vst [vmem:[#allocation76_spill] sm:$0xff] %v6490_v6  ;;  %v6496_v35 = vld [vmem:[#allocation2 + $0x7c] sm:$0xff]  ;;  %v6521_v0 = vld [vmem:[#allocation2 + $0x94] sm:$0xff] }
  0xc7   : > { %v5155_v29 = vadd.f32 %v5123_v53, %v5091_v30  ;;  %v1989_v34 = vadd.f32 %v1957_v25, %v1889_v59  ;;  %11495 = vst [vmem:[#allocation77_spill] sm:$0xff] %v6492_v40  ;;  %v2457_v24 = vadd.f32 %v2425_v14, %v2357_v33  ;;  %v2525_v23 = vmul.f32 %v11313_v52, %v6474_v46  ;;  %v6498_v10 = vld [vmem:[#allocation2 + $0x7d] sm:$0xff]  ;;  %v6508_v53 = vld [vmem:[#allocation2 + $0x92] sm:$0xff] }
  0xc8   : > { %11496 = vst [vmem:[#allocation78_spill] sm:$0xff] %v6496_v35  ;;  %11497 = vst [vmem:[#allocation80_spill] sm:$0xff] %v6498_v10  ;;  %v1520_v48 = vadd.f32 %v1488_v32, %v1420_v42  ;;  %v2157_v57 = vmul.f32 %v11311_v43, %v6476_v28  ;;  %v2625_v62 = vmul.f32 %v11438_v36, %v6482_v45  ;;  %v6504_v30 = vld [vmem:[#allocation2 + $0x7e] sm:$0xff]  ;;  %v11501_v42 = vld [vmem:[#allocation27_spill] sm:$0xff] }
  0xc9   : > { %11498 = vst [vmem:[#allocation79_spill] sm:$0xff] %v6504_v30  ;;  %v3026_v25 = vmul.f32 %v5725_v13, %v6484_v47  ;;  %11499 = vst [vmem:[#allocation81_spill] sm:$0xff] %v6508_v53  ;;  %v11500_v59 = vld [vmem:[#allocation100_spill] sm:$0xff]  ;;  %v2089_v14 = vadd.f32 %v2057_v50, %v1989_v34  ;;  %v2557_v38 = vadd.f32 %v2525_v23, %v2457_v24  ;;  %v11502_v28 = vld [vmem:[#allocation18_spill] sm:$0xff] }
  0xca   : > { %v5194_v33 = vadd.f32 %v11500_v59, %v5155_v29  ;;  %v3094_v32 = vmul.f32 %v11501_v42, %v6490_v6  ;;  %v951_v27 = vadd.f32 %v919_v58, %v851_v17  ;;  %v2257_v46 = vmul.f32 %v11502_v28, %v6492_v40  ;;  %v11503_v45 = vld [vmem:[#allocation23_spill] sm:$0xff]  ;;  %v11504_v60 = vld [vmem:[#allocation24_spill] sm:$0xff]  ;;  %11506 = vst [vmem:[#allocation83_spill] sm:$0xff] %v6521_v0  ;;  %v11507_v23 = vld [vmem:[#allocation25_spill] sm:$0xff] }
  0xcb   : > { %v2725_v56 = vmul.f32 %v11503_v45, %v6496_v35  ;;  %v2825_v7 = vmul.f32 %v11504_v60, %v6498_v10  ;;  %v6519_v47 = vld [vmem:[#allocation2 + $0x93] sm:$0xff]  ;;  %v2657_v24 = vadd.f32 %v2625_v62, %v2557_v38  ;;  %v2925_v50 = vmul.f32 %v11507_v23, %v6504_v30  ;;  %v11511_v35 = vld [vmem:[#allocation33_spill] sm:$0xff]  ;;  %v11513_v45 = vld [vmem:[#allocation34_spill] sm:$0xff] }
  0xcc   : > { %11505 = vst [vmem:[#allocation82_spill] sm:$0xff] %v6519_v47  ;;  %5226 = vst.msk [vmem:[%s6091_s10 + $0x18] sm:$0xff] %vm171_vm0, %v5194_v33  ;;  %v3126_v58 = vadd.f32 %v3094_v32, %v3026_v25  ;;  %v11508_v17 = vld [vmem:[#allocation28_spill] sm:$0xff]  ;;  %v1620_v40 = vadd.f32 %v1588_v18, %v1520_v48  ;;  %v2189_v10 = vadd.f32 %v2157_v57, %v2089_v14  ;;  %v11512_v6 = vld [vmem:[#allocation43_spill] sm:$0xff] }
  0xcd   : > { %v3194_v29 = vmul.f32 %v11508_v17, %v6508_v53  ;;  %v6529_v34 = vld [vmem:[#allocation2 + $0x95] sm:$0xff]  ;;  %v3695_v60 = vmul.f32 %v11512_v6, %v11511_v35  ;;  %v11514_v36 = vld [vmem:[#allocation62_spill] sm:$0xff]  ;;  %v6537_v38 = vld [vmem:[#allocation2 + $0xc0] sm:$0xff]  ;;  %v2757_v25 = vadd.f32 %v2725_v56, %v2657_v24 }
  0xce   : > { %11509 = vst [vmem:[#allocation84_spill] sm:$0xff] %v6529_v34  ;;  %v6531_v59 = vld [vmem:[#allocation2 + $0x96] sm:$0xff]  ;;  %v3763_v33 = vmul.f32 %v11514_v36, %v11513_v45  ;;  %11515 = vst [vmem:[#allocation86_spill] sm:$0xff] %v6537_v38  ;;  %v6539_v62 = vld [vmem:[#allocation2 + $0xc1] sm:$0xff] }
  0xcf   : > { %11510 = vst [vmem:[#allocation85_spill] sm:$0xff] %v6531_v59  ;;  %11516 = vst [vmem:[#allocation90_spill] sm:$0xff] %v6539_v62  ;;  %v3226_v32 = vadd.f32 %v3194_v29, %v3126_v58  ;;  %v11517_v30 = vld [vmem:[#allocation29_spill] sm:$0xff]  ;;  %v11518_v23 = vld [vmem:[#allocation30_spill] sm:$0xff]  ;;  %v2857_v56 = vadd.f32 %v2825_v7, %v2757_v25 }
  0xd0   : > { %v3294_v53 = vmul.f32 %v11517_v30, %v6519_v47  ;;  %v3394_v17 = vmul.f32 %v11518_v23, %v6521_v0  ;;  %v11519_v18 = vld [vmem:[#allocation31_spill] sm:$0xff]  ;;  %v11520_v6 = vld [vmem:[#allocation32_spill] sm:$0xff]  ;;  %v3795_v14 = vadd.f32 %v3763_v33, %v3695_v60  ;;  %v6551_v42 = vld [vmem:[#allocation2 + $0xc2] sm:$0xff]  ;;  %v4432_v0 = vmul.f32 %v11465_v31, %v6539_v62 }
  0xd1   : > { %v3494_v48 = vmul.f32 %v11519_v18, %v6529_v34  ;;  %v3594_v57 = vmul.f32 %v11520_v6, %v6531_v59  ;;  %v11521_v36 = vld [vmem:[#allocation35_spill] sm:$0xff]  ;;  %11523 = vst [vmem:[#allocation87_spill] sm:$0xff] %v6551_v42  ;;  %v11524_v58 = vld [vmem:[#allocation40_spill] sm:$0xff]  ;;  %v2289_v23 = vadd.f32 %v2257_v46, %v2189_v10  ;;  %v11527_v60 = vld [vmem:[#allocation37_spill] sm:$0xff]  ;;  %v2957_v7 = vadd.f32 %v2925_v50, %v2857_v56 }
  0xd2   : > { %v11522_v45 = vld [vmem:[#allocation47_spill] sm:$0xff]  ;;  %v3326_v24 = vadd.f32 %v3294_v53, %v3226_v32  ;;  %v4364_v29 = vmul.f32 %v11524_v58, %v6537_v38  ;;  %v316_v47 = vld [vmem:[#allocation2 + $0x38] sm:$0xff]  ;;  %v4532_v32 = vmul.f32 %v11403_v61, %v6551_v42  ;;  %v11530_v31 = vld [vmem:[#allocation38_spill] sm:$0xff] }
  0xd3   : > { %v3863_v35 = vmul.f32 %v11522_v45, %v11521_v36  ;;  %v11525_v18 = vld [vmem:[#allocation36_spill] sm:$0xff]  ;;  %v11528_v33 = vld [vmem:[#allocation51_spill] sm:$0xff]  ;;  %v6561_v45 = vld [vmem:[#allocation2 + $0xc3] sm:$0xff] }
  0xd4   : > { %v11526_v30 = vld [vmem:[#allocation48_spill] sm:$0xff]  ;;  %v4063_v6 = vmul.f32 %v11528_v33, %v11527_v60  ;;  %11529 = vst [vmem:[#allocation88_spill] sm:$0xff] %v6561_v45  ;;  %v3426_v53 = vadd.f32 %v3394_v17, %v3326_v24  ;;  %v4464_v25 = vadd.f32 %v4432_v0, %v4364_v29  ;;  %v11532_v10 = vld [vmem:[#allocation54_spill] sm:$0xff]  ;;  %v352_v33 = vmul.f32 %v11407_v3, %v316_v47 }
  0xd5   : > { %v3895_v34 = vadd.f32 %v3863_v35, %v3795_v14  ;;  %v3963_v59 = vmul.f32 %v11526_v30, %v11525_v18  ;;  %v384_v36 = vld [vmem:[#allocation2 + $0x39] sm:$0xff]  ;;  %v4263_v30 = vmul.f32 %v11532_v10, %v11405_v16  ;;  %v6569_v14 = vld [vmem:[#allocation2 + $0xc4] sm:$0xff]  ;;  %v4632_v0 = vmul.f32 %v11473_v5, %v6561_v45  ;;  %v6580_v42 = vld [vmem:[#allocation2 + $0x51] sm:$0xff] }
  0xd6   : > { %v484_v38 = vld [vmem:[#allocation2 + $0x3a] sm:$0xff]  ;;  %11533 = vst [vmem:[#allocation53_spill] sm:$0xff] %v6569_v14  ;;  %v3526_v18 = vadd.f32 %v3494_v48, %v3426_v53  ;;  %v4564_v50 = vadd.f32 %v4532_v32, %v4464_v25  ;;  %v6574_v17 = vld [vmem:[#allocation2 + $0xc5] sm:$0xff]  ;;  %v4996_v24 = vadd.f32 %v1620_v40, %v951_v27  ;;  %v5028_v29 = vadd.f32 %v2957_v7, %v2289_v23  ;;  %v6591_v23 = vld [vmem:[#allocation2 + $0x52] sm:$0xff] }
  0xd7   : > { %v3995_v62 = vadd.f32 %v3963_v59, %v3895_v34  ;;  %v11531_v46 = vld [vmem:[#allocation52_spill] sm:$0xff]  ;;  %11534 = vst [vmem:[#allocation5_spill] sm:$0xff] %v6574_v17  ;;  %v420_v34 = vmul.f32 %v11340_v12, %v384_v36  ;;  %v6577_v59 = vld [vmem:[#allocation2 + $0x50] sm:$0xff]  ;;  %11536 = vst [vmem:[#allocation6_spill] sm:$0xff] %v6580_v42  ;;  %v4732_v48 = vmul.f32 %v11342_v2, %v6569_v14 }
  0xd8   : > { %v4163_v35 = vmul.f32 %v11531_v46, %v11530_v31  ;;  %v584_v60 = vld [vmem:[#allocation2 + $0x3b] sm:$0xff]  ;;  %11535 = vst [vmem:[#allocation89_spill] sm:$0xff] %v6577_v59  ;;  %v520_v46 = vmul.f32 %v11411_v1, %v484_v38  ;;  %v4664_v47 = vadd.f32 %v4632_v0, %v4564_v50  ;;  %v6584_v53 = vld [vmem:[#allocation2 + $0xc6] sm:$0xff]  ;;  %v3626_v36 = vadd.f32 %v3594_v57, %v3526_v18  ;;  %v11564_v14 = vld [vmem:[#allocation23_spill] sm:$0xff] }
  0xd9   : > { %v4095_v56 = vadd.f32 %v4063_v6, %v3995_v62  ;;  %v684_v10 = vld [vmem:[#allocation2 + $0x3c] sm:$0xff]  ;;  %11537 = vst [vmem:[#allocation11_spill] sm:$0xff] %v6584_v53  ;;  %v452_v25 = vadd.f32 %v420_v34, %v352_v33  ;;  %v620_v32 = vmul.f32 %v11284_v26, %v584_v60  ;;  %v4832_v40 = vmul.f32 %v11410_v63, %v6574_v17  ;;  %v6596_v50 = vld [vmem:[#allocation2 + $0x68] sm:$0xff]  ;;  %v6603_v60 = vld [vmem:[%s10258_s1 + $0x30] ss:$0 sm:$0xff] }
  0xda   : > { %v1021_v27 = vmul.f32 %v11287_v55, %v6577_v59  ;;  %11538 = vst [vmem:[#allocation7_spill] sm:$0xff] %v6591_v23  ;;  %v4764_v38 = vadd.f32 %v4732_v48, %v4664_v47  ;;  %v720_v6 = vmul.f32 %v11285_v20, %v684_v10  ;;  %v784_v7 = vld [vmem:[#allocation2 + $0x3d] sm:$0xff]  ;;  %v1089_v33 = vmul.f32 %v11288_v11, %v6580_v42  ;;  %v6598_v18 = vld [vmem:[#allocation2 + $0x69] sm:$0xff]  ;;  %v6607_v34 = vld [vmem:[#allocation2 + $0x53] sm:$0xff] }
  0xdb   : > { %v4195_v45 = vadd.f32 %v4163_v35, %v4095_v56  ;;  %v552_v62 = vadd.f32 %v520_v46, %v452_v25  ;;  %11539 = vst [vmem:[#allocation10_spill] sm:$0xff] %v6596_v50  ;;  %11540 = vst [vmem:[#allocation12_spill] sm:$0xff] %v6598_v18  ;;  %v4932_v35 = vmul.f32 %v6603_v60, %v6584_v53  ;;  %v884_v10 = vld [vmem:[#allocation2 + $0x3e] sm:$0xff]  ;;  %v6611_v25 = vld [vmem:[#allocation2 + $0x54] sm:$0xff] }
  0xdc   : > { %v5092_v0 = vadd.f32 %v5028_v29, %v4996_v24  ;;  %11541 = vst [vmem:[#allocation8_spill] sm:$0xff] %v6607_v34  ;;  %v4864_v56 = vadd.f32 %v4832_v40, %v4764_v38  ;;  %v1121_v47 = vadd.f32 %v1089_v33, %v1021_v27  ;;  %v1189_v48 = vmul.f32 %v11289_v19, %v6591_v23  ;;  %v6616_v59 = vld [vmem:[#allocation2 + $0x55] sm:$0xff]  ;;  %v6667_v53 = vld [vmem:[#allocation2 + $0x84] sm:$0xff] }
  0xdd   : > { %v4295_v57 = vadd.f32 %v4263_v30, %v4195_v45  ;;  %v652_v46 = vadd.f32 %v620_v32, %v552_v62  ;;  %11542 = vst [vmem:[#allocation91_spill] sm:$0xff] %v6611_v25  ;;  %v6613_v45 = vld [vmem:[#allocation2 + $0x6a] sm:$0xff]  ;;  %v820_v42 = vmul.f32 %v11294_v8, %v784_v7  ;;  %11544 = vst [vmem:[#allocation94_spill] sm:$0xff] %v6616_v59  ;;  %v6622_v32 = vld [vmem:[#allocation2 + $0x80] sm:$0xff] }
  0xde   : > { %11543 = vst [vmem:[#allocation92_spill] sm:$0xff] %v6613_v45  ;;  %v1690_v24 = vmul.f32 %v5638_v44, %v6596_v50  ;;  %v1758_v29 = vmul.f32 %v5650_v49, %v6598_v18  ;;  %11545 = vst [vmem:[#allocation93_spill] sm:$0xff] %v6622_v32  ;;  %v4964_v40 = vadd.f32 %v4932_v35, %v4864_v56  ;;  %v6626_v33 = vld [vmem:[#allocation2 + $0x56] sm:$0xff]  ;;  %v6630_v7 = vld [vmem:[#allocation2 + $0x81] sm:$0xff] }
  0xdf   : > { %v5060_v30 = vadd.f32 %v4295_v57, %v3626_v36  ;;  %v752_v27 = vadd.f32 %v720_v6, %v652_v46  ;;  %v1221_v38 = vadd.f32 %v1189_v48, %v1121_v47  ;;  %v1289_v62 = vmul.f32 %v5620_v37, %v6607_v34  ;;  %11546 = vst [vmem:[#allocation9_spill] sm:$0xff] %v6626_v33  ;;  %v6628_v36 = vld [vmem:[#allocation2 + $0x6b] sm:$0xff]  ;;  %v6669_v17 = vld [vmem:[#allocation2 + $0x9a] sm:$0xff] }
  0xe0   : > { %11547 = vst [vmem:[#allocation95_spill] sm:$0xff] %v6628_v36  ;;  %11548 = vst [vmem:[#allocation97_spill] sm:$0xff] %v6630_v7  ;;  %v920_v57 = vmul.f32 %v11301_v4, %v884_v10  ;;  %v1389_v50 = vmul.f32 %v5629_v41, %v6611_v25  ;;  %v1790_v18 = vadd.f32 %v1758_v29, %v1690_v24  ;;  %v6637_v6 = vld [vmem:[#allocation2 + $0x6c] sm:$0xff]  ;;  %v6645_v10 = vld [vmem:[#allocation2 + $0x82] sm:$0xff] }
  0xe1   : > { %v1858_v35 = vmul.f32 %v11359_v22, %v6613_v45  ;;  %11549 = vst [vmem:[#allocation96_spill] sm:$0xff] %v6637_v6  ;;  %v5124_v56 = vadd.f32 %v5060_v30, %v4964_v40  ;;  %v1321_v46 = vadd.f32 %v1289_v62, %v1221_v38  ;;  %v1489_v47 = vmul.f32 %v11305_v21, %v6616_v59  ;;  %v6641_v48 = vld [vmem:[#allocation2 + $0x6d] sm:$0xff]  ;;  %v6655_v40 = vld [vmem:[#allocation2 + $0x98] sm:$0xff] }
  0xe2   : > { %11550 = vst [vmem:[#allocation98_spill] sm:$0xff] %v6641_v48  ;;  %v2358_v34 = vmul.f32 %v11364_v15, %v6622_v32  ;;  %11551 = vst [vmem:[#allocation101_spill] sm:$0xff] %v6645_v10  ;;  %v1589_v24 = vmul.f32 %v11427_v9, %v6626_v33  ;;  %v1958_v45 = vmul.f32 %v5658_v51, %v6628_v36  ;;  %v6651_v25 = vld [vmem:[#allocation2 + $0x6e] sm:$0xff]  ;;  %v6657_v38 = vld [vmem:[#allocation2 + $0x99] sm:$0xff] }
  0xe3   : > { %v1890_v29 = vadd.f32 %v1858_v35, %v1790_v18  ;;  %11552 = vst [vmem:[#allocation99_spill] sm:$0xff] %v6651_v25  ;;  %v2426_v30 = vmul.f32 %v11366_v54, %v6630_v7  ;;  %11553 = vst [vmem:[#allocation102_spill] sm:$0xff] %v6655_v40  ;;  %v5156_v62 = vadd.f32 %v5124_v56, %v5092_v0  ;;  %v6661_v33 = vld [vmem:[#allocation2 + $0x83] sm:$0xff]  ;;  %v11561_v56 = vld [vmem:[#allocation27_spill] sm:$0xff] }
  0xe4   : > { %11554 = vst [vmem:[#allocation103_spill] sm:$0xff] %v6657_v38  ;;  %v852_v32 = vadd.f32 %v820_v42, %v752_v27  ;;  %v1421_v59 = vadd.f32 %v1389_v50, %v1321_v46  ;;  %v2058_v23 = vmul.f32 %v11368_v39, %v6637_v6  ;;  %11555 = vst [vmem:[#allocation105_spill] sm:$0xff] %v6661_v33  ;;  %v6674_v42 = vld [vmem:[%s10259_s2] ss:$0 sm:$0xff] }
  0xe5   : > { %v1990_v18 = vadd.f32 %v1958_v45, %v1890_v29  ;;  %v2158_v35 = vmul.f32 %v11311_v43, %v6641_v48  ;;  %v2458_v36 = vadd.f32 %v2426_v30, %v2358_v34  ;;  %v2526_v7 = vmul.f32 %v11313_v52, %v6645_v10  ;;  %11556 = vst [vmem:[#allocation104_spill] sm:$0xff] %v6667_v53  ;;  %v6679_v45 = vld [vmem:[#allocation2 + $0x85] sm:$0xff] }
  0xe6   : > { %11557 = vst [vmem:[#allocation107_spill] sm:$0xff] %v6669_v17  ;;  %11558 = vst [vmem:[#allocation108_spill] sm:$0xff] %v6674_v42  ;;  %v5195_v50 = vadd.f32 %v6674_v42, %v5156_v62  ;;  %v2258_v0 = vmul.f32 %v11502_v28, %v6651_v25  ;;  %v6681_v34 = vld [vmem:[#allocation2 + $0x86] sm:$0xff]  ;;  %v3027_v27 = vmul.f32 %v5725_v13, %v6655_v40  ;;  %v6689_v62 = vld [vmem:[#allocation2 + $0x9b] sm:$0xff] }
  0xe7   : > { %11559 = vst [vmem:[#allocation106_spill] sm:$0xff] %v6679_v45  ;;  %11560 = vst [vmem:[#allocation109_spill] sm:$0xff] %v6681_v34  ;;  %v3095_v46 = vmul.f32 %v11561_v56, %v6657_v38  ;;  %v1521_v29 = vadd.f32 %v1489_v47, %v1421_v59  ;;  %v2090_v30 = vadd.f32 %v2058_v23, %v1990_v18  ;;  %v11562_v10 = vld [vmem:[#allocation22_spill] sm:$0xff]  ;;  %v11565_v40 = vld [vmem:[#allocation28_spill] sm:$0xff] }
  0xe8   : > { %v2558_v48 = vadd.f32 %v2526_v7, %v2458_v36  ;;  %v2626_v6 = vmul.f32 %v11562_v10, %v6661_v33  ;;  %11563 = vst [vmem:[#allocation110_spill] sm:$0xff] %v6689_v62  ;;  %5227 = vst.msk [vmem:[%s6091_s10 + $0x20] sm:$0xff] %vm171_vm0, %v5195_v50  ;;  %v952_v25 = vadd.f32 %v920_v57, %v852_v32  ;;  %v6697_v13 = vld [vmem:[#allocation2 + $0x9c] sm:$0xff]  ;;  %v11571_v32 = vld [vmem:[#allocation55_spill] sm:$0xff] }
  0xe9   : > { %v2726_v28 = vmul.f32 %v11564_v14, %v6667_v53  ;;  %v3127_v43 = vadd.f32 %v3095_v46, %v3027_v27  ;;  %v3195_v42 = vmul.f32 %v11565_v40, %v6669_v17  ;;  %11566 = vst [vmem:[#allocation112_spill] sm:$0xff] %v6697_v13  ;;  %v6699_v59 = vld [vmem:[#allocation2 + $0x9d] sm:$0xff]  ;;  %v6707_v38 = vld [vmem:[#allocation2 + $0xc8] sm:$0xff]  ;;  %v2190_v27 = vadd.f32 %v2158_v35, %v2090_v30 }
  0xea   : > { %11567 = vst [vmem:[#allocation111_spill] sm:$0xff] %v6699_v59  ;;  %v2658_v23 = vadd.f32 %v2626_v6, %v2558_v48  ;;  %v11568_v36 = vld [vmem:[#allocation24_spill] sm:$0xff]  ;;  %v11569_v47 = vld [vmem:[#allocation25_spill] sm:$0xff]  ;;  %11572 = vst [vmem:[#allocation114_spill] sm:$0xff] %v6707_v38 }
  0xeb   : > { %v2826_v7 = vmul.f32 %v11568_v36, %v6679_v45  ;;  %v2926_v18 = vmul.f32 %v11569_v47, %v6681_v34  ;;  %v11570_v50 = vld [vmem:[#allocation33_spill] sm:$0xff]  ;;  %v3227_v46 = vadd.f32 %v3195_v42, %v3127_v43  ;;  %v11575_v40 = vld [vmem:[#allocation34_spill] sm:$0xff]  ;;  %v1621_v45 = vadd.f32 %v1589_v24, %v1521_v29  ;;  %v11580_v42 = vld [vmem:[#allocation35_spill] sm:$0xff] }
  0xec   : > { %v3696_v57 = vmul.f32 %v11571_v32, %v11570_v50  ;;  %v11573_v17 = vld [vmem:[#allocation29_spill] sm:$0xff]  ;;  %v6715_v14 = vld [vmem:[#allocation2 + $0xc9] sm:$0xff]  ;;  %v2758_v36 = vadd.f32 %v2726_v28, %v2658_v23  ;;  %v11583_v24 = vld [vmem:[#allocation32_spill] sm:$0xff] }
  0xed   : > { %v3295_v53 = vmul.f32 %v11573_v17, %v6689_v62  ;;  %v6711_v33 = vld [vmem:[#allocation2 + $0x9e] sm:$0xff]  ;;  %11577 = vst [vmem:[#allocation115_spill] sm:$0xff] %v6715_v14  ;;  %v11578_v34 = vld [vmem:[#allocation30_spill] sm:$0xff]  ;;  %v11579_v32 = vld [vmem:[#allocation31_spill] sm:$0xff]  ;;  %v4365_v17 = vmul.f32 %v11524_v58, %v6707_v38 }
  0xee   : > { %11574 = vst [vmem:[#allocation113_spill] sm:$0xff] %v6711_v33  ;;  %v11576_v6 = vld [vmem:[#allocation49_spill] sm:$0xff]  ;;  %v3395_v47 = vmul.f32 %v11578_v34, %v6697_v13  ;;  %v3495_v50 = vmul.f32 %v11579_v32, %v6699_v59  ;;  %v11581_v30 = vld [vmem:[#allocation58_spill] sm:$0xff]  ;;  %v3595_v28 = vmul.f32 %v11583_v24, %v6711_v33  ;;  %v11584_v29 = vld [vmem:[#allocation36_spill] sm:$0xff] }
  0xef   : > { %v3764_v48 = vmul.f32 %v11576_v6, %v11575_v40  ;;  %v3327_v35 = vadd.f32 %v3295_v53, %v3227_v46  ;;  %v3864_v62 = vmul.f32 %v11581_v30, %v11580_v42  ;;  %v6725_v56 = vld [vmem:[#allocation2 + $0xca] sm:$0xff]  ;;  %v2858_v6 = vadd.f32 %v2826_v7, %v2758_v36  ;;  %v11585_v23 = vld [vmem:[#allocation60_spill] sm:$0xff]  ;;  %v11586_v34 = vld [vmem:[#allocation41_spill] sm:$0xff] }
  0xf0   : > { %11582 = vst [vmem:[#allocation116_spill] sm:$0xff] %v6725_v56  ;;  %v3964_v13 = vmul.f32 %v11585_v23, %v11584_v29  ;;  %v4433_v59 = vmul.f32 %v11586_v34, %v6715_v14  ;;  %v2290_v53 = vadd.f32 %v2258_v0, %v2190_v27  ;;  %v11588_v30 = vld [vmem:[#allocation56_spill] sm:$0xff]  ;;  %v6735_v32 = vld [vmem:[#allocation2 + $0xcb] sm:$0xff]  ;;  %v11591_v7 = vld [vmem:[#allocation61_spill] sm:$0xff]  ;;  %v4533_v23 = vmul.f32 %v11403_v61, %v6725_v56 }
  0xf1   : > { %v3796_v43 = vadd.f32 %v3764_v48, %v3696_v57  ;;  %v3427_v57 = vadd.f32 %v3395_v47, %v3327_v35  ;;  %v11587_v48 = vld [vmem:[#allocation37_spill] sm:$0xff]  ;;  %11589 = vst [vmem:[#allocation117_spill] sm:$0xff] %v6735_v32  ;;  %v6737_v38 = vld [vmem:[#allocation2 + $0xcc] sm:$0xff]  ;;  %v2958_v36 = vadd.f32 %v2926_v18, %v2858_v6  ;;  %v4164_v33 = vmul.f32 %v11591_v7, %v11530_v31 }
  0xf2   : > { %v4064_v42 = vmul.f32 %v11588_v30, %v11587_v48  ;;  %11590 = vst [vmem:[#allocation118_spill] sm:$0xff] %v6737_v38  ;;  %v4465_v24 = vadd.f32 %v4433_v59, %v4365_v17  ;;  %v11592_v0 = vld [vmem:[#allocation50_spill] sm:$0xff]  ;;  %v11593_v47 = vld [vmem:[#allocation15_spill] sm:$0xff]  ;;  %v11594_v35 = vld [vmem:[#allocation57_spill] sm:$0xff]  ;;  %v4633_v18 = vmul.f32 %v11473_v5, %v6735_v32  ;;  %v4733_v17 = vmul.f32 %v11342_v2, %v6737_v38 }
  0xf3   : > { %v3896_v46 = vadd.f32 %v3864_v62, %v3796_v43  ;;  %v3527_v29 = vadd.f32 %v3495_v50, %v3427_v57  ;;  %v353_v62 = vmul.f32 %v11592_v0, %v11407_v3  ;;  %v421_v27 = vmul.f32 %v11593_v47, %v11340_v12  ;;  %v6753_v6 = vld [vmem:[#allocation2 + $0xcd] sm:$0xff] }
  0xf4   : > { %v4264_v43 = vmul.f32 %v11594_v35, %v11405_v16  ;;  %v4565_v30 = vadd.f32 %v4533_v23, %v4465_v24  ;;  %11595 = vst [vmem:[#allocation119_spill] sm:$0xff] %v6753_v6  ;;  %v4997_v50 = vadd.f32 %v1621_v45, %v952_v25  ;;  %v5029_v35 = vadd.f32 %v2958_v36, %v2290_v53  ;;  %v11598_v24 = vld [vmem:[#allocation65_spill] sm:$0xff]  ;;  %v11599_v38 = vld [vmem:[#allocation63_spill] sm:$0xff] }
  0xf5   : > { %v3996_v14 = vadd.f32 %v3964_v13, %v3896_v46  ;;  %v6755_v13 = vld [vmem:[#allocation2 + $0xce] sm:$0xff]  ;;  %v453_v57 = vadd.f32 %v421_v27, %v353_v62  ;;  %v3627_v0 = vadd.f32 %v3595_v28, %v3527_v29  ;;  %v621_v23 = vmul.f32 %v11598_v24, %v11284_v26  ;;  %v11602_v62 = vld [vmem:[#allocation20_spill] sm:$0xff] }
  0xf6   : > { %11596 = vst [vmem:[#allocation120_spill] sm:$0xff] %v6755_v13  ;;  %v11597_v46 = vld [vmem:[#allocation59_spill] sm:$0xff]  ;;  %v4665_v47 = vadd.f32 %v4633_v18, %v4565_v30  ;;  %v4833_v25 = vmul.f32 %v11410_v63, %v6753_v6  ;;  %v4933_v45 = vmul.f32 %v6603_v60, %v6755_v13  ;;  %v11601_v28 = vld [vmem:[#allocation66_spill] sm:$0xff]  ;;  %v1190_v27 = vmul.f32 %v11602_v62, %v11289_v19  ;;  %v11603_v18 = vld [vmem:[#allocation69_spill] sm:$0xff] }
  0xf7   : > { %v4096_v59 = vadd.f32 %v4064_v42, %v3996_v14  ;;  %v521_v7 = vmul.f32 %v11597_v46, %v11411_v1  ;;  %v1022_v14 = vmul.f32 %v11599_v38, %v11287_v55  ;;  %v11600_v42 = vld [vmem:[#allocation19_spill] sm:$0xff]  ;;  %v721_v29 = vmul.f32 %v11601_v28, %v11285_v20  ;;  %v11610_v28 = vld [vmem:[#allocation74_spill] sm:$0xff]  ;;  %v11612_v62 = vld [vmem:[#allocation76_spill] sm:$0xff] }
  0xf8   : > { %v1090_v2 = vmul.f32 %v11600_v42, %v11288_v11  ;;  %v4765_v16 = vadd.f32 %v4733_v17, %v4665_v47  ;;  %v5093_v30 = vadd.f32 %v5029_v35, %v4997_v50  ;;  %v1691_v17 = vmul.f32 %v11603_v18, %v5638_v44  ;;  %v11605_v24 = vld [vmem:[#allocation67_spill] sm:$0xff]  ;;  %v11608_v35 = vld [vmem:[#allocation70_spill] sm:$0xff]  ;;  %v11636_v6 = vld [vmem:[#allocation25_spill] sm:$0xff] }
  0xf9   : > { %v4196_v32 = vadd.f32 %v4164_v33, %v4096_v59  ;;  %v553_v56 = vadd.f32 %v521_v7, %v453_v57  ;;  %v11604_v59 = vld [vmem:[#allocation68_spill] sm:$0xff]  ;;  %v1290_v42 = vmul.f32 %v11605_v24, %v5620_v37 }
  0xfa   : > { %v1122_v33 = vadd.f32 %v1090_v2, %v1022_v14  ;;  %v4865_v38 = vadd.f32 %v4833_v25, %v4765_v16  ;;  %v1759_v57 = vmul.f32 %v11604_v59, %v5650_v49  ;;  %v11606_v2 = vld [vmem:[#allocation64_spill] sm:$0xff]  ;;  %v11609_v25 = vld [vmem:[#allocation71_spill] sm:$0xff]  ;;  %v11614_v59 = vld [vmem:[#allocation73_spill] sm:$0xff] }
  0xfb   : > { %v4296_v53 = vadd.f32 %v4264_v43, %v4196_v32  ;;  %v653_v36 = vadd.f32 %v621_v23, %v553_v56  ;;  %v821_v56 = vmul.f32 %v11606_v2, %v11294_v8  ;;  %v11607_v16 = vld [vmem:[#allocation72_spill] sm:$0xff]  ;;  %v921_v23 = vmul.f32 %v11608_v35, %v11301_v4  ;;  %v11618_v35 = vld [vmem:[#allocation77_spill] sm:$0xff] }
  0xfc   : > { %v1222_v47 = vadd.f32 %v1190_v27, %v1122_v33  ;;  %v4965_v32 = vadd.f32 %v4933_v45, %v4865_v38  ;;  %v1791_v43 = vadd.f32 %v1759_v57, %v1691_v17  ;;  %v1859_v50 = vmul.f32 %v11607_v16, %v11359_v22  ;;  %v11611_v45 = vld [vmem:[#allocation75_spill] sm:$0xff]  ;;  %v6793_v38 = vld [vmem:[#allocation2 + $0xa8] sm:$0xff] }
  0xfd   : > { %v5061_v46 = vadd.f32 %v4296_v53, %v3627_v0  ;;  %v753_v7 = vadd.f32 %v721_v29, %v653_v36  ;;  %v1390_v0 = vmul.f32 %v11609_v25, %v5629_v41  ;;  %v1959_v29 = vmul.f32 %v11610_v28, %v5658_v51  ;;  %11613 = vst [vmem:[#allocation121_spill] sm:$0xff] %v6793_v38  ;;  %v11620_v25 = vld [vmem:[#allocation26_spill] sm:$0xff] }
  0xfe   : > { %v1322_v14 = vadd.f32 %v1290_v42, %v1222_v47  ;;  %v1891_v36 = vadd.f32 %v1859_v50, %v1791_v43  ;;  %v2359_v33 = vmul.f32 %v11611_v45, %v11364_v15  ;;  %v2427_v27 = vmul.f32 %v11612_v62, %v11366_v54  ;;  %v11615_v47 = vld [vmem:[#allocation78_spill] sm:$0xff]  ;;  %v11617_v43 = vld [vmem:[#allocation81_spill] sm:$0xff]  ;;  %v11622_v45 = vld [vmem:[#allocation108_spill] sm:$0xff] }
  0xff   : > { %v5125_v53 = vadd.f32 %v5061_v46, %v4965_v32  ;;  %v853_v18 = vadd.f32 %v821_v56, %v753_v7  ;;  %v1490_v57 = vmul.f32 %v11614_v59, %v11305_v21  ;;  %v2059_v24 = vmul.f32 %v11615_v47, %v11368_v39  ;;  %v6799_v42 = vld [vmem:[#allocation2 + $0xa9] sm:$0xff] }
 0x100   : > { %v1422_v17 = vadd.f32 %v1390_v0, %v1322_v14  ;;  %11616 = vst [vmem:[#allocation122_spill] sm:$0xff] %v6799_v42  ;;  %v1991_v32 = vadd.f32 %v1959_v29, %v1891_v36  ;;  %v2459_v2 = vadd.f32 %v2427_v27, %v2359_v33  ;;  %v2527_v16 = vmul.f32 %v11617_v43, %v11313_v52  ;;  %v11619_v56 = vld [vmem:[#allocation82_spill] sm:$0xff]  ;;  %v11623_v36 = vld [vmem:[#allocation27_spill] sm:$0xff]  ;;  %v11624_v27 = vld [vmem:[#allocation17_spill] sm:$0xff] }
 0x101   : > { %v5157_v46 = vadd.f32 %v5125_v53, %v5093_v30  ;;  %v1590_v7 = vmul.f32 %v11618_v35, %v11427_v9  ;;  %v2627_v14 = vmul.f32 %v11619_v56, %v11562_v10  ;;  %v3028_v0 = vmul.f32 %v11620_v25, %v6793_v38  ;;  %v6809_v28 = vld [vmem:[#allocation2 + $0xaa] sm:$0xff]  ;;  %v11637_v10 = vld [vmem:[#allocation85_spill] sm:$0xff] }
 0x102   : > { %v1522_v50 = vadd.f32 %v1490_v57, %v1422_v17  ;;  %11621 = vst [vmem:[#allocation42_spill] sm:$0xff] %v6809_v28  ;;  %v2091_v29 = vadd.f32 %v2059_v24, %v1991_v32  ;;  %v2559_v53 = vadd.f32 %v2527_v16, %v2459_v2  ;;  %v3096_v33 = vmul.f32 %v11623_v36, %v6799_v42  ;;  %v11625_v17 = vld [vmem:[#allocation80_spill] sm:$0xff]  ;;  %v11626_v57 = vld [vmem:[#allocation18_spill] sm:$0xff]  ;;  %v11627_v47 = vld [vmem:[#allocation79_spill] sm:$0xff] }
 0x103   : > { %v5196_v30 = vadd.f32 %v11622_v45, %v5157_v46  ;;  %v953_v62 = vadd.f32 %v921_v23, %v853_v18  ;;  %v2159_v59 = vmul.f32 %v11625_v17, %v11624_v27  ;;  %v2259_v43 = vmul.f32 %v11627_v47, %v11626_v57  ;;  %v11628_v35 = vld [vmem:[#allocation23_spill] sm:$0xff]  ;;  %v11631_v24 = vld [vmem:[#allocation24_spill] sm:$0xff]  ;;  %v11639_v36 = vld [vmem:[#allocation86_spill] sm:$0xff] }
 0x104   : > { %v11629_v56 = vld [vmem:[#allocation83_spill] sm:$0xff]  ;;  %v2659_v46 = vadd.f32 %v2627_v14, %v2559_v53  ;;  %v11632_v32 = vld [vmem:[#allocation84_spill] sm:$0xff]  ;;  %v3128_v16 = vadd.f32 %v3096_v33, %v3028_v0  ;;  %v11640_v14 = vld [vmem:[#allocation90_spill] sm:$0xff]  ;;  %v1622_v33 = vadd.f32 %v1590_v7, %v1522_v50 }
 0x105   : > { %v2727_v13 = vmul.f32 %v11629_v56, %v11628_v35  ;;  %v6820_v38 = vld [vmem:[#allocation2 + $0xab] sm:$0xff]  ;;  %5228 = vst.msk [vmem:[%s6091_s10 + $0x28] sm:$0xff] %vm171_vm0, %v5196_v30  ;;  %v2827_v2 = vmul.f32 %v11632_v32, %v11631_v24  ;;  %v11633_v23 = vld [vmem:[#allocation28_spill] sm:$0xff]  ;;  %v2191_v47 = vadd.f32 %v2159_v59, %v2091_v29  ;;  %v2927_v56 = vmul.f32 %v11637_v10, %v11636_v6  ;;  %v11638_v35 = vld [vmem:[#allocation33_spill] sm:$0xff] }
 0x106   : > { %11630 = vst [vmem:[#allocation100_spill] sm:$0xff] %v6820_v38  ;;  %v3196_v18 = vmul.f32 %v11633_v23, %v6809_v28  ;;  %v6828_v42 = vld [vmem:[#allocation2 + $0xac] sm:$0xff]  ;;  %v3697_v25 = vmul.f32 %v11639_v36, %v11638_v35  ;;  %v3765_v30 = vmul.f32 %v11640_v14, %v11575_v40  ;;  %v6838_v53 = vld [vmem:[#allocation2 + $0xd8] sm:$0xff]  ;;  %v11643_v24 = vld [vmem:[#allocation29_spill] sm:$0xff] }
 0x107   : > { %11634 = vst [vmem:[#allocation43_spill] sm:$0xff] %v6828_v42  ;;  %v6830_v17 = vld [vmem:[#allocation2 + $0xad] sm:$0xff]  ;;  %11641 = vst [vmem:[#allocation47_spill] sm:$0xff] %v6838_v53  ;;  %v6840_v0 = vld [vmem:[#allocation2 + $0xd9] sm:$0xff]  ;;  %v2759_v32 = vadd.f32 %v2727_v13, %v2659_v46  ;;  %v3296_v23 = vmul.f32 %v11643_v24, %v6820_v38  ;;  %v4366_v7 = vmul.f32 %v11524_v58, %v6838_v53 }
 0x108   : > { %11635 = vst [vmem:[#allocation62_spill] sm:$0xff] %v6830_v17  ;;  %11642 = vst [vmem:[#allocation48_spill] sm:$0xff] %v6840_v0  ;;  %v3228_v28 = vadd.f32 %v3196_v18, %v3128_v16  ;;  %v6844_v29 = vld [vmem:[#allocation2 + $0xae] sm:$0xff]  ;;  %v3797_v6 = vadd.f32 %v3765_v30, %v3697_v25  ;;  %v6852_v45 = vld [vmem:[#allocation2 + $0xda] sm:$0xff]  ;;  %v4434_v46 = vmul.f32 %v11586_v34, %v6840_v0 }
 0x109   : > { %11644 = vst [vmem:[#allocation51_spill] sm:$0xff] %v6844_v29  ;;  %v11645_v10 = vld [vmem:[#allocation30_spill] sm:$0xff]  ;;  %v11646_v36 = vld [vmem:[#allocation31_spill] sm:$0xff]  ;;  %11649 = vst [vmem:[#allocation52_spill] sm:$0xff] %v6852_v45  ;;  %v2859_v50 = vadd.f32 %v2827_v2, %v2759_v32  ;;  %v2291_v16 = vadd.f32 %v2259_v43, %v2191_v47 }
 0x10a   : > { %v3396_v59 = vmul.f32 %v11645_v10, %v6828_v42  ;;  %v3496_v35 = vmul.f32 %v11646_v36, %v6830_v17  ;;  %v11647_v14 = vld [vmem:[#allocation35_spill] sm:$0xff]  ;;  %v3328_v13 = vadd.f32 %v3296_v23, %v3228_v28  ;;  %v11650_v18 = vld [vmem:[#allocation32_spill] sm:$0xff]  ;;  %v4466_v2 = vadd.f32 %v4434_v46, %v4366_v7  ;;  %v11654_v32 = vld [vmem:[#allocation53_spill] sm:$0xff] }
 0x10b   : > { %v11648_v40 = vld [vmem:[#allocation87_spill] sm:$0xff]  ;;  %v3596_v42 = vmul.f32 %v11650_v18, %v6844_v29  ;;  %v11651_v17 = vld [vmem:[#allocation36_spill] sm:$0xff]  ;;  %v4534_v28 = vmul.f32 %v11403_v61, %v6852_v45  ;;  %v4065_v0 = vmul.f32 %v11654_v32, %v11587_v48  ;;  %v11655_v43 = vld [vmem:[#allocation5_spill] sm:$0xff]  ;;  %v4998_v32 = vadd.f32 %v1622_v33, %v953_v62 }
 0x10c   : > { %v3865_v57 = vmul.f32 %v11648_v40, %v11647_v14  ;;  %v11652_v25 = vld [vmem:[#allocation88_spill] sm:$0xff]  ;;  %v2959_v40 = vadd.f32 %v2927_v56, %v2859_v50  ;;  %v3428_v14 = vadd.f32 %v3396_v59, %v3328_v13  ;;  %v4165_v47 = vmul.f32 %v11655_v43, %v11530_v31  ;;  %v11660_v7 = vld [vmem:[#allocation39_spill] sm:$0xff]  ;;  %v11662_v61 = vld [vmem:[#allocation46_spill] sm:$0xff] }
 0x10d   : > { %v3965_v30 = vmul.f32 %v11652_v25, %v11651_v17  ;;  %v6862_v36 = vld [vmem:[#allocation2 + $0xdb] sm:$0xff]  ;;  %v4566_v29 = vadd.f32 %v4534_v28, %v4466_v2  ;;  %v11661_v46 = vld [vmem:[#allocation11_spill] sm:$0xff] }
 0x10e   : > { %v3897_v38 = vadd.f32 %v3865_v57, %v3797_v6  ;;  %11653 = vst [vmem:[#allocation54_spill] sm:$0xff] %v6862_v36  ;;  %v6870_v53 = vld [vmem:[#allocation2 + $0xdc] sm:$0xff]  ;;  %v3528_v25 = vadd.f32 %v3496_v35, %v3428_v14  ;;  %v4634_v56 = vmul.f32 %v11473_v5, %v6862_v36  ;;  %v5030_v43 = vadd.f32 %v2959_v40, %v2291_v16  ;;  %v11664_v2 = vld [vmem:[#allocation7_spill] sm:$0xff] }
 0x10f   : > { %11656 = vst [vmem:[#allocation55_spill] sm:$0xff] %v6870_v53  ;;  %v11657_v6 = vld [vmem:[#allocation89_spill] sm:$0xff]  ;;  %v522_v28 = vmul.f32 %v11664_v2, %v11411_v1  ;;  %v11667_v40 = vld [vmem:[#allocation12_spill] sm:$0xff] }
 0x110   : > { %v3997_v23 = vadd.f32 %v3965_v30, %v3897_v38  ;;  %v354_v57 = vmul.f32 %v11657_v6, %v11407_v3  ;;  %v6876_v59 = vld [vmem:[#allocation2 + $0xdd] sm:$0xff]  ;;  %v11659_v38 = vld [vmem:[#allocation6_spill] sm:$0xff]  ;;  %v4265_v30 = vmul.f32 %v11661_v46, %v11660_v7  ;;  %v4666_v45 = vadd.f32 %v4634_v56, %v4566_v29 }
 0x111   : > { %11658 = vst [vmem:[#allocation49_spill] sm:$0xff] %v6876_v59  ;;  %v422_v50 = vmul.f32 %v11659_v38, %v11340_v12  ;;  %v4734_v6 = vmul.f32 %v11662_v61, %v6870_v53  ;;  %v6884_v35 = vld [vmem:[#allocation2 + $0xde] sm:$0xff]  ;;  %v3628_v36 = vadd.f32 %v3596_v42, %v3528_v25  ;;  %v1091_v56 = vmul.f32 %v11667_v40, %v11288_v11 }
 0x112   : > { %v4097_v13 = vadd.f32 %v4065_v0, %v3997_v23  ;;  %11663 = vst [vmem:[#allocation58_spill] sm:$0xff] %v6884_v35  ;;  %v4834_v0 = vmul.f32 %v11410_v63, %v6876_v59  ;;  %v11665_v23 = vld [vmem:[#allocation10_spill] sm:$0xff]  ;;  %v11666_v29 = vld [vmem:[#allocation8_spill] sm:$0xff]  ;;  %v5094_v42 = vadd.f32 %v5030_v43, %v4998_v32 }
 0x113   : > { %v454_v14 = vadd.f32 %v422_v50, %v354_v57  ;;  %v1023_v38 = vmul.f32 %v11665_v23, %v11287_v55  ;;  %v4766_v62 = vadd.f32 %v4734_v6, %v4666_v45  ;;  %v622_v16 = vmul.f32 %v11666_v29, %v11284_v26  ;;  %v11669_v45 = vld [vmem:[#allocation92_spill] sm:$0xff]  ;;  %v11671_v29 = vld [vmem:[#allocation93_spill] sm:$0xff] }
 0x114   : > { %v4197_v5 = vadd.f32 %v4165_v47, %v4097_v13  ;;  %v4934_v50 = vmul.f32 %v6603_v60, %v6884_v35  ;;  %v11668_v47 = vld [vmem:[#allocation91_spill] sm:$0xff]  ;;  %v1191_v6 = vmul.f32 %v11669_v45, %v11289_v19  ;;  %v11688_v59 = vld [vmem:[#allocation108_spill] sm:$0xff] }
 0x115   : > { %v554_v33 = vadd.f32 %v522_v28, %v454_v14  ;;  %v722_v25 = vmul.f32 %v11668_v47, %v11285_v20  ;;  %v4866_v13 = vadd.f32 %v4834_v0, %v4766_v62  ;;  %v1123_v2 = vadd.f32 %v1091_v56, %v1023_v38  ;;  %v11670_v28 = vld [vmem:[#allocation94_spill] sm:$0xff]  ;;  %v11673_v0 = vld [vmem:[#allocation95_spill] sm:$0xff]  ;;  %v11674_v38 = vld [vmem:[#allocation9_spill] sm:$0xff] }
 0x116   : > { %v4297_v57 = vadd.f32 %v4265_v30, %v4197_v5  ;;  %v822_v23 = vmul.f32 %v11670_v28, %v11294_v8  ;;  %v1692_v5 = vmul.f32 %v11671_v29, %v5638_v44  ;;  %v11672_v30 = vld [vmem:[#allocation97_spill] sm:$0xff]  ;;  %v1291_v62 = vmul.f32 %v11673_v0, %v5620_v37  ;;  %v11677_v29 = vld [vmem:[#allocation98_spill] sm:$0xff] }
 0x117   : > { %v654_v46 = vadd.f32 %v622_v16, %v554_v33  ;;  %v1760_v40 = vmul.f32 %v11672_v30, %v5650_v49  ;;  %v4966_v32 = vadd.f32 %v4934_v50, %v4866_v13  ;;  %v1223_v35 = vadd.f32 %v1191_v6, %v1123_v2  ;;  %v11680_v30 = vld [vmem:[#allocation105_spill] sm:$0xff] }
 0x118   : > { %v5062_v14 = vadd.f32 %v4297_v57, %v3628_v36  ;;  %v922_v33 = vmul.f32 %v11674_v38, %v11301_v4  ;;  %v11675_v36 = vld [vmem:[#allocation96_spill] sm:$0xff]  ;;  %v11676_v57 = vld [vmem:[#allocation101_spill] sm:$0xff]  ;;  %v1491_v50 = vmul.f32 %v11677_v29, %v11305_v21  ;;  %v1960_v0 = vmul.f32 %v11680_v30, %v5658_v51  ;;  %v6926_v38 = vld [vmem:[#allocation2 + $0xb0] sm:$0xff] }
 0x119   : > { %v754_v43 = vadd.f32 %v722_v25, %v654_v46  ;;  %v1391_v16 = vmul.f32 %v11675_v36, %v5629_v41  ;;  %v1792_v56 = vadd.f32 %v1760_v40, %v1692_v5  ;;  %v1860_v47 = vmul.f32 %v11676_v57, %v11359_v22  ;;  %v11678_v25 = vld [vmem:[#allocation102_spill] sm:$0xff]  ;;  %v11679_v46 = vld [vmem:[#allocation99_spill] sm:$0xff]  ;;  %11682 = vst [vmem:[#allocation60_spill] sm:$0xff] %v6926_v38  ;;  %v11684_v36 = vld [vmem:[#allocation104_spill] sm:$0xff] }
 0x11a   : > { %v5126_v45 = vadd.f32 %v5062_v14, %v4966_v32  ;;  %v1323_v28 = vadd.f32 %v1291_v62, %v1223_v35  ;;  %v2360_v13 = vmul.f32 %v11678_v25, %v11364_v15  ;;  %v1591_v2 = vmul.f32 %v11679_v46, %v11427_v9  ;;  %v11681_v5 = vld [vmem:[#allocation103_spill] sm:$0xff]  ;;  %v11689_v9 = vld [vmem:[#allocation18_spill] sm:$0xff] }
 0x11b   : > { %v1892_v6 = vadd.f32 %v1860_v47, %v1792_v56  ;;  %v2428_v40 = vmul.f32 %v11681_v5, %v11366_v54  ;;  %v6928_v14 = vld [vmem:[#allocation2 + $0xb1] sm:$0xff]  ;;  %v854_v32 = vadd.f32 %v822_v23, %v754_v43  ;;  %v2060_v57 = vmul.f32 %v11684_v36, %v11368_v39  ;;  %v11685_v56 = vld [vmem:[#allocation106_spill] sm:$0xff] }
 0x11c   : > { %11683 = vst [vmem:[#allocation56_spill] sm:$0xff] %v6928_v14  ;;  %v5158_v35 = vadd.f32 %v5126_v45, %v5094_v42  ;;  %v1423_v62 = vadd.f32 %v1391_v16, %v1323_v28  ;;  %v2160_v47 = vmul.f32 %v11685_v56, %v11624_v27  ;;  %v11686_v46 = vld [vmem:[#allocation107_spill] sm:$0xff]  ;;  %v11690_v42 = vld [vmem:[#allocation109_spill] sm:$0xff]  ;;  %v11691_v43 = vld [vmem:[#allocation26_spill] sm:$0xff] }
 0x11d   : > { %v1992_v29 = vadd.f32 %v1960_v0, %v1892_v6  ;;  %v2460_v25 = vadd.f32 %v2428_v40, %v2360_v13  ;;  %v2528_v30 = vmul.f32 %v11686_v46, %v11313_v52  ;;  %v6936_v5 = vld [vmem:[#allocation2 + $0xb2] sm:$0xff]  ;;  %v2260_v23 = vmul.f32 %v11690_v42, %v11689_v9  ;;  %v11693_v13 = vld [vmem:[#allocation22_spill] sm:$0xff] }
 0x11e   : > { %11687 = vst [vmem:[#allocation61_spill] sm:$0xff] %v6936_v5  ;;  %v5197_v53 = vadd.f32 %v11688_v59, %v5158_v35  ;;  %v3029_v16 = vmul.f32 %v11691_v43, %v6926_v38  ;;  %v11692_v45 = vld [vmem:[#allocation27_spill] sm:$0xff]  ;;  %v1523_v6 = vadd.f32 %v1491_v50, %v1423_v62  ;;  %v11694_v40 = vld [vmem:[#allocation110_spill] sm:$0xff]  ;;  %v954_v35 = vadd.f32 %v922_v33, %v854_v32  ;;  %v11697_v59 = vld [vmem:[#allocation112_spill] sm:$0xff] }
 0x11f   : > { %v3097_v28 = vmul.f32 %v11692_v45, %v6928_v14  ;;  %v2092_v0 = vadd.f32 %v2060_v57, %v1992_v29  ;;  %v2560_v36 = vadd.f32 %v2528_v30, %v2460_v25  ;;  %v2628_v56 = vmul.f32 %v11694_v40, %v11693_v13  ;;  %v6947_v46 = vld [vmem:[#allocation2 + $0xb3] sm:$0xff]  ;;  %v11703_v30 = vld [vmem:[#allocation25_spill] sm:$0xff]  ;;  %v11706_v33 = vld [vmem:[#allocation114_spill] sm:$0xff] }
 0x120   : > { %11695 = vst [vmem:[#allocation50_spill] sm:$0xff] %v6947_v46  ;;  %5229 = vst.msk [vmem:[%s6091_s10 + $0x30] sm:$0xff] %vm171_vm0, %v5197_v53  ;;  %v11696_v27 = vld [vmem:[#allocation23_spill] sm:$0xff]  ;;  %v11698_v38 = vld [vmem:[#allocation28_spill] sm:$0xff] }
 0x121   : > { %v2728_v42 = vmul.f32 %v11697_v59, %v11696_v27  ;;  %v3129_v9 = vadd.f32 %v3097_v28, %v3029_v16  ;;  %v3197_v43 = vmul.f32 %v11698_v38, %v6936_v5  ;;  %v6955_v52 = vld [vmem:[#allocation2 + $0xb4] sm:$0xff]  ;;  %v2660_v62 = vadd.f32 %v2628_v56, %v2560_v36  ;;  %v11704_v40 = vld [vmem:[#allocation113_spill] sm:$0xff]  ;;  %v11709_v38 = vld [vmem:[#allocation34_spill] sm:$0xff] }
 0x122   : > { %11699 = vst [vmem:[#allocation15_spill] sm:$0xff] %v6955_v52  ;;  %v6957_v50 = vld [vmem:[#allocation2 + $0xb5] sm:$0xff]  ;;  %v2928_v14 = vmul.f32 %v11704_v40, %v11703_v30  ;;  %v11705_v53 = vld [vmem:[#allocation33_spill] sm:$0xff]  ;;  %v2192_v59 = vadd.f32 %v2160_v47, %v2092_v0  ;;  %v3297_v28 = vmul.f32 %v11643_v24, %v6947_v46  ;;  %v3397_v40 = vmul.f32 %v11645_v10, %v6955_v52 }
 0x123   : > { %11700 = vst [vmem:[#allocation57_spill] sm:$0xff] %v6957_v50  ;;  %v11701_v57 = vld [vmem:[#allocation24_spill] sm:$0xff]  ;;  %v11702_v29 = vld [vmem:[#allocation111_spill] sm:$0xff]  ;;  %v3698_v32 = vmul.f32 %v11706_v33, %v11705_v53  ;;  %v6965_v45 = vld [vmem:[#allocation2 + $0xe0] sm:$0xff]  ;;  %v3229_v16 = vadd.f32 %v3197_v43, %v3129_v9 }
 0x124   : > { %v2828_v25 = vmul.f32 %v11702_v29, %v11701_v57  ;;  %11707 = vst [vmem:[#allocation59_spill] sm:$0xff] %v6965_v45  ;;  %v6969_v5 = vld [vmem:[#allocation2 + $0xb6] sm:$0xff]  ;;  %v6973_v27 = vld [vmem:[#allocation2 + $0xe1] sm:$0xff]  ;;  %v1623_v29 = vadd.f32 %v1591_v2, %v1523_v6  ;;  %v2760_v57 = vadd.f32 %v2728_v42, %v2660_v62  ;;  %v4367_v24 = vmul.f32 %v11524_v58, %v6965_v45 }
 0x125   : > { %11708 = vst [vmem:[#allocation65_spill] sm:$0xff] %v6969_v5  ;;  %v11710_v36 = vld [vmem:[#allocation115_spill] sm:$0xff]  ;;  %11711 = vst [vmem:[#allocation63_spill] sm:$0xff] %v6973_v27  ;;  %v3329_v47 = vadd.f32 %v3297_v28, %v3229_v16  ;;  %v11714_v0 = vld [vmem:[#allocation116_spill] sm:$0xff]  ;;  %v3597_v2 = vmul.f32 %v11650_v18, %v6969_v5  ;;  %v4435_v62 = vmul.f32 %v11586_v34, %v6973_v27 }
 0x126   : > { %v3766_v56 = vmul.f32 %v11710_v36, %v11709_v38  ;;  %v11712_v33 = vld [vmem:[#allocation31_spill] sm:$0xff]  ;;  %v6983_v30 = vld [vmem:[#allocation2 + $0xe2] sm:$0xff]  ;;  %v2860_v36 = vadd.f32 %v2828_v25, %v2760_v57  ;;  %v2292_v28 = vadd.f32 %v2260_v23, %v2192_v59 }
 0x127   : > { %v3497_v53 = vmul.f32 %v11712_v33, %v6957_v50  ;;  %v11713_v43 = vld [vmem:[#allocation35_spill] sm:$0xff]  ;;  %11715 = vst [vmem:[#allocation19_spill] sm:$0xff] %v6983_v30  ;;  %v11716_v6 = vld [vmem:[#allocation117_spill] sm:$0xff]  ;;  %v11717_v50 = vld [vmem:[#allocation118_spill] sm:$0xff] }
 0x128   : > { %v3798_v9 = vadd.f32 %v3766_v56, %v3698_v32  ;;  %v3866_v46 = vmul.f32 %v11714_v0, %v11713_v43  ;;  %v3966_v42 = vmul.f32 %v11716_v6, %v11651_v17  ;;  %v319_v16 = vld [vmem:[#allocation2 + $0x60] sm:$0xff]  ;;  %v3429_v56 = vadd.f32 %v3397_v40, %v3329_v47  ;;  %v11720_v5 = vld [vmem:[#allocation119_spill] sm:$0xff]  ;;  %v11721_v17 = vld [vmem:[#allocation44_spill] sm:$0xff] }
 0x129   : > { %v387_v32 = vld [vmem:[#allocation2 + $0x61] sm:$0xff]  ;;  %v4066_v45 = vmul.f32 %v11717_v50, %v11587_v48  ;;  %v2960_v25 = vadd.f32 %v2928_v14, %v2860_v36  ;;  %v4166_v18 = vmul.f32 %v11720_v5, %v11530_v31  ;;  %v4467_v6 = vadd.f32 %v4435_v62, %v4367_v24  ;;  %v11722_v40 = vld [vmem:[#allocation120_spill] sm:$0xff] }
 0x12a   : > { %v3898_v0 = vadd.f32 %v3866_v46, %v3798_v9  ;;  %v6993_v52 = vld [vmem:[#allocation2 + $0xe3] sm:$0xff]  ;;  %v4535_v27 = vmul.f32 %v11721_v17, %v6983_v30  ;;  %v3529_v58 = vadd.f32 %v3497_v53, %v3429_v56  ;;  %v355_v46 = vmul.f32 %v11407_v3, %v319_v16  ;;  %v7009_v5 = vld [vmem:[#allocation2 + $0x78] sm:$0xff] }
 0x12b   : > { %11718 = vst [vmem:[#allocation66_spill] sm:$0xff] %v6993_v52  ;;  %v6995_v57 = vld [vmem:[#allocation2 + $0xe4] sm:$0xff]  ;;  %v423_v59 = vmul.f32 %v11340_v12, %v387_v32  ;;  %v4266_v47 = vmul.f32 %v11722_v40, %v11660_v7  ;;  %11724 = vst [vmem:[#allocation69_spill] sm:$0xff] %v7009_v5  ;;  %v7011_v62 = vld [vmem:[#allocation2 + $0x79] sm:$0xff]  ;;  %v4999_v32 = vadd.f32 %v1623_v29, %v954_v35 }
 0x12c   : > { %11719 = vst [vmem:[#allocation20_spill] sm:$0xff] %v6995_v57  ;;  %v487_v34 = vld [vmem:[#allocation2 + $0x62] sm:$0xff]  ;;  %v3998_v23 = vadd.f32 %v3966_v42, %v3898_v0  ;;  %v4567_v9 = vadd.f32 %v4535_v27, %v4467_v6  ;;  %v4735_v24 = vmul.f32 %v11662_v61, %v6995_v57  ;;  %11725 = vst [vmem:[#allocation68_spill] sm:$0xff] %v7011_v62  ;;  %v7019_v57 = vld [vmem:[#allocation2 + $0x7a] sm:$0xff] }
 0x12d   : > { %v587_v50 = vld [vmem:[#allocation2 + $0x63] sm:$0xff]  ;;  %v455_v56 = vadd.f32 %v423_v59, %v355_v46  ;;  %v523_v0 = vmul.f32 %v11411_v1, %v487_v34  ;;  %v3629_v6 = vadd.f32 %v3597_v2, %v3529_v58  ;;  %11728 = vst [vmem:[#allocation72_spill] sm:$0xff] %v7019_v57  ;;  %v7025_v35 = vld [vmem:[#allocation2 + $0x90] sm:$0xff] }
 0x12e   : > { %v11723_v14 = vld [vmem:[#allocation45_spill] sm:$0xff]  ;;  %v4098_v53 = vadd.f32 %v4066_v45, %v3998_v23  ;;  %v623_v30 = vmul.f32 %v11284_v26, %v587_v50  ;;  %v1024_v45 = vmul.f32 %v11287_v55, %v7009_v5  ;;  %v1092_v23 = vmul.f32 %v11288_v11, %v7011_v62  ;;  %11729 = vst [vmem:[#allocation70_spill] sm:$0xff] %v7025_v35  ;;  %v7027_v29 = vld [vmem:[#allocation2 + $0x91] sm:$0xff] }
 0x12f   : > { %v4635_v36 = vmul.f32 %v11723_v14, %v6993_v52  ;;  %v7013_v42 = vld [vmem:[#allocation2 + $0xe5] sm:$0xff]  ;;  %v5031_v52 = vadd.f32 %v2960_v25, %v2292_v28  ;;  %v555_v7 = vadd.f32 %v523_v0, %v455_v56  ;;  %11730 = vst [vmem:[#allocation71_spill] sm:$0xff] %v7027_v29  ;;  %v7034_v28 = vld [vmem:[#allocation2 + $0x7b] sm:$0xff]  ;;  %v11755_v5 = vld [vmem:[#allocation43_spill] sm:$0xff] }
 0x130   : > { %11726 = vst [vmem:[#allocation67_spill] sm:$0xff] %v7013_v42  ;;  %v7015_v16 = vld [vmem:[#allocation2 + $0xe6] sm:$0xff]  ;;  %v4198_v61 = vadd.f32 %v4166_v18, %v4098_v53  ;;  %v4835_v58 = vmul.f32 %v11410_v63, %v7013_v42  ;;  %11731 = vst [vmem:[#allocation74_spill] sm:$0xff] %v7034_v28  ;;  %v1124_v50 = vadd.f32 %v1092_v23, %v1024_v45  ;;  %v7040_v0 = vld [vmem:[#allocation2 + $0x7c] sm:$0xff] }
 0x131   : > { %11727 = vst [vmem:[#allocation64_spill] sm:$0xff] %v7015_v16  ;;  %v687_v27 = vld [vmem:[#allocation2 + $0x64] sm:$0xff]  ;;  %v4667_v40 = vadd.f32 %v4635_v36, %v4567_v9  ;;  %v4935_v2 = vmul.f32 %v6603_v60, %v7015_v16  ;;  %v655_v46 = vadd.f32 %v623_v30, %v555_v7  ;;  %v1192_v9 = vmul.f32 %v11289_v19, %v7019_v57  ;;  %v7038_v36 = vld [vmem:[#allocation2 + $0x92] sm:$0xff] }
 0x132   : > { %v723_v18 = vmul.f32 %v11285_v20, %v687_v27  ;;  %v4298_v25 = vadd.f32 %v4266_v47, %v4198_v61  ;;  %v787_v59 = vld [vmem:[#allocation2 + $0x65] sm:$0xff]  ;;  %11732 = vst [vmem:[#allocation75_spill] sm:$0xff] %v7038_v36  ;;  %v5095_v53 = vadd.f32 %v5031_v52, %v4999_v32  ;;  %11733 = vst [vmem:[#allocation76_spill] sm:$0xff] %v7040_v0  ;;  %v7046_v61 = vld [vmem:[#allocation2 + $0x93] sm:$0xff] }
 0x133   : > { %v4767_v34 = vadd.f32 %v4735_v24, %v4667_v40  ;;  %v887_v56 = vld [vmem:[#allocation2 + $0x66] sm:$0xff]  ;;  %v1693_v40 = vmul.f32 %v5638_v44, %v7025_v35  ;;  %v1761_v27 = vmul.f32 %v5650_v49, %v7027_v29  ;;  %11734 = vst [vmem:[#allocation73_spill] sm:$0xff] %v7046_v61  ;;  %v1224_v47 = vadd.f32 %v1192_v9, %v1124_v50  ;;  %v7051_v32 = vld [vmem:[#allocation2 + $0x7d] sm:$0xff]  ;;  %v7055_v35 = vld [vmem:[#allocation2 + $0x94] sm:$0xff] }
 0x134   : > { %v5063_v7 = vadd.f32 %v4298_v25, %v3629_v6  ;;  %v755_v30 = vadd.f32 %v723_v18, %v655_v46  ;;  %v1292_v45 = vmul.f32 %v5620_v37, %v7034_v28  ;;  %v823_v52 = vmul.f32 %v11294_v8, %v787_v59  ;;  %11735 = vst [vmem:[#allocation78_spill] sm:$0xff] %v7051_v32  ;;  %v7062_v25 = vld [vmem:[#allocation2 + $0x7e] sm:$0xff]  ;;  %v11739_v9 = vld [vmem:[#allocation122_spill] sm:$0xff] }
 0x135   : > { %v4867_v24 = vadd.f32 %v4835_v58, %v4767_v34  ;;  %v1793_v34 = vadd.f32 %v1761_v27, %v1693_v40  ;;  %v1861_v58 = vmul.f32 %v11359_v22, %v7038_v36  ;;  %11736 = vst [vmem:[#allocation81_spill] sm:$0xff] %v7055_v35  ;;  %v923_v29 = vmul.f32 %v11301_v4, %v887_v56  ;;  %v11738_v59 = vld [vmem:[#allocation121_spill] sm:$0xff]  ;;  %v11745_v36 = vld [vmem:[#allocation42_spill] sm:$0xff] }
 0x136   : > { %v1324_v57 = vadd.f32 %v1292_v45, %v1224_v47  ;;  %v1392_v6 = vmul.f32 %v5629_v41, %v7040_v0  ;;  %v1961_v18 = vmul.f32 %v5658_v51, %v7046_v61  ;;  %11737 = vst [vmem:[#allocation77_spill] sm:$0xff] %v7062_v25  ;;  %v2361_v50 = vmul.f32 %v11738_v59, %v11364_v15  ;;  %v7068_v40 = vld [vmem:[#allocation2 + $0xc0] sm:$0xff]  ;;  %v7078_v59 = vld [vmem:[#allocation2 + $0x96] sm:$0xff]  ;;  %v11748_v0 = vld [vmem:[#allocation26_spill] sm:$0xff] }
 0x137   : > { %v4967_v23 = vadd.f32 %v4935_v2, %v4867_v24  ;;  %v1893_v46 = vadd.f32 %v1861_v58, %v1793_v34  ;;  %v2429_v24 = vmul.f32 %v11739_v9, %v11366_v54  ;;  %11740 = vst [vmem:[#allocation82_spill] sm:$0xff] %v7068_v40  ;;  %v855_v56 = vadd.f32 %v823_v52, %v755_v30  ;;  %v7076_v58 = vld [vmem:[#allocation2 + $0x95] sm:$0xff]  ;;  %v11744_v9 = vld [vmem:[#allocation21_spill] sm:$0xff]  ;;  %v11746_v52 = vld [vmem:[#allocation14_spill] sm:$0xff] }
 0x138   : > { %v1424_v27 = vadd.f32 %v1392_v6, %v1324_v57  ;;  %v1492_v47 = vmul.f32 %v11305_v21, %v7051_v32  ;;  %v2061_v45 = vmul.f32 %v11368_v39, %v7055_v35  ;;  %11742 = vst [vmem:[#allocation79_spill] sm:$0xff] %v7076_v58  ;;  %11743 = vst [vmem:[#allocation83_spill] sm:$0xff] %v7078_v59  ;;  %v11747_v32 = vld [vmem:[#allocation100_spill] sm:$0xff] }
 0x139   : > { %v5127_v2 = vadd.f32 %v5063_v7, %v4967_v23  ;;  %v7074_v7 = vld [vmem:[#allocation2 + $0xc1] sm:$0xff]  ;;  %v1993_v34 = vadd.f32 %v1961_v18, %v1893_v46  ;;  %v2461_v61 = vadd.f32 %v2429_v24, %v2361_v50  ;;  %v2529_v30 = vmul.f32 %v11745_v36, %v11744_v9  ;;  %v11751_v24 = vld [vmem:[#allocation27_spill] sm:$0xff] }
 0x13a   : > { %11741 = vst [vmem:[#allocation80_spill] sm:$0xff] %v7074_v7  ;;  %v1524_v57 = vadd.f32 %v1492_v47, %v1424_v27  ;;  %v1592_v6 = vmul.f32 %v11746_v52, %v7062_v25  ;;  %v2629_v35 = vmul.f32 %v11747_v32, %v11693_v13  ;;  %v7088_v18 = vld [vmem:[#allocation2 + $0xc2] sm:$0xff]  ;;  %v3098_v16 = vmul.f32 %v11751_v24, %v7074_v7  ;;  %v11754_v32 = vld [vmem:[#allocation23_spill] sm:$0xff] }
 0x13b   : > { %v5159_v23 = vadd.f32 %v5127_v2, %v5095_v53  ;;  %v3030_v53 = vmul.f32 %v11748_v0, %v7068_v40  ;;  %11749 = vst [vmem:[#allocation84_spill] sm:$0xff] %v7088_v18  ;;  %v11750_v2 = vld [vmem:[#allocation108_spill] sm:$0xff]  ;;  %v2093_v28 = vadd.f32 %v2061_v45, %v1993_v34  ;;  %v2561_v50 = vadd.f32 %v2529_v30, %v2461_v61  ;;  %v11752_v27 = vld [vmem:[#allocation17_spill] sm:$0xff]  ;;  %v11753_v25 = vld [vmem:[#allocation18_spill] sm:$0xff] }
 0x13c   : > { %v955_v36 = vadd.f32 %v923_v29, %v855_v56  ;;  %v2161_v47 = vmul.f32 %v11752_v27, %v7076_v58  ;;  %v2261_v62 = vmul.f32 %v11753_v25, %v7078_v59  ;;  %v2729_v42 = vmul.f32 %v11755_v5, %v11754_v32  ;;  %v7099_v40 = vld [vmem:[#allocation2 + $0xc3] sm:$0xff]  ;;  %v11757_v45 = vld [vmem:[#allocation24_spill] sm:$0xff]  ;;  %v11763_v24 = vld [vmem:[#allocation51_spill] sm:$0xff] }
 0x13d   : > { %v5198_v46 = vadd.f32 %v11750_v2, %v5159_v23  ;;  %11756 = vst [vmem:[#allocation85_spill] sm:$0xff] %v7099_v40  ;;  %v2661_v23 = vadd.f32 %v2629_v35, %v2561_v50  ;;  %v11758_v61 = vld [vmem:[#allocation62_spill] sm:$0xff]  ;;  %v3130_v30 = vadd.f32 %v3098_v16, %v3030_v53  ;;  %v11759_v29 = vld [vmem:[#allocation28_spill] sm:$0xff]  ;;  %v11762_v13 = vld [vmem:[#allocation25_spill] sm:$0xff]  ;;  %v1624_v53 = vadd.f32 %v1592_v6, %v1524_v57 }
 0x13e   : > { %v2829_v34 = vmul.f32 %v11758_v61, %v11757_v45  ;;  %v3198_v56 = vmul.f32 %v11759_v29, %v7088_v18  ;;  %v7107_v7 = vld [vmem:[#allocation2 + $0xc4] sm:$0xff]  ;;  %v2193_v59 = vadd.f32 %v2161_v47, %v2093_v28  ;;  %v2929_v5 = vmul.f32 %v11763_v24, %v11762_v13  ;;  %v11765_v0 = vld [vmem:[#allocation47_spill] sm:$0xff]  ;;  %v11766_v35 = vld [vmem:[#allocation48_spill] sm:$0xff] }
 0x13f   : > { %5230 = vst.msk [vmem:[%s6091_s10 + $0x38] sm:$0xff] %vm171_vm0, %v5198_v46  ;;  %11760 = vst [vmem:[#allocation86_spill] sm:$0xff] %v7107_v7  ;;  %v7109_v58 = vld [vmem:[#allocation2 + $0xc5] sm:$0xff]  ;;  %v3767_v46 = vmul.f32 %v11766_v35, %v11709_v38  ;;  %v7117_v50 = vld [vmem:[#allocation2 + $0xf0] sm:$0xff]  ;;  %v2761_v61 = vadd.f32 %v2729_v42, %v2661_v23  ;;  %v3398_v24 = vmul.f32 %v11645_v10, %v7107_v7 }
 0x140   : > { %11761 = vst [vmem:[#allocation90_spill] sm:$0xff] %v7109_v58  ;;  %v11764_v32 = vld [vmem:[#allocation33_spill] sm:$0xff]  ;;  %11767 = vst [vmem:[#allocation87_spill] sm:$0xff] %v7117_v50  ;;  %v7119_v16 = vld [vmem:[#allocation2 + $0xf1] sm:$0xff]  ;;  %v3230_v18 = vadd.f32 %v3198_v56, %v3130_v30 }
 0x141   : > { %v3699_v25 = vmul.f32 %v11765_v0, %v11764_v32  ;;  %11768 = vst [vmem:[#allocation88_spill] sm:$0xff] %v7119_v16  ;;  %v11769_v45 = vld [vmem:[#allocation29_spill] sm:$0xff]  ;;  %v3498_v0 = vmul.f32 %v11712_v33, %v7109_v58  ;;  %v11771_v35 = vld [vmem:[#allocation52_spill] sm:$0xff]  ;;  %v2861_v57 = vadd.f32 %v2829_v34, %v2761_v61 }
 0x142   : > { %v3298_v29 = vmul.f32 %v11769_v45, %v7099_v40  ;;  %v7123_v28 = vld [vmem:[#allocation2 + $0xc6] sm:$0xff]  ;;  %v3867_v38 = vmul.f32 %v11771_v35, %v11713_v43  ;;  %v7131_v32 = vld [vmem:[#allocation2 + $0xf2] sm:$0xff]  ;;  %v2293_v45 = vadd.f32 %v2261_v62, %v2193_v59 }
 0x143   : > { %11770 = vst [vmem:[#allocation53_spill] sm:$0xff] %v7123_v28  ;;  %v3799_v47 = vadd.f32 %v3767_v46, %v3699_v25  ;;  %11772 = vst [vmem:[#allocation5_spill] sm:$0xff] %v7131_v32  ;;  %v11773_v6 = vld [vmem:[#allocation40_spill] sm:$0xff]  ;;  %v11774_v30 = vld [vmem:[#allocation41_spill] sm:$0xff]  ;;  %v2961_v34 = vadd.f32 %v2929_v5, %v2861_v57  ;;  %v4536_v61 = vmul.f32 %v11721_v17, %v7131_v32 }
 0x144   : > { %v3330_v42 = vadd.f32 %v3298_v29, %v3230_v18  ;;  %v4368_v23 = vmul.f32 %v11773_v6, %v7117_v50  ;;  %v4436_v56 = vmul.f32 %v11774_v30, %v7119_v16  ;;  %v320_v40 = vld [vmem:[#allocation2 + $0x68] sm:$0xff]  ;;  %v11775_v7 = vld [vmem:[#allocation32_spill] sm:$0xff]  ;;  %v11779_v16 = vld [vmem:[#allocation55_spill] sm:$0xff] }
 0x145   : > { %v3598_v10 = vmul.f32 %v11775_v7, %v7123_v28  ;;  %v3899_v58 = vadd.f32 %v3867_v38, %v3799_v47  ;;  %v11776_v25 = vld [vmem:[#allocation36_spill] sm:$0xff]  ;;  %v11777_v46 = vld [vmem:[#allocation54_spill] sm:$0xff]  ;;  %v4067_v62 = vmul.f32 %v11779_v16, %v11587_v48  ;;  %v11780_v59 = vld [vmem:[#allocation49_spill] sm:$0xff]  ;;  %v356_v47 = vmul.f32 %v11407_v3, %v320_v40 }
 0x146   : > { %v3967_v33 = vmul.f32 %v11777_v46, %v11776_v25  ;;  %v7141_v35 = vld [vmem:[#allocation2 + $0xf3] sm:$0xff]  ;;  %v388_v43 = vld [vmem:[#allocation2 + $0x69] sm:$0xff]  ;;  %v3430_v18 = vadd.f32 %v3398_v24, %v3330_v42  ;;  %v4468_v29 = vadd.f32 %v4436_v56, %v4368_v23  ;;  %v4167_v28 = vmul.f32 %v11780_v59, %v11530_v31  ;;  %v7161_v40 = vld [vmem:[#allocation2 + $0x81] sm:$0xff] }
 0x147   : > { %11778 = vst [vmem:[#allocation89_spill] sm:$0xff] %v7141_v35  ;;  %v7149_v38 = vld [vmem:[#allocation2 + $0xf4] sm:$0xff]  ;;  %v488_v46 = vld [vmem:[#allocation2 + $0x6a] sm:$0xff]  ;;  %v4636_v5 = vmul.f32 %v11723_v14, %v7141_v35  ;;  %v5000_v56 = vadd.f32 %v1624_v53, %v955_v36  ;;  %v5032_v59 = vadd.f32 %v2961_v34, %v2293_v45  ;;  %11786 = vst [vmem:[#allocation10_spill] sm:$0xff] %v7161_v40 }
 0x148   : > { %v3999_v50 = vadd.f32 %v3967_v33, %v3899_v58  ;;  %11781 = vst [vmem:[#allocation6_spill] sm:$0xff] %v7149_v38  ;;  %v3530_v30 = vadd.f32 %v3498_v0, %v3430_v18  ;;  %v4568_v25 = vadd.f32 %v4536_v61, %v4468_v29  ;;  %v7154_v24 = vld [vmem:[#allocation2 + $0xf5] sm:$0xff]  ;;  %v424_v33 = vmul.f32 %v11340_v12, %v388_v43  ;;  %v7157_v58 = vld [vmem:[#allocation2 + $0x80] sm:$0xff]  ;;  %v11785_v42 = vld [vmem:[#allocation58_spill] sm:$0xff] }
 0x149   : > { %11782 = vst [vmem:[#allocation11_spill] sm:$0xff] %v7154_v24  ;;  %11783 = vst [vmem:[#allocation7_spill] sm:$0xff] %v7157_v58  ;;  %v11784_v57 = vld [vmem:[#allocation39_spill] sm:$0xff]  ;;  %v11787_v18 = vld [vmem:[#allocation46_spill] sm:$0xff]  ;;  %v524_v43 = vmul.f32 %v11411_v1, %v488_v46  ;;  %v1025_v36 = vmul.f32 %v11287_v55, %v7157_v58 }
 0x14a   : > { %v4099_v16 = vadd.f32 %v4067_v62, %v3999_v50  ;;  %v4267_v23 = vmul.f32 %v11785_v42, %v11784_v57  ;;  %v588_v32 = vld [vmem:[#allocation2 + $0x6b] sm:$0xff]  ;;  %v4668_v0 = vadd.f32 %v4636_v5, %v4568_v25  ;;  %v4736_v29 = vmul.f32 %v11787_v18, %v7149_v38  ;;  %v7165_v61 = vld [vmem:[#allocation2 + $0xf6] sm:$0xff]  ;;  %v7172_v45 = vld [vmem:[#allocation2 + $0x82] sm:$0xff] }
 0x14b   : > { %11788 = vst [vmem:[#allocation8_spill] sm:$0xff] %v7165_v61  ;;  %v456_v35 = vadd.f32 %v424_v33, %v356_v47  ;;  %v688_v14 = vld [vmem:[#allocation2 + $0x6c] sm:$0xff]  ;;  %v3630_v12 = vadd.f32 %v3598_v10, %v3530_v30  ;;  %v4836_v62 = vmul.f32 %v11410_v63, %v7154_v24  ;;  %11789 = vst [vmem:[#allocation12_spill] sm:$0xff] %v7172_v45  ;;  %v7177_v46 = vld [vmem:[#allocation2 + $0x98] sm:$0xff] }
 0x14c   : > { %v4199_v50 = vadd.f32 %v4167_v28, %v4099_v16  ;;  %v4768_v53 = vadd.f32 %v4736_v29, %v4668_v0  ;;  %v624_v34 = vmul.f32 %v11284_v26, %v588_v32  ;;  %v788_v5 = vld [vmem:[#allocation2 + $0x6d] sm:$0xff]  ;;  %v1093_v47 = vmul.f32 %v11288_v11, %v7161_v40  ;;  %11790 = vst [vmem:[#allocation91_spill] sm:$0xff] %v7177_v46  ;;  %v7179_v10 = vld [vmem:[#allocation2 + $0x99] sm:$0xff]  ;;  %v7184_v42 = vld [vmem:[#allocation2 + $0x83] sm:$0xff] }
 0x14d   : > { %v556_v25 = vadd.f32 %v524_v43, %v456_v35  ;;  %11791 = vst [vmem:[#allocation92_spill] sm:$0xff] %v7179_v10  ;;  %v4936_v30 = vmul.f32 %v6603_v60, %v7165_v61  ;;  %v5096_v33 = vadd.f32 %v5032_v59, %v5000_v56  ;;  %v724_v16 = vmul.f32 %v11285_v20, %v688_v14  ;;  %v888_v32 = vld [vmem:[#allocation2 + $0x6e] sm:$0xff]  ;;  %v7188_v40 = vld [vmem:[#allocation2 + $0x84] sm:$0xff]  ;;  %v7190_v58 = vld [vmem:[#allocation2 + $0x9a] sm:$0xff] }
 0x14e   : > { %v4299_v28 = vadd.f32 %v4267_v23, %v4199_v50  ;;  %11792 = vst [vmem:[#allocation94_spill] sm:$0xff] %v7184_v42  ;;  %v4868_v35 = vadd.f32 %v4836_v62, %v4768_v53  ;;  %v1125_v29 = vadd.f32 %v1093_v47, %v1025_v36  ;;  %v1193_v43 = vmul.f32 %v11289_v19, %v7172_v45  ;;  %v7193_v60 = vld [vmem:[#allocation2 + $0x85] sm:$0xff]  ;;  %v11814_v61 = vld [vmem:[#allocation15_spill] sm:$0xff] }
 0x14f   : > { %v656_v0 = vadd.f32 %v624_v34, %v556_v25  ;;  %11793 = vst [vmem:[#allocation93_spill] sm:$0xff] %v7188_v40  ;;  %11794 = vst [vmem:[#allocation97_spill] sm:$0xff] %v7190_v58  ;;  %v824_v50 = vmul.f32 %v11294_v8, %v788_v5  ;;  %v1694_v14 = vmul.f32 %v5638_v44, %v7177_v46  ;;  %v7201_v25 = vld [vmem:[#allocation2 + $0x86] sm:$0xff]  ;;  %v7203_v34 = vld [vmem:[#allocation2 + $0x9b] sm:$0xff] }
 0x150   : > { %v5064_v23 = vadd.f32 %v4299_v28, %v3630_v12  ;;  %11795 = vst [vmem:[#allocation95_spill] sm:$0xff] %v7193_v60  ;;  %v1762_v56 = vmul.f32 %v5650_v49, %v7179_v10  ;;  %v4968_v59 = vadd.f32 %v4936_v30, %v4868_v35  ;;  %v1225_v36 = vadd.f32 %v1193_v43, %v1125_v29  ;;  %v7210_v10 = vld [vmem:[#allocation2 + $0x9c] sm:$0xff] }
 0x151   : > { %v756_v62 = vadd.f32 %v724_v16, %v656_v0  ;;  %v1293_v53 = vmul.f32 %v5620_v37, %v7184_v42  ;;  %11796 = vst [vmem:[#allocation9_spill] sm:$0xff] %v7201_v25  ;;  %11797 = vst [vmem:[#allocation96_spill] sm:$0xff] %v7203_v34  ;;  %v924_v12 = vmul.f32 %v11301_v4, %v888_v32  ;;  %v7214_v0 = vld [vmem:[#allocation2 + $0x9d] sm:$0xff] }
 0x152   : > { %v1393_v5 = vmul.f32 %v5629_v41, %v7188_v40  ;;  %v1794_v47 = vadd.f32 %v1762_v56, %v1694_v14  ;;  %v1862_v28 = vmul.f32 %v11359_v22, %v7190_v58  ;;  %11798 = vst [vmem:[#allocation101_spill] sm:$0xff] %v7210_v10  ;;  %v5128_v30 = vadd.f32 %v5064_v23, %v4968_v59  ;;  %v11800_v29 = vld [vmem:[#allocation60_spill] sm:$0xff] }
 0x153   : > { %v1325_v16 = vadd.f32 %v1293_v53, %v1225_v36  ;;  %v1493_v35 = vmul.f32 %v11305_v21, %v7193_v60  ;;  %11799 = vst [vmem:[#allocation98_spill] sm:$0xff] %v7214_v0  ;;  %v2362_v43 = vmul.f32 %v11800_v29, %v11364_v15  ;;  %v1593_v32 = vmul.f32 %v11746_v52, %v7201_v25  ;;  %v7222_v56 = vld [vmem:[#allocation2 + $0x9e] sm:$0xff]  ;;  %v7226_v36 = vld [vmem:[#allocation2 + $0xc8] sm:$0xff] }
 0x154   : > { %v1894_v40 = vadd.f32 %v1862_v28, %v1794_v47  ;;  %v1962_v14 = vmul.f32 %v5658_v51, %v7203_v34  ;;  %11801 = vst [vmem:[#allocation102_spill] sm:$0xff] %v7222_v56  ;;  %v11802_v23 = vld [vmem:[#allocation56_spill] sm:$0xff]  ;;  %11803 = vst [vmem:[#allocation99_spill] sm:$0xff] %v7226_v36  ;;  %v7228_v53 = vld [vmem:[#allocation2 + $0xc9] sm:$0xff]  ;;  %v5160_v60 = vadd.f32 %v5128_v30, %v5096_v33 }
 0x155   : > { %v2430_v59 = vmul.f32 %v11802_v23, %v11366_v54  ;;  %11804 = vst [vmem:[#allocation105_spill] sm:$0xff] %v7228_v53  ;;  %v856_v58 = vadd.f32 %v824_v50, %v756_v62  ;;  %v1425_v42 = vadd.f32 %v1393_v5, %v1325_v16  ;;  %v2062_v29 = vmul.f32 %v11368_v39, %v7210_v10  ;;  %v11805_v34 = vld [vmem:[#allocation61_spill] sm:$0xff]  ;;  %v7236_v23 = vld [vmem:[#allocation2 + $0xca] sm:$0xff] }
 0x156   : > { %v1994_v47 = vadd.f32 %v1962_v14, %v1894_v40  ;;  %v2162_v28 = vmul.f32 %v11752_v27, %v7214_v0  ;;  %v2530_v46 = vmul.f32 %v11805_v34, %v11744_v9  ;;  %11806 = vst [vmem:[#allocation103_spill] sm:$0xff] %v7236_v23  ;;  %v5199_v45 = vadd.f32 %v11750_v2, %v5160_v60  ;;  %v11807_v33 = vld [vmem:[#allocation18_spill] sm:$0xff]  ;;  %v11809_v30 = vld [vmem:[#allocation27_spill] sm:$0xff]  ;;  %v7273_v27 = vld [vmem:[#allocation2 + $0xf9] sm:$0xff] }
 0x157   : > { %v2462_v25 = vadd.f32 %v2430_v59, %v2362_v43  ;;  %v2262_v50 = vmul.f32 %v11807_v33, %v7222_v56  ;;  %v11808_v62 = vld [vmem:[#allocation26_spill] sm:$0xff]  ;;  %v3099_v40 = vmul.f32 %v11809_v30, %v7228_v53  ;;  %v1525_v16 = vadd.f32 %v1493_v35, %v1425_v42  ;;  %v11813_v60 = vld [vmem:[#allocation23_spill] sm:$0xff]  ;;  %v11819_v35 = vld [vmem:[#allocation57_spill] sm:$0xff]  ;;  %11828 = vst [vmem:[#allocation112_spill] sm:$0xff] %v7273_v27 }
 0x158   : > { %v3031_v5 = vmul.f32 %v11808_v62, %v7226_v36  ;;  %v2094_v14 = vadd.f32 %v2062_v29, %v1994_v47  ;;  %v11810_v43 = vld [vmem:[#allocation22_spill] sm:$0xff]  ;;  %5231 = vst.msk [vmem:[%s6091_s10 + $0x40] sm:$0xff] %vm171_vm0, %v5199_v45  ;;  %v956_v2 = vadd.f32 %v924_v12, %v856_v58  ;;  %v2730_v56 = vmul.f32 %v11814_v61, %v11813_v60  ;;  %v11815_v36 = vld [vmem:[#allocation28_spill] sm:$0xff]  ;;  %v11820_v47 = vld [vmem:[#allocation65_spill] sm:$0xff] }
 0x159   : > { %v2562_v0 = vadd.f32 %v2530_v46, %v2462_v25  ;;  %v11811_v59 = vld [vmem:[#allocation50_spill] sm:$0xff]  ;;  %v3199_v38 = vmul.f32 %v11815_v36, %v7236_v23  ;;  %v11818_v25 = vld [vmem:[#allocation24_spill] sm:$0xff]  ;;  %v11821_v45 = vld [vmem:[#allocation33_spill] sm:$0xff] }
 0x15a   : > { %v2630_v10 = vmul.f32 %v11811_v59, %v11810_v43  ;;  %v7247_v34 = vld [vmem:[#allocation2 + $0xcb] sm:$0xff]  ;;  %v3131_v24 = vadd.f32 %v3099_v40, %v3031_v5  ;;  %v2830_v29 = vmul.f32 %v11819_v35, %v11818_v25  ;;  %v2930_v59 = vmul.f32 %v11820_v47, %v11762_v13  ;;  %v7265_v53 = vld [vmem:[#allocation2 + $0xf8] sm:$0xff]  ;;  %v11824_v40 = vld [vmem:[#allocation29_spill] sm:$0xff] }
 0x15b   : > { %11812 = vst [vmem:[#allocation104_spill] sm:$0xff] %v7247_v34  ;;  %v7255_v33 = vld [vmem:[#allocation2 + $0xcc] sm:$0xff]  ;;  %11823 = vst [vmem:[#allocation109_spill] sm:$0xff] %v7265_v53  ;;  %v2194_v61 = vadd.f32 %v2162_v28, %v2094_v14  ;;  %v3299_v23 = vmul.f32 %v11824_v40, %v7247_v34  ;;  %v1625_v35 = vadd.f32 %v1593_v32, %v1525_v16  ;;  %v7283_v30 = vld [vmem:[#allocation2 + $0xfa] sm:$0xff] }
 0x15c   : > { %11816 = vst [vmem:[#allocation106_spill] sm:$0xff] %v7255_v33  ;;  %v7257_v42 = vld [vmem:[#allocation2 + $0xcd] sm:$0xff]  ;;  %v2662_v46 = vadd.f32 %v2630_v10, %v2562_v0  ;;  %v3231_v5 = vadd.f32 %v3199_v38, %v3131_v24  ;;  %v4369_v40 = vmul.f32 %v11773_v6, %v7265_v53  ;;  %11833 = vst [vmem:[#allocation111_spill] sm:$0xff] %v7283_v30  ;;  %v7295_v53 = vld [vmem:[#allocation2 + $0xfc] sm:$0xff] }
 0x15d   : > { %11817 = vst [vmem:[#allocation107_spill] sm:$0xff] %v7257_v42  ;;  %v11822_v58 = vld [vmem:[#allocation59_spill] sm:$0xff]  ;;  %v11826_v60 = vld [vmem:[#allocation34_spill] sm:$0xff]  ;;  %11839 = vst [vmem:[#allocation114_spill] sm:$0xff] %v7295_v53 }
 0x15e   : > { %v3700_v12 = vmul.f32 %v11822_v58, %v11821_v45  ;;  %v7269_v36 = vld [vmem:[#allocation2 + $0xce] sm:$0xff]  ;;  %v2762_v25 = vadd.f32 %v2730_v56, %v2662_v46  ;;  %v3331_v28 = vadd.f32 %v3299_v23, %v3231_v5  ;;  %v11834_v56 = vld [vmem:[#allocation36_spill] sm:$0xff]  ;;  %v2294_v23 = vadd.f32 %v2262_v50, %v2194_v61 }
 0x15f   : > { %11825 = vst [vmem:[#allocation110_spill] sm:$0xff] %v7269_v36  ;;  %v11827_v10 = vld [vmem:[#allocation63_spill] sm:$0xff]  ;;  %v11829_v47 = vld [vmem:[#allocation30_spill] sm:$0xff]  ;;  %v3599_v32 = vmul.f32 %v11775_v7, %v7269_v36  ;;  %v11843_v61 = vld [vmem:[#allocation68_spill] sm:$0xff] }
 0x160   : > { %v3768_v0 = vmul.f32 %v11827_v10, %v11826_v60  ;;  %v3399_v13 = vmul.f32 %v11829_v47, %v7255_v33  ;;  %v11830_v58 = vld [vmem:[#allocation31_spill] sm:$0xff]  ;;  %v2862_v10 = vadd.f32 %v2830_v29, %v2762_v25  ;;  %v11835_v16 = vld [vmem:[#allocation66_spill] sm:$0xff]  ;;  %v11836_v33 = vld [vmem:[#allocation41_spill] sm:$0xff] }
 0x161   : > { %v3499_v45 = vmul.f32 %v11830_v58, %v7257_v42  ;;  %v11831_v24 = vld [vmem:[#allocation35_spill] sm:$0xff]  ;;  %v3968_v46 = vmul.f32 %v11835_v16, %v11834_v56  ;;  %v4437_v42 = vmul.f32 %v11836_v33, %v7273_v27  ;;  %v4537_v16 = vmul.f32 %v11721_v17, %v7283_v30 }
 0x162   : > { %v3800_v38 = vadd.f32 %v3768_v0, %v3700_v12  ;;  %v11832_v14 = vld [vmem:[#allocation19_spill] sm:$0xff]  ;;  %v3431_v12 = vadd.f32 %v3399_v13, %v3331_v28  ;;  %v11837_v0 = vld [vmem:[#allocation20_spill] sm:$0xff]  ;;  %v2962_v25 = vadd.f32 %v2930_v59, %v2862_v10  ;;  %v11841_v13 = vld [vmem:[#allocation69_spill] sm:$0xff] }
 0x163   : > { %v3868_v34 = vmul.f32 %v11832_v14, %v11831_v24  ;;  %v4068_v14 = vmul.f32 %v11837_v0, %v11587_v48  ;;  %v7293_v24 = vld [vmem:[#allocation2 + $0xfb] sm:$0xff]  ;;  %v11840_v29 = vld [vmem:[#allocation67_spill] sm:$0xff]  ;;  %v4469_v7 = vadd.f32 %v4437_v42, %v4369_v40  ;;  %v357_v50 = vmul.f32 %v11841_v13, %v11407_v3 }
 0x164   : > { %11838 = vst [vmem:[#allocation113_spill] sm:$0xff] %v7293_v24  ;;  %v4168_v36 = vmul.f32 %v11840_v29, %v11530_v31  ;;  %v3531_v56 = vadd.f32 %v3499_v45, %v3431_v12  ;;  %v11845_v59 = vld [vmem:[#allocation45_spill] sm:$0xff]  ;;  %v4737_v42 = vmul.f32 %v11787_v18, %v7295_v53  ;;  %v11850_v53 = vld [vmem:[#allocation70_spill] sm:$0xff] }
 0x165   : > { %v3900_v5 = vadd.f32 %v3868_v34, %v3800_v38  ;;  %v11842_v34 = vld [vmem:[#allocation4_spill] sm:$0xff]  ;;  %v4569_v48 = vadd.f32 %v4537_v16, %v4469_v7  ;;  %v4637_v10 = vmul.f32 %v11845_v59, %v7293_v24  ;;  %v11849_v7 = vld [vmem:[#allocation74_spill] sm:$0xff] }
 0x166   : > { %v425_v28 = vmul.f32 %v11843_v61, %v11842_v34  ;;  %v11844_v38 = vld [vmem:[#allocation64_spill] sm:$0xff]  ;;  %v3631_v61 = vadd.f32 %v3599_v32, %v3531_v56  ;;  %v625_v16 = vmul.f32 %v11849_v7, %v11284_v26  ;;  %v7323_v34 = vld [vmem:[#allocation2 + $0xa8] sm:$0xff]  ;;  %v7332_v32 = vld [vmem:[%s10258_s1 + $0x30] ss:$0 sm:$0xff] }
 0x167   : > { %v4000_v27 = vadd.f32 %v3968_v46, %v3900_v5  ;;  %v4268_v0 = vmul.f32 %v11844_v38, %v11784_v57  ;;  %v7311_v29 = vld [vmem:[#allocation2 + $0xfd] sm:$0xff]  ;;  %v5001_v46 = vadd.f32 %v1625_v35, %v956_v2  ;;  %v4669_v30 = vadd.f32 %v4637_v10, %v4569_v48  ;;  %11852 = vst [vmem:[#allocation117_spill] sm:$0xff] %v7323_v34  ;;  %v7325_v2 = vld [vmem:[#allocation2 + $0xa9] sm:$0xff] }
 0x168   : > { %11846 = vst [vmem:[#allocation115_spill] sm:$0xff] %v7311_v29  ;;  %v7313_v45 = vld [vmem:[#allocation2 + $0xfe] sm:$0xff]  ;;  %v457_v12 = vadd.f32 %v425_v28, %v357_v50  ;;  %v5033_v38 = vadd.f32 %v2962_v25, %v2294_v23  ;;  %11853 = vst [vmem:[#allocation118_spill] sm:$0xff] %v7325_v2  ;;  %v4837_v48 = vmul.f32 %v11410_v63, %v7311_v29  ;;  %v11855_v28 = vld [vmem:[#allocation75_spill] sm:$0xff] }
 0x169   : > { %v4100_v40 = vadd.f32 %v4068_v14, %v4000_v27  ;;  %11847 = vst [vmem:[#allocation116_spill] sm:$0xff] %v7313_v45  ;;  %v11848_v5 = vld [vmem:[#allocation72_spill] sm:$0xff]  ;;  %v1026_v27 = vmul.f32 %v11850_v53, %v11287_v55  ;;  %v11851_v14 = vld [vmem:[#allocation71_spill] sm:$0xff]  ;;  %v4769_v35 = vadd.f32 %v4737_v42, %v4669_v30  ;;  %v1194_v30 = vmul.f32 %v11855_v28, %v11289_v19  ;;  %v11886_v29 = vld [vmem:[#allocation25_spill] sm:$0xff] }
 0x16a   : > { %v525_v13 = vmul.f32 %v11848_v5, %v11411_v1  ;;  %v1094_v18 = vmul.f32 %v11851_v14, %v11288_v11  ;;  %v11854_v53 = vld [vmem:[#allocation76_spill] sm:$0xff]  ;;  %v7340_v10 = vld [vmem:[#allocation2 + $0xaa] sm:$0xff]  ;;  %v1763_v5 = vmul.f32 %v5650_v49, %v7325_v2 }
 0x16b   : > { %v4200_v24 = vadd.f32 %v4168_v36, %v4100_v40  ;;  %v4937_v36 = vmul.f32 %v7332_v32, %v7313_v45  ;;  %v725_v56 = vmul.f32 %v11854_v53, %v11285_v20  ;;  %11856 = vst [vmem:[#allocation119_spill] sm:$0xff] %v7340_v10  ;;  %v4869_v42 = vadd.f32 %v4837_v48, %v4769_v35  ;;  %v11861_v48 = vld [vmem:[#allocation77_spill] sm:$0xff]  ;;  %v11879_v2 = vld [vmem:[#allocation86_spill] sm:$0xff] }
 0x16c   : > { %v557_v57 = vadd.f32 %v525_v13, %v457_v12  ;;  %v1126_v50 = vadd.f32 %v1094_v18, %v1026_v27  ;;  %v5097_v40 = vadd.f32 %v5033_v38, %v5001_v46  ;;  %v1695_v12 = vmul.f32 %v5638_v44, %v7323_v34  ;;  %v7346_v13 = vld [vmem:[#allocation2 + $0xab] sm:$0xff]  ;;  %v7402_v45 = vld [vmem:[#allocation2 + $0xdb] sm:$0xff] }
 0x16d   : > { %v4300_v23 = vadd.f32 %v4268_v0, %v4200_v24  ;;  %11857 = vst [vmem:[#allocation120_spill] sm:$0xff] %v7346_v13  ;;  %v4969_v0 = vadd.f32 %v4937_v36, %v4869_v42  ;;  %v1863_v46 = vmul.f32 %v11359_v22, %v7340_v10  ;;  %v7354_v38 = vld [vmem:[#allocation2 + $0xac] sm:$0xff]  ;;  %v925_v53 = vmul.f32 %v11861_v48, %v11301_v4  ;;  %v11864_v42 = vld [vmem:[#allocation80_spill] sm:$0xff] }
 0x16e   : > { %v657_v25 = vadd.f32 %v625_v16, %v557_v57  ;;  %v1226_v24 = vadd.f32 %v1194_v30, %v1126_v50  ;;  %v11858_v57 = vld [vmem:[#allocation73_spill] sm:$0xff]  ;;  %v11859_v16 = vld [vmem:[#allocation78_spill] sm:$0xff]  ;;  %v1795_v35 = vadd.f32 %v1763_v5, %v1695_v12  ;;  %11860 = vst [vmem:[#allocation121_spill] sm:$0xff] %v7354_v38  ;;  %v2431_v12 = vmul.f32 %v11864_v42, %v11366_v54  ;;  %v7366_v5 = vld [vmem:[#allocation2 + $0xd8] sm:$0xff] }
 0x16f   : > { %v5065_v7 = vadd.f32 %v4300_v23, %v3631_v61  ;;  %v1294_v18 = vmul.f32 %v11858_v57, %v5620_v37  ;;  %v825_v27 = vmul.f32 %v11859_v16, %v11294_v8  ;;  %v11862_v61 = vld [vmem:[#allocation81_spill] sm:$0xff]  ;;  %v1963_v23 = vmul.f32 %v5658_v51, %v7346_v13  ;;  %v11863_v50 = vld [vmem:[#allocation82_spill] sm:$0xff]  ;;  %11865 = vst [vmem:[#allocation122_spill] sm:$0xff] %v7366_v5  ;;  %v11870_v42 = vld [vmem:[#allocation84_spill] sm:$0xff] }
 0x170   : > { %v757_v14 = vadd.f32 %v725_v56, %v657_v25  ;;  %v1394_v56 = vmul.f32 %v11862_v61, %v5629_v41  ;;  %v1895_v25 = vadd.f32 %v1863_v46, %v1795_v35  ;;  %v2363_v30 = vmul.f32 %v11863_v50, %v11364_v15  ;;  %v7372_v61 = vld [vmem:[#allocation2 + $0xd9] sm:$0xff]  ;;  %v7374_v35 = vld [vmem:[#allocation2 + $0xad] sm:$0xff]  ;;  %11880 = vst [vmem:[#allocation51_spill] sm:$0xff] %v7402_v45 }
 0x171   : > { %v1326_v28 = vadd.f32 %v1294_v18, %v1226_v24  ;;  %v5129_v36 = vadd.f32 %v5065_v7, %v4969_v0  ;;  %v11866_v24 = vld [vmem:[#allocation79_spill] sm:$0xff]  ;;  %v2063_v48 = vmul.f32 %v11368_v39, %v7354_v38  ;;  %11867 = vst [vmem:[#allocation42_spill] sm:$0xff] %v7372_v61  ;;  %11868 = vst [vmem:[#allocation100_spill] sm:$0xff] %v7374_v35 }
 0x172   : > { %v857_v57 = vadd.f32 %v825_v27, %v757_v14  ;;  %v1494_v18 = vmul.f32 %v11866_v24, %v11305_v21  ;;  %v1995_v0 = vadd.f32 %v1963_v23, %v1895_v25  ;;  %v7376_v46 = vld [vmem:[#allocation2 + $0xae] sm:$0xff]  ;;  %v2463_v50 = vadd.f32 %v2431_v12, %v2363_v30  ;;  %v7386_v23 = vld [vmem:[#allocation2 + $0xda] sm:$0xff] }
 0x173   : > { %v1426_v16 = vadd.f32 %v1394_v56, %v1326_v28  ;;  %v5161_v7 = vadd.f32 %v5129_v36, %v5097_v40  ;;  %11869 = vst [vmem:[#allocation108_spill] sm:$0xff] %v7376_v46  ;;  %v2531_v13 = vmul.f32 %v11870_v42, %v11744_v9  ;;  %v11871_v27 = vld [vmem:[#allocation83_spill] sm:$0xff]  ;;  %v11872_v56 = vld [vmem:[#allocation85_spill] sm:$0xff]  ;;  %v3032_v40 = vmul.f32 %v11808_v62, %v7366_v5  ;;  %v11877_v5 = vld [vmem:[#allocation18_spill] sm:$0xff] }
 0x174   : > { %v1594_v28 = vmul.f32 %v11871_v27, %v11746_v52  ;;  %v2631_v24 = vmul.f32 %v11872_v56, %v11810_v43  ;;  %11873 = vst [vmem:[#allocation43_spill] sm:$0xff] %v7386_v23  ;;  %v7391_v36 = vld [vmem:[%s10259_s2] ss:$0 sm:$0xff]  ;;  %v2095_v30 = vadd.f32 %v2063_v48, %v1995_v0  ;;  %v957_v42 = vadd.f32 %v925_v53, %v857_v57  ;;  %v11878_v10 = vld [vmem:[#allocation23_spill] sm:$0xff]  ;;  %v11881_v48 = vld [vmem:[#allocation24_spill] sm:$0xff] }
 0x175   : > { %v1526_v14 = vadd.f32 %v1494_v18, %v1426_v16  ;;  %11874 = vst [vmem:[#allocation62_spill] sm:$0xff] %v7391_v36  ;;  %v5200_v25 = vadd.f32 %v7391_v36, %v5161_v7  ;;  %v2563_v12 = vadd.f32 %v2531_v13, %v2463_v50  ;;  %v11875_v16 = vld [vmem:[#allocation27_spill] sm:$0xff]  ;;  %v11876_v27 = vld [vmem:[#allocation17_spill] sm:$0xff]  ;;  %v2263_v38 = vmul.f32 %v11877_v5, %v7376_v46  ;;  %v11882_v13 = vld [vmem:[#allocation90_spill] sm:$0xff] }
 0x176   : > { %v3100_v18 = vmul.f32 %v11875_v16, %v7372_v61  ;;  %v2163_v56 = vmul.f32 %v11876_v27, %v7374_v35  ;;  %v2731_v34 = vmul.f32 %v11879_v2, %v11878_v10  ;;  %v2831_v0 = vmul.f32 %v11882_v13, %v11881_v48  ;;  %v11883_v53 = vld [vmem:[#allocation28_spill] sm:$0xff]  ;;  %v11887_v43 = vld [vmem:[#allocation53_spill] sm:$0xff]  ;;  %v11889_v16 = vld [vmem:[#allocation87_spill] sm:$0xff] }
 0x177   : > { %5232 = vst.msk [vmem:[%s6091_s10 + $0x48] sm:$0xff] %vm171_vm0, %v5200_v25  ;;  %v2663_v7 = vadd.f32 %v2631_v24, %v2563_v12  ;;  %v3200_v57 = vmul.f32 %v11883_v53, %v7386_v23  ;;  %v7410_v61 = vld [vmem:[#allocation2 + $0xdc] sm:$0xff]  ;;  %v2931_v2 = vmul.f32 %v11887_v43, %v11886_v29  ;;  %v7420_v12 = vld [vmem:[#allocation2 + $0x108] sm:$0xff] }
 0x178   : > { %v3132_v50 = vadd.f32 %v3100_v18, %v3032_v40  ;;  %11884 = vst [vmem:[#allocation47_spill] sm:$0xff] %v7410_v61  ;;  %v7412_v35 = vld [vmem:[#allocation2 + $0xdd] sm:$0xff]  ;;  %v2195_v46 = vadd.f32 %v2163_v56, %v2095_v30  ;;  %11891 = vst [vmem:[#allocation52_spill] sm:$0xff] %v7420_v12  ;;  %v7422_v40 = vld [vmem:[#allocation2 + $0x109] sm:$0xff]  ;;  %v1626_v18 = vadd.f32 %v1594_v28, %v1526_v14 }
 0x179   : > { %11885 = vst [vmem:[#allocation48_spill] sm:$0xff] %v7412_v35  ;;  %v11888_v10 = vld [vmem:[#allocation33_spill] sm:$0xff]  ;;  %v11890_v24 = vld [vmem:[#allocation88_spill] sm:$0xff]  ;;  %11892 = vst [vmem:[#allocation54_spill] sm:$0xff] %v7422_v40  ;;  %v2763_v13 = vadd.f32 %v2731_v34, %v2663_v7  ;;  %v3400_v43 = vmul.f32 %v11829_v47, %v7410_v61  ;;  %v4370_v28 = vmul.f32 %v11773_v6, %v7420_v12 }
 0x17a   : > { %v3701_v62 = vmul.f32 %v11889_v16, %v11888_v10  ;;  %v3769_v25 = vmul.f32 %v11890_v24, %v11826_v60  ;;  %v3232_v23 = vadd.f32 %v3200_v57, %v3132_v50  ;;  %v11893_v48 = vld [vmem:[#allocation29_spill] sm:$0xff]  ;;  %v3500_v16 = vmul.f32 %v11830_v58, %v7412_v35  ;;  %v11895_v24 = vld [vmem:[#allocation35_spill] sm:$0xff]  ;;  %v11898_v57 = vld [vmem:[#allocation32_spill] sm:$0xff] }
 0x17b   : > { %v3300_v53 = vmul.f32 %v11893_v48, %v7402_v45  ;;  %v7426_v30 = vld [vmem:[#allocation2 + $0xde] sm:$0xff]  ;;  %v7434_v29 = vld [vmem:[#allocation2 + $0x10a] sm:$0xff]  ;;  %v2863_v14 = vadd.f32 %v2831_v0, %v2763_v13  ;;  %v4438_v7 = vmul.f32 %v11836_v33, %v7422_v40  ;;  %v2295_v50 = vadd.f32 %v2263_v38, %v2195_v46 }
 0x17c   : > { %11894 = vst [vmem:[#allocation55_spill] sm:$0xff] %v7426_v30  ;;  %v3801_v56 = vadd.f32 %v3769_v25, %v3701_v62  ;;  %v11896_v60 = vld [vmem:[#allocation5_spill] sm:$0xff]  ;;  %11897 = vst [vmem:[#allocation49_spill] sm:$0xff] %v7434_v29  ;;  %v3600_v61 = vmul.f32 %v11898_v57, %v7426_v30  ;;  %v11899_v35 = vld [vmem:[#allocation36_spill] sm:$0xff] }
 0x17d   : > { %v3869_v10 = vmul.f32 %v11896_v60, %v11895_v24  ;;  %v3332_v34 = vadd.f32 %v3300_v53, %v3232_v23  ;;  %v11900_v62 = vld [vmem:[#allocation89_spill] sm:$0xff]  ;;  %v7444_v58 = vld [vmem:[#allocation2 + $0x10b] sm:$0xff]  ;;  %v2963_v60 = vadd.f32 %v2931_v2, %v2863_v14  ;;  %v4470_v0 = vadd.f32 %v4438_v7, %v4370_v28  ;;  %v11908_v14 = vld [vmem:[#allocation4_spill] sm:$0xff] }
 0x17e   : > { %v3969_v25 = vmul.f32 %v11900_v62, %v11899_v35  ;;  %11901 = vst [vmem:[#allocation58_spill] sm:$0xff] %v7444_v58  ;;  %v4538_v23 = vmul.f32 %v11721_v17, %v7434_v29  ;;  %v11902_v13 = vld [vmem:[#allocation37_spill] sm:$0xff]  ;;  %v11903_v12 = vld [vmem:[#allocation6_spill] sm:$0xff]  ;;  %v11904_v38 = vld [vmem:[#allocation11_spill] sm:$0xff]  ;;  %v4638_v2 = vmul.f32 %v11845_v59, %v7444_v58 }
 0x17f   : > { %v3901_v45 = vadd.f32 %v3869_v10, %v3801_v56  ;;  %v3432_v24 = vadd.f32 %v3400_v43, %v3332_v34  ;;  %v4069_v40 = vmul.f32 %v11903_v12, %v11902_v13  ;;  %v4169_v46 = vmul.f32 %v11904_v38, %v11530_v31  ;;  %v7452_v30 = vld [vmem:[#allocation2 + $0x10c] sm:$0xff]  ;;  %v11911_v7 = vld [vmem:[#allocation8_spill] sm:$0xff] }
 0x180   : > { %11905 = vst [vmem:[#allocation60_spill] sm:$0xff] %v7452_v30  ;;  %v11906_v10 = vld [vmem:[#allocation7_spill] sm:$0xff]  ;;  %v4570_v33 = vadd.f32 %v4538_v23, %v4470_v0  ;;  %v5002_v38 = vadd.f32 %v1626_v18, %v957_v42  ;;  %v5034_v29 = vadd.f32 %v2963_v60, %v2295_v50  ;;  %v11912_v31 = vld [vmem:[#allocation46_spill] sm:$0xff]  ;;  %v11914_v0 = vld [vmem:[#allocation12_spill] sm:$0xff] }
 0x181   : > { %v4001_v53 = vadd.f32 %v3969_v25, %v3901_v45  ;;  %v358_v56 = vmul.f32 %v11906_v10, %v11407_v3  ;;  %v3532_v62 = vadd.f32 %v3500_v16, %v3432_v24  ;;  %v7458_v43 = vld [vmem:[#allocation2 + $0x10d] sm:$0xff]  ;;  %v4738_v10 = vmul.f32 %v11912_v31, %v7452_v30  ;;  %v11917_v60 = vld [vmem:[#allocation92_spill] sm:$0xff] }
 0x182   : > { %11907 = vst [vmem:[#allocation56_spill] sm:$0xff] %v7458_v43  ;;  %v11909_v45 = vld [vmem:[#allocation10_spill] sm:$0xff]  ;;  %v11910_v12 = vld [vmem:[#allocation39_spill] sm:$0xff]  ;;  %v4670_v17 = vadd.f32 %v4638_v2, %v4570_v33  ;;  %v526_v23 = vmul.f32 %v11914_v0, %v11411_v1  ;;  %v1095_v2 = vmul.f32 %v11917_v60, %v11288_v11  ;;  %v11921_v0 = vld [vmem:[#allocation97_spill] sm:$0xff] }
 0x183   : > { %v426_v34 = vmul.f32 %v11909_v45, %v11908_v14  ;;  %v4101_v28 = vadd.f32 %v4069_v40, %v4001_v53  ;;  %v4269_v25 = vmul.f32 %v11911_v7, %v11910_v12  ;;  %v7466_v16 = vld [vmem:[#allocation2 + $0x10e] sm:$0xff]  ;;  %v3632_v58 = vadd.f32 %v3600_v61, %v3532_v62 }
 0x184   : > { %11913 = vst [vmem:[#allocation61_spill] sm:$0xff] %v7466_v16  ;;  %v4838_v40 = vmul.f32 %v11410_v63, %v7458_v43  ;;  %v11915_v53 = vld [vmem:[#allocation91_spill] sm:$0xff]  ;;  %v4770_v42 = vadd.f32 %v4738_v10, %v4670_v17  ;;  %v11916_v33 = vld [vmem:[#allocation94_spill] sm:$0xff]  ;;  %v5098_v62 = vadd.f32 %v5034_v29, %v5002_v38 }
 0x185   : > { %v458_v24 = vadd.f32 %v426_v34, %v358_v56  ;;  %v4201_v59 = vadd.f32 %v4169_v46, %v4101_v28  ;;  %v1027_v45 = vmul.f32 %v11915_v53, %v11287_v55  ;;  %v626_v50 = vmul.f32 %v11916_v33, %v11284_v26  ;;  %v7478_v56 = vld [vmem:[#allocation2 + $0xb0] sm:$0xff]  ;;  %v11920_v28 = vld [vmem:[#allocation93_spill] sm:$0xff] }
 0x186   : > { %11918 = vst [vmem:[#allocation50_spill] sm:$0xff] %v7478_v56  ;;  %v7480_v34 = vld [vmem:[#allocation2 + $0xb1] sm:$0xff]  ;;  %v4938_v46 = vmul.f32 %v7332_v32, %v7466_v16  ;;  %v726_v7 = vmul.f32 %v11920_v28, %v11285_v20  ;;  %v4870_v17 = vadd.f32 %v4838_v40, %v4770_v42 }
 0x187   : > { %v558_v18 = vadd.f32 %v526_v23, %v458_v24  ;;  %11919 = vst [vmem:[#allocation15_spill] sm:$0xff] %v7480_v34  ;;  %v4301_v61 = vadd.f32 %v4269_v25, %v4201_v59  ;;  %v1127_v24 = vadd.f32 %v1095_v2, %v1027_v45  ;;  %v1195_v23 = vmul.f32 %v11921_v0, %v11289_v19  ;;  %v7488_v53 = vld [vmem:[#allocation2 + $0xb2] sm:$0xff]  ;;  %v11927_v2 = vld [vmem:[#allocation101_spill] sm:$0xff] }
 0x188   : > { %11922 = vst [vmem:[#allocation57_spill] sm:$0xff] %v7488_v53  ;;  %v11923_v60 = vld [vmem:[#allocation95_spill] sm:$0xff]  ;;  %v1696_v59 = vmul.f32 %v5638_v44, %v7478_v56  ;;  %v1764_v29 = vmul.f32 %v5650_v49, %v7480_v34  ;;  %v4970_v25 = vadd.f32 %v4938_v46, %v4870_v17  ;;  %v11924_v45 = vld [vmem:[#allocation96_spill] sm:$0xff]  ;;  %v1864_v0 = vmul.f32 %v11359_v22, %v7488_v53  ;;  %v11929_v17 = vld [vmem:[#allocation98_spill] sm:$0xff] }
 0x189   : > { %v658_v10 = vadd.f32 %v626_v50, %v558_v18  ;;  %v5066_v33 = vadd.f32 %v4301_v61, %v3632_v58  ;;  %v826_v43 = vmul.f32 %v11923_v60, %v11294_v8  ;;  %v1227_v40 = vadd.f32 %v1195_v23, %v1127_v24  ;;  %v7498_v18 = vld [vmem:[#allocation2 + $0xb3] sm:$0xff]  ;;  %v11926_v50 = vld [vmem:[#allocation9_spill] sm:$0xff] }
 0x18a   : > { %v1295_v42 = vmul.f32 %v11924_v45, %v5620_v37  ;;  %11925 = vst [vmem:[#allocation65_spill] sm:$0xff] %v7498_v18  ;;  %v926_v58 = vmul.f32 %v11926_v50, %v11301_v4  ;;  %v1395_v61 = vmul.f32 %v11927_v2, %v5629_v41  ;;  %v1796_v28 = vadd.f32 %v1764_v29, %v1696_v59  ;;  %v7506_v60 = vld [vmem:[#allocation2 + $0xb4] sm:$0xff]  ;;  %v11932_v50 = vld [vmem:[#allocation102_spill] sm:$0xff] }
 0x18b   : > { %v758_v38 = vadd.f32 %v726_v7, %v658_v10  ;;  %11928 = vst [vmem:[#allocation59_spill] sm:$0xff] %v7506_v60  ;;  %v5130_v46 = vadd.f32 %v5066_v33, %v4970_v25  ;;  %v1495_v10 = vmul.f32 %v11929_v17, %v11305_v21  ;;  %v7510_v24 = vld [vmem:[#allocation2 + $0xb5] sm:$0xff]  ;;  %v1595_v34 = vmul.f32 %v11932_v50, %v11746_v52  ;;  %v11934_v33 = vld [vmem:[#allocation105_spill] sm:$0xff] }
 0x18c   : > { %v1327_v7 = vadd.f32 %v1295_v42, %v1227_v40  ;;  %11930 = vst [vmem:[#allocation63_spill] sm:$0xff] %v7510_v24  ;;  %v11931_v23 = vld [vmem:[#allocation99_spill] sm:$0xff]  ;;  %v1896_v2 = vadd.f32 %v1864_v0, %v1796_v28  ;;  %v1964_v59 = vmul.f32 %v5658_v51, %v7498_v18  ;;  %v2432_v25 = vmul.f32 %v11934_v33, %v11366_v54  ;;  %v7522_v40 = vld [vmem:[#allocation2 + $0xe0] sm:$0xff] }
 0x18d   : > { %v2364_v45 = vmul.f32 %v11931_v23, %v11364_v15  ;;  %v7518_v29 = vld [vmem:[#allocation2 + $0xb6] sm:$0xff]  ;;  %11935 = vst [vmem:[#allocation66_spill] sm:$0xff] %v7522_v40  ;;  %v7524_v42 = vld [vmem:[#allocation2 + $0xe1] sm:$0xff]  ;;  %v5162_v17 = vadd.f32 %v5130_v46, %v5098_v62  ;;  %v858_v53 = vadd.f32 %v826_v43, %v758_v38  ;;  %v2064_v23 = vmul.f32 %v11368_v39, %v7506_v60 }
 0x18e   : > { %11933 = vst [vmem:[#allocation19_spill] sm:$0xff] %v7518_v29  ;;  %11936 = vst [vmem:[#allocation20_spill] sm:$0xff] %v7524_v42  ;;  %v1427_v56 = vadd.f32 %v1395_v61, %v1327_v7  ;;  %v1996_v28 = vadd.f32 %v1964_v59, %v1896_v2  ;;  %v2164_v0 = vmul.f32 %v11876_v27, %v7510_v24  ;;  %v11937_v18 = vld [vmem:[#allocation103_spill] sm:$0xff]  ;;  %v7532_v33 = vld [vmem:[#allocation2 + $0xe2] sm:$0xff] }
 0x18f   : > { %v2464_v50 = vadd.f32 %v2432_v25, %v2364_v45  ;;  %v2532_v16 = vmul.f32 %v11937_v18, %v11744_v9  ;;  %11938 = vst [vmem:[#allocation67_spill] sm:$0xff] %v7532_v33  ;;  %v5201_v30 = vadd.f32 %v7391_v36, %v5162_v17  ;;  %v2264_v43 = vmul.f32 %v11877_v5, %v7518_v29  ;;  %v11939_v62 = vld [vmem:[#allocation26_spill] sm:$0xff]  ;;  %v11940_v61 = vld [vmem:[#allocation27_spill] sm:$0xff]  ;;  %v11942_v25 = vld [vmem:[#allocation104_spill] sm:$0xff] }
 0x190   : > { %v3033_v38 = vmul.f32 %v11939_v62, %v7522_v40  ;;  %v3101_v46 = vmul.f32 %v11940_v61, %v7524_v42  ;;  %v1527_v7 = vadd.f32 %v1495_v10, %v1427_v56  ;;  %v2096_v2 = vadd.f32 %v2064_v23, %v1996_v28  ;;  %v11941_v45 = vld [vmem:[#allocation22_spill] sm:$0xff]  ;;  %v11944_v60 = vld [vmem:[#allocation23_spill] sm:$0xff]  ;;  %v11946_v40 = vld [vmem:[#allocation28_spill] sm:$0xff] }
 0x191   : > { %v2564_v59 = vadd.f32 %v2532_v16, %v2464_v50  ;;  %v2632_v24 = vmul.f32 %v11942_v25, %v11941_v45  ;;  %v7543_v18 = vld [vmem:[#allocation2 + $0xe3] sm:$0xff]  ;;  %5233 = vst.msk [vmem:[%s6091_s10 + $0x50] sm:$0xff] %vm171_vm0, %v5201_v30  ;;  %v958_v17 = vadd.f32 %v926_v58, %v858_v53  ;;  %v3201_v36 = vmul.f32 %v11946_v40, %v7532_v33  ;;  %v11949_v10 = vld [vmem:[#allocation24_spill] sm:$0xff]  ;;  %v11950_v23 = vld [vmem:[#allocation107_spill] sm:$0xff] }
 0x192   : > { %11943 = vst [vmem:[#allocation69_spill] sm:$0xff] %v7543_v18  ;;  %v11945_v27 = vld [vmem:[#allocation106_spill] sm:$0xff]  ;;  %v3133_v5 = vadd.f32 %v3101_v46, %v3033_v38  ;;  %v2832_v28 = vmul.f32 %v11950_v23, %v11949_v10  ;;  %v11951_v50 = vld [vmem:[#allocation25_spill] sm:$0xff]  ;;  %v7561_v61 = vld [vmem:[#allocation2 + $0x110] sm:$0xff]  ;;  %v3301_v46 = vmul.f32 %v11893_v48, %v7543_v18  ;;  %v1627_v23 = vadd.f32 %v1595_v34, %v1527_v7 }
 0x193   : > { %v2732_v29 = vmul.f32 %v11945_v27, %v11944_v60  ;;  %v7551_v62 = vld [vmem:[#allocation2 + $0xe4] sm:$0xff]  ;;  %v2664_v16 = vadd.f32 %v2632_v24, %v2564_v59  ;;  %11955 = vst [vmem:[#allocation72_spill] sm:$0xff] %v7561_v61  ;;  %v2196_v27 = vadd.f32 %v2164_v0, %v2096_v2  ;;  %v11958_v24 = vld [vmem:[#allocation112_spill] sm:$0xff]  ;;  %v11962_v2 = vld [vmem:[#allocation111_spill] sm:$0xff]  ;;  %v4371_v48 = vmul.f32 %v11773_v6, %v7561_v61 }
 0x194   : > { %11947 = vst [vmem:[#allocation68_spill] sm:$0xff] %v7551_v62  ;;  %v7553_v56 = vld [vmem:[#allocation2 + $0xe5] sm:$0xff]  ;;  %v3233_v38 = vadd.f32 %v3201_v36, %v3133_v5  ;;  %v7569_v60 = vld [vmem:[#allocation2 + $0x111] sm:$0xff] }
 0x195   : > { %11948 = vst [vmem:[#allocation64_spill] sm:$0xff] %v7553_v56  ;;  %v11952_v25 = vld [vmem:[#allocation110_spill] sm:$0xff]  ;;  %v11953_v30 = vld [vmem:[#allocation33_spill] sm:$0xff]  ;;  %11959 = vst [vmem:[#allocation70_spill] sm:$0xff] %v7569_v60  ;;  %v2764_v10 = vadd.f32 %v2732_v29, %v2664_v16 }
 0x196   : > { %v2932_v42 = vmul.f32 %v11952_v25, %v11951_v50  ;;  %v11954_v53 = vld [vmem:[#allocation109_spill] sm:$0xff]  ;;  %v11957_v40 = vld [vmem:[#allocation34_spill] sm:$0xff]  ;;  %v3401_v25 = vmul.f32 %v11829_v47, %v7551_v62  ;;  %v3333_v0 = vadd.f32 %v3301_v46, %v3233_v38  ;;  %v11961_v36 = vld [vmem:[#allocation35_spill] sm:$0xff]  ;;  %v2296_v46 = vadd.f32 %v2264_v43, %v2196_v27 }
 0x197   : > { %v3702_v58 = vmul.f32 %v11954_v53, %v11953_v30  ;;  %v7565_v33 = vld [vmem:[#allocation2 + $0xe6] sm:$0xff]  ;;  %v3770_v59 = vmul.f32 %v11958_v24, %v11957_v40  ;;  %v11960_v53 = vld [vmem:[#allocation31_spill] sm:$0xff]  ;;  %v3870_v18 = vmul.f32 %v11962_v2, %v11961_v36  ;;  %v2864_v24 = vadd.f32 %v2832_v28, %v2764_v10 }
 0x198   : > { %11956 = vst [vmem:[#allocation74_spill] sm:$0xff] %v7565_v33  ;;  %v3501_v30 = vmul.f32 %v11960_v53, %v7553_v56  ;;  %v7579_v50 = vld [vmem:[#allocation2 + $0x112] sm:$0xff]  ;;  %v3601_v34 = vmul.f32 %v11898_v57, %v7565_v33  ;;  %v11964_v29 = vld [vmem:[#allocation113_spill] sm:$0xff]  ;;  %v11966_v62 = vld [vmem:[#allocation114_spill] sm:$0xff] }
 0x199   : > { %v3802_v5 = vadd.f32 %v3770_v59, %v3702_v58  ;;  %11963 = vst [vmem:[#allocation71_spill] sm:$0xff] %v7579_v50  ;;  %v3970_v7 = vmul.f32 %v11964_v29, %v11899_v35  ;;  %v11965_v16 = vld [vmem:[#allocation41_spill] sm:$0xff]  ;;  %v323_v38 = vld [vmem:[#allocation2 + $0x90] sm:$0xff]  ;;  %v3433_v59 = vadd.f32 %v3401_v25, %v3333_v0  ;;  %v4070_v61 = vmul.f32 %v11966_v62, %v11902_v13  ;;  %v11969_v33 = vld [vmem:[#allocation38_spill] sm:$0xff] }
 0x19a   : > { %v4439_v56 = vmul.f32 %v11965_v16, %v7569_v60  ;;  %v391_v58 = vld [vmem:[#allocation2 + $0x91] sm:$0xff]  ;;  %v2964_v28 = vadd.f32 %v2932_v42, %v2864_v24  ;;  %v11973_v42 = vld [vmem:[#allocation45_spill] sm:$0xff] }
 0x19b   : > { %v3902_v2 = vadd.f32 %v3870_v18, %v3802_v5  ;;  %v7589_v6 = vld [vmem:[#allocation2 + $0x113] sm:$0xff]  ;;  %v3533_v53 = vadd.f32 %v3501_v30, %v3433_v59  ;;  %v359_v18 = vmul.f32 %v11407_v3, %v323_v38  ;;  %v427_v27 = vmul.f32 %v11908_v14, %v391_v58 }
 0x19c   : > { %11967 = vst [vmem:[#allocation76_spill] sm:$0xff] %v7589_v6  ;;  %v7591_v10 = vld [vmem:[#allocation2 + $0x114] sm:$0xff]  ;;  %v4471_v29 = vadd.f32 %v4439_v56, %v4371_v48  ;;  %v4639_v24 = vmul.f32 %v11973_v42, %v7589_v6 }
 0x19d   : > { %11968 = vst [vmem:[#allocation75_spill] sm:$0xff] %v7591_v10  ;;  %v11970_v57 = vld [vmem:[#allocation115_spill] sm:$0xff]  ;;  %v11971_v35 = vld [vmem:[#allocation44_spill] sm:$0xff]  ;;  %v4002_v43 = vadd.f32 %v3970_v7, %v3902_v2  ;;  %v4739_v48 = vmul.f32 %v11912_v31, %v7591_v10  ;;  %v5003_v7 = vadd.f32 %v1627_v23, %v958_v17  ;;  %v459_v38 = vadd.f32 %v427_v27, %v359_v18  ;;  %v7615_v31 = vld [vmem:[#allocation2 + $0xc0] sm:$0xff] }
 0x19e   : > { %v4170_v36 = vmul.f32 %v11970_v57, %v11969_v33  ;;  %v4539_v60 = vmul.f32 %v11971_v35, %v7579_v50  ;;  %v491_v16 = vld [vmem:[#allocation2 + $0x92] sm:$0xff]  ;;  %v3633_v2 = vadd.f32 %v3601_v34, %v3533_v53  ;;  %11978 = vst [vmem:[#allocation77_spill] sm:$0xff] %v7615_v31  ;;  %v7617_v17 = vld [vmem:[#allocation2 + $0xc1] sm:$0xff] }
 0x19f   : > { %v591_v62 = vld [vmem:[#allocation2 + $0x93] sm:$0xff]  ;;  %v4102_v57 = vadd.f32 %v4070_v61, %v4002_v43  ;;  %v527_v58 = vmul.f32 %v11411_v1, %v491_v16  ;;  %v11977_v61 = vld [vmem:[#allocation118_spill] sm:$0xff]  ;;  %11979 = vst [vmem:[#allocation81_spill] sm:$0xff] %v7617_v17 }
 0x1a0   : > { %v11972_v25 = vld [vmem:[#allocation116_spill] sm:$0xff]  ;;  %v4571_v5 = vadd.f32 %v4539_v60, %v4471_v29  ;;  %v627_v60 = vmul.f32 %v11284_v26, %v591_v62  ;;  %v1096_v43 = vmul.f32 %v11977_v61, %v11288_v11  ;;  %v11980_v18 = vld [vmem:[#allocation119_spill] sm:$0xff]  ;;  %v7626_v62 = vld [vmem:[#allocation2 + $0xc2] sm:$0xff] }
 0x1a1   : > { %v4270_v0 = vmul.f32 %v11972_v25, %v11910_v12  ;;  %v7605_v56 = vld [vmem:[#allocation2 + $0x115] sm:$0xff]  ;;  %v5035_v25 = vadd.f32 %v2964_v28, %v2296_v46  ;;  %v4202_v29 = vadd.f32 %v4170_v36, %v4102_v57  ;;  %v559_v6 = vadd.f32 %v527_v58, %v459_v38  ;;  %v11976_v12 = vld [vmem:[#allocation117_spill] sm:$0xff]  ;;  %11981 = vst [vmem:[#allocation82_spill] sm:$0xff] %v7626_v62 }
 0x1a2   : > { %11974 = vst [vmem:[#allocation73_spill] sm:$0xff] %v7605_v56  ;;  %v7607_v30 = vld [vmem:[#allocation2 + $0x116] sm:$0xff]  ;;  %v4671_v50 = vadd.f32 %v4639_v24, %v4571_v5  ;;  %v1028_v10 = vmul.f32 %v11976_v12, %v11287_v55  ;;  %v4839_v53 = vmul.f32 %v11410_v63, %v7605_v56  ;;  %v1196_v27 = vmul.f32 %v11980_v18, %v11289_v19  ;;  %v7632_v38 = vld [vmem:[#allocation2 + $0xc3] sm:$0xff] }
 0x1a3   : > { %11975 = vst [vmem:[#allocation78_spill] sm:$0xff] %v7607_v30  ;;  %v691_v59 = vld [vmem:[#allocation2 + $0x94] sm:$0xff]  ;;  %v4939_v34 = vmul.f32 %v7332_v32, %v7607_v30  ;;  %v4302_v16 = vadd.f32 %v4270_v0, %v4202_v29  ;;  %v659_v46 = vadd.f32 %v627_v60, %v559_v6  ;;  %v5099_v24 = vadd.f32 %v5035_v25, %v5003_v7  ;;  %v7639_v25 = vld [vmem:[#allocation2 + $0xc4] sm:$0xff] }
 0x1a4   : > { %v4771_v23 = vadd.f32 %v4739_v48, %v4671_v50  ;;  %v727_v36 = vmul.f32 %v11285_v20, %v691_v59  ;;  %v791_v28 = vld [vmem:[#allocation2 + $0x95] sm:$0xff]  ;;  %v1128_v12 = vadd.f32 %v1096_v43, %v1028_v10  ;;  %v1697_v48 = vmul.f32 %v5638_v44, %v7615_v31  ;;  %11982 = vst [vmem:[#allocation80_spill] sm:$0xff] %v7632_v38  ;;  %v12010_v30 = vld [vmem:[#allocation25_spill] sm:$0xff] }
 0x1a5   : > { %v891_v50 = vld [vmem:[#allocation2 + $0x96] sm:$0xff]  ;;  %v1765_v57 = vmul.f32 %v5650_v49, %v7617_v17  ;;  %v5067_v0 = vadd.f32 %v4302_v16, %v3633_v2  ;;  %v827_v29 = vmul.f32 %v11294_v8, %v791_v28  ;;  %v1865_v7 = vmul.f32 %v11359_v22, %v7626_v62  ;;  %11984 = vst [vmem:[#allocation79_spill] sm:$0xff] %v7639_v25 }
 0x1a6   : > { %v4871_v5 = vadd.f32 %v4839_v53, %v4771_v23  ;;  %v759_v6 = vadd.f32 %v727_v36, %v659_v46  ;;  %v1228_v58 = vadd.f32 %v1196_v27, %v1128_v12  ;;  %v11983_v10 = vld [vmem:[#allocation120_spill] sm:$0xff]  ;;  %v927_v43 = vmul.f32 %v11301_v4, %v891_v50  ;;  %v11985_v53 = vld [vmem:[#allocation121_spill] sm:$0xff]  ;;  %v11987_v12 = vld [vmem:[#allocation42_spill] sm:$0xff] }
 0x1a7   : > { %v1296_v59 = vmul.f32 %v11983_v10, %v5620_v37  ;;  %v1797_v61 = vadd.f32 %v1765_v57, %v1697_v48  ;;  %v1396_v2 = vmul.f32 %v11985_v53, %v5629_v41  ;;  %v1965_v36 = vmul.f32 %v5658_v51, %v7632_v38  ;;  %v7650_v27 = vld [vmem:[#allocation2 + $0xf0] sm:$0xff]  ;;  %v11989_v50 = vld [vmem:[#allocation100_spill] sm:$0xff] }
 0x1a8   : > { %v4971_v60 = vadd.f32 %v4939_v34, %v4871_v5  ;;  %v11986_v34 = vld [vmem:[#allocation122_spill] sm:$0xff]  ;;  %v2433_v18 = vmul.f32 %v11987_v12, %v11366_v54  ;;  %11988 = vst [vmem:[#allocation84_spill] sm:$0xff] %v7650_v27  ;;  %v859_v5 = vadd.f32 %v827_v29, %v759_v6  ;;  %v1496_v57 = vmul.f32 %v11989_v50, %v11305_v21  ;;  %v7656_v10 = vld [vmem:[#allocation2 + $0xf1] sm:$0xff] }
 0x1a9   : > { %v1328_v23 = vadd.f32 %v1296_v59, %v1228_v58  ;;  %v1897_v46 = vadd.f32 %v1865_v7, %v1797_v61  ;;  %v2365_v28 = vmul.f32 %v11986_v34, %v11364_v15  ;;  %v2065_v58 = vmul.f32 %v11368_v39, %v7639_v25  ;;  %11990 = vst [vmem:[#allocation83_spill] sm:$0xff] %v7656_v10  ;;  %v7660_v61 = vld [vmem:[#allocation2 + $0xc6] sm:$0xff]  ;;  %v11993_v53 = vld [vmem:[#allocation43_spill] sm:$0xff] }
 0x1aa   : > { %v5131_v16 = vadd.f32 %v5067_v0, %v4971_v60  ;;  %v7658_v60 = vld [vmem:[#allocation2 + $0xc5] sm:$0xff]  ;;  %11992 = vst [vmem:[#allocation86_spill] sm:$0xff] %v7660_v61  ;;  %v2533_v6 = vmul.f32 %v11993_v53, %v11744_v9  ;;  %v11995_v34 = vld [vmem:[#allocation51_spill] sm:$0xff]  ;;  %v959_v53 = vadd.f32 %v927_v43, %v859_v5  ;;  %v12007_v43 = vld [vmem:[#allocation28_spill] sm:$0xff] }
 0x1ab   : > { %v1428_v48 = vadd.f32 %v1396_v2, %v1328_v23  ;;  %v1997_v59 = vadd.f32 %v1965_v36, %v1897_v46  ;;  %11991 = vst [vmem:[#allocation85_spill] sm:$0xff] %v7658_v60  ;;  %v2465_v7 = vadd.f32 %v2433_v18, %v2365_v28  ;;  %v11994_v23 = vld [vmem:[#allocation108_spill] sm:$0xff]  ;;  %v2633_v12 = vmul.f32 %v11995_v34, %v11941_v45  ;;  %v11996_v50 = vld [vmem:[#allocation26_spill] sm:$0xff]  ;;  %v11999_v18 = vld [vmem:[#allocation27_spill] sm:$0xff] }
 0x1ac   : > { %v5163_v0 = vadd.f32 %v5131_v16, %v5099_v24  ;;  %v1596_v2 = vmul.f32 %v11994_v23, %v11746_v52  ;;  %v3034_v24 = vmul.f32 %v11996_v50, %v7650_v27  ;;  %v7670_v36 = vld [vmem:[#allocation2 + $0xf2] sm:$0xff]  ;;  %v11998_v16 = vld [vmem:[#allocation62_spill] sm:$0xff]  ;;  %v3102_v38 = vmul.f32 %v11999_v18, %v7656_v10 }
 0x1ad   : > { %v1528_v29 = vadd.f32 %v1496_v57, %v1428_v48  ;;  %11997 = vst [vmem:[#allocation90_spill] sm:$0xff] %v7670_v36  ;;  %v2097_v25 = vadd.f32 %v2065_v58, %v1997_v59  ;;  %v2565_v28 = vadd.f32 %v2533_v6, %v2465_v7  ;;  %v12000_v48 = vld [vmem:[#allocation17_spill] sm:$0xff]  ;;  %v12001_v23 = vld [vmem:[#allocation18_spill] sm:$0xff]  ;;  %v12002_v34 = vld [vmem:[#allocation23_spill] sm:$0xff]  ;;  %v3202_v5 = vmul.f32 %v12007_v43, %v7670_v36 }
 0x1ae   : > { %v5202_v46 = vadd.f32 %v11998_v16, %v5163_v0  ;;  %v2165_v57 = vmul.f32 %v12000_v48, %v7658_v60  ;;  %v2265_v62 = vmul.f32 %v12001_v23, %v7660_v61  ;;  %v12003_v17 = vld [vmem:[#allocation47_spill] sm:$0xff]  ;;  %v12005_v58 = vld [vmem:[#allocation24_spill] sm:$0xff]  ;;  %v3134_v6 = vadd.f32 %v3102_v38, %v3034_v24  ;;  %v7701_v38 = vld [vmem:[#allocation2 + $0x121] sm:$0xff] }
 0x1af   : > { %v2733_v31 = vmul.f32 %v12003_v17, %v12002_v34  ;;  %v7681_v27 = vld [vmem:[#allocation2 + $0xf3] sm:$0xff]  ;;  %v2665_v0 = vadd.f32 %v2633_v12, %v2565_v28  ;;  %v12012_v34 = vld [vmem:[#allocation33_spill] sm:$0xff]  ;;  %v12014_v12 = vld [vmem:[#allocation54_spill] sm:$0xff]  ;;  %12016 = vst [vmem:[#allocation89_spill] sm:$0xff] %v7701_v38  ;;  %v1628_v24 = vadd.f32 %v1596_v2, %v1528_v29 }
 0x1b0   : > { %12004 = vst [vmem:[#allocation53_spill] sm:$0xff] %v7681_v27  ;;  %5234 = vst.msk [vmem:[%s6091_s10 + $0x58] sm:$0xff] %vm171_vm0, %v5202_v46  ;;  %v12006_v59 = vld [vmem:[#allocation48_spill] sm:$0xff]  ;;  %v2197_v61 = vadd.f32 %v2165_v57, %v2097_v25  ;;  %v12011_v56 = vld [vmem:[#allocation55_spill] sm:$0xff]  ;;  %v3771_v46 = vmul.f32 %v12014_v12, %v11957_v40  ;;  %v3234_v36 = vadd.f32 %v3202_v5, %v3134_v6 }
 0x1b1   : > { %v2833_v7 = vmul.f32 %v12006_v59, %v12005_v58  ;;  %v7689_v10 = vld [vmem:[#allocation2 + $0xf4] sm:$0xff]  ;;  %v2933_v17 = vmul.f32 %v12011_v56, %v12010_v30  ;;  %v7699_v28 = vld [vmem:[#allocation2 + $0x120] sm:$0xff]  ;;  %v2765_v59 = vadd.f32 %v2733_v31, %v2665_v0 }
 0x1b2   : > { %12008 = vst [vmem:[#allocation87_spill] sm:$0xff] %v7689_v10  ;;  %v7691_v60 = vld [vmem:[#allocation2 + $0xf5] sm:$0xff]  ;;  %12015 = vst [vmem:[#allocation5_spill] sm:$0xff] %v7699_v28  ;;  %v12017_v58 = vld [vmem:[#allocation29_spill] sm:$0xff]  ;;  %v3402_v56 = vmul.f32 %v11829_v47, %v7689_v10 }
 0x1b3   : > { %12009 = vst [vmem:[#allocation88_spill] sm:$0xff] %v7691_v60  ;;  %v12013_v45 = vld [vmem:[#allocation52_spill] sm:$0xff]  ;;  %v3302_v43 = vmul.f32 %v12017_v58, %v7681_v27  ;;  %v12020_v12 = vld [vmem:[#allocation35_spill] sm:$0xff]  ;;  %v12021_v40 = vld [vmem:[#allocation49_spill] sm:$0xff]  ;;  %v2865_v29 = vadd.f32 %v2833_v7, %v2765_v59  ;;  %v2297_v58 = vadd.f32 %v2265_v62, %v2197_v61 }
 0x1b4   : > { %v3703_v18 = vmul.f32 %v12013_v45, %v12012_v34  ;;  %v7705_v25 = vld [vmem:[#allocation2 + $0xf6] sm:$0xff]  ;;  %v3871_v30 = vmul.f32 %v12021_v40, %v12020_v12  ;;  %v7713_v50 = vld [vmem:[#allocation2 + $0x122] sm:$0xff] }
 0x1b5   : > { %12018 = vst [vmem:[#allocation6_spill] sm:$0xff] %v7705_v25  ;;  %v12019_v45 = vld [vmem:[#allocation31_spill] sm:$0xff]  ;;  %12022 = vst [vmem:[#allocation11_spill] sm:$0xff] %v7713_v50  ;;  %v3334_v31 = vadd.f32 %v3302_v43, %v3234_v36  ;;  %v12023_v2 = vld [vmem:[#allocation40_spill] sm:$0xff]  ;;  %v2965_v7 = vadd.f32 %v2933_v17, %v2865_v29  ;;  %v4540_v59 = vmul.f32 %v11971_v35, %v7713_v50 }
 0x1b6   : > { %v3502_v57 = vmul.f32 %v12019_v45, %v7691_v60  ;;  %v3803_v34 = vadd.f32 %v3771_v46, %v3703_v18  ;;  %v4372_v0 = vmul.f32 %v12023_v2, %v7699_v28  ;;  %v12024_v6 = vld [vmem:[#allocation41_spill] sm:$0xff]  ;;  %v324_v27 = vld [vmem:[#allocation2 + $0x98] sm:$0xff]  ;;  %v12027_v46 = vld [vmem:[#allocation58_spill] sm:$0xff] }
 0x1b7   : > { %v4440_v5 = vmul.f32 %v12024_v6, %v7701_v38  ;;  %v12025_v10 = vld [vmem:[#allocation32_spill] sm:$0xff]  ;;  %v7723_v40 = vld [vmem:[#allocation2 + $0x123] sm:$0xff]  ;;  %v3434_v36 = vadd.f32 %v3402_v56, %v3334_v31  ;;  %v12033_v29 = vld [vmem:[#allocation39_spill] sm:$0xff] }
 0x1b8   : > { %v3602_v47 = vmul.f32 %v12025_v10, %v7705_v25  ;;  %v3903_v60 = vadd.f32 %v3871_v30, %v3803_v34  ;;  %v12026_v18 = vld [vmem:[#allocation36_spill] sm:$0xff]  ;;  %12028 = vst [vmem:[#allocation7_spill] sm:$0xff] %v7723_v40  ;;  %v7731_v30 = vld [vmem:[#allocation2 + $0x124] sm:$0xff]  ;;  %v360_v34 = vmul.f32 %v11407_v3, %v324_v27  ;;  %v4640_v17 = vmul.f32 %v11973_v42, %v7723_v40 }
 0x1b9   : > { %v3971_v45 = vmul.f32 %v12027_v46, %v12026_v18  ;;  %v392_v12 = vld [vmem:[#allocation2 + $0x99] sm:$0xff]  ;;  %v4472_v43 = vadd.f32 %v4440_v5, %v4372_v0  ;;  %12031 = vst [vmem:[#allocation4_spill] sm:$0xff] %v7731_v30  ;;  %v3534_v6 = vadd.f32 %v3502_v57, %v3434_v36  ;;  %v7736_v56 = vld [vmem:[#allocation2 + $0x125] sm:$0xff]  ;;  %v5004_v0 = vadd.f32 %v1628_v24, %v959_v53 }
 0x1ba   : > { %v12029_v38 = vld [vmem:[#allocation60_spill] sm:$0xff]  ;;  %12032 = vst [vmem:[#allocation10_spill] sm:$0xff] %v7736_v56  ;;  %v5036_v5 = vadd.f32 %v2965_v7, %v2297_v58  ;;  %v12035_v27 = vld [vmem:[#allocation46_spill] sm:$0xff] }
 0x1bb   : > { %v4003_v28 = vadd.f32 %v3971_v45, %v3903_v60  ;;  %v4071_v62 = vmul.f32 %v12029_v38, %v11902_v13  ;;  %v12030_v61 = vld [vmem:[#allocation56_spill] sm:$0xff]  ;;  %v4572_v18 = vadd.f32 %v4540_v59, %v4472_v43  ;;  %v428_v60 = vmul.f32 %v11908_v14, %v392_v12  ;;  %v12034_v38 = vld [vmem:[#allocation61_spill] sm:$0xff]  ;;  %v12037_v12 = vld [vmem:[#allocation50_spill] sm:$0xff] }
 0x1bc   : > { %v4171_v25 = vmul.f32 %v12030_v61, %v11969_v33  ;;  %v492_v46 = vld [vmem:[#allocation2 + $0x9a] sm:$0xff]  ;;  %v4271_v31 = vmul.f32 %v12034_v38, %v12033_v29  ;;  %v4740_v3 = vmul.f32 %v12035_v27, %v7731_v30  ;;  %v7743_v57 = vld [vmem:[#allocation2 + $0x126] sm:$0xff]  ;;  %v3634_v40 = vadd.f32 %v3602_v47, %v3534_v6 }
 0x1bd   : > { %v4103_v45 = vadd.f32 %v4071_v62, %v4003_v28  ;;  %v592_v61 = vld [vmem:[#allocation2 + $0x9b] sm:$0xff]  ;;  %v4672_v50 = vadd.f32 %v4640_v17, %v4572_v18  ;;  %12036 = vst [vmem:[#allocation8_spill] sm:$0xff] %v7743_v57  ;;  %v460_v36 = vadd.f32 %v428_v60, %v360_v34  ;;  %v528_v43 = vmul.f32 %v11411_v1, %v492_v46  ;;  %v12038_v62 = vld [vmem:[#allocation15_spill] sm:$0xff]  ;;  %v7753_v34 = vld [vmem:[#allocation2 + $0xc8] sm:$0xff] }
 0x1be   : > { %v692_v59 = vld [vmem:[#allocation2 + $0x9c] sm:$0xff]  ;;  %v4840_v28 = vmul.f32 %v11410_v63, %v7736_v56  ;;  %v1029_v53 = vmul.f32 %v12037_v12, %v11287_v55  ;;  %v628_v18 = vmul.f32 %v11284_v26, %v592_v61  ;;  %v1097_v17 = vmul.f32 %v12038_v62, %v11288_v11  ;;  %12039 = vst [vmem:[#allocation12_spill] sm:$0xff] %v7753_v34  ;;  %v7755_v46 = vld [vmem:[#allocation2 + $0xc9] sm:$0xff] }
 0x1bf   : > { %v4203_v42 = vadd.f32 %v4171_v25, %v4103_v45  ;;  %v4772_v58 = vadd.f32 %v4740_v3, %v4672_v50  ;;  %v560_v24 = vadd.f32 %v528_v43, %v460_v36  ;;  %v792_v7 = vld [vmem:[#allocation2 + $0x9d] sm:$0xff]  ;;  %12040 = vst [vmem:[#allocation91_spill] sm:$0xff] %v7755_v46  ;;  %v4940_v25 = vmul.f32 %v7332_v32, %v7743_v57  ;;  %v7762_v43 = vld [vmem:[#allocation2 + $0xca] sm:$0xff] }
 0x1c0   : > { %v5100_v6 = vadd.f32 %v5036_v5, %v5004_v0  ;;  %v728_v60 = vmul.f32 %v11285_v20, %v692_v59  ;;  %v892_v50 = vld [vmem:[#allocation2 + $0x9e] sm:$0xff]  ;;  %v1129_v38 = vadd.f32 %v1097_v17, %v1029_v53  ;;  %12042 = vst [vmem:[#allocation94_spill] sm:$0xff] %v7762_v43  ;;  %v828_v62 = vmul.f32 %v11294_v8, %v792_v7 }
 0x1c1   : > { %v4303_v47 = vadd.f32 %v4271_v31, %v4203_v42  ;;  %v4872_v45 = vadd.f32 %v4840_v28, %v4772_v58  ;;  %v660_v3 = vadd.f32 %v628_v18, %v560_v24  ;;  %v12041_v61 = vld [vmem:[#allocation57_spill] sm:$0xff]  ;;  %v1698_v42 = vmul.f32 %v5638_v44, %v7753_v34  ;;  %v7771_v58 = vld [vmem:[#allocation2 + $0xcb] sm:$0xff]  ;;  %v12063_v56 = vld [vmem:[#allocation68_spill] sm:$0xff] }
 0x1c2   : > { %v1197_v36 = vmul.f32 %v12041_v61, %v11289_v19  ;;  %v1766_v31 = vmul.f32 %v5650_v49, %v7755_v46  ;;  %v12043_v28 = vld [vmem:[#allocation65_spill] sm:$0xff]  ;;  %12044 = vst [vmem:[#allocation92_spill] sm:$0xff] %v7771_v58  ;;  %v928_v24 = vmul.f32 %v11301_v4, %v892_v50  ;;  %v1866_v17 = vmul.f32 %v11359_v22, %v7762_v43  ;;  %v12050_v50 = vld [vmem:[#allocation19_spill] sm:$0xff] }
 0x1c3   : > { %v5068_v12 = vadd.f32 %v4303_v47, %v3634_v40  ;;  %v4972_v0 = vadd.f32 %v4940_v25, %v4872_v45  ;;  %v760_v5 = vadd.f32 %v728_v60, %v660_v3  ;;  %v1297_v53 = vmul.f32 %v12043_v28, %v5620_v37  ;;  %v12045_v40 = vld [vmem:[#allocation59_spill] sm:$0xff] }
 0x1c4   : > { %v1229_v59 = vadd.f32 %v1197_v36, %v1129_v38  ;;  %v1397_v18 = vmul.f32 %v12045_v40, %v5629_v41  ;;  %v1798_v7 = vadd.f32 %v1766_v31, %v1698_v42  ;;  %v7778_v47 = vld [vmem:[#allocation2 + $0xcc] sm:$0xff]  ;;  %v1597_v28 = vmul.f32 %v12050_v50, %v11746_v52 }
 0x1c5   : > { %12046 = vst [vmem:[#allocation93_spill] sm:$0xff] %v7778_v47  ;;  %v5132_v61 = vadd.f32 %v5068_v12, %v4972_v0  ;;  %v12047_v60 = vld [vmem:[#allocation63_spill] sm:$0xff]  ;;  %v12049_v38 = vld [vmem:[#allocation66_spill] sm:$0xff]  ;;  %v1966_v42 = vmul.f32 %v5658_v51, %v7771_v58  ;;  %v12052_v12 = vld [vmem:[#allocation20_spill] sm:$0xff]  ;;  %v860_v43 = vadd.f32 %v828_v62, %v760_v5 }
 0x1c6   : > { %v1329_v25 = vadd.f32 %v1297_v53, %v1229_v59  ;;  %v1497_v45 = vmul.f32 %v12047_v60, %v11305_v21  ;;  %v7782_v3 = vld [vmem:[#allocation2 + $0xcd] sm:$0xff]  ;;  %v2366_v36 = vmul.f32 %v12049_v38, %v11364_v15  ;;  %v1898_v40 = vadd.f32 %v1866_v17, %v1798_v7  ;;  %v7794_v59 = vld [vmem:[#allocation2 + $0xf8] sm:$0xff] }
 0x1c7   : > { %12048 = vst [vmem:[#allocation97_spill] sm:$0xff] %v7782_v3  ;;  %v7790_v31 = vld [vmem:[#allocation2 + $0xce] sm:$0xff]  ;;  %v2434_v0 = vmul.f32 %v12052_v12, %v11366_v54  ;;  %12053 = vst [vmem:[#allocation96_spill] sm:$0xff] %v7794_v59  ;;  %v7796_v53 = vld [vmem:[#allocation2 + $0xf9] sm:$0xff]  ;;  %v5164_v60 = vadd.f32 %v5132_v61, %v5100_v6  ;;  %v2066_v38 = vmul.f32 %v11368_v39, %v7778_v47 }
 0x1c8   : > { %12051 = vst [vmem:[#allocation95_spill] sm:$0xff] %v7790_v31  ;;  %12054 = vst [vmem:[#allocation9_spill] sm:$0xff] %v7796_v53  ;;  %v1429_v46 = vadd.f32 %v1397_v18, %v1329_v25  ;;  %v1998_v7 = vadd.f32 %v1966_v42, %v1898_v40  ;;  %v2166_v17 = vmul.f32 %v12000_v48, %v7782_v3  ;;  %v12055_v58 = vld [vmem:[#allocation67_spill] sm:$0xff]  ;;  %v7804_v12 = vld [vmem:[#allocation2 + $0xfa] sm:$0xff] }
 0x1c9   : > { %v2466_v50 = vadd.f32 %v2434_v0, %v2366_v36  ;;  %v2534_v34 = vmul.f32 %v12055_v58, %v11744_v9  ;;  %12056 = vst [vmem:[#allocation101_spill] sm:$0xff] %v7804_v12  ;;  %v5203_v57 = vadd.f32 %v11998_v16, %v5164_v60  ;;  %v2266_v6 = vmul.f32 %v12001_v23, %v7790_v31  ;;  %v12057_v62 = vld [vmem:[#allocation26_spill] sm:$0xff]  ;;  %v12058_v18 = vld [vmem:[#allocation27_spill] sm:$0xff]  ;;  %v12060_v0 = vld [vmem:[#allocation69_spill] sm:$0xff] }
 0x1ca   : > { %v3035_v5 = vmul.f32 %v12057_v62, %v7794_v59  ;;  %v3103_v61 = vmul.f32 %v12058_v18, %v7796_v53  ;;  %v1529_v25 = vadd.f32 %v1497_v45, %v1429_v46  ;;  %v2098_v40 = vadd.f32 %v2066_v38, %v1998_v7  ;;  %v12059_v36 = vld [vmem:[#allocation22_spill] sm:$0xff]  ;;  %v7815_v58 = vld [vmem:[#allocation2 + $0xfb] sm:$0xff]  ;;  %v12062_v47 = vld [vmem:[#allocation23_spill] sm:$0xff] }
 0x1cb   : > { %v2566_v42 = vadd.f32 %v2534_v34, %v2466_v50  ;;  %v2634_v3 = vmul.f32 %v12060_v0, %v12059_v36  ;;  %12061 = vst [vmem:[#allocation98_spill] sm:$0xff] %v7815_v58  ;;  %5235 = vst.msk [vmem:[%s6091_s10 + $0x60] sm:$0xff] %vm171_vm0, %v5203_v57  ;;  %v960_v60 = vadd.f32 %v928_v24, %v860_v43  ;;  %v12064_v59 = vld [vmem:[#allocation28_spill] sm:$0xff]  ;;  %v12069_v50 = vld [vmem:[#allocation25_spill] sm:$0xff] }
 0x1cc   : > { %v2734_v31 = vmul.f32 %v12063_v56, %v12062_v47  ;;  %v3135_v30 = vadd.f32 %v3103_v61, %v3035_v5  ;;  %v3203_v23 = vmul.f32 %v12064_v59, %v7804_v12  ;;  %v7823_v48 = vld [vmem:[#allocation2 + $0xfc] sm:$0xff]  ;;  %v12070_v0 = vld [vmem:[#allocation74_spill] sm:$0xff]  ;;  %v2198_v56 = vadd.f32 %v2166_v17, %v2098_v40  ;;  %v12082_v40 = vld [vmem:[#allocation71_spill] sm:$0xff] }
 0x1cd   : > { %12065 = vst [vmem:[#allocation99_spill] sm:$0xff] %v7823_v48  ;;  %v7825_v46 = vld [vmem:[#allocation2 + $0xfd] sm:$0xff]  ;;  %v2666_v34 = vadd.f32 %v2634_v3, %v2566_v42  ;;  %v2934_v53 = vmul.f32 %v12070_v0, %v12069_v50  ;;  %v7833_v18 = vld [vmem:[#allocation2 + $0x128] sm:$0xff] }
 0x1ce   : > { %12066 = vst [vmem:[#allocation102_spill] sm:$0xff] %v7825_v46  ;;  %v12067_v45 = vld [vmem:[#allocation24_spill] sm:$0xff]  ;;  %v12071_v57 = vld [vmem:[#allocation33_spill] sm:$0xff]  ;;  %12073 = vst [vmem:[#allocation105_spill] sm:$0xff] %v7833_v18  ;;  %v3235_v5 = vadd.f32 %v3203_v23, %v3135_v30 }
 0x1cf   : > { %v12068_v38 = vld [vmem:[#allocation64_spill] sm:$0xff]  ;;  %v12074_v61 = vld [vmem:[#allocation29_spill] sm:$0xff]  ;;  %v12076_v47 = vld [vmem:[#allocation34_spill] sm:$0xff] }
 0x1d0   : > { %v2834_v7 = vmul.f32 %v12068_v38, %v12067_v45  ;;  %v12072_v43 = vld [vmem:[#allocation72_spill] sm:$0xff]  ;;  %v3303_v12 = vmul.f32 %v12074_v61, %v7815_v58  ;;  %v12077_v3 = vld [vmem:[#allocation70_spill] sm:$0xff]  ;;  %v1629_v38 = vadd.f32 %v1597_v28, %v1529_v25  ;;  %v2766_v45 = vadd.f32 %v2734_v31, %v2666_v34  ;;  %v12081_v30 = vld [vmem:[#allocation35_spill] sm:$0xff] }
 0x1d1   : > { %v3704_v24 = vmul.f32 %v12072_v43, %v12071_v57  ;;  %v7837_v59 = vld [vmem:[#allocation2 + $0xfe] sm:$0xff]  ;;  %v3772_v42 = vmul.f32 %v12077_v3, %v12076_v47  ;;  %v7841_v16 = vld [vmem:[#allocation2 + $0x129] sm:$0xff]  ;;  %v3872_v58 = vmul.f32 %v12082_v40, %v12081_v30  ;;  %v4373_v61 = vmul.f32 %v12023_v2, %v7833_v18 }
 0x1d2   : > { %12075 = vst [vmem:[#allocation103_spill] sm:$0xff] %v7837_v59  ;;  %12078 = vst [vmem:[#allocation104_spill] sm:$0xff] %v7841_v16  ;;  %v12079_v0 = vld [vmem:[#allocation30_spill] sm:$0xff]  ;;  %v12080_v43 = vld [vmem:[#allocation31_spill] sm:$0xff]  ;;  %v3335_v17 = vadd.f32 %v3303_v12, %v3235_v5  ;;  %v2866_v3 = vadd.f32 %v2834_v7, %v2766_v45  ;;  %v3603_v28 = vmul.f32 %v12025_v10, %v7837_v59 }
 0x1d3   : > { %v3403_v50 = vmul.f32 %v12079_v0, %v7823_v48  ;;  %v3503_v57 = vmul.f32 %v12080_v43, %v7825_v46  ;;  %v3804_v23 = vadd.f32 %v3772_v42, %v3704_v24  ;;  %v7851_v62 = vld [vmem:[#allocation2 + $0x12a] sm:$0xff]  ;;  %v12084_v31 = vld [vmem:[#allocation36_spill] sm:$0xff]  ;;  %v12086_v48 = vld [vmem:[#allocation41_spill] sm:$0xff]  ;;  %v2298_v5 = vadd.f32 %v2266_v6, %v2198_v56 }
 0x1d4   : > { %12083 = vst [vmem:[#allocation106_spill] sm:$0xff] %v7851_v62  ;;  %v12085_v25 = vld [vmem:[#allocation76_spill] sm:$0xff]  ;;  %v4441_v46 = vmul.f32 %v12086_v48, %v7841_v16  ;;  %v325_v12 = vld [vmem:[#allocation2 + $0xa8] sm:$0xff]  ;;  %v12087_v30 = vld [vmem:[#allocation75_spill] sm:$0xff]  ;;  %v2966_v7 = vadd.f32 %v2934_v53, %v2866_v3  ;;  %v4541_v16 = vmul.f32 %v11971_v35, %v7851_v62 }
 0x1d5   : > { %v3972_v34 = vmul.f32 %v12085_v25, %v12084_v31  ;;  %v393_v24 = vld [vmem:[#allocation2 + $0xa9] sm:$0xff]  ;;  %v3435_v42 = vadd.f32 %v3403_v50, %v3335_v17  ;;  %v3904_v40 = vadd.f32 %v3872_v58, %v3804_v23  ;;  %v4072_v18 = vmul.f32 %v12087_v30, %v11902_v13  ;;  %v12090_v59 = vld [vmem:[#allocation73_spill] sm:$0xff] }
 0x1d6   : > { %v7861_v2 = vld [vmem:[#allocation2 + $0x12b] sm:$0xff]  ;;  %v4172_v10 = vmul.f32 %v12090_v59, %v11969_v33  ;;  %v4473_v25 = vadd.f32 %v4441_v46, %v4373_v61  ;;  %v429_v56 = vmul.f32 %v11908_v14, %v393_v24  ;;  %v12093_v53 = vld [vmem:[#allocation45_spill] sm:$0xff] }
 0x1d7   : > { %12088 = vst [vmem:[#allocation107_spill] sm:$0xff] %v7861_v2  ;;  %v7863_v45 = vld [vmem:[#allocation2 + $0x12c] sm:$0xff]  ;;  %v3535_v48 = vadd.f32 %v3503_v57, %v3435_v42  ;;  %v4004_v6 = vadd.f32 %v3972_v34, %v3904_v40  ;;  %v4641_v3 = vmul.f32 %v12093_v53, %v7861_v2  ;;  %v5005_v34 = vadd.f32 %v1629_v38, %v960_v60  ;;  %v7889_v60 = vld [vmem:[#allocation2 + $0xd9] sm:$0xff] }
 0x1d8   : > { %12089 = vst [vmem:[#allocation110_spill] sm:$0xff] %v7863_v45  ;;  %v493_v31 = vld [vmem:[#allocation2 + $0xaa] sm:$0xff]  ;;  %v4573_v13 = vadd.f32 %v4541_v16, %v4473_v25  ;;  %v4741_v59 = vmul.f32 %v12035_v27, %v7863_v45  ;;  %v7887_v27 = vld [vmem:[#allocation2 + $0xd8] sm:$0xff]  ;;  %12099 = vst [vmem:[#allocation113_spill] sm:$0xff] %v7889_v60 }
 0x1d9   : > { %v12091_v50 = vld [vmem:[#allocation3_spill] sm:$0xff]  ;;  %v12092_v23 = vld [vmem:[#allocation78_spill] sm:$0xff]  ;;  %v4104_v46 = vadd.f32 %v4072_v18, %v4004_v6  ;;  %v529_v24 = vmul.f32 %v11411_v1, %v493_v31  ;;  %v3635_v40 = vadd.f32 %v3603_v28, %v3535_v48  ;;  %v12097_v18 = vld [vmem:[#allocation81_spill] sm:$0xff]  ;;  %12098 = vst [vmem:[#allocation111_spill] sm:$0xff] %v7887_v27 }
 0x1da   : > { %v361_v58 = vmul.f32 %v12091_v50, %v325_v12  ;;  %v593_v17 = vld [vmem:[#allocation2 + $0xab] sm:$0xff]  ;;  %v4272_v30 = vmul.f32 %v12092_v23, %v12033_v29  ;;  %v4673_v62 = vadd.f32 %v4641_v3, %v4573_v13  ;;  %v5037_v23 = vadd.f32 %v2966_v7, %v2298_v5  ;;  %v12096_v29 = vld [vmem:[#allocation77_spill] sm:$0xff] }
 0x1db   : > { %v7877_v61 = vld [vmem:[#allocation2 + $0x12d] sm:$0xff]  ;;  %v629_v16 = vmul.f32 %v11284_v26, %v593_v17  ;;  %v4204_v25 = vadd.f32 %v4172_v10, %v4104_v46  ;;  %v1030_v45 = vmul.f32 %v12096_v29, %v11287_v55  ;;  %v1098_v6 = vmul.f32 %v12097_v18, %v11288_v11  ;;  %v7904_v46 = vld [vmem:[#allocation2 + $0xdb] sm:$0xff] }
 0x1dc   : > { %12094 = vst [vmem:[#allocation109_spill] sm:$0xff] %v7877_v61  ;;  %v7879_v57 = vld [vmem:[#allocation2 + $0x12e] sm:$0xff]  ;;  %v461_v12 = vadd.f32 %v429_v56, %v361_v58  ;;  %v4773_v38 = vadd.f32 %v4741_v59, %v4673_v62  ;;  %v4841_v48 = vmul.f32 %v11410_v63, %v7877_v61  ;;  %v7898_v56 = vld [vmem:[#allocation2 + $0xda] sm:$0xff]  ;;  %v5101_v3 = vadd.f32 %v5037_v23, %v5005_v34 }
 0x1dd   : > { %12095 = vst [vmem:[#allocation112_spill] sm:$0xff] %v7879_v57  ;;  %v693_v42 = vld [vmem:[#allocation2 + $0xac] sm:$0xff]  ;;  %v4941_v13 = vmul.f32 %v7332_v32, %v7879_v57  ;;  %v4304_v28 = vadd.f32 %v4272_v30, %v4204_v25  ;;  %v1130_v29 = vadd.f32 %v1098_v6, %v1030_v45  ;;  %12101 = vst [vmem:[#allocation114_spill] sm:$0xff] %v7898_v56  ;;  %v12103_v45 = vld [vmem:[#allocation80_spill] sm:$0xff] }
 0x1de   : > { %v561_v2 = vadd.f32 %v529_v24, %v461_v12  ;;  %v729_v10 = vmul.f32 %v11285_v20, %v693_v42  ;;  %v793_v5 = vld [vmem:[#allocation2 + $0xad] sm:$0xff]  ;;  %v4873_v17 = vadd.f32 %v4841_v48, %v4773_v38  ;;  %v1699_v59 = vmul.f32 %v5638_v44, %v7887_v27  ;;  %12102 = vst [vmem:[#allocation115_spill] sm:$0xff] %v7904_v46  ;;  %v7911_v23 = vld [vmem:[#allocation2 + $0xdc] sm:$0xff] }
 0x1df   : > { %v12100_v7 = vld [vmem:[#allocation82_spill] sm:$0xff]  ;;  %v1767_v32 = vmul.f32 %v5650_v49, %v7889_v60  ;;  %v5069_v30 = vadd.f32 %v4304_v28, %v3635_v40  ;;  %v1298_v24 = vmul.f32 %v12103_v45, %v5620_v37  ;;  %v1867_v34 = vmul.f32 %v11359_v22, %v7898_v56  ;;  %12104 = vst [vmem:[#allocation116_spill] sm:$0xff] %v7911_v23  ;;  %v12105_v38 = vld [vmem:[#allocation79_spill] sm:$0xff]  ;;  %v12132_v57 = vld [vmem:[#allocation33_spill] sm:$0xff] }
 0x1e0   : > { %v661_v31 = vadd.f32 %v629_v16, %v561_v2  ;;  %v1198_v58 = vmul.f32 %v12100_v7, %v11289_v19  ;;  %v893_v62 = vld [vmem:[#allocation2 + $0xae] sm:$0xff]  ;;  %v4973_v42 = vadd.f32 %v4941_v13, %v4873_v17  ;;  %v829_v16 = vmul.f32 %v11294_v8, %v793_v5  ;;  %v12106_v13 = vld [vmem:[#allocation84_spill] sm:$0xff]  ;;  %v12133_v61 = vld [vmem:[#allocation5_spill] sm:$0xff] }
 0x1e1   : > { %v1799_v25 = vadd.f32 %v1767_v32, %v1699_v59  ;;  %v929_v18 = vmul.f32 %v11301_v4, %v893_v62  ;;  %v1398_v40 = vmul.f32 %v12105_v38, %v5629_v41  ;;  %v1967_v48 = vmul.f32 %v5658_v51, %v7904_v46  ;;  %v12107_v5 = vld [vmem:[#allocation83_spill] sm:$0xff]  ;;  %v7922_v7 = vld [vmem:[#allocation2 + $0x108] sm:$0xff]  ;;  %v12109_v62 = vld [vmem:[#allocation85_spill] sm:$0xff] }
 0x1e2   : > { %v761_v2 = vadd.f32 %v729_v10, %v661_v31  ;;  %v1230_v12 = vadd.f32 %v1198_v58, %v1130_v29  ;;  %v5133_v10 = vadd.f32 %v5069_v30, %v4973_v42  ;;  %v2367_v31 = vmul.f32 %v12106_v13, %v11364_v15  ;;  %12108 = vst [vmem:[#allocation117_spill] sm:$0xff] %v7922_v7  ;;  %v7932_v42 = vld [vmem:[#allocation2 + $0xde] sm:$0xff]  ;;  %v12123_v56 = vld [vmem:[#allocation87_spill] sm:$0xff]  ;;  %v12131_v27 = vld [vmem:[#allocation6_spill] sm:$0xff] }
 0x1e3   : > { %v1899_v28 = vadd.f32 %v1867_v34, %v1799_v25  ;;  %v2435_v29 = vmul.f32 %v12107_v5, %v11366_v54  ;;  %v1498_v59 = vmul.f32 %v12109_v62, %v11305_v21  ;;  %v2067_v32 = vmul.f32 %v11368_v39, %v7911_v23  ;;  %12112 = vst [vmem:[#allocation120_spill] sm:$0xff] %v7932_v42  ;;  %v12113_v34 = vld [vmem:[#allocation90_spill] sm:$0xff] }
 0x1e4   : > { %v1330_v6 = vadd.f32 %v1298_v24, %v1230_v12  ;;  %v861_v58 = vadd.f32 %v829_v16, %v761_v2  ;;  %v7928_v12 = vld [vmem:[#allocation2 + $0x109] sm:$0xff]  ;;  %v5165_v30 = vadd.f32 %v5133_v10, %v5101_v3  ;;  %v7930_v24 = vld [vmem:[#allocation2 + $0xdd] sm:$0xff]  ;;  %v2535_v2 = vmul.f32 %v12113_v34, %v11744_v9 }
 0x1e5   : > { %12110 = vst [vmem:[#allocation118_spill] sm:$0xff] %v7928_v12  ;;  %v1999_v45 = vadd.f32 %v1967_v48, %v1899_v28  ;;  %12111 = vst [vmem:[#allocation119_spill] sm:$0xff] %v7930_v24  ;;  %v2467_v25 = vadd.f32 %v2435_v29, %v2367_v31  ;;  %v12116_v5 = vld [vmem:[#allocation26_spill] sm:$0xff]  ;;  %v12119_v29 = vld [vmem:[#allocation27_spill] sm:$0xff] }
 0x1e6   : > { %v1430_v17 = vadd.f32 %v1398_v40, %v1330_v6  ;;  %v12114_v6 = vld [vmem:[#allocation86_spill] sm:$0xff]  ;;  %v12115_v40 = vld [vmem:[#allocation53_spill] sm:$0xff]  ;;  %v3036_v3 = vmul.f32 %v12116_v5, %v7922_v7  ;;  %v3104_v23 = vmul.f32 %v12119_v29, %v7928_v12  ;;  %v961_v34 = vadd.f32 %v929_v18, %v861_v58  ;;  %v12127_v18 = vld [vmem:[#allocation28_spill] sm:$0xff] }
 0x1e7   : > { %v1598_v38 = vmul.f32 %v12114_v6, %v11746_v52  ;;  %v2635_v13 = vmul.f32 %v12115_v40, %v12059_v36  ;;  %v7942_v48 = vld [vmem:[#allocation2 + $0x10a] sm:$0xff]  ;;  %v2099_v62 = vadd.f32 %v2067_v32, %v1999_v45  ;;  %v2567_v31 = vadd.f32 %v2535_v2, %v2467_v25  ;;  %v12125_v32 = vld [vmem:[#allocation24_spill] sm:$0xff]  ;;  %v12130_v12 = vld [vmem:[#allocation25_spill] sm:$0xff] }
 0x1e8   : > { %v1530_v16 = vadd.f32 %v1498_v59, %v1430_v17  ;;  %12117 = vst [vmem:[#allocation121_spill] sm:$0xff] %v7942_v48  ;;  %v12118_v10 = vld [vmem:[#allocation62_spill] sm:$0xff]  ;;  %v12120_v17 = vld [vmem:[#allocation17_spill] sm:$0xff]  ;;  %v12122_v40 = vld [vmem:[#allocation23_spill] sm:$0xff]  ;;  %v3136_v2 = vadd.f32 %v3104_v23, %v3036_v3  ;;  %v3204_v58 = vmul.f32 %v12127_v18, %v7942_v48 }
 0x1e9   : > { %v5204_v28 = vadd.f32 %v12118_v10, %v5165_v30  ;;  %v2167_v59 = vmul.f32 %v12120_v17, %v7930_v24  ;;  %v12121_v6 = vld [vmem:[#allocation18_spill] sm:$0xff]  ;;  %v2735_v60 = vmul.f32 %v12123_v56, %v12122_v40  ;;  %v2667_v30 = vadd.f32 %v2635_v13, %v2567_v31  ;;  %v12126_v45 = vld [vmem:[#allocation88_spill] sm:$0xff]  ;;  %v12134_v13 = vld [vmem:[#allocation89_spill] sm:$0xff] }
 0x1ea   : > { %v2267_v46 = vmul.f32 %v12121_v6, %v7932_v42  ;;  %v7953_v7 = vld [vmem:[#allocation2 + $0x10b] sm:$0xff]  ;;  %v2835_v25 = vmul.f32 %v12126_v45, %v12125_v32  ;;  %v2935_v56 = vmul.f32 %v12131_v27, %v12130_v12  ;;  %v3705_v40 = vmul.f32 %v12133_v61, %v12132_v57  ;;  %v7971_v31 = vld [vmem:[#allocation2 + $0x138] sm:$0xff]  ;;  %v12137_v32 = vld [vmem:[#allocation29_spill] sm:$0xff] }
 0x1eb   : > { %12124 = vst [vmem:[#allocation122_spill] sm:$0xff] %v7953_v7  ;;  %5236 = vst.msk [vmem:[%s6091_s10 + $0x68] sm:$0xff] %vm171_vm0, %v5204_v28  ;;  %v7961_v10 = vld [vmem:[#allocation2 + $0x10c] sm:$0xff]  ;;  %v2199_v42 = vadd.f32 %v2167_v59, %v2099_v62  ;;  %v3773_v28 = vmul.f32 %v12134_v13, %v12076_v47  ;;  %v7973_v23 = vld [vmem:[#allocation2 + $0x139] sm:$0xff]  ;;  %v1630_v3 = vadd.f32 %v1598_v38, %v1530_v16 }
 0x1ec   : > { %12128 = vst [vmem:[#allocation42_spill] sm:$0xff] %v7961_v10  ;;  %v7963_v24 = vld [vmem:[#allocation2 + $0x10d] sm:$0xff]  ;;  %12135 = vst [vmem:[#allocation43_spill] sm:$0xff] %v7971_v31  ;;  %v2767_v45 = vadd.f32 %v2735_v60, %v2667_v30  ;;  %v3236_v48 = vadd.f32 %v3204_v58, %v3136_v2  ;;  %v3304_v18 = vmul.f32 %v12137_v32, %v7953_v7  ;;  %v7985_v12 = vld [vmem:[#allocation2 + $0x13a] sm:$0xff] }
 0x1ed   : > { %12129 = vst [vmem:[#allocation100_spill] sm:$0xff] %v7963_v24  ;;  %12136 = vst [vmem:[#allocation108_spill] sm:$0xff] %v7973_v23  ;;  %v7977_v62 = vld [vmem:[#allocation2 + $0x10e] sm:$0xff]  ;;  %v3404_v27 = vmul.f32 %v12079_v0, %v7961_v10  ;;  %v3504_v61 = vmul.f32 %v12080_v43, %v7963_v24  ;;  %v3805_v59 = vadd.f32 %v3773_v28, %v3705_v40  ;;  %v12142_v38 = vld [vmem:[#allocation40_spill] sm:$0xff] }
 0x1ee   : > { %12138 = vst [vmem:[#allocation51_spill] sm:$0xff] %v7977_v62  ;;  %v12139_v13 = vld [vmem:[#allocation35_spill] sm:$0xff]  ;;  %12141 = vst [vmem:[#allocation47_spill] sm:$0xff] %v7985_v12  ;;  %v2867_v16 = vadd.f32 %v2835_v25, %v2767_v45  ;;  %v3336_v60 = vadd.f32 %v3304_v18, %v3236_v48  ;;  %v4374_v30 = vmul.f32 %v12142_v38, %v7971_v31  ;;  %v12143_v2 = vld [vmem:[#allocation41_spill] sm:$0xff] }
 0x1ef   : > { %v12140_v47 = vld [vmem:[#allocation11_spill] sm:$0xff]  ;;  %v4442_v58 = vmul.f32 %v12143_v2, %v7973_v23  ;;  %v2299_v32 = vadd.f32 %v2267_v46, %v2199_v42  ;;  %v12144_v10 = vld [vmem:[#allocation32_spill] sm:$0xff]  ;;  %v4542_v45 = vmul.f32 %v11971_v35, %v7985_v12  ;;  %v12148_v23 = vld [vmem:[#allocation37_spill] sm:$0xff] }
 0x1f0   : > { %v3873_v57 = vmul.f32 %v12140_v47, %v12139_v13  ;;  %v326_v7 = vld [vmem:[#allocation2 + $0xb0] sm:$0xff]  ;;  %v3604_v0 = vmul.f32 %v12144_v10, %v7977_v62  ;;  %v12145_v40 = vld [vmem:[#allocation36_spill] sm:$0xff]  ;;  %v2967_v25 = vadd.f32 %v2935_v56, %v2867_v16  ;;  %v3436_v48 = vadd.f32 %v3404_v27, %v3336_v60  ;;  %v12150_v42 = vld [vmem:[#allocation10_spill] sm:$0xff] }
 0x1f1   : > { %v12146_v28 = vld [vmem:[#allocation7_spill] sm:$0xff]  ;;  %v7995_v47 = vld [vmem:[#allocation2 + $0x13b] sm:$0xff]  ;;  %v4474_v18 = vadd.f32 %v4442_v58, %v4374_v30  ;;  %v4173_v62 = vmul.f32 %v12150_v42, %v11969_v33 }
 0x1f2   : > { %v3905_v24 = vadd.f32 %v3873_v57, %v3805_v59  ;;  %v3973_v43 = vmul.f32 %v12146_v28, %v12145_v40  ;;  %12147 = vst [vmem:[#allocation48_spill] sm:$0xff] %v7995_v47  ;;  %v394_v13 = vld [vmem:[#allocation2 + $0xb1] sm:$0xff]  ;;  %v8003_v57 = vld [vmem:[#allocation2 + $0x13c] sm:$0xff]  ;;  %v362_v59 = vmul.f32 %v12091_v50, %v326_v7  ;;  %v3536_v40 = vadd.f32 %v3504_v61, %v3436_v48  ;;  %v12155_v7 = vld [vmem:[#allocation46_spill] sm:$0xff] }
 0x1f3   : > { %v12149_v2 = vld [vmem:[#allocation4_spill] sm:$0xff]  ;;  %12151 = vst [vmem:[#allocation55_spill] sm:$0xff] %v8003_v57  ;;  %v4574_v10 = vadd.f32 %v4542_v45, %v4474_v18  ;;  %v4642_v56 = vmul.f32 %v12093_v53, %v7995_v47  ;;  %v12153_v16 = vld [vmem:[#allocation39_spill] sm:$0xff]  ;;  %v5038_v58 = vadd.f32 %v2967_v25, %v2299_v32  ;;  %v4742_v50 = vmul.f32 %v12155_v7, %v8003_v57 }
 0x1f4   : > { %v4005_v31 = vadd.f32 %v3973_v43, %v3905_v24  ;;  %v4073_v46 = vmul.f32 %v12149_v2, %v12148_v23  ;;  %v494_v28 = vld [vmem:[#allocation2 + $0xb2] sm:$0xff]  ;;  %v8008_v27 = vld [vmem:[#allocation2 + $0x13d] sm:$0xff]  ;;  %v430_v43 = vmul.f32 %v11908_v14, %v394_v13  ;;  %v5006_v2 = vadd.f32 %v1630_v3, %v961_v34 }
 0x1f5   : > { %12152 = vst [vmem:[#allocation52_spill] sm:$0xff] %v8008_v27  ;;  %v12154_v60 = vld [vmem:[#allocation8_spill] sm:$0xff]  ;;  %v4674_v12 = vadd.f32 %v4642_v56, %v4574_v10  ;;  %v530_v18 = vmul.f32 %v11411_v1, %v494_v28  ;;  %v3636_v47 = vadd.f32 %v3604_v0, %v3536_v40  ;;  %v8027_v28 = vld [vmem:[#allocation2 + $0xe1] sm:$0xff] }
 0x1f6   : > { %v4105_v24 = vadd.f32 %v4073_v46, %v4005_v31  ;;  %v4273_v30 = vmul.f32 %v12154_v60, %v12153_v16  ;;  %v594_v42 = vld [vmem:[#allocation2 + $0xb3] sm:$0xff]  ;;  %v8015_v61 = vld [vmem:[#allocation2 + $0x13e] sm:$0xff]  ;;  %v462_v48 = vadd.f32 %v430_v43, %v362_v59  ;;  %v4842_v31 = vmul.f32 %v11410_v63, %v8008_v27  ;;  %12160 = vst [vmem:[#allocation58_spill] sm:$0xff] %v8027_v28 }
 0x1f7   : > { %12156 = vst [vmem:[#allocation54_spill] sm:$0xff] %v8015_v61  ;;  %v694_v45 = vld [vmem:[#allocation2 + $0xb4] sm:$0xff]  ;;  %v4774_v32 = vadd.f32 %v4742_v50, %v4674_v12  ;;  %v630_v10 = vmul.f32 %v11284_v26, %v594_v42  ;;  %v8025_v59 = vld [vmem:[#allocation2 + $0xe0] sm:$0xff]  ;;  %v5102_v12 = vadd.f32 %v5038_v58, %v5006_v2  ;;  %v1768_v2 = vmul.f32 %v5650_v49, %v8027_v28 }
 0x1f8   : > { %v4205_v53 = vadd.f32 %v4173_v62, %v4105_v24  ;;  %v12157_v13 = vld [vmem:[#allocation12_spill] sm:$0xff]  ;;  %v562_v3 = vadd.f32 %v530_v18, %v462_v48  ;;  %v12158_v46 = vld [vmem:[#allocation91_spill] sm:$0xff]  ;;  %12159 = vst [vmem:[#allocation49_spill] sm:$0xff] %v8025_v59  ;;  %v730_v40 = vmul.f32 %v11285_v20, %v694_v45  ;;  %v12161_v48 = vld [vmem:[#allocation94_spill] sm:$0xff] }
 0x1f9   : > { %v1031_v34 = vmul.f32 %v12157_v13, %v11287_v55  ;;  %v794_v25 = vld [vmem:[#allocation2 + $0xb5] sm:$0xff]  ;;  %v1099_v56 = vmul.f32 %v12158_v46, %v11288_v11  ;;  %v8032_v62 = vld [vmem:[%s10258_s1 + $0x30] ss:$0 sm:$0xff]  ;;  %v4874_v43 = vadd.f32 %v4842_v31, %v4774_v32  ;;  %v1199_v18 = vmul.f32 %v12161_v48, %v11289_v19  ;;  %v8039_v13 = vld [vmem:[#allocation2 + $0xe2] sm:$0xff] }
 0x1fa   : > { %v4305_v0 = vadd.f32 %v4273_v30, %v4205_v53  ;;  %v4942_v50 = vmul.f32 %v8032_v62, %v8015_v61  ;;  %v662_v24 = vadd.f32 %v630_v10, %v562_v3  ;;  %v894_v60 = vld [vmem:[#allocation2 + $0xb6] sm:$0xff]  ;;  %12162 = vst [vmem:[#allocation60_spill] sm:$0xff] %v8039_v13  ;;  %v830_v30 = vmul.f32 %v11294_v8, %v794_v25  ;;  %v8048_v3 = vld [vmem:[#allocation2 + $0xe3] sm:$0xff] }
 0x1fb   : > { %v1131_v42 = vadd.f32 %v1099_v56, %v1031_v34  ;;  %v1700_v46 = vmul.f32 %v5638_v44, %v8025_v59  ;;  %v12163_v32 = vld [vmem:[#allocation92_spill] sm:$0xff]  ;;  %12164 = vst [vmem:[#allocation56_spill] sm:$0xff] %v8048_v3  ;;  %v930_v10 = vmul.f32 %v11301_v4, %v894_v60  ;;  %v8055_v48 = vld [vmem:[#allocation2 + $0xe4] sm:$0xff]  ;;  %v12170_v60 = vld [vmem:[#allocation95_spill] sm:$0xff] }
 0x1fc   : > { %v5070_v53 = vadd.f32 %v4305_v0, %v3636_v47  ;;  %v4974_v58 = vadd.f32 %v4942_v50, %v4874_v43  ;;  %v762_v45 = vadd.f32 %v730_v40, %v662_v24  ;;  %v1299_v34 = vmul.f32 %v12163_v32, %v5620_v37  ;;  %v12165_v47 = vld [vmem:[#allocation93_spill] sm:$0xff]  ;;  %12166 = vst [vmem:[#allocation61_spill] sm:$0xff] %v8055_v48 }
 0x1fd   : > { %v1231_v31 = vadd.f32 %v1199_v18, %v1131_v42  ;;  %v1399_v56 = vmul.f32 %v12165_v47, %v5629_v41  ;;  %v1800_v25 = vadd.f32 %v1768_v2, %v1700_v46  ;;  %v1868_v0 = vmul.f32 %v11359_v22, %v8039_v13  ;;  %v12167_v40 = vld [vmem:[#allocation97_spill] sm:$0xff]  ;;  %v12169_v42 = vld [vmem:[#allocation96_spill] sm:$0xff] }
 0x1fe   : > { %v5134_v28 = vadd.f32 %v5070_v53, %v4974_v58  ;;  %v1499_v43 = vmul.f32 %v12167_v40, %v11305_v21  ;;  %v8059_v24 = vld [vmem:[#allocation2 + $0xe5] sm:$0xff]  ;;  %v2368_v18 = vmul.f32 %v12169_v42, %v11364_v15  ;;  %v1599_v32 = vmul.f32 %v12170_v60, %v11746_v52 }
 0x1ff   : > { %v1331_v50 = vadd.f32 %v1299_v34, %v1231_v31  ;;  %12168 = vst [vmem:[#allocation50_spill] sm:$0xff] %v8059_v24  ;;  %v1900_v47 = vadd.f32 %v1868_v0, %v1800_v25  ;;  %v1968_v46 = vmul.f32 %v5658_v51, %v8048_v3  ;;  %v8067_v2 = vld [vmem:[#allocation2 + $0xe6] sm:$0xff]  ;;  %v8071_v31 = vld [vmem:[#allocation2 + $0x110] sm:$0xff]  ;;  %v862_v13 = vadd.f32 %v830_v30, %v762_v45 }
 0x200   : > { %12171 = vst [vmem:[#allocation15_spill] sm:$0xff] %v8067_v2  ;;  %v12172_v53 = vld [vmem:[#allocation9_spill] sm:$0xff]  ;;  %12173 = vst [vmem:[#allocation57_spill] sm:$0xff] %v8071_v31  ;;  %v8073_v34 = vld [vmem:[#allocation2 + $0x111] sm:$0xff]  ;;  %v5166_v40 = vadd.f32 %v5134_v28, %v5102_v12  ;;  %v2068_v42 = vmul.f32 %v11368_v39, %v8055_v48  ;;  %v2168_v0 = vmul.f32 %v12120_v17, %v8059_v24 }
 0x201   : > { %v2436_v58 = vmul.f32 %v12172_v53, %v11366_v54  ;;  %12174 = vst [vmem:[#allocation65_spill] sm:$0xff] %v8073_v34  ;;  %v1431_v59 = vadd.f32 %v1399_v56, %v1331_v50  ;;  %v2000_v25 = vadd.f32 %v1968_v46, %v1900_v47  ;;  %v12175_v3 = vld [vmem:[#allocation101_spill] sm:$0xff]  ;;  %v8081_v53 = vld [vmem:[#allocation2 + $0x112] sm:$0xff]  ;;  %v2268_v30 = vmul.f32 %v12121_v6, %v8067_v2  ;;  %v12178_v47 = vld [vmem:[#allocation98_spill] sm:$0xff] }
 0x202   : > { %v2536_v61 = vmul.f32 %v12175_v3, %v11744_v9  ;;  %12176 = vst [vmem:[#allocation59_spill] sm:$0xff] %v8081_v53  ;;  %v8086_v28 = vld [vmem:[%s10259_s2] ss:$0 sm:$0xff]  ;;  %v3037_v45 = vmul.f32 %v12116_v5, %v8071_v31  ;;  %v3105_v56 = vmul.f32 %v12119_v29, %v8073_v34  ;;  %v2636_v46 = vmul.f32 %v12178_v47, %v12059_v36  ;;  %v12180_v24 = vld [vmem:[#allocation23_spill] sm:$0xff]  ;;  %v12182_v31 = vld [vmem:[#allocation28_spill] sm:$0xff] }
 0x203   : > { %v2468_v60 = vadd.f32 %v2436_v58, %v2368_v18  ;;  %12177 = vst [vmem:[#allocation63_spill] sm:$0xff] %v8086_v28  ;;  %v5205_v12 = vadd.f32 %v8086_v28, %v5166_v40  ;;  %v1531_v50 = vadd.f32 %v1499_v43, %v1431_v59  ;;  %v2100_v3 = vadd.f32 %v2068_v42, %v2000_v25  ;;  %v8097_v58 = vld [vmem:[#allocation2 + $0x113] sm:$0xff]  ;;  %v12186_v42 = vld [vmem:[#allocation102_spill] sm:$0xff]  ;;  %v8115_v17 = vld [vmem:[#allocation2 + $0x140] sm:$0xff] }
 0x204   : > { %12179 = vst [vmem:[#allocation66_spill] sm:$0xff] %v8097_v58  ;;  %v962_v40 = vadd.f32 %v930_v10, %v862_v13  ;;  %v12181_v48 = vld [vmem:[#allocation99_spill] sm:$0xff]  ;;  %v3137_v27 = vadd.f32 %v3105_v56, %v3037_v45  ;;  %v3205_v57 = vmul.f32 %v12182_v31, %v8081_v53  ;;  %v12185_v43 = vld [vmem:[#allocation24_spill] sm:$0xff]  ;;  %v12190_v13 = vld [vmem:[#allocation105_spill] sm:$0xff] }
 0x205   : > { %v2568_v18 = vadd.f32 %v2536_v61, %v2468_v60  ;;  %5237 = vst.msk [vmem:[%s6091_s10 + $0x70] sm:$0xff] %vm171_vm0, %v5205_v12  ;;  %v2736_v2 = vmul.f32 %v12181_v48, %v12180_v24  ;;  %v8105_v6 = vld [vmem:[#allocation2 + $0x114] sm:$0xff]  ;;  %v2836_v25 = vmul.f32 %v12186_v42, %v12185_v43  ;;  %v12187_v60 = vld [vmem:[#allocation25_spill] sm:$0xff]  ;;  %12191 = vst [vmem:[#allocation67_spill] sm:$0xff] %v8115_v17 }
 0x206   : > { %12183 = vst [vmem:[#allocation19_spill] sm:$0xff] %v8105_v6  ;;  %v8107_v59 = vld [vmem:[#allocation2 + $0x115] sm:$0xff]  ;;  %v12189_v12 = vld [vmem:[#allocation33_spill] sm:$0xff]  ;;  %v2200_v48 = vadd.f32 %v2168_v0, %v2100_v3  ;;  %v3237_v45 = vadd.f32 %v3205_v57, %v3137_v27  ;;  %v12194_v24 = vld [vmem:[#allocation34_spill] sm:$0xff]  ;;  %v1631_v42 = vadd.f32 %v1599_v32, %v1531_v50 }
 0x207   : > { %12184 = vst [vmem:[#allocation20_spill] sm:$0xff] %v8107_v59  ;;  %v2668_v61 = vadd.f32 %v2636_v46, %v2568_v18  ;;  %v12188_v47 = vld [vmem:[#allocation103_spill] sm:$0xff]  ;;  %v3706_v10 = vmul.f32 %v12190_v13, %v12189_v12  ;;  %v12192_v56 = vld [vmem:[#allocation29_spill] sm:$0xff]  ;;  %v12195_v18 = vld [vmem:[#allocation104_spill] sm:$0xff] }
 0x208   : > { %v2936_v34 = vmul.f32 %v12188_v47, %v12187_v60  ;;  %v3305_v53 = vmul.f32 %v12192_v56, %v8097_v58  ;;  %v8119_v31 = vld [vmem:[#allocation2 + $0x116] sm:$0xff]  ;;  %v3774_v46 = vmul.f32 %v12195_v18, %v12194_v24  ;;  %v8123_v29 = vld [vmem:[#allocation2 + $0x141] sm:$0xff]  ;;  %v4375_v56 = vmul.f32 %v12142_v38, %v8115_v17 }
 0x209   : > { %12193 = vst [vmem:[#allocation69_spill] sm:$0xff] %v8119_v31  ;;  %12196 = vst [vmem:[#allocation68_spill] sm:$0xff] %v8123_v29  ;;  %v2768_v43 = vadd.f32 %v2736_v2, %v2668_v61  ;;  %v12197_v47 = vld [vmem:[#allocation30_spill] sm:$0xff]  ;;  %v12198_v13 = vld [vmem:[#allocation31_spill] sm:$0xff] }
 0x20a   : > { %v3405_v60 = vmul.f32 %v12197_v47, %v8105_v6  ;;  %v3505_v12 = vmul.f32 %v12198_v13, %v8107_v59  ;;  %v3337_v0 = vadd.f32 %v3305_v53, %v3237_v45  ;;  %v3806_v57 = vadd.f32 %v3774_v46, %v3706_v10  ;;  %v12199_v27 = vld [vmem:[#allocation35_spill] sm:$0xff]  ;;  %v12200_v3 = vld [vmem:[#allocation106_spill] sm:$0xff]  ;;  %v12202_v32 = vld [vmem:[#allocation32_spill] sm:$0xff] }
 0x20b   : > { %v3874_v58 = vmul.f32 %v12200_v3, %v12199_v27  ;;  %v8133_v28 = vld [vmem:[#allocation2 + $0x142] sm:$0xff]  ;;  %v2868_v18 = vadd.f32 %v2836_v25, %v2768_v43  ;;  %v3605_v2 = vmul.f32 %v12202_v32, %v8119_v31  ;;  %v12203_v50 = vld [vmem:[#allocation36_spill] sm:$0xff]  ;;  %v12204_v61 = vld [vmem:[#allocation107_spill] sm:$0xff]  ;;  %v2300_v45 = vadd.f32 %v2268_v30, %v2200_v48 }
 0x20c   : > { %12201 = vst [vmem:[#allocation64_spill] sm:$0xff] %v8133_v28  ;;  %v3974_v6 = vmul.f32 %v12204_v61, %v12203_v50  ;;  %v12205_v47 = vld [vmem:[#allocation41_spill] sm:$0xff]  ;;  %v3437_v46 = vadd.f32 %v3405_v60, %v3337_v0  ;;  %v12206_v27 = vld [vmem:[#allocation110_spill] sm:$0xff]  ;;  %v12210_v60 = vld [vmem:[#allocation3_spill] sm:$0xff] }
 0x20d   : > { %v4443_v59 = vmul.f32 %v12205_v47, %v8123_v29  ;;  %v327_v53 = vld [vmem:[#allocation2 + $0xc0] sm:$0xff]  ;;  %v3906_v3 = vadd.f32 %v3874_v58, %v3806_v57  ;;  %v4074_v17 = vmul.f32 %v12206_v27, %v12148_v23  ;;  %v2968_v25 = vadd.f32 %v2936_v34, %v2868_v18  ;;  %v12211_v57 = vld [vmem:[#allocation112_spill] sm:$0xff] }
 0x20e   : > { %v395_v10 = vld [vmem:[#allocation2 + $0xc1] sm:$0xff]  ;;  %v4543_v29 = vmul.f32 %v11971_v35, %v8133_v28  ;;  %v3537_v47 = vadd.f32 %v3505_v12, %v3437_v46  ;;  %v363_v58 = vmul.f32 %v12210_v60, %v327_v53  ;;  %v4274_v27 = vmul.f32 %v12211_v57, %v12153_v16  ;;  %v12215_v16 = vld [vmem:[#allocation111_spill] sm:$0xff] }
 0x20f   : > { %v8143_v38 = vld [vmem:[#allocation2 + $0x143] sm:$0xff]  ;;  %v4475_v61 = vadd.f32 %v4443_v59, %v4375_v56  ;;  %v4006_v30 = vadd.f32 %v3974_v6, %v3906_v3  ;;  %v431_v48 = vmul.f32 %v11908_v14, %v395_v10  ;;  %v5007_v6 = vadd.f32 %v1631_v42, %v962_v40  ;;  %v8171_v40 = vld [vmem:[#allocation2 + $0xf1] sm:$0xff] }
 0x210   : > { %12207 = vst [vmem:[#allocation74_spill] sm:$0xff] %v8143_v38  ;;  %v8145_v43 = vld [vmem:[#allocation2 + $0x144] sm:$0xff]  ;;  %v3637_v3 = vadd.f32 %v3605_v2, %v3537_v47  ;;  %v5039_v57 = vadd.f32 %v2968_v25, %v2300_v45  ;;  %12218 = vst [vmem:[#allocation75_spill] sm:$0xff] %v8171_v40 }
 0x211   : > { %12208 = vst [vmem:[#allocation72_spill] sm:$0xff] %v8145_v43  ;;  %v12209_v31 = vld [vmem:[#allocation109_spill] sm:$0xff]  ;;  %v4575_v23 = vadd.f32 %v4543_v29, %v4475_v61  ;;  %v4106_v59 = vadd.f32 %v4074_v17, %v4006_v30  ;;  %v463_v53 = vadd.f32 %v431_v48, %v363_v58  ;;  %v12219_v25 = vld [vmem:[#allocation114_spill] sm:$0xff]  ;;  %v8180_v48 = vld [vmem:[#allocation2 + $0xf2] sm:$0xff] }
 0x212   : > { %v4174_v32 = vmul.f32 %v12209_v31, %v11969_v33  ;;  %v495_v50 = vld [vmem:[#allocation2 + $0xc2] sm:$0xff]  ;;  %v4743_v31 = vmul.f32 %v12155_v7, %v8145_v43  ;;  %v1032_v43 = vmul.f32 %v12215_v16, %v11287_v55  ;;  %v8169_v7 = vld [vmem:[#allocation2 + $0xf0] sm:$0xff]  ;;  %v1200_v58 = vmul.f32 %v12219_v25, %v11289_v19  ;;  %12220 = vst [vmem:[#allocation73_spill] sm:$0xff] %v8180_v48 }
 0x213   : > { %v595_v0 = vld [vmem:[#allocation2 + $0xc3] sm:$0xff]  ;;  %v531_v10 = vmul.f32 %v11411_v1, %v495_v50  ;;  %12217 = vst [vmem:[#allocation76_spill] sm:$0xff] %v8169_v7 }
 0x214   : > { %v12212_v34 = vld [vmem:[#allocation45_spill] sm:$0xff]  ;;  %v631_v29 = vmul.f32 %v11284_v26, %v595_v0  ;;  %v4206_v61 = vadd.f32 %v4174_v32, %v4106_v59  ;;  %v1769_v59 = vmul.f32 %v5650_v49, %v8171_v40 }
 0x215   : > { %v4643_v18 = vmul.f32 %v12212_v34, %v8143_v38  ;;  %v8159_v56 = vld [vmem:[#allocation2 + $0x145] sm:$0xff]  ;;  %v563_v38 = vadd.f32 %v531_v10, %v463_v53  ;;  %v8186_v53 = vld [vmem:[#allocation2 + $0xf3] sm:$0xff] }
 0x216   : > { %12213 = vst [vmem:[#allocation70_spill] sm:$0xff] %v8159_v56  ;;  %v8161_v12 = vld [vmem:[#allocation2 + $0x146] sm:$0xff]  ;;  %v4843_v47 = vmul.f32 %v11410_v63, %v8159_v56  ;;  %v4306_v2 = vadd.f32 %v4274_v27, %v4206_v61  ;;  %12221 = vst [vmem:[#allocation78_spill] sm:$0xff] %v8186_v53 }
 0x217   : > { %12214 = vst [vmem:[#allocation71_spill] sm:$0xff] %v8161_v12  ;;  %v695_v46 = vld [vmem:[#allocation2 + $0xc4] sm:$0xff]  ;;  %v4675_v28 = vadd.f32 %v4643_v18, %v4575_v23  ;;  %v4943_v23 = vmul.f32 %v8032_v62, %v8161_v12  ;;  %v663_v50 = vadd.f32 %v631_v29, %v563_v38  ;;  %v5103_v18 = vadd.f32 %v5039_v57, %v5007_v6  ;;  %v8193_v57 = vld [vmem:[#allocation2 + $0xf4] sm:$0xff] }
 0x218   : > { %v12216_v17 = vld [vmem:[#allocation113_spill] sm:$0xff]  ;;  %v731_v32 = vmul.f32 %v11285_v20, %v695_v46  ;;  %v5071_v27 = vadd.f32 %v4306_v2, %v3637_v3  ;;  %v1869_v6 = vmul.f32 %v11359_v22, %v8180_v48  ;;  %12223 = vst [vmem:[#allocation77_spill] sm:$0xff] %v8193_v57  ;;  %v12241_v48 = vld [vmem:[#allocation42_spill] sm:$0xff]  ;;  %v12249_v12 = vld [vmem:[#allocation51_spill] sm:$0xff] }
 0x219   : > { %v1100_v30 = vmul.f32 %v12216_v17, %v11288_v11  ;;  %v4775_v42 = vadd.f32 %v4743_v31, %v4675_v28  ;;  %v795_v45 = vld [vmem:[#allocation2 + $0xc5] sm:$0xff]  ;;  %v1701_v31 = vmul.f32 %v5638_v44, %v8169_v7 }
 0x21a   : > { %v895_v28 = vld [vmem:[#allocation2 + $0xc6] sm:$0xff]  ;;  %v763_v38 = vadd.f32 %v731_v32, %v663_v50  ;;  %v831_v61 = vmul.f32 %v11294_v8, %v795_v45  ;;  %v1969_v32 = vmul.f32 %v5658_v51, %v8186_v53 }
 0x21b   : > { %v1132_v16 = vadd.f32 %v1100_v30, %v1032_v43  ;;  %v4875_v0 = vadd.f32 %v4843_v47, %v4775_v42  ;;  %v12222_v43 = vld [vmem:[#allocation115_spill] sm:$0xff]  ;;  %v1801_v17 = vadd.f32 %v1769_v59, %v1701_v31  ;;  %v931_v30 = vmul.f32 %v11301_v4, %v895_v28  ;;  %v12224_v47 = vld [vmem:[#allocation116_spill] sm:$0xff]  ;;  %v12248_v7 = vld [vmem:[#allocation25_spill] sm:$0xff] }
 0x21c   : > { %v1300_v46 = vmul.f32 %v12222_v43, %v5620_v37  ;;  %v1400_v3 = vmul.f32 %v12224_v47, %v5629_v41  ;;  %v12228_v28 = vld [vmem:[#allocation119_spill] sm:$0xff]  ;;  %v8210_v43 = vld [vmem:[#allocation2 + $0x121] sm:$0xff] }
 0x21d   : > { %v1232_v10 = vadd.f32 %v1200_v58, %v1132_v16  ;;  %v4975_v29 = vadd.f32 %v4943_v23, %v4875_v0  ;;  %v1901_v50 = vadd.f32 %v1869_v6, %v1801_v17  ;;  %v12225_v23 = vld [vmem:[#allocation117_spill] sm:$0xff]  ;;  %v12226_v16 = vld [vmem:[#allocation118_spill] sm:$0xff]  ;;  %v863_v0 = vadd.f32 %v831_v61, %v763_v38  ;;  %12229 = vst [vmem:[#allocation82_spill] sm:$0xff] %v8210_v43  ;;  %v8214_v17 = vld [vmem:[#allocation2 + $0xf6] sm:$0xff] }
 0x21e   : > { %v2369_v45 = vmul.f32 %v12225_v23, %v11364_v15  ;;  %v2437_v25 = vmul.f32 %v12226_v16, %v11366_v54  ;;  %v8204_v58 = vld [vmem:[#allocation2 + $0x120] sm:$0xff]  ;;  %v1500_v59 = vmul.f32 %v12228_v28, %v11305_v21  ;;  %12231 = vst [vmem:[#allocation79_spill] sm:$0xff] %v8214_v17  ;;  %v12234_v23 = vld [vmem:[#allocation122_spill] sm:$0xff] }
 0x21f   : > { %v1332_v42 = vadd.f32 %v1300_v46, %v1232_v10  ;;  %v5135_v2 = vadd.f32 %v5071_v27, %v4975_v29  ;;  %12227 = vst [vmem:[#allocation81_spill] sm:$0xff] %v8204_v58  ;;  %v2069_v10 = vmul.f32 %v11368_v39, %v8193_v57  ;;  %v2001_v46 = vadd.f32 %v1969_v32, %v1901_v50  ;;  %v8212_v29 = vld [vmem:[#allocation2 + $0xf5] sm:$0xff]  ;;  %v12232_v47 = vld [vmem:[#allocation121_spill] sm:$0xff] }
 0x220   : > { %12230 = vst [vmem:[#allocation80_spill] sm:$0xff] %v8212_v29  ;;  %v2469_v6 = vadd.f32 %v2437_v25, %v2369_v45  ;;  %v2537_v38 = vmul.f32 %v12232_v47, %v11744_v9  ;;  %v2637_v16 = vmul.f32 %v12234_v23, %v12059_v36  ;;  %v8224_v32 = vld [vmem:[#allocation2 + $0x122] sm:$0xff]  ;;  %v12237_v25 = vld [vmem:[#allocation27_spill] sm:$0xff]  ;;  %v963_v47 = vadd.f32 %v931_v30, %v863_v0  ;;  %v12245_v30 = vld [vmem:[#allocation28_spill] sm:$0xff] }
 0x221   : > { %v1432_v31 = vadd.f32 %v1400_v3, %v1332_v42  ;;  %v5167_v27 = vadd.f32 %v5135_v2, %v5103_v18  ;;  %v12233_v42 = vld [vmem:[#allocation120_spill] sm:$0xff]  ;;  %v3038_v18 = vmul.f32 %v12116_v5, %v8204_v58  ;;  %12235 = vst [vmem:[#allocation84_spill] sm:$0xff] %v8224_v32  ;;  %v12236_v2 = vld [vmem:[#allocation63_spill] sm:$0xff]  ;;  %v2101_v28 = vadd.f32 %v2069_v10, %v2001_v46  ;;  %v8235_v58 = vld [vmem:[#allocation2 + $0x123] sm:$0xff] }
 0x222   : > { %v1600_v3 = vmul.f32 %v12233_v42, %v11746_v52  ;;  %v2569_v45 = vadd.f32 %v2537_v38, %v2469_v6  ;;  %v3106_v57 = vmul.f32 %v12237_v25, %v8210_v43  ;;  %v12239_v42 = vld [vmem:[#allocation18_spill] sm:$0xff]  ;;  %v12240_v23 = vld [vmem:[#allocation23_spill] sm:$0xff]  ;;  %12242 = vst [vmem:[#allocation83_spill] sm:$0xff] %v8235_v58  ;;  %v12243_v10 = vld [vmem:[#allocation24_spill] sm:$0xff]  ;;  %v3206_v0 = vmul.f32 %v12245_v30, %v8224_v32 }
 0x223   : > { %v1532_v61 = vadd.f32 %v1500_v59, %v1432_v31  ;;  %v5206_v50 = vadd.f32 %v12236_v2, %v5167_v27  ;;  %v12238_v31 = vld [vmem:[#allocation17_spill] sm:$0xff]  ;;  %v2269_v53 = vmul.f32 %v12239_v42, %v8214_v17  ;;  %v2737_v40 = vmul.f32 %v12241_v48, %v12240_v23  ;;  %v12244_v46 = vld [vmem:[#allocation100_spill] sm:$0xff]  ;;  %v12251_v23 = vld [vmem:[#allocation43_spill] sm:$0xff] }
 0x224   : > { %v2169_v59 = vmul.f32 %v12238_v31, %v8212_v29  ;;  %v2669_v27 = vadd.f32 %v2637_v16, %v2569_v45  ;;  %v2837_v6 = vmul.f32 %v12244_v46, %v12243_v10  ;;  %v3138_v38 = vadd.f32 %v3106_v57, %v3038_v18  ;;  %v8243_v43 = vld [vmem:[#allocation2 + $0x124] sm:$0xff]  ;;  %v12252_v16 = vld [vmem:[#allocation108_spill] sm:$0xff]  ;;  %v8253_v45 = vld [vmem:[#allocation2 + $0x150] sm:$0xff] }
 0x225   : > { %5238 = vst.msk [vmem:[%s6091_s10 + $0x78] sm:$0xff] %vm171_vm0, %v5206_v50  ;;  %12246 = vst [vmem:[#allocation85_spill] sm:$0xff] %v8243_v43  ;;  %v8245_v29 = vld [vmem:[#allocation2 + $0x125] sm:$0xff]  ;;  %v2937_v48 = vmul.f32 %v12249_v12, %v12248_v7  ;;  %v3775_v50 = vmul.f32 %v12252_v16, %v12194_v24  ;;  %v8255_v57 = vld [vmem:[#allocation2 + $0x151] sm:$0xff]  ;;  %v1632_v18 = vadd.f32 %v1600_v3, %v1532_v61 }
 0x226   : > { %12247 = vst [vmem:[#allocation90_spill] sm:$0xff] %v8245_v29  ;;  %v2201_v17 = vadd.f32 %v2169_v59, %v2101_v28  ;;  %v12250_v56 = vld [vmem:[#allocation33_spill] sm:$0xff]  ;;  %12253 = vst [vmem:[#allocation86_spill] sm:$0xff] %v8253_v45  ;;  %v2769_v46 = vadd.f32 %v2737_v40, %v2669_v27  ;;  %v3238_v32 = vadd.f32 %v3206_v0, %v3138_v38  ;;  %v12257_v12 = vld [vmem:[#allocation30_spill] sm:$0xff] }
 0x227   : > { %v3707_v36 = vmul.f32 %v12251_v23, %v12250_v56  ;;  %12254 = vst [vmem:[#allocation53_spill] sm:$0xff] %v8255_v57  ;;  %v12255_v10 = vld [vmem:[#allocation29_spill] sm:$0xff]  ;;  %v3406_v59 = vmul.f32 %v12257_v12, %v8243_v43  ;;  %v3506_v23 = vmul.f32 %v12198_v13, %v8245_v29  ;;  %v12258_v16 = vld [vmem:[#allocation35_spill] sm:$0xff]  ;;  %v12261_v3 = vld [vmem:[#allocation40_spill] sm:$0xff] }
 0x228   : > { %v3306_v30 = vmul.f32 %v12255_v10, %v8235_v58  ;;  %v8259_v28 = vld [vmem:[#allocation2 + $0x126] sm:$0xff]  ;;  %v12259_v24 = vld [vmem:[#allocation47_spill] sm:$0xff]  ;;  %v2869_v61 = vadd.f32 %v2837_v6, %v2769_v46  ;;  %v4376_v27 = vmul.f32 %v12261_v3, %v8253_v45  ;;  %v2301_v10 = vadd.f32 %v2269_v53, %v2201_v17  ;;  %v12263_v43 = vld [vmem:[#allocation32_spill] sm:$0xff] }
 0x229   : > { %12256 = vst [vmem:[#allocation62_spill] sm:$0xff] %v8259_v28  ;;  %v3807_v56 = vadd.f32 %v3775_v50, %v3707_v36  ;;  %v3875_v7 = vmul.f32 %v12259_v24, %v12258_v16  ;;  %v8267_v25 = vld [vmem:[#allocation2 + $0x152] sm:$0xff]  ;;  %v12262_v38 = vld [vmem:[#allocation41_spill] sm:$0xff]  ;;  %v328_v58 = vld [vmem:[#allocation2 + $0xc8] sm:$0xff]  ;;  %v3606_v12 = vmul.f32 %v12263_v43, %v8259_v28 }
 0x22a   : > { %12260 = vst [vmem:[#allocation87_spill] sm:$0xff] %v8267_v25  ;;  %v3338_v40 = vadd.f32 %v3306_v30, %v3238_v32  ;;  %v4444_v0 = vmul.f32 %v12262_v38, %v8255_v57  ;;  %v12264_v36 = vld [vmem:[#allocation36_spill] sm:$0xff]  ;;  %v396_v16 = vld [vmem:[#allocation2 + $0xc9] sm:$0xff]  ;;  %v2969_v6 = vadd.f32 %v2937_v48, %v2869_v61  ;;  %v4544_v46 = vmul.f32 %v11971_v35, %v8267_v25  ;;  %v12267_v57 = vld [vmem:[#allocation37_spill] sm:$0xff] }
 0x22b   : > { %v3907_v29 = vadd.f32 %v3875_v7, %v3807_v56  ;;  %v12265_v50 = vld [vmem:[#allocation48_spill] sm:$0xff]  ;;  %v12268_v38 = vld [vmem:[#allocation55_spill] sm:$0xff]  ;;  %v364_v56 = vmul.f32 %v12210_v60, %v328_v58  ;;  %v12274_v58 = vld [vmem:[#allocation46_spill] sm:$0xff] }
 0x22c   : > { %v3975_v13 = vmul.f32 %v12265_v50, %v12264_v36  ;;  %v8277_v24 = vld [vmem:[#allocation2 + $0x153] sm:$0xff]  ;;  %v3438_v32 = vadd.f32 %v3406_v59, %v3338_v40  ;;  %v4476_v30 = vadd.f32 %v4444_v0, %v4376_v27  ;;  %v4075_v53 = vmul.f32 %v12268_v38, %v12267_v57  ;;  %v496_v50 = vld [vmem:[#allocation2 + $0xca] sm:$0xff] }
 0x22d   : > { %12266 = vst [vmem:[#allocation88_spill] sm:$0xff] %v8277_v24  ;;  %v12269_v17 = vld [vmem:[#allocation52_spill] sm:$0xff]  ;;  %v4644_v48 = vmul.f32 %v12212_v34, %v8277_v24  ;;  %v12272_v61 = vld [vmem:[#allocation39_spill] sm:$0xff]  ;;  %v12273_v40 = vld [vmem:[#allocation54_spill] sm:$0xff]  ;;  %v5008_v38 = vadd.f32 %v1632_v18, %v963_v47  ;;  %v5040_v0 = vadd.f32 %v2969_v6, %v2301_v10 }
 0x22e   : > { %v4007_v45 = vadd.f32 %v3975_v13, %v3907_v29  ;;  %v4175_v28 = vmul.f32 %v12269_v17, %v11969_v33  ;;  %v8285_v7 = vld [vmem:[#allocation2 + $0x154] sm:$0xff]  ;;  %v3538_v36 = vadd.f32 %v3506_v23, %v3438_v32  ;;  %v4576_v43 = vadd.f32 %v4544_v46, %v4476_v30  ;;  %v596_v17 = vld [vmem:[#allocation2 + $0xcb] sm:$0xff] }
 0x22f   : > { %12270 = vst [vmem:[#allocation6_spill] sm:$0xff] %v8285_v7  ;;  %v8290_v59 = vld [vmem:[#allocation2 + $0x155] sm:$0xff]  ;;  %v432_v13 = vmul.f32 %v11908_v14, %v396_v16  ;;  %v4275_v27 = vmul.f32 %v12273_v40, %v12272_v61  ;;  %v4744_v60 = vmul.f32 %v12274_v58, %v8285_v7  ;;  %v532_v30 = vmul.f32 %v11411_v1, %v496_v50  ;;  %v696_v46 = vld [vmem:[#allocation2 + $0xcc] sm:$0xff]  ;;  %v12276_v16 = vld [vmem:[#allocation49_spill] sm:$0xff] }
 0x230   : > { %12271 = vst [vmem:[#allocation5_spill] sm:$0xff] %v8290_v59  ;;  %v4107_v29 = vadd.f32 %v4075_v53, %v4007_v45  ;;  %v4676_v25 = vadd.f32 %v4644_v48, %v4576_v43  ;;  %v8297_v23 = vld [vmem:[#allocation2 + $0x156] sm:$0xff]  ;;  %v3638_v24 = vadd.f32 %v3606_v12, %v3538_v36  ;;  %v4844_v45 = vmul.f32 %v11410_v63, %v8290_v59  ;;  %v796_v6 = vld [vmem:[#allocation2 + $0xcd] sm:$0xff] }
 0x231   : > { %12275 = vst [vmem:[#allocation89_spill] sm:$0xff] %v8297_v23  ;;  %v464_v32 = vadd.f32 %v432_v13, %v364_v56  ;;  %v1033_v47 = vmul.f32 %v12276_v16, %v11287_v55  ;;  %v632_v43 = vmul.f32 %v11284_v26, %v596_v17  ;;  %v12277_v53 = vld [vmem:[#allocation58_spill] sm:$0xff]  ;;  %v8307_v56 = vld [vmem:[#allocation2 + $0xf8] sm:$0xff]  ;;  %v5104_v36 = vadd.f32 %v5040_v0, %v5008_v38 }
 0x232   : > { %v4207_v34 = vadd.f32 %v4175_v28, %v4107_v29  ;;  %v4776_v10 = vadd.f32 %v4744_v60, %v4676_v25  ;;  %v1101_v48 = vmul.f32 %v12277_v53, %v11288_v11  ;;  %12278 = vst [vmem:[#allocation11_spill] sm:$0xff] %v8307_v56  ;;  %v8309_v50 = vld [vmem:[#allocation2 + $0xf9] sm:$0xff]  ;;  %v4944_v28 = vmul.f32 %v8032_v62, %v8297_v23  ;;  %v896_v25 = vld [vmem:[#allocation2 + $0xce] sm:$0xff] }
 0x233   : > { %v564_v18 = vadd.f32 %v532_v30, %v464_v32  ;;  %12279 = vst [vmem:[#allocation7_spill] sm:$0xff] %v8309_v50  ;;  %v732_v13 = vmul.f32 %v11285_v20, %v696_v46  ;;  %v12280_v17 = vld [vmem:[#allocation60_spill] sm:$0xff]  ;;  %v832_v53 = vmul.f32 %v11294_v8, %v796_v6 }
 0x234   : > { %v4307_v12 = vadd.f32 %v4275_v27, %v4207_v34  ;;  %v4876_v29 = vadd.f32 %v4844_v45, %v4776_v10  ;;  %v1133_v40 = vadd.f32 %v1101_v48, %v1033_v47  ;;  %v1201_v32 = vmul.f32 %v12280_v17, %v11289_v19  ;;  %v8316_v30 = vld [vmem:[#allocation2 + $0xfa] sm:$0xff] }
 0x235   : > { %v664_v60 = vadd.f32 %v632_v43, %v564_v18  ;;  %12281 = vst [vmem:[#allocation4_spill] sm:$0xff] %v8316_v30  ;;  %v1702_v34 = vmul.f32 %v5638_v44, %v8307_v56  ;;  %v1770_v27 = vmul.f32 %v5650_v49, %v8309_v50  ;;  %v12282_v45 = vld [vmem:[#allocation56_spill] sm:$0xff]  ;;  %v932_v18 = vmul.f32 %v11301_v4, %v896_v25  ;;  %v12289_v25 = vld [vmem:[#allocation15_spill] sm:$0xff] }
 0x236   : > { %v5072_v16 = vadd.f32 %v4307_v12, %v3638_v24  ;;  %v4976_v38 = vadd.f32 %v4944_v28, %v4876_v29  ;;  %v1233_v46 = vadd.f32 %v1201_v32, %v1133_v40  ;;  %v1301_v47 = vmul.f32 %v12282_v45, %v5620_v37  ;;  %v8325_v10 = vld [vmem:[#allocation2 + $0xfb] sm:$0xff] }
 0x237   : > { %v764_v0 = vadd.f32 %v732_v13, %v664_v60  ;;  %12283 = vst [vmem:[#allocation10_spill] sm:$0xff] %v8325_v10  ;;  %v12284_v24 = vld [vmem:[#allocation61_spill] sm:$0xff]  ;;  %v1802_v6 = vadd.f32 %v1770_v27, %v1702_v34  ;;  %v1870_v48 = vmul.f32 %v11359_v22, %v8316_v30  ;;  %v12286_v13 = vld [vmem:[#allocation50_spill] sm:$0xff]  ;;  %v1601_v45 = vmul.f32 %v12289_v25, %v11746_v52 }
 0x238   : > { %v1401_v43 = vmul.f32 %v12284_v24, %v5629_v41  ;;  %v8332_v12 = vld [vmem:[#allocation2 + $0xfc] sm:$0xff]  ;;  %v5136_v17 = vadd.f32 %v5072_v16, %v4976_v38  ;;  %v1333_v28 = vadd.f32 %v1301_v47, %v1233_v46  ;;  %v1501_v29 = vmul.f32 %v12286_v13, %v11305_v21  ;;  %v8348_v46 = vld [vmem:[#allocation2 + $0x128] sm:$0xff] }
 0x239   : > { %12285 = vst [vmem:[#allocation8_spill] sm:$0xff] %v8332_v12  ;;  %v8336_v60 = vld [vmem:[#allocation2 + $0xfd] sm:$0xff]  ;;  %v1902_v24 = vadd.f32 %v1870_v48, %v1802_v6  ;;  %v1970_v34 = vmul.f32 %v5658_v51, %v8325_v10  ;;  %12292 = vst [vmem:[#allocation94_spill] sm:$0xff] %v8348_v46  ;;  %v8350_v47 = vld [vmem:[#allocation2 + $0x129] sm:$0xff]  ;;  %v864_v30 = vadd.f32 %v832_v53, %v764_v0 }
 0x23a   : > { %12287 = vst [vmem:[#allocation12_spill] sm:$0xff] %v8336_v60  ;;  %v12288_v40 = vld [vmem:[#allocation57_spill] sm:$0xff]  ;;  %12293 = vst [vmem:[#allocation92_spill] sm:$0xff] %v8350_v47  ;;  %v5168_v13 = vadd.f32 %v5136_v17, %v5104_v36  ;;  %v1433_v50 = vadd.f32 %v1401_v43, %v1333_v28  ;;  %v2170_v48 = vmul.f32 %v12238_v31, %v8336_v60  ;;  %v12294_v10 = vld [vmem:[#allocation59_spill] sm:$0xff] }
 0x23b   : > { %v2370_v32 = vmul.f32 %v12288_v40, %v11364_v15  ;;  %v8344_v27 = vld [vmem:[#allocation2 + $0xfe] sm:$0xff]  ;;  %v2070_v40 = vmul.f32 %v11368_v39, %v8332_v12  ;;  %v2002_v6 = vadd.f32 %v1970_v34, %v1902_v24  ;;  %v2538_v56 = vmul.f32 %v12294_v10, %v11744_v9  ;;  %v12296_v0 = vld [vmem:[#allocation27_spill] sm:$0xff]  ;;  %v12298_v34 = vld [vmem:[#allocation66_spill] sm:$0xff] }
 0x23c   : > { %12290 = vst [vmem:[#allocation91_spill] sm:$0xff] %v8344_v27  ;;  %v12291_v16 = vld [vmem:[#allocation65_spill] sm:$0xff]  ;;  %v5207_v23 = vadd.f32 %v12236_v2, %v5168_v13  ;;  %v2270_v36 = vmul.f32 %v12239_v42, %v8344_v27  ;;  %v3039_v53 = vmul.f32 %v12116_v5, %v8348_v46  ;;  %v3107_v43 = vmul.f32 %v12296_v0, %v8350_v47  ;;  %v8369_v10 = vld [vmem:[#allocation2 + $0x12b] sm:$0xff]  ;;  %v12302_v46 = vld [vmem:[#allocation28_spill] sm:$0xff] }
 0x23d   : > { %v2438_v38 = vmul.f32 %v12291_v16, %v11366_v54  ;;  %v8358_v16 = vld [vmem:[#allocation2 + $0x12a] sm:$0xff]  ;;  %v1533_v17 = vadd.f32 %v1501_v29, %v1433_v50  ;;  %v2102_v28 = vadd.f32 %v2070_v40, %v2002_v6  ;;  %12299 = vst [vmem:[#allocation97_spill] sm:$0xff] %v8369_v10  ;;  %v964_v13 = vadd.f32 %v932_v18, %v864_v30  ;;  %v12305_v29 = vld [vmem:[#allocation24_spill] sm:$0xff] }
 0x23e   : > { %12295 = vst [vmem:[#allocation93_spill] sm:$0xff] %v8358_v16  ;;  %5239 = vst.msk [vmem:[%s6091_s10 + $0x80] sm:$0xff] %vm171_vm0, %v5207_v23  ;;  %v12300_v60 = vld [vmem:[#allocation23_spill] sm:$0xff]  ;;  %v3139_v59 = vadd.f32 %v3107_v43, %v3039_v53  ;;  %v3207_v7 = vmul.f32 %v12302_v46, %v8358_v16  ;;  %v12306_v40 = vld [vmem:[#allocation20_spill] sm:$0xff] }
 0x23f   : > { %v2470_v25 = vadd.f32 %v2438_v38, %v2370_v32  ;;  %v12297_v32 = vld [vmem:[#allocation22_spill] sm:$0xff]  ;;  %v12301_v12 = vld [vmem:[#allocation19_spill] sm:$0xff]  ;;  %v2838_v6 = vmul.f32 %v12306_v40, %v12305_v29  ;;  %v12309_v23 = vld [vmem:[#allocation33_spill] sm:$0xff]  ;;  %v1633_v40 = vadd.f32 %v1601_v45, %v1533_v17 }
 0x240   : > { %v2638_v38 = vmul.f32 %v12298_v34, %v12297_v32  ;;  %v2738_v27 = vmul.f32 %v12301_v12, %v12300_v60  ;;  %v8377_v42 = vld [vmem:[#allocation2 + $0x12c] sm:$0xff]  ;;  %v12308_v34 = vld [vmem:[#allocation69_spill] sm:$0xff]  ;;  %v8387_v31 = vld [vmem:[#allocation2 + $0x158] sm:$0xff]  ;;  %v2202_v12 = vadd.f32 %v2170_v48, %v2102_v28  ;;  %v3239_v53 = vadd.f32 %v3207_v7, %v3139_v59 }
 0x241   : > { %v2570_v24 = vadd.f32 %v2538_v56, %v2470_v25  ;;  %12303 = vst [vmem:[#allocation96_spill] sm:$0xff] %v8377_v42  ;;  %v8379_v50 = vld [vmem:[#allocation2 + $0x12d] sm:$0xff]  ;;  %v12307_v25 = vld [vmem:[#allocation25_spill] sm:$0xff]  ;;  %12311 = vst [vmem:[#allocation9_spill] sm:$0xff] %v8387_v31 }
 0x242   : > { %12304 = vst [vmem:[#allocation95_spill] sm:$0xff] %v8379_v50  ;;  %v2938_v47 = vmul.f32 %v12308_v34, %v12307_v25  ;;  %v12310_v30 = vld [vmem:[#allocation67_spill] sm:$0xff]  ;;  %v12312_v43 = vld [vmem:[#allocation29_spill] sm:$0xff]  ;;  %v12314_v60 = vld [vmem:[#allocation34_spill] sm:$0xff] }
 0x243   : > { %v2670_v56 = vadd.f32 %v2638_v38, %v2570_v24  ;;  %v3708_v18 = vmul.f32 %v12310_v30, %v12309_v23  ;;  %v3307_v16 = vmul.f32 %v12312_v43, %v8369_v10  ;;  %v8391_v46 = vld [vmem:[#allocation2 + $0x12e] sm:$0xff]  ;;  %v12315_v24 = vld [vmem:[#allocation68_spill] sm:$0xff]  ;;  %v4377_v43 = vmul.f32 %v12261_v3, %v8387_v31 }
 0x244   : > { %12313 = vst [vmem:[#allocation101_spill] sm:$0xff] %v8391_v46  ;;  %v3776_v38 = vmul.f32 %v12315_v24, %v12314_v60  ;;  %v8395_v0 = vld [vmem:[#allocation2 + $0x159] sm:$0xff]  ;;  %v12317_v34 = vld [vmem:[#allocation30_spill] sm:$0xff]  ;;  %v12318_v30 = vld [vmem:[#allocation31_spill] sm:$0xff] }
 0x245   : > { %12316 = vst [vmem:[#allocation98_spill] sm:$0xff] %v8395_v0  ;;  %v2770_v29 = vadd.f32 %v2738_v27, %v2670_v56  ;;  %v3407_v25 = vmul.f32 %v12317_v34, %v8377_v42  ;;  %v3507_v23 = vmul.f32 %v12318_v30, %v8379_v50  ;;  %v3339_v48 = vadd.f32 %v3307_v16, %v3239_v53  ;;  %v12319_v59 = vld [vmem:[#allocation35_spill] sm:$0xff]  ;;  %v12320_v28 = vld [vmem:[#allocation64_spill] sm:$0xff]  ;;  %v12324_v56 = vld [vmem:[#allocation74_spill] sm:$0xff] }
 0x246   : > { %v3808_v7 = vadd.f32 %v3776_v38, %v3708_v18  ;;  %v3876_v10 = vmul.f32 %v12320_v28, %v12319_v59  ;;  %v8405_v2 = vld [vmem:[#allocation2 + $0x15a] sm:$0xff]  ;;  %v2302_v53 = vadd.f32 %v2270_v36, %v2202_v12 }
 0x247   : > { %12321 = vst [vmem:[#allocation99_spill] sm:$0xff] %v8405_v2  ;;  %v2870_v24 = vadd.f32 %v2838_v6, %v2770_v29  ;;  %v12322_v45 = vld [vmem:[#allocation32_spill] sm:$0xff]  ;;  %v12325_v34 = vld [vmem:[#allocation41_spill] sm:$0xff]  ;;  %v3439_v38 = vadd.f32 %v3407_v25, %v3339_v48  ;;  %v12330_v25 = vld [vmem:[#allocation3_spill] sm:$0xff] }
 0x248   : > { %v3607_v27 = vmul.f32 %v12322_v45, %v8391_v46  ;;  %v12323_v17 = vld [vmem:[#allocation36_spill] sm:$0xff]  ;;  %v4445_v50 = vmul.f32 %v12325_v34, %v8395_v0  ;;  %v3908_v28 = vadd.f32 %v3876_v10, %v3808_v7  ;;  %v12329_v46 = vld [vmem:[#allocation70_spill] sm:$0xff]  ;;  %v4545_v0 = vmul.f32 %v11971_v35, %v8405_v2  ;;  %v12331_v7 = vld [vmem:[#allocation71_spill] sm:$0xff] }
 0x249   : > { %v3976_v42 = vmul.f32 %v12324_v56, %v12323_v17  ;;  %v329_v16 = vld [vmem:[#allocation2 + $0xd8] sm:$0xff]  ;;  %v2970_v6 = vadd.f32 %v2938_v47, %v2870_v24  ;;  %v4176_v45 = vmul.f32 %v12329_v46, %v11969_v33  ;;  %v3539_v34 = vadd.f32 %v3507_v23, %v3439_v38  ;;  %v12332_v47 = vld [vmem:[#allocation45_spill] sm:$0xff] }
 0x24a   : > { %v397_v18 = vld [vmem:[#allocation2 + $0xd9] sm:$0xff]  ;;  %v4477_v56 = vadd.f32 %v4445_v50, %v4377_v43  ;;  %v365_v10 = vmul.f32 %v12330_v25, %v329_v16 }
 0x24b   : > { %v12326_v59 = vld [vmem:[#allocation72_spill] sm:$0xff]  ;;  %v4008_v36 = vadd.f32 %v3976_v42, %v3908_v28  ;;  %v433_v12 = vmul.f32 %v11908_v14, %v397_v18  ;;  %v5009_v42 = vadd.f32 %v1633_v40, %v964_v13  ;;  %v3639_v28 = vadd.f32 %v3607_v27, %v3539_v34  ;;  %v8443_v13 = vld [vmem:[#allocation2 + $0x109] sm:$0xff] }
 0x24c   : > { %v4076_v31 = vmul.f32 %v12326_v59, %v12267_v57  ;;  %v8415_v3 = vld [vmem:[#allocation2 + $0x15b] sm:$0xff]  ;;  %v4276_v59 = vmul.f32 %v12331_v7, %v12272_v61  ;;  %v4577_v57 = vadd.f32 %v4545_v0, %v4477_v56  ;;  %v5041_v7 = vadd.f32 %v2970_v6, %v2302_v53  ;;  %12338 = vst [vmem:[#allocation107_spill] sm:$0xff] %v8443_v13 }
 0x24d   : > { %12327 = vst [vmem:[#allocation102_spill] sm:$0xff] %v8415_v3  ;;  %v8417_v29 = vld [vmem:[#allocation2 + $0x15c] sm:$0xff]  ;;  %v4645_v24 = vmul.f32 %v12332_v47, %v8415_v3  ;;  %v465_v16 = vadd.f32 %v433_v12, %v365_v10  ;;  %v8452_v12 = vld [vmem:[#allocation2 + $0x10a] sm:$0xff] }
 0x24e   : > { %12328 = vst [vmem:[#allocation103_spill] sm:$0xff] %v8417_v29  ;;  %v497_v17 = vld [vmem:[#allocation2 + $0xda] sm:$0xff]  ;;  %v4745_v46 = vmul.f32 %v12274_v58, %v8417_v29  ;;  %v4108_v50 = vadd.f32 %v4076_v31, %v4008_v36  ;;  %v12336_v31 = vld [vmem:[#allocation75_spill] sm:$0xff]  ;;  %v8441_v58 = vld [vmem:[#allocation2 + $0x108] sm:$0xff] }
 0x24f   : > { %v597_v48 = vld [vmem:[#allocation2 + $0xdb] sm:$0xff]  ;;  %v533_v18 = vmul.f32 %v11411_v1, %v497_v17  ;;  %v4677_v2 = vadd.f32 %v4645_v24, %v4577_v57  ;;  %v1102_v36 = vmul.f32 %v12336_v31, %v11288_v11  ;;  %12337 = vst [vmem:[#allocation106_spill] sm:$0xff] %v8441_v58  ;;  %12340 = vst [vmem:[#allocation110_spill] sm:$0xff] %v8452_v12 }
 0x250   : > { %v8431_v43 = vld [vmem:[#allocation2 + $0x15d] sm:$0xff]  ;;  %v633_v0 = vmul.f32 %v11284_v26, %v597_v48  ;;  %v4208_v56 = vadd.f32 %v4176_v45, %v4108_v50  ;;  %v5105_v24 = vadd.f32 %v5041_v7, %v5009_v42  ;;  %v1771_v50 = vmul.f32 %v5650_v49, %v8443_v13  ;;  %v8465_v7 = vld [vmem:[#allocation2 + $0x10c] sm:$0xff] }
 0x251   : > { %12333 = vst [vmem:[#allocation105_spill] sm:$0xff] %v8431_v43  ;;  %v8433_v23 = vld [vmem:[#allocation2 + $0x15e] sm:$0xff]  ;;  %v565_v3 = vadd.f32 %v533_v18, %v465_v16  ;;  %v4777_v40 = vadd.f32 %v4745_v46, %v4677_v2  ;;  %v4845_v34 = vmul.f32 %v11410_v63, %v8431_v43  ;;  %v1703_v46 = vmul.f32 %v5638_v44, %v8441_v58  ;;  %v8458_v16 = vld [vmem:[#allocation2 + $0x10b] sm:$0xff] }
 0x252   : > { %12334 = vst [vmem:[#allocation104_spill] sm:$0xff] %v8433_v23  ;;  %v697_v38 = vld [vmem:[#allocation2 + $0xdc] sm:$0xff]  ;;  %v4945_v57 = vmul.f32 %v8032_v62, %v8433_v23  ;;  %v4308_v27 = vadd.f32 %v4276_v59, %v4208_v56  ;;  %12341 = vst [vmem:[#allocation109_spill] sm:$0xff] %v8458_v16  ;;  %v1871_v42 = vmul.f32 %v11359_v22, %v8452_v12  ;;  %v12369_v23 = vld [vmem:[#allocation62_spill] sm:$0xff] }
 0x253   : > { %v12335_v61 = vld [vmem:[#allocation76_spill] sm:$0xff]  ;;  %v733_v45 = vmul.f32 %v11285_v20, %v697_v38  ;;  %v665_v17 = vadd.f32 %v633_v0, %v565_v3  ;;  %v12339_v6 = vld [vmem:[#allocation73_spill] sm:$0xff]  ;;  %v4877_v48 = vadd.f32 %v4845_v34, %v4777_v40  ;;  %v1803_v31 = vadd.f32 %v1771_v50, %v1703_v46  ;;  %12343 = vst [vmem:[#allocation112_spill] sm:$0xff] %v8465_v7 }
 0x254   : > { %v1034_v29 = vmul.f32 %v12335_v61, %v11287_v55  ;;  %v797_v53 = vld [vmem:[#allocation2 + $0xdd] sm:$0xff]  ;;  %v1202_v10 = vmul.f32 %v12339_v6, %v11289_v19  ;;  %v5073_v59 = vadd.f32 %v4308_v27, %v3639_v28 }
 0x255   : > { %v897_v2 = vld [vmem:[#allocation2 + $0xde] sm:$0xff]  ;;  %v765_v3 = vadd.f32 %v733_v45, %v665_v17  ;;  %v4977_v0 = vadd.f32 %v4945_v57, %v4877_v48  ;;  %v833_v56 = vmul.f32 %v11294_v8, %v797_v53  ;;  %v1971_v45 = vmul.f32 %v5658_v51, %v8458_v16 }
 0x256   : > { %v1134_v61 = vadd.f32 %v1102_v36, %v1034_v29  ;;  %v12342_v29 = vld [vmem:[#allocation78_spill] sm:$0xff]  ;;  %v933_v36 = vmul.f32 %v11301_v4, %v897_v2  ;;  %v12344_v34 = vld [vmem:[#allocation77_spill] sm:$0xff]  ;;  %v1903_v17 = vadd.f32 %v1871_v42, %v1803_v31  ;;  %v12348_v2 = vld [vmem:[#allocation80_spill] sm:$0xff] }
 0x257   : > { %v1302_v38 = vmul.f32 %v12342_v29, %v5620_v37  ;;  %v1402_v28 = vmul.f32 %v12344_v34, %v5629_v41  ;;  %v5137_v27 = vadd.f32 %v5073_v59, %v4977_v0  ;;  %v12345_v57 = vld [vmem:[#allocation81_spill] sm:$0xff]  ;;  %v865_v48 = vadd.f32 %v833_v56, %v765_v3  ;;  %v8484_v0 = vld [vmem:[#allocation2 + $0x10d] sm:$0xff]  ;;  %v12352_v34 = vld [vmem:[#allocation84_spill] sm:$0xff] }
 0x258   : > { %v1234_v18 = vadd.f32 %v1202_v10, %v1134_v61  ;;  %v2371_v53 = vmul.f32 %v12345_v57, %v11364_v15  ;;  %v12346_v61 = vld [vmem:[#allocation82_spill] sm:$0xff]  ;;  %v8476_v10 = vld [vmem:[#allocation2 + $0x138] sm:$0xff]  ;;  %v1502_v50 = vmul.f32 %v12348_v2, %v11305_v21  ;;  %12350 = vst [vmem:[#allocation114_spill] sm:$0xff] %v8484_v0  ;;  %v2539_v3 = vmul.f32 %v12352_v34, %v11744_v9  ;;  %v12354_v57 = vld [vmem:[#allocation83_spill] sm:$0xff] }
 0x259   : > { %v2439_v6 = vmul.f32 %v12346_v61, %v11366_v54  ;;  %12347 = vst [vmem:[#allocation111_spill] sm:$0xff] %v8476_v10  ;;  %v8482_v29 = vld [vmem:[#allocation2 + $0x139] sm:$0xff]  ;;  %v5169_v59 = vadd.f32 %v5137_v27, %v5105_v24  ;;  %v8486_v31 = vld [vmem:[#allocation2 + $0x10e] sm:$0xff]  ;;  %v2639_v61 = vmul.f32 %v12354_v57, %v12297_v32  ;;  %v3040_v24 = vmul.f32 %v12116_v5, %v8476_v10 }
 0x25a   : > { %v1334_v40 = vadd.f32 %v1302_v38, %v1234_v18  ;;  %v2071_v18 = vmul.f32 %v11368_v39, %v8465_v7  ;;  %12349 = vst [vmem:[#allocation113_spill] sm:$0xff] %v8482_v29  ;;  %v2003_v38 = vadd.f32 %v1971_v45, %v1903_v17  ;;  %12351 = vst [vmem:[#allocation115_spill] sm:$0xff] %v8486_v31  ;;  %v8496_v45 = vld [vmem:[#allocation2 + $0x13a] sm:$0xff]  ;;  %v12356_v27 = vld [vmem:[#allocation63_spill] sm:$0xff] }
 0x25b   : > { %v2471_v42 = vadd.f32 %v2439_v6, %v2371_v53  ;;  %12355 = vst [vmem:[#allocation116_spill] sm:$0xff] %v8496_v45  ;;  %v5208_v17 = vadd.f32 %v12356_v27, %v5169_v59  ;;  %v12357_v6 = vld [vmem:[#allocation27_spill] sm:$0xff]  ;;  %v965_v34 = vadd.f32 %v933_v36, %v865_v48  ;;  %v12361_v12 = vld [vmem:[#allocation85_spill] sm:$0xff]  ;;  %v12365_v36 = vld [vmem:[#allocation28_spill] sm:$0xff] }
 0x25c   : > { %v1434_v46 = vadd.f32 %v1402_v28, %v1334_v40  ;;  %v12353_v40 = vld [vmem:[#allocation79_spill] sm:$0xff]  ;;  %v2103_v2 = vadd.f32 %v2071_v18, %v2003_v38  ;;  %v3108_v7 = vmul.f32 %v12357_v6, %v8482_v29  ;;  %v8507_v10 = vld [vmem:[#allocation2 + $0x13b] sm:$0xff]  ;;  %v12364_v38 = vld [vmem:[#allocation90_spill] sm:$0xff]  ;;  %v3208_v48 = vmul.f32 %v12365_v36, %v8496_v45 }
 0x25d   : > { %v1602_v28 = vmul.f32 %v12353_v40, %v11746_v52  ;;  %v2571_v53 = vadd.f32 %v2539_v3, %v2471_v42  ;;  %v12359_v40 = vld [vmem:[#allocation18_spill] sm:$0xff]  ;;  %v12360_v57 = vld [vmem:[#allocation23_spill] sm:$0xff]  ;;  %12362 = vst [vmem:[#allocation117_spill] sm:$0xff] %v8507_v10  ;;  %5240 = vst.msk [vmem:[%s6091_s10 + $0x88] sm:$0xff] %vm171_vm0, %v5208_v17 }
 0x25e   : > { %v1534_v56 = vadd.f32 %v1502_v50, %v1434_v46  ;;  %v12358_v46 = vld [vmem:[#allocation17_spill] sm:$0xff]  ;;  %v2271_v16 = vmul.f32 %v12359_v40, %v8486_v31  ;;  %v2739_v13 = vmul.f32 %v12361_v12, %v12360_v57  ;;  %v12363_v18 = vld [vmem:[#allocation24_spill] sm:$0xff]  ;;  %v3140_v3 = vadd.f32 %v3108_v7, %v3040_v24  ;;  %v12371_v57 = vld [vmem:[#allocation86_spill] sm:$0xff] }
 0x25f   : > { %v2171_v50 = vmul.f32 %v12358_v46, %v8484_v0  ;;  %v2671_v59 = vadd.f32 %v2639_v61, %v2571_v53  ;;  %v2839_v42 = vmul.f32 %v12364_v38, %v12363_v18  ;;  %v8515_v29 = vld [vmem:[#allocation2 + $0x13c] sm:$0xff]  ;;  %v8525_v53 = vld [vmem:[#allocation2 + $0x168] sm:$0xff] }
 0x260   : > { %12366 = vst [vmem:[#allocation118_spill] sm:$0xff] %v8515_v29  ;;  %v8517_v0 = vld [vmem:[#allocation2 + $0x13d] sm:$0xff]  ;;  %12373 = vst [vmem:[#allocation121_spill] sm:$0xff] %v8525_v53  ;;  %v8527_v7 = vld [vmem:[#allocation2 + $0x169] sm:$0xff]  ;;  %v1634_v24 = vadd.f32 %v1602_v28, %v1534_v56  ;;  %v3240_v45 = vadd.f32 %v3208_v48, %v3140_v3 }
 0x261   : > { %12367 = vst [vmem:[#allocation119_spill] sm:$0xff] %v8517_v0  ;;  %v2203_v31 = vadd.f32 %v2171_v50, %v2103_v2  ;;  %v12368_v58 = vld [vmem:[#allocation25_spill] sm:$0xff]  ;;  %12374 = vst [vmem:[#allocation120_spill] sm:$0xff] %v8527_v7  ;;  %v2771_v38 = vadd.f32 %v2739_v13, %v2671_v59  ;;  %v8539_v6 = vld [vmem:[#allocation2 + $0x16a] sm:$0xff] }
 0x262   : > { %v2939_v12 = vmul.f32 %v12369_v23, %v12368_v58  ;;  %v12370_v43 = vld [vmem:[#allocation33_spill] sm:$0xff]  ;;  %v12377_v23 = vld [vmem:[#allocation30_spill] sm:$0xff]  ;;  %12380 = vst [vmem:[#allocation42_spill] sm:$0xff] %v8539_v6  ;;  %v12381_v28 = vld [vmem:[#allocation40_spill] sm:$0xff] }
 0x263   : > { %v3709_v32 = vmul.f32 %v12371_v57, %v12370_v43  ;;  %v12372_v61 = vld [vmem:[#allocation53_spill] sm:$0xff]  ;;  %v3408_v50 = vmul.f32 %v12377_v23, %v8515_v29  ;;  %v3508_v57 = vmul.f32 %v12318_v30, %v8517_v0  ;;  %v2871_v56 = vadd.f32 %v2839_v42, %v2771_v38  ;;  %v12383_v29 = vld [vmem:[#allocation32_spill] sm:$0xff] }
 0x264   : > { %v3777_v17 = vmul.f32 %v12372_v61, %v12314_v60  ;;  %v12375_v18 = vld [vmem:[#allocation29_spill] sm:$0xff]  ;;  %v12378_v61 = vld [vmem:[#allocation35_spill] sm:$0xff]  ;;  %v4378_v59 = vmul.f32 %v12381_v28, %v8525_v53  ;;  %v4546_v38 = vmul.f32 %v11971_v35, %v8539_v6 }
 0x265   : > { %v3308_v36 = vmul.f32 %v12375_v18, %v8507_v10  ;;  %v8531_v2 = vld [vmem:[#allocation2 + $0x13e] sm:$0xff]  ;;  %v12379_v60 = vld [vmem:[#allocation87_spill] sm:$0xff]  ;;  %v2303_v18 = vadd.f32 %v2271_v16, %v2203_v31  ;;  %v2971_v42 = vadd.f32 %v2939_v12, %v2871_v56 }
 0x266   : > { %12376 = vst [vmem:[#allocation122_spill] sm:$0xff] %v8531_v2  ;;  %v3809_v43 = vadd.f32 %v3777_v17, %v3709_v32  ;;  %v3877_v58 = vmul.f32 %v12379_v60, %v12378_v61  ;;  %v12382_v3 = vld [vmem:[#allocation41_spill] sm:$0xff]  ;;  %v3608_v23 = vmul.f32 %v12383_v29, %v8531_v2  ;;  %v12384_v32 = vld [vmem:[#allocation36_spill] sm:$0xff]  ;;  %v8549_v60 = vld [vmem:[#allocation2 + $0x16b] sm:$0xff] }
 0x267   : > { %v3340_v13 = vadd.f32 %v3308_v36, %v3240_v45  ;;  %v4446_v48 = vmul.f32 %v12382_v3, %v8527_v7  ;;  %v330_v10 = vld [vmem:[#allocation2 + $0xe0] sm:$0xff]  ;;  %v12385_v17 = vld [vmem:[#allocation88_spill] sm:$0xff]  ;;  %12386 = vst [vmem:[#allocation100_spill] sm:$0xff] %v8549_v60  ;;  %v12388_v3 = vld [vmem:[#allocation6_spill] sm:$0xff]  ;;  %v4646_v12 = vmul.f32 %v12332_v47, %v8549_v60 }
 0x268   : > { %v3909_v0 = vadd.f32 %v3877_v58, %v3809_v43  ;;  %v3977_v30 = vmul.f32 %v12385_v17, %v12384_v32  ;;  %v398_v61 = vld [vmem:[#allocation2 + $0xe1] sm:$0xff]  ;;  %v8557_v58 = vld [vmem:[#allocation2 + $0x16c] sm:$0xff]  ;;  %v366_v43 = vmul.f32 %v12330_v25, %v330_v10 }
 0x269   : > { %v3440_v45 = vadd.f32 %v3408_v50, %v3340_v13  ;;  %v4478_v36 = vadd.f32 %v4446_v48, %v4378_v59  ;;  %v12387_v7 = vld [vmem:[#allocation37_spill] sm:$0xff]  ;;  %12390 = vst [vmem:[#allocation51_spill] sm:$0xff] %v8557_v58  ;;  %v8562_v50 = vld [vmem:[#allocation2 + $0x16d] sm:$0xff]  ;;  %v5042_v48 = vadd.f32 %v2971_v42, %v2303_v18 }
 0x26a   : > { %v4009_v53 = vadd.f32 %v3977_v30, %v3909_v0  ;;  %v4077_v16 = vmul.f32 %v12388_v3, %v12387_v7  ;;  %v12389_v31 = vld [vmem:[#allocation5_spill] sm:$0xff]  ;;  %12391 = vst [vmem:[#allocation43_spill] sm:$0xff] %v8562_v50  ;;  %v434_v30 = vmul.f32 %v11908_v14, %v398_v61  ;;  %v12392_v56 = vld [vmem:[#allocation39_spill] sm:$0xff]  ;;  %v5010_v3 = vadd.f32 %v1634_v24, %v965_v34  ;;  %v12394_v10 = vld [vmem:[#allocation46_spill] sm:$0xff] }
 0x26b   : > { %v4177_v2 = vmul.f32 %v12389_v31, %v11969_v33  ;;  %v498_v17 = vld [vmem:[#allocation2 + $0xe2] sm:$0xff]  ;;  %v3540_v32 = vadd.f32 %v3508_v57, %v3440_v45  ;;  %v4578_v29 = vadd.f32 %v4546_v38, %v4478_v36  ;;  %v4746_v25 = vmul.f32 %v12394_v10, %v8557_v58  ;;  %v8569_v57 = vld [vmem:[#allocation2 + $0x16e] sm:$0xff] }
 0x26c   : > { %v4109_v0 = vadd.f32 %v4077_v16, %v4009_v53  ;;  %v12393_v13 = vld [vmem:[#allocation89_spill] sm:$0xff]  ;;  %12395 = vst [vmem:[#allocation108_spill] sm:$0xff] %v8569_v57  ;;  %v466_v45 = vadd.f32 %v434_v30, %v366_v43  ;;  %v534_v36 = vmul.f32 %v11411_v1, %v498_v17  ;;  %v4846_v53 = vmul.f32 %v11410_v63, %v8562_v50  ;;  %v12396_v61 = vld [vmem:[#allocation11_spill] sm:$0xff] }
 0x26d   : > { %v4277_v59 = vmul.f32 %v12393_v13, %v12392_v56  ;;  %v598_v31 = vld [vmem:[#allocation2 + $0xe3] sm:$0xff]  ;;  %v4678_v6 = vadd.f32 %v4646_v12, %v4578_v29  ;;  %v3640_v60 = vadd.f32 %v3608_v23, %v3540_v32  ;;  %v1035_v34 = vmul.f32 %v12396_v61, %v11287_v55  ;;  %v12397_v16 = vld [vmem:[#allocation7_spill] sm:$0xff] }
 0x26e   : > { %v698_v38 = vld [vmem:[#allocation2 + $0xe4] sm:$0xff]  ;;  %v4209_v47 = vadd.f32 %v4177_v2, %v4109_v0  ;;  %v566_v24 = vadd.f32 %v534_v36, %v466_v45  ;;  %v634_v29 = vmul.f32 %v11284_v26, %v598_v31  ;;  %v1103_v12 = vmul.f32 %v12397_v16, %v11288_v11  ;;  %v8579_v43 = vld [vmem:[#allocation2 + $0x110] sm:$0xff]  ;;  %v12400_v31 = vld [vmem:[#allocation4_spill] sm:$0xff] }
 0x26f   : > { %v4778_v18 = vadd.f32 %v4746_v25, %v4678_v6  ;;  %v798_v42 = vld [vmem:[#allocation2 + $0xe5] sm:$0xff]  ;;  %12398 = vst [vmem:[#allocation47_spill] sm:$0xff] %v8579_v43  ;;  %v8581_v17 = vld [vmem:[#allocation2 + $0x111] sm:$0xff]  ;;  %v4946_v2 = vmul.f32 %v8032_v62, %v8569_v57  ;;  %v5106_v32 = vadd.f32 %v5042_v48, %v5010_v3  ;;  %v734_v30 = vmul.f32 %v11285_v20, %v698_v38 }
 0x270   : > { %12399 = vst [vmem:[#allocation48_spill] sm:$0xff] %v8581_v17  ;;  %v4309_v23 = vadd.f32 %v4277_v59, %v4209_v47  ;;  %v666_v25 = vadd.f32 %v634_v29, %v566_v24  ;;  %v898_v6 = vld [vmem:[#allocation2 + $0xe6] sm:$0xff]  ;;  %v1135_v13 = vadd.f32 %v1103_v12, %v1035_v34  ;;  %v1203_v45 = vmul.f32 %v12400_v31, %v11289_v19  ;;  %v8588_v36 = vld [vmem:[#allocation2 + $0x112] sm:$0xff] }
 0x271   : > { %v4878_v0 = vadd.f32 %v4846_v53, %v4778_v18  ;;  %12401 = vst [vmem:[#allocation55_spill] sm:$0xff] %v8588_v36  ;;  %v834_v16 = vmul.f32 %v11294_v8, %v798_v42  ;;  %v1704_v47 = vmul.f32 %v5638_v44, %v8579_v43  ;;  %v1772_v62 = vmul.f32 %v5650_v49, %v8581_v17  ;;  %v12402_v38 = vld [vmem:[#allocation10_spill] sm:$0xff]  ;;  %v8597_v34 = vld [vmem:[#allocation2 + $0x113] sm:$0xff] }
 0x272   : > { %v5074_v61 = vadd.f32 %v4309_v23, %v3640_v60  ;;  %v766_v3 = vadd.f32 %v734_v30, %v666_v25  ;;  %v1235_v48 = vadd.f32 %v1203_v45, %v1135_v13  ;;  %v1303_v53 = vmul.f32 %v12402_v38, %v5620_v37  ;;  %12403 = vst [vmem:[#allocation52_spill] sm:$0xff] %v8597_v34  ;;  %v12404_v60 = vld [vmem:[#allocation8_spill] sm:$0xff]  ;;  %v12408_v13 = vld [vmem:[#allocation94_spill] sm:$0xff]  ;;  %v8659_v58 = vld [vmem:[#allocation2 + $0x170] sm:$0xff] }
 0x273   : > { %v4978_v59 = vadd.f32 %v4946_v2, %v4878_v0  ;;  %v934_v18 = vmul.f32 %v11301_v4, %v898_v6  ;;  %v1403_v24 = vmul.f32 %v12404_v60, %v5629_v41  ;;  %v1804_v29 = vadd.f32 %v1772_v62, %v1704_v47  ;;  %v8604_v12 = vld [vmem:[#allocation2 + $0x114] sm:$0xff]  ;;  %v8649_v50 = vld [vmem:[#allocation2 + $0x144] sm:$0xff]  ;;  %12431 = vst [vmem:[#allocation65_spill] sm:$0xff] %v8659_v58 }
 0x274   : > { %v1872_v42 = vmul.f32 %v11359_v22, %v8588_v36  ;;  %12405 = vst [vmem:[#allocation54_spill] sm:$0xff] %v8604_v12  ;;  %v1335_v2 = vadd.f32 %v1303_v53, %v1235_v48  ;;  %v12406_v30 = vld [vmem:[#allocation12_spill] sm:$0xff]  ;;  %v2372_v31 = vmul.f32 %v12408_v13, %v11364_v15  ;;  %v12409_v6 = vld [vmem:[#allocation91_spill] sm:$0xff]  ;;  %v1972_v47 = vmul.f32 %v5658_v51, %v8597_v34  ;;  %v8620_v48 = vld [vmem:[#allocation2 + $0x140] sm:$0xff] }
 0x275   : > { %v5138_v23 = vadd.f32 %v5074_v61, %v4978_v59  ;;  %v1503_v0 = vmul.f32 %v12406_v30, %v11305_v21  ;;  %v8608_v25 = vld [vmem:[#allocation2 + $0x115] sm:$0xff]  ;;  %v1603_v45 = vmul.f32 %v12409_v6, %v11746_v52  ;;  %12412 = vst [vmem:[#allocation60_spill] sm:$0xff] %v8620_v48  ;;  %v8622_v53 = vld [vmem:[#allocation2 + $0x141] sm:$0xff]  ;;  %v866_v30 = vadd.f32 %v834_v16, %v766_v3 }
 0x276   : > { %12407 = vst [vmem:[#allocation49_spill] sm:$0xff] %v8608_v25  ;;  %v1904_v38 = vadd.f32 %v1872_v42, %v1804_v29  ;;  %v8616_v62 = vld [vmem:[#allocation2 + $0x116] sm:$0xff]  ;;  %12413 = vst [vmem:[#allocation56_spill] sm:$0xff] %v8622_v53  ;;  %v1435_v36 = vadd.f32 %v1403_v24, %v1335_v2  ;;  %v2072_v13 = vmul.f32 %v11368_v39, %v8604_v12  ;;  %v12414_v34 = vld [vmem:[#allocation93_spill] sm:$0xff] }
 0x277   : > { %12410 = vst [vmem:[#allocation58_spill] sm:$0xff] %v8616_v62  ;;  %v12411_v61 = vld [vmem:[#allocation92_spill] sm:$0xff]  ;;  %v5170_v60 = vadd.f32 %v5138_v23, %v5106_v32  ;;  %v2172_v42 = vmul.f32 %v12358_v46, %v8608_v25  ;;  %v2540_v17 = vmul.f32 %v12414_v34, %v11744_v9  ;;  %v2272_v32 = vmul.f32 %v12359_v40, %v8616_v62  ;;  %v12416_v3 = vld [vmem:[#allocation27_spill] sm:$0xff]  ;;  %v8641_v34 = vld [vmem:[#allocation2 + $0x143] sm:$0xff] }
 0x278   : > { %v2440_v59 = vmul.f32 %v12411_v61, %v11366_v54  ;;  %v2004_v29 = vadd.f32 %v1972_v47, %v1904_v38  ;;  %v8630_v61 = vld [vmem:[#allocation2 + $0x142] sm:$0xff]  ;;  %v3041_v16 = vmul.f32 %v12116_v5, %v8620_v48  ;;  %v3109_v24 = vmul.f32 %v12416_v3, %v8622_v53  ;;  %12419 = vst [vmem:[#allocation50_spill] sm:$0xff] %v8641_v34  ;;  %v12421_v25 = vld [vmem:[#allocation96_spill] sm:$0xff] }
 0x279   : > { %12415 = vst [vmem:[#allocation61_spill] sm:$0xff] %v8630_v61  ;;  %v5209_v43 = vadd.f32 %v12356_v27, %v5170_v60  ;;  %v1535_v23 = vadd.f32 %v1503_v0, %v1435_v36  ;;  %v12418_v47 = vld [vmem:[#allocation97_spill] sm:$0xff]  ;;  %v966_v27 = vadd.f32 %v934_v18, %v866_v30  ;;  %v12420_v60 = vld [vmem:[#allocation23_spill] sm:$0xff]  ;;  %v12422_v48 = vld [vmem:[#allocation28_spill] sm:$0xff] }
 0x27a   : > { %v2472_v6 = vadd.f32 %v2440_v59, %v2372_v31  ;;  %v2104_v2 = vadd.f32 %v2072_v13, %v2004_v29  ;;  %v12417_v31 = vld [vmem:[#allocation22_spill] sm:$0xff]  ;;  %v2740_v62 = vmul.f32 %v12421_v25, %v12420_v60  ;;  %v3141_v12 = vadd.f32 %v3109_v24, %v3041_v16  ;;  %12423 = vst [vmem:[#allocation57_spill] sm:$0xff] %v8649_v50  ;;  %v12425_v0 = vld [vmem:[#allocation24_spill] sm:$0xff]  ;;  %v12426_v13 = vld [vmem:[#allocation95_spill] sm:$0xff] }
 0x27b   : > { %v2640_v59 = vmul.f32 %v12418_v47, %v12417_v31  ;;  %5241 = vst.msk [vmem:[%s6091_s10 + $0x90] sm:$0xff] %vm171_vm0, %v5209_v43  ;;  %v3209_v57 = vmul.f32 %v12422_v48, %v8630_v61  ;;  %v8651_v36 = vld [vmem:[#allocation2 + $0x145] sm:$0xff]  ;;  %v2840_v29 = vmul.f32 %v12426_v13, %v12425_v0  ;;  %v8667_v40 = vld [vmem:[#allocation2 + $0x171] sm:$0xff]  ;;  %v1635_v13 = vadd.f32 %v1603_v45, %v1535_v23 }
 0x27c   : > { %v2572_v38 = vadd.f32 %v2540_v17, %v2472_v6  ;;  %12424 = vst [vmem:[#allocation15_spill] sm:$0xff] %v8651_v36  ;;  %v12427_v6 = vld [vmem:[#allocation25_spill] sm:$0xff]  ;;  %v2204_v25 = vadd.f32 %v2172_v42, %v2104_v2  ;;  %v12434_v60 = vld [vmem:[#allocation34_spill] sm:$0xff]  ;;  %12436 = vst [vmem:[#allocation66_spill] sm:$0xff] %v8667_v40 }
 0x27d   : > { %v12428_v47 = vld [vmem:[#allocation101_spill] sm:$0xff]  ;;  %v3241_v16 = vadd.f32 %v3209_v57, %v3141_v12  ;;  %v12439_v12 = vld [vmem:[#allocation35_spill] sm:$0xff]  ;;  %v12442_v45 = vld [vmem:[#allocation32_spill] sm:$0xff] }
 0x27e   : > { %v2672_v17 = vadd.f32 %v2640_v59, %v2572_v38  ;;  %v2940_v53 = vmul.f32 %v12428_v47, %v12427_v6  ;;  %v12429_v43 = vld [vmem:[#allocation33_spill] sm:$0xff]  ;;  %v12435_v38 = vld [vmem:[#allocation98_spill] sm:$0xff]  ;;  %v12440_v2 = vld [vmem:[#allocation99_spill] sm:$0xff] }
 0x27f   : > { %v12430_v18 = vld [vmem:[#allocation9_spill] sm:$0xff]  ;;  %v3778_v59 = vmul.f32 %v12435_v38, %v12434_v60  ;;  %v12437_v47 = vld [vmem:[#allocation30_spill] sm:$0xff]  ;;  %v8677_v46 = vld [vmem:[#allocation2 + $0x172] sm:$0xff] }
 0x280   : > { %v3710_v30 = vmul.f32 %v12430_v18, %v12429_v43  ;;  %v12432_v24 = vld [vmem:[#allocation29_spill] sm:$0xff]  ;;  %v2772_v0 = vadd.f32 %v2740_v62, %v2672_v17  ;;  %v3409_v6 = vmul.f32 %v12437_v47, %v8649_v50  ;;  %v12438_v18 = vld [vmem:[#allocation31_spill] sm:$0xff]  ;;  %12441 = vst [vmem:[#allocation19_spill] sm:$0xff] %v8677_v46  ;;  %v12443_v23 = vld [vmem:[#allocation36_spill] sm:$0xff] }
 0x281   : > { %v3309_v61 = vmul.f32 %v12432_v24, %v8641_v34  ;;  %v8663_v48 = vld [vmem:[#allocation2 + $0x146] sm:$0xff]  ;;  %v3509_v43 = vmul.f32 %v12438_v18, %v8651_v36  ;;  %v3878_v34 = vmul.f32 %v12440_v2, %v12439_v12  ;;  %v4379_v24 = vmul.f32 %v12381_v28, %v8659_v58  ;;  %v12446_v12 = vld [vmem:[#allocation103_spill] sm:$0xff] }
 0x282   : > { %12433 = vst [vmem:[#allocation59_spill] sm:$0xff] %v8663_v48  ;;  %v3810_v57 = vadd.f32 %v3778_v59, %v3710_v30  ;;  %v2872_v38 = vadd.f32 %v2840_v29, %v2772_v0  ;;  %v3609_v62 = vmul.f32 %v12442_v45, %v8663_v48  ;;  %v12444_v17 = vld [vmem:[#allocation102_spill] sm:$0xff]  ;;  %v12445_v47 = vld [vmem:[#allocation41_spill] sm:$0xff]  ;;  %v399_v30 = vld [vmem:[#allocation2 + $0xf1] sm:$0xff]  ;;  %v4078_v58 = vmul.f32 %v12446_v12, %v12387_v7 }
 0x283   : > { %v3341_v42 = vadd.f32 %v3309_v61, %v3241_v16  ;;  %v3978_v50 = vmul.f32 %v12444_v17, %v12443_v23  ;;  %v4447_v36 = vmul.f32 %v12445_v47, %v8667_v40  ;;  %v331_v61 = vld [vmem:[#allocation2 + $0xf0] sm:$0xff]  ;;  %v2304_v16 = vadd.f32 %v2272_v32, %v2204_v25  ;;  %v12449_v48 = vld [vmem:[#allocation105_spill] sm:$0xff] }
 0x284   : > { %v3910_v2 = vadd.f32 %v3878_v34, %v3810_v57  ;;  %v8687_v28 = vld [vmem:[#allocation2 + $0x173] sm:$0xff]  ;;  %v2972_v29 = vadd.f32 %v2940_v53, %v2872_v38  ;;  %v4178_v45 = vmul.f32 %v12449_v48, %v11969_v33  ;;  %v4547_v40 = vmul.f32 %v11971_v35, %v8677_v46  ;;  %v12452_v53 = vld [vmem:[#allocation45_spill] sm:$0xff] }
 0x285   : > { %v3441_v59 = vadd.f32 %v3409_v6, %v3341_v42  ;;  %12447 = vst [vmem:[#allocation20_spill] sm:$0xff] %v8687_v28  ;;  %v8689_v0 = vld [vmem:[#allocation2 + $0x174] sm:$0xff]  ;;  %v4479_v17 = vadd.f32 %v4447_v36, %v4379_v24  ;;  %v435_v25 = vmul.f32 %v11908_v14, %v399_v30  ;;  %v4647_v38 = vmul.f32 %v12452_v53, %v8687_v28 }
 0x286   : > { %12448 = vst [vmem:[#allocation69_spill] sm:$0xff] %v8689_v0  ;;  %v499_v23 = vld [vmem:[#allocation2 + $0xf2] sm:$0xff]  ;;  %v4010_v32 = vadd.f32 %v3978_v50, %v3910_v2  ;;  %v4747_v48 = vmul.f32 %v12394_v10, %v8689_v0  ;;  %v5011_v50 = vadd.f32 %v1635_v13, %v966_v27  ;;  %v8713_v10 = vld [vmem:[#allocation2 + $0x120] sm:$0xff] }
 0x287   : > { %v3541_v47 = vadd.f32 %v3509_v43, %v3441_v59  ;;  %v12450_v6 = vld [vmem:[#allocation3_spill] sm:$0xff]  ;;  %v12451_v57 = vld [vmem:[#allocation104_spill] sm:$0xff]  ;;  %v4579_v7 = vadd.f32 %v4547_v40, %v4479_v17  ;;  %v535_v30 = vmul.f32 %v11411_v1, %v499_v23  ;;  %12457 = vst [vmem:[#allocation64_spill] sm:$0xff] %v8713_v10  ;;  %v8715_v27 = vld [vmem:[#allocation2 + $0x121] sm:$0xff] }
 0x288   : > { %v367_v34 = vmul.f32 %v12450_v6, %v331_v61  ;;  %v599_v42 = vld [vmem:[#allocation2 + $0xf3] sm:$0xff]  ;;  %v4278_v12 = vmul.f32 %v12451_v57, %v12392_v56  ;;  %v4110_v36 = vadd.f32 %v4078_v58, %v4010_v32  ;;  %v5043_v57 = vadd.f32 %v2972_v29, %v2304_v16  ;;  %v12455_v56 = vld [vmem:[#allocation106_spill] sm:$0xff]  ;;  %12458 = vst [vmem:[#allocation74_spill] sm:$0xff] %v8715_v27 }
 0x289   : > { %v8703_v24 = vld [vmem:[#allocation2 + $0x175] sm:$0xff]  ;;  %v3641_v2 = vadd.f32 %v3609_v62, %v3541_v47  ;;  %v4679_v46 = vadd.f32 %v4647_v38, %v4579_v7  ;;  %v635_v40 = vmul.f32 %v11284_v26, %v599_v42  ;;  %v1036_v0 = vmul.f32 %v12455_v56, %v11287_v55  ;;  %v8722_v7 = vld [vmem:[%s10258_s1 + $0x30] ss:$0 sm:$0xff] }
 0x28a   : > { %12453 = vst [vmem:[#allocation67_spill] sm:$0xff] %v8703_v24  ;;  %v8705_v43 = vld [vmem:[#allocation2 + $0x176] sm:$0xff]  ;;  %v467_v61 = vadd.f32 %v435_v25, %v367_v34  ;;  %v4210_v17 = vadd.f32 %v4178_v45, %v4110_v36  ;;  %v4847_v47 = vmul.f32 %v11410_v63, %v8703_v24  ;;  %v12459_v34 = vld [vmem:[#allocation110_spill] sm:$0xff]  ;;  %v5107_v38 = vadd.f32 %v5043_v57, %v5011_v50  ;;  %v12489_v24 = vld [vmem:[#allocation33_spill] sm:$0xff] }
 0x28b   : > { %12454 = vst [vmem:[#allocation68_spill] sm:$0xff] %v8705_v43  ;;  %v699_v59 = vld [vmem:[#allocation2 + $0xf4] sm:$0xff]  ;;  %v4779_v13 = vadd.f32 %v4747_v48, %v4679_v46  ;;  %v4947_v45 = vmul.f32 %v8722_v7, %v8705_v43  ;;  %v1204_v46 = vmul.f32 %v12459_v34, %v11289_v19  ;;  %v8729_v25 = vld [vmem:[#allocation2 + $0x122] sm:$0xff]  ;;  %v1705_v36 = vmul.f32 %v5638_v44, %v8713_v10 }
 0x28c   : > { %v567_v28 = vadd.f32 %v535_v30, %v467_v61  ;;  %v12456_v58 = vld [vmem:[#allocation107_spill] sm:$0xff]  ;;  %v735_v56 = vmul.f32 %v11285_v20, %v699_v59  ;;  %v4310_v62 = vadd.f32 %v4278_v12, %v4210_v17  ;;  %12460 = vst [vmem:[#allocation72_spill] sm:$0xff] %v8729_v25  ;;  %v1773_v61 = vmul.f32 %v5650_v49, %v8715_v27  ;;  %v8735_v30 = vld [vmem:[#allocation2 + $0x123] sm:$0xff]  ;;  %v12464_v34 = vld [vmem:[#allocation112_spill] sm:$0xff] }
 0x28d   : > { %v1104_v32 = vmul.f32 %v12456_v58, %v11288_v11  ;;  %v799_v16 = vld [vmem:[#allocation2 + $0xf5] sm:$0xff]  ;;  %v4879_v42 = vadd.f32 %v4847_v47, %v4779_v13  ;;  %12461 = vst [vmem:[#allocation70_spill] sm:$0xff] %v8735_v30  ;;  %v1873_v50 = vmul.f32 %v11359_v22, %v8729_v25  ;;  %v8742_v57 = vld [vmem:[#allocation2 + $0x124] sm:$0xff] }
 0x28e   : > { %v667_v23 = vadd.f32 %v635_v40, %v567_v28  ;;  %v899_v48 = vld [vmem:[#allocation2 + $0xf6] sm:$0xff]  ;;  %v5075_v12 = vadd.f32 %v4310_v62, %v3641_v2  ;;  %v835_v58 = vmul.f32 %v11294_v8, %v799_v16  ;;  %12463 = vst [vmem:[#allocation71_spill] sm:$0xff] %v8742_v57  ;;  %v1404_v2 = vmul.f32 %v12464_v34, %v5629_v41  ;;  %v12487_v10 = vld [vmem:[#allocation25_spill] sm:$0xff]  ;;  %v12488_v43 = vld [vmem:[#allocation122_spill] sm:$0xff] }
 0x28f   : > { %v1136_v29 = vadd.f32 %v1104_v32, %v1036_v0  ;;  %v12462_v0 = vld [vmem:[#allocation109_spill] sm:$0xff]  ;;  %v4979_v17 = vadd.f32 %v4947_v45, %v4879_v42  ;;  %v1805_v32 = vadd.f32 %v1773_v61, %v1705_v36  ;;  %v935_v13 = vmul.f32 %v11301_v4, %v899_v48  ;;  %v12465_v45 = vld [vmem:[#allocation111_spill] sm:$0xff]  ;;  %v12468_v48 = vld [vmem:[#allocation114_spill] sm:$0xff] }
 0x290   : > { %v767_v28 = vadd.f32 %v735_v56, %v667_v23  ;;  %v1304_v40 = vmul.f32 %v12462_v0, %v5620_v37  ;;  %v1973_v56 = vmul.f32 %v5658_v51, %v8735_v30  ;;  %v2373_v16 = vmul.f32 %v12465_v45, %v11364_v15  ;;  %v8753_v42 = vld [vmem:[#allocation2 + $0x150] sm:$0xff]  ;;  %v12472_v45 = vld [vmem:[#allocation116_spill] sm:$0xff]  ;;  %v12480_v30 = vld [vmem:[#allocation118_spill] sm:$0xff] }
 0x291   : > { %v1236_v59 = vadd.f32 %v1204_v46, %v1136_v29  ;;  %v5139_v62 = vadd.f32 %v5075_v12, %v4979_v17  ;;  %v1905_v23 = vadd.f32 %v1873_v50, %v1805_v32  ;;  %v12466_v29 = vld [vmem:[#allocation113_spill] sm:$0xff]  ;;  %12467 = vst [vmem:[#allocation76_spill] sm:$0xff] %v8753_v42  ;;  %v2073_v0 = vmul.f32 %v11368_v39, %v8742_v57  ;;  %v12479_v57 = vld [vmem:[#allocation23_spill] sm:$0xff] }
 0x292   : > { %v2441_v46 = vmul.f32 %v12466_v29, %v11366_v54  ;;  %v867_v36 = vadd.f32 %v835_v58, %v767_v28  ;;  %v8761_v32 = vld [vmem:[#allocation2 + $0x125] sm:$0xff]  ;;  %v2541_v29 = vmul.f32 %v12472_v45, %v11744_v9  ;;  %v12473_v58 = vld [vmem:[#allocation115_spill] sm:$0xff]  ;;  %v2741_v25 = vmul.f32 %v12480_v30, %v12479_v57 }
 0x293   : > { %v1336_v47 = vadd.f32 %v1304_v40, %v1236_v59  ;;  %v1504_v59 = vmul.f32 %v12468_v48, %v11305_v21  ;;  %v8759_v40 = vld [vmem:[#allocation2 + $0x151] sm:$0xff]  ;;  %v5171_v12 = vadd.f32 %v5139_v62, %v5107_v38  ;;  %v2005_v17 = vadd.f32 %v1973_v56, %v1905_v23  ;;  %12470 = vst [vmem:[#allocation73_spill] sm:$0xff] %v8761_v32  ;;  %v8763_v50 = vld [vmem:[#allocation2 + $0x126] sm:$0xff]  ;;  %v8778_v62 = vld [vmem:[%s10259_s2] ss:$0 sm:$0xff] }
 0x294   : > { %12469 = vst [vmem:[#allocation75_spill] sm:$0xff] %v8759_v40  ;;  %12471 = vst [vmem:[#allocation78_spill] sm:$0xff] %v8763_v50  ;;  %v2473_v34 = vadd.f32 %v2441_v46, %v2373_v16  ;;  %v3042_v38 = vmul.f32 %v12116_v5, %v8753_v42  ;;  %v8773_v56 = vld [vmem:[#allocation2 + $0x152] sm:$0xff]  ;;  %v12477_v45 = vld [vmem:[#allocation17_spill] sm:$0xff]  ;;  %v2941_v30 = vmul.f32 %v12488_v43, %v12487_v10 }
 0x295   : > { %v1436_v61 = vadd.f32 %v1404_v2, %v1336_v47  ;;  %v1604_v47 = vmul.f32 %v12473_v58, %v11746_v52  ;;  %v12474_v2 = vld [vmem:[#allocation117_spill] sm:$0xff]  ;;  %12475 = vst [vmem:[#allocation77_spill] sm:$0xff] %v8773_v56  ;;  %12476 = vst [vmem:[#allocation81_spill] sm:$0xff] %v8778_v62  ;;  %v5210_v23 = vadd.f32 %v8778_v62, %v5171_v12  ;;  %v8789_v27 = vld [vmem:[#allocation2 + $0x153] sm:$0xff] }
 0x296   : > { %v2641_v48 = vmul.f32 %v12474_v2, %v12417_v31  ;;  %v2105_v16 = vadd.f32 %v2073_v0, %v2005_v17  ;;  %v2573_v46 = vadd.f32 %v2541_v29, %v2473_v34  ;;  %v2173_v58 = vmul.f32 %v12477_v45, %v8761_v32  ;;  %v12478_v2 = vld [vmem:[#allocation18_spill] sm:$0xff]  ;;  %12481 = vst [vmem:[#allocation82_spill] sm:$0xff] %v8789_v27  ;;  %v12482_v0 = vld [vmem:[#allocation24_spill] sm:$0xff]  ;;  %v12483_v17 = vld [vmem:[#allocation119_spill] sm:$0xff] }
 0x297   : > { %v1536_v28 = vadd.f32 %v1504_v59, %v1436_v61  ;;  %v3110_v61 = vmul.f32 %v12416_v3, %v8759_v40  ;;  %v967_v59 = vadd.f32 %v935_v13, %v867_v36  ;;  %v2273_v42 = vmul.f32 %v12478_v2, %v8763_v50  ;;  %5242 = vst.msk [vmem:[%s6091_s10 + $0x98] sm:$0xff] %vm171_vm0, %v5210_v23  ;;  %v12484_v13 = vld [vmem:[#allocation28_spill] sm:$0xff]  ;;  %v12490_v57 = vld [vmem:[#allocation121_spill] sm:$0xff]  ;;  %v12496_v43 = vld [vmem:[#allocation30_spill] sm:$0xff] }
 0x298   : > { %v2673_v12 = vadd.f32 %v2641_v48, %v2573_v46  ;;  %v2841_v34 = vmul.f32 %v12483_v17, %v12482_v0  ;;  %v3210_v36 = vmul.f32 %v12484_v13, %v8773_v56  ;;  %v8797_v40 = vld [vmem:[#allocation2 + $0x154] sm:$0xff]  ;;  %v2205_v50 = vadd.f32 %v2173_v58, %v2105_v16  ;;  %v8807_v46 = vld [vmem:[#allocation2 + $0x180] sm:$0xff] }
 0x299   : > { %v3142_v29 = vadd.f32 %v3110_v61, %v3042_v38  ;;  %12485 = vst [vmem:[#allocation80_spill] sm:$0xff] %v8797_v40  ;;  %v8799_v32 = vld [vmem:[#allocation2 + $0x155] sm:$0xff]  ;;  %v3711_v31 = vmul.f32 %v12490_v57, %v12489_v24  ;;  %12492 = vst [vmem:[#allocation79_spill] sm:$0xff] %v8807_v46  ;;  %v8809_v38 = vld [vmem:[#allocation2 + $0x181] sm:$0xff]  ;;  %v1636_v61 = vadd.f32 %v1604_v47, %v1536_v28 }
 0x29a   : > { %12486 = vst [vmem:[#allocation84_spill] sm:$0xff] %v8799_v32  ;;  %v12491_v48 = vld [vmem:[#allocation120_spill] sm:$0xff]  ;;  %12493 = vst [vmem:[#allocation83_spill] sm:$0xff] %v8809_v38  ;;  %v2773_v17 = vadd.f32 %v2741_v25, %v2673_v12  ;;  %v12494_v0 = vld [vmem:[#allocation29_spill] sm:$0xff]  ;;  %v3410_v58 = vmul.f32 %v12496_v43, %v8797_v40  ;;  %v3510_v57 = vmul.f32 %v12438_v18, %v8799_v32 }
 0x29b   : > { %v3779_v23 = vmul.f32 %v12491_v48, %v12434_v60  ;;  %v3242_v56 = vadd.f32 %v3210_v36, %v3142_v29  ;;  %v3310_v13 = vmul.f32 %v12494_v0, %v8789_v27  ;;  %v8813_v16 = vld [vmem:[#allocation2 + $0x156] sm:$0xff]  ;;  %v12498_v60 = vld [vmem:[#allocation42_spill] sm:$0xff]  ;;  %v12501_v29 = vld [vmem:[#allocation41_spill] sm:$0xff]  ;;  %v2305_v0 = vadd.f32 %v2273_v42, %v2205_v50 }
 0x29c   : > { %12495 = vst [vmem:[#allocation63_spill] sm:$0xff] %v8813_v16  ;;  %v12497_v48 = vld [vmem:[#allocation35_spill] sm:$0xff]  ;;  %v8821_v3 = vld [vmem:[#allocation2 + $0x182] sm:$0xff]  ;;  %v2873_v28 = vadd.f32 %v2841_v34, %v2773_v17  ;;  %v12500_v47 = vld [vmem:[#allocation40_spill] sm:$0xff]  ;;  %v4448_v36 = vmul.f32 %v12501_v29, %v8809_v38 }
 0x29d   : > { %v3811_v24 = vadd.f32 %v3779_v23, %v3711_v31  ;;  %v3879_v10 = vmul.f32 %v12498_v60, %v12497_v48  ;;  %12499 = vst [vmem:[#allocation85_spill] sm:$0xff] %v8821_v3  ;;  %v3342_v25 = vadd.f32 %v3310_v13, %v3242_v56  ;;  %v4380_v12 = vmul.f32 %v12500_v47, %v8807_v46  ;;  %v332_v27 = vld [vmem:[#allocation2 + $0xf8] sm:$0xff]  ;;  %v8831_v60 = vld [vmem:[#allocation2 + $0x183] sm:$0xff]  ;;  %v12507_v29 = vld [vmem:[#allocation51_spill] sm:$0xff] }
 0x29e   : > { %v12502_v40 = vld [vmem:[#allocation32_spill] sm:$0xff]  ;;  %12505 = vst [vmem:[#allocation90_spill] sm:$0xff] %v8831_v60  ;;  %v2973_v34 = vadd.f32 %v2941_v30, %v2873_v28  ;;  %v4548_v17 = vmul.f32 %v11971_v35, %v8821_v3  ;;  %v12506_v38 = vld [vmem:[#allocation37_spill] sm:$0xff]  ;;  %v12508_v50 = vld [vmem:[#allocation43_spill] sm:$0xff]  ;;  %v4648_v30 = vmul.f32 %v12452_v53, %v8831_v60 }
 0x29f   : > { %v3610_v43 = vmul.f32 %v12502_v40, %v8813_v16  ;;  %v3911_v32 = vadd.f32 %v3879_v10, %v3811_v24  ;;  %v12503_v31 = vld [vmem:[#allocation36_spill] sm:$0xff]  ;;  %v3442_v56 = vadd.f32 %v3410_v58, %v3342_v25  ;;  %v4480_v13 = vadd.f32 %v4448_v36, %v4380_v12  ;;  %v8839_v10 = vld [vmem:[#allocation2 + $0x184] sm:$0xff]  ;;  %v12511_v28 = vld [vmem:[#allocation39_spill] sm:$0xff] }
 0x2a0   : > { %v12504_v23 = vld [vmem:[#allocation100_spill] sm:$0xff]  ;;  %v4079_v42 = vmul.f32 %v12507_v29, %v12506_v38  ;;  %v4179_v16 = vmul.f32 %v12508_v50, %v11969_v33  ;;  %12509 = vst [vmem:[#allocation62_spill] sm:$0xff] %v8839_v10  ;;  %v368_v24 = vmul.f32 %v12450_v6, %v332_v27  ;;  %v8844_v58 = vld [vmem:[#allocation2 + $0x185] sm:$0xff]  ;;  %v5012_v29 = vadd.f32 %v1636_v61, %v967_v59 }
 0x2a1   : > { %v3979_v18 = vmul.f32 %v12504_v23, %v12503_v31  ;;  %v400_v48 = vld [vmem:[#allocation2 + $0xf9] sm:$0xff]  ;;  %v3542_v31 = vadd.f32 %v3510_v57, %v3442_v56  ;;  %v4580_v40 = vadd.f32 %v4548_v17, %v4480_v13  ;;  %12510 = vst [vmem:[#allocation86_spill] sm:$0xff] %v8844_v58  ;;  %v5044_v36 = vadd.f32 %v2973_v34, %v2305_v0  ;;  %v12513_v27 = vld [vmem:[#allocation46_spill] sm:$0xff] }
 0x2a2   : > { %v500_v23 = vld [vmem:[#allocation2 + $0xfa] sm:$0xff]  ;;  %v4748_v6 = vmul.f32 %v12513_v27, %v8839_v10  ;;  %v8851_v57 = vld [vmem:[#allocation2 + $0x186] sm:$0xff] }
 0x2a3   : > { %v4011_v46 = vadd.f32 %v3979_v18, %v3911_v32  ;;  %v436_v18 = vmul.f32 %v11908_v14, %v400_v48  ;;  %v12512_v25 = vld [vmem:[#allocation108_spill] sm:$0xff]  ;;  %v4680_v3 = vadd.f32 %v4648_v30, %v4580_v40  ;;  %12514 = vst [vmem:[#allocation53_spill] sm:$0xff] %v8851_v57  ;;  %v536_v13 = vmul.f32 %v11411_v1, %v500_v23  ;;  %v12515_v48 = vld [vmem:[#allocation47_spill] sm:$0xff] }
 0x2a4   : > { %v4279_v12 = vmul.f32 %v12512_v25, %v12511_v28  ;;  %v600_v50 = vld [vmem:[#allocation2 + $0xfb] sm:$0xff]  ;;  %v3642_v60 = vadd.f32 %v3610_v43, %v3542_v31  ;;  %v1037_v59 = vmul.f32 %v12515_v48, %v11287_v55  ;;  %v8863_v23 = vld [vmem:[#allocation2 + $0x129] sm:$0xff]  ;;  %v5108_v31 = vadd.f32 %v5044_v36, %v5012_v29 }
 0x2a5   : > { %v4111_v32 = vadd.f32 %v4079_v42, %v4011_v46  ;;  %v468_v56 = vadd.f32 %v436_v18, %v368_v24  ;;  %v700_v17 = vld [vmem:[#allocation2 + $0xfc] sm:$0xff]  ;;  %v4848_v46 = vmul.f32 %v11410_v63, %v8844_v58  ;;  %v4780_v0 = vadd.f32 %v4748_v6, %v4680_v3  ;;  %v8861_v24 = vld [vmem:[#allocation2 + $0x128] sm:$0xff]  ;;  %12518 = vst [vmem:[#allocation88_spill] sm:$0xff] %v8863_v23 }
 0x2a6   : > { %v636_v40 = vmul.f32 %v11284_v26, %v600_v50  ;;  %v800_v34 = vld [vmem:[#allocation2 + $0xfd] sm:$0xff]  ;;  %12517 = vst [vmem:[#allocation87_spill] sm:$0xff] %v8861_v24  ;;  %v736_v18 = vmul.f32 %v11285_v20, %v700_v17  ;;  %v12519_v50 = vld [vmem:[#allocation55_spill] sm:$0xff] }
 0x2a7   : > { %v4211_v53 = vadd.f32 %v4179_v16, %v4111_v32  ;;  %v568_v61 = vadd.f32 %v536_v13, %v468_v56  ;;  %v12516_v42 = vld [vmem:[#allocation48_spill] sm:$0xff]  ;;  %v4948_v16 = vmul.f32 %v8722_v7, %v8851_v57  ;;  %v4880_v32 = vadd.f32 %v4848_v46, %v4780_v0  ;;  %v8870_v13 = vld [vmem:[#allocation2 + $0x12a] sm:$0xff] }
 0x2a8   : > { %v1105_v30 = vmul.f32 %v12516_v42, %v11288_v11  ;;  %v900_v6 = vld [vmem:[#allocation2 + $0xfe] sm:$0xff]  ;;  %v1205_v56 = vmul.f32 %v12519_v50, %v11289_v19  ;;  %12520 = vst [vmem:[#allocation6_spill] sm:$0xff] %v8870_v13  ;;  %v836_v42 = vmul.f32 %v11294_v8, %v800_v34  ;;  %v8879_v0 = vld [vmem:[#allocation2 + $0x12b] sm:$0xff] }
 0x2a9   : > { %v4311_v43 = vadd.f32 %v4279_v12, %v4211_v53  ;;  %v668_v3 = vadd.f32 %v636_v40, %v568_v61  ;;  %v1706_v53 = vmul.f32 %v5638_v44, %v8861_v24  ;;  %v1774_v12 = vmul.f32 %v5650_v49, %v8863_v23  ;;  %v12521_v46 = vld [vmem:[#allocation52_spill] sm:$0xff]  ;;  %12522 = vst [vmem:[#allocation5_spill] sm:$0xff] %v8879_v0 }
 0x2aa   : > { %v1137_v25 = vadd.f32 %v1105_v30, %v1037_v59  ;;  %v4980_v29 = vadd.f32 %v4948_v16, %v4880_v32  ;;  %v1305_v59 = vmul.f32 %v12521_v46, %v5620_v37  ;;  %v936_v61 = vmul.f32 %v11301_v4, %v900_v6  ;;  %v12528_v6 = vld [vmem:[#allocation58_spill] sm:$0xff] }
 0x2ab   : > { %v5076_v48 = vadd.f32 %v4311_v43, %v3642_v60  ;;  %v768_v36 = vadd.f32 %v736_v18, %v668_v3  ;;  %v12523_v60 = vld [vmem:[#allocation54_spill] sm:$0xff]  ;;  %v1806_v34 = vadd.f32 %v1774_v12, %v1706_v53  ;;  %v1874_v30 = vmul.f32 %v11359_v22, %v8870_v13  ;;  %v12525_v18 = vld [vmem:[#allocation49_spill] sm:$0xff] }
 0x2ac   : > { %v1237_v17 = vadd.f32 %v1205_v56, %v1137_v25  ;;  %v1405_v40 = vmul.f32 %v12523_v60, %v5629_v41  ;;  %v8886_v43 = vld [vmem:[#allocation2 + $0x12c] sm:$0xff]  ;;  %v1505_v32 = vmul.f32 %v12525_v18, %v11305_v21  ;;  %v12527_v25 = vld [vmem:[#allocation60_spill] sm:$0xff]  ;;  %v1605_v46 = vmul.f32 %v12528_v6, %v11746_v52 }
 0x2ad   : > { %12524 = vst [vmem:[#allocation89_spill] sm:$0xff] %v8886_v43  ;;  %v5140_v50 = vadd.f32 %v5076_v48, %v4980_v29  ;;  %v8890_v3 = vld [vmem:[#allocation2 + $0x12d] sm:$0xff]  ;;  %v2374_v56 = vmul.f32 %v12527_v25, %v11364_v15  ;;  %v1906_v60 = vadd.f32 %v1874_v30, %v1806_v34  ;;  %v1974_v53 = vmul.f32 %v5658_v51, %v8879_v0  ;;  %v12530_v48 = vld [vmem:[#allocation56_spill] sm:$0xff]  ;;  %v12533_v0 = vld [vmem:[#allocation61_spill] sm:$0xff] }
 0x2ae   : > { %v1337_v16 = vadd.f32 %v1305_v59, %v1237_v17  ;;  %12526 = vst [vmem:[#allocation11_spill] sm:$0xff] %v8890_v3  ;;  %v8898_v12 = vld [vmem:[#allocation2 + $0x12e] sm:$0xff]  ;;  %v2442_v29 = vmul.f32 %v12530_v48, %v11366_v54  ;;  %v8902_v17 = vld [vmem:[#allocation2 + $0x158] sm:$0xff]  ;;  %v868_v13 = vadd.f32 %v836_v42, %v768_v36  ;;  %v2074_v25 = vmul.f32 %v11368_v39, %v8886_v43  ;;  %v12540_v43 = vld [vmem:[#allocation57_spill] sm:$0xff] }
 0x2af   : > { %12529 = vst [vmem:[#allocation7_spill] sm:$0xff] %v8898_v12  ;;  %12531 = vst [vmem:[#allocation4_spill] sm:$0xff] %v8902_v17  ;;  %v8904_v59 = vld [vmem:[#allocation2 + $0x159] sm:$0xff]  ;;  %v5172_v18 = vadd.f32 %v5140_v50, %v5108_v31  ;;  %v2006_v34 = vadd.f32 %v1974_v53, %v1906_v60  ;;  %v2174_v30 = vmul.f32 %v12477_v45, %v8890_v3  ;;  %v12535_v36 = vld [vmem:[#allocation27_spill] sm:$0xff] }
 0x2b0   : > { %12532 = vst [vmem:[#allocation10_spill] sm:$0xff] %v8904_v59  ;;  %v1437_v23 = vadd.f32 %v1405_v40, %v1337_v16  ;;  %v2474_v6 = vadd.f32 %v2442_v29, %v2374_v56  ;;  %v2542_v24 = vmul.f32 %v12533_v0, %v11744_v9  ;;  %v8912_v48 = vld [vmem:[#allocation2 + $0x15a] sm:$0xff]  ;;  %v2274_v31 = vmul.f32 %v12478_v2, %v8898_v12  ;;  %v12536_v56 = vld [vmem:[#allocation22_spill] sm:$0xff]  ;;  %v12539_v3 = vld [vmem:[#allocation23_spill] sm:$0xff] }
 0x2b1   : > { %12534 = vst [vmem:[#allocation8_spill] sm:$0xff] %v8912_v48  ;;  %v5211_v57 = vadd.f32 %v8778_v62, %v5172_v18  ;;  %v3043_v42 = vmul.f32 %v12116_v5, %v8902_v17  ;;  %v3111_v40 = vmul.f32 %v12535_v36, %v8904_v59  ;;  %v2106_v16 = vadd.f32 %v2074_v25, %v2006_v34  ;;  %v12537_v53 = vld [vmem:[#allocation50_spill] sm:$0xff]  ;;  %v8923_v0 = vld [vmem:[#allocation2 + $0x15b] sm:$0xff]  ;;  %v12545_v25 = vld [vmem:[#allocation15_spill] sm:$0xff] }
 0x2b2   : > { %v1537_v50 = vadd.f32 %v1505_v32, %v1437_v23  ;;  %v2574_v60 = vadd.f32 %v2542_v24, %v2474_v6  ;;  %v2642_v29 = vmul.f32 %v12537_v53, %v12536_v56  ;;  %12538 = vst [vmem:[#allocation12_spill] sm:$0xff] %v8923_v0  ;;  %v968_v18 = vadd.f32 %v936_v61, %v868_v13  ;;  %v12541_v17 = vld [vmem:[#allocation28_spill] sm:$0xff]  ;;  %v12546_v6 = vld [vmem:[#allocation25_spill] sm:$0xff]  ;;  %v12547_v53 = vld [vmem:[#allocation59_spill] sm:$0xff] }
 0x2b3   : > { %5243 = vst.msk [vmem:[%s6091_s10 + $0xa0] sm:$0xff] %vm171_vm0, %v5211_v57  ;;  %v2742_v12 = vmul.f32 %v12540_v43, %v12539_v3  ;;  %v3143_v58 = vadd.f32 %v3111_v40, %v3043_v42  ;;  %v3211_v10 = vmul.f32 %v12541_v17, %v8912_v48  ;;  %v8931_v2 = vld [vmem:[#allocation2 + $0x15c] sm:$0xff]  ;;  %v2942_v59 = vmul.f32 %v12547_v53, %v12546_v6  ;;  %v8941_v45 = vld [vmem:[#allocation2 + $0x188] sm:$0xff] }
 0x2b4   : > { %12542 = vst [vmem:[#allocation94_spill] sm:$0xff] %v8931_v2  ;;  %v8933_v23 = vld [vmem:[#allocation2 + $0x15d] sm:$0xff]  ;;  %v2674_v24 = vadd.f32 %v2642_v29, %v2574_v60  ;;  %12550 = vst [vmem:[#allocation92_spill] sm:$0xff] %v8941_v45  ;;  %v2206_v43 = vadd.f32 %v2174_v30, %v2106_v16  ;;  %v12553_v3 = vld [vmem:[#allocation34_spill] sm:$0xff] }
 0x2b5   : > { %12543 = vst [vmem:[#allocation91_spill] sm:$0xff] %v8933_v23  ;;  %v12544_v32 = vld [vmem:[#allocation24_spill] sm:$0xff]  ;;  %v12548_v57 = vld [vmem:[#allocation33_spill] sm:$0xff]  ;;  %v3243_v42 = vadd.f32 %v3211_v10, %v3143_v58  ;;  %v12554_v60 = vld [vmem:[#allocation66_spill] sm:$0xff] }
 0x2b6   : > { %v2842_v34 = vmul.f32 %v12545_v25, %v12544_v32  ;;  %v12549_v13 = vld [vmem:[#allocation65_spill] sm:$0xff]  ;;  %v3780_v29 = vmul.f32 %v12554_v60, %v12553_v3  ;;  %v8949_v36 = vld [vmem:[#allocation2 + $0x189] sm:$0xff]  ;;  %v1637_v25 = vadd.f32 %v1605_v46, %v1537_v50  ;;  %v2774_v32 = vadd.f32 %v2742_v12, %v2674_v24  ;;  %v12561_v46 = vld [vmem:[#allocation32_spill] sm:$0xff] }
 0x2b7   : > { %v3712_v61 = vmul.f32 %v12549_v13, %v12548_v57  ;;  %v12551_v40 = vld [vmem:[#allocation29_spill] sm:$0xff]  ;;  %12555 = vst [vmem:[#allocation97_spill] sm:$0xff] %v8949_v36  ;;  %v12556_v53 = vld [vmem:[#allocation30_spill] sm:$0xff]  ;;  %v12557_v13 = vld [vmem:[#allocation31_spill] sm:$0xff] }
 0x2b8   : > { %v3311_v48 = vmul.f32 %v12551_v40, %v8923_v0  ;;  %v8945_v17 = vld [vmem:[#allocation2 + $0x15e] sm:$0xff]  ;;  %v3411_v6 = vmul.f32 %v12556_v53, %v8931_v2  ;;  %v3511_v57 = vmul.f32 %v12557_v13, %v8933_v23  ;;  %v12558_v58 = vld [vmem:[#allocation35_spill] sm:$0xff]  ;;  %v4381_v40 = vmul.f32 %v12500_v47, %v8941_v45 }
 0x2b9   : > { %12552 = vst [vmem:[#allocation93_spill] sm:$0xff] %v8945_v17  ;;  %v3812_v10 = vadd.f32 %v3780_v29, %v3712_v61  ;;  %v12559_v16 = vld [vmem:[#allocation19_spill] sm:$0xff]  ;;  %v2874_v60 = vadd.f32 %v2842_v34, %v2774_v32  ;;  %v3611_v12 = vmul.f32 %v12561_v46, %v8945_v17  ;;  %v12562_v50 = vld [vmem:[#allocation36_spill] sm:$0xff]  ;;  %v12564_v53 = vld [vmem:[#allocation41_spill] sm:$0xff] }
 0x2ba   : > { %v3343_v30 = vadd.f32 %v3311_v48, %v3243_v42  ;;  %v3880_v0 = vmul.f32 %v12559_v16, %v12558_v58  ;;  %v8959_v62 = vld [vmem:[#allocation2 + $0x18a] sm:$0xff]  ;;  %v12563_v24 = vld [vmem:[#allocation20_spill] sm:$0xff]  ;;  %v4449_v23 = vmul.f32 %v12564_v53, %v8949_v36  ;;  %v2306_v42 = vadd.f32 %v2274_v31, %v2206_v43  ;;  %v12565_v58 = vld [vmem:[#allocation69_spill] sm:$0xff] }
 0x2bb   : > { %12560 = vst [vmem:[#allocation96_spill] sm:$0xff] %v8959_v62  ;;  %v3980_v2 = vmul.f32 %v12563_v24, %v12562_v50  ;;  %v333_v48 = vld [vmem:[#allocation2 + $0x108] sm:$0xff]  ;;  %v4080_v45 = vmul.f32 %v12565_v58, %v12506_v38  ;;  %v2974_v34 = vadd.f32 %v2942_v59, %v2874_v60  ;;  %v12568_v17 = vld [vmem:[#allocation67_spill] sm:$0xff]  ;;  %v4549_v36 = vmul.f32 %v11971_v35, %v8959_v62  ;;  %v12571_v59 = vld [vmem:[#allocation45_spill] sm:$0xff] }
 0x2bc   : > { %v401_v61 = vld [vmem:[#allocation2 + $0x109] sm:$0xff]  ;;  %v3443_v29 = vadd.f32 %v3411_v6, %v3343_v30  ;;  %v3912_v16 = vadd.f32 %v3880_v0, %v3812_v10  ;;  %v4180_v46 = vmul.f32 %v12568_v17, %v11969_v33  ;;  %v4481_v24 = vadd.f32 %v4449_v23, %v4381_v40  ;;  %v12570_v10 = vld [vmem:[#allocation68_spill] sm:$0xff] }
 0x2bd   : > { %v8969_v47 = vld [vmem:[#allocation2 + $0x18b] sm:$0xff]  ;;  %v437_v43 = vmul.f32 %v11908_v14, %v401_v61  ;;  %v4280_v58 = vmul.f32 %v12570_v10, %v12511_v28  ;;  %v5045_v10 = vadd.f32 %v2974_v34, %v2306_v42  ;;  %v12574_v28 = vld [vmem:[#allocation64_spill] sm:$0xff] }
 0x2be   : > { %12566 = vst [vmem:[#allocation95_spill] sm:$0xff] %v8969_v47  ;;  %v8971_v32 = vld [vmem:[#allocation2 + $0x18c] sm:$0xff]  ;;  %v3543_v53 = vadd.f32 %v3511_v57, %v3443_v29  ;;  %v4012_v31 = vadd.f32 %v3980_v2, %v3912_v16  ;;  %v4581_v38 = vadd.f32 %v4549_v36, %v4481_v24  ;;  %v4649_v60 = vmul.f32 %v12571_v59, %v8969_v47  ;;  %v12578_v34 = vld [vmem:[#allocation72_spill] sm:$0xff] }
 0x2bf   : > { %12567 = vst [vmem:[#allocation101_spill] sm:$0xff] %v8971_v32  ;;  %v501_v50 = vld [vmem:[#allocation2 + $0x10a] sm:$0xff]  ;;  %v4749_v17 = vmul.f32 %v12513_v27, %v8971_v32  ;;  %v5013_v2 = vadd.f32 %v1637_v25, %v968_v18  ;;  %v1038_v32 = vmul.f32 %v12574_v28, %v11287_v55  ;;  %v8995_v27 = vld [vmem:[#allocation2 + $0x138] sm:$0xff] }
 0x2c0   : > { %v12569_v6 = vld [vmem:[#allocation3_spill] sm:$0xff]  ;;  %v4112_v23 = vadd.f32 %v4080_v45, %v4012_v31  ;;  %v537_v61 = vmul.f32 %v11411_v1, %v501_v50  ;;  %v3643_v16 = vadd.f32 %v3611_v12, %v3543_v53  ;;  %v4681_v62 = vadd.f32 %v4649_v60, %v4581_v38  ;;  %v12575_v45 = vld [vmem:[#allocation74_spill] sm:$0xff]  ;;  %12576 = vst [vmem:[#allocation99_spill] sm:$0xff] %v8995_v27  ;;  %v8997_v18 = vld [vmem:[#allocation2 + $0x139] sm:$0xff] }
 0x2c1   : > { %v369_v0 = vmul.f32 %v12569_v6, %v333_v48  ;;  %v601_v30 = vld [vmem:[#allocation2 + $0x10b] sm:$0xff]  ;;  %v1106_v31 = vmul.f32 %v12575_v45, %v11288_v11  ;;  %12577 = vst [vmem:[#allocation102_spill] sm:$0xff] %v8997_v18  ;;  %v5109_v60 = vadd.f32 %v5045_v10, %v5013_v2  ;;  %v9019_v10 = vld [vmem:[#allocation2 + $0x13c] sm:$0xff] }
 0x2c2   : > { %v8985_v40 = vld [vmem:[#allocation2 + $0x18d] sm:$0xff]  ;;  %v637_v36 = vmul.f32 %v11284_v26, %v601_v30  ;;  %v4212_v24 = vadd.f32 %v4180_v46, %v4112_v23  ;;  %v4781_v25 = vadd.f32 %v4749_v17, %v4681_v62  ;;  %v1707_v17 = vmul.f32 %v5638_v44, %v8995_v27  ;;  %12582 = vst [vmem:[#allocation104_spill] sm:$0xff] %v9019_v10  ;;  %v12607_v27 = vld [vmem:[#allocation25_spill] sm:$0xff] }
 0x2c3   : > { %12572 = vst [vmem:[#allocation9_spill] sm:$0xff] %v8985_v40  ;;  %v8987_v57 = vld [vmem:[#allocation2 + $0x18e] sm:$0xff]  ;;  %v469_v48 = vadd.f32 %v437_v43, %v369_v0  ;;  %v4849_v53 = vmul.f32 %v11410_v63, %v8985_v40  ;;  %v1138_v28 = vadd.f32 %v1106_v31, %v1038_v32  ;;  %v1206_v0 = vmul.f32 %v12578_v34, %v11289_v19  ;;  %v9006_v43 = vld [vmem:[#allocation2 + $0x13a] sm:$0xff] }
 0x2c4   : > { %12573 = vst [vmem:[#allocation98_spill] sm:$0xff] %v8987_v57  ;;  %v701_v29 = vld [vmem:[#allocation2 + $0x10c] sm:$0xff]  ;;  %v4949_v38 = vmul.f32 %v8722_v7, %v8987_v57  ;;  %v4312_v12 = vadd.f32 %v4280_v58, %v4212_v24  ;;  %12579 = vst [vmem:[#allocation103_spill] sm:$0xff] %v9006_v43  ;;  %v1775_v23 = vmul.f32 %v5650_v49, %v8997_v18  ;;  %v12609_v40 = vld [vmem:[#allocation33_spill] sm:$0xff] }
 0x2c5   : > { %v569_v47 = vadd.f32 %v537_v61, %v469_v48  ;;  %v737_v46 = vmul.f32 %v11285_v20, %v701_v29  ;;  %v801_v42 = vld [vmem:[#allocation2 + $0x10d] sm:$0xff]  ;;  %v4881_v30 = vadd.f32 %v4849_v53, %v4781_v25  ;;  %v9012_v48 = vld [vmem:[#allocation2 + $0x13b] sm:$0xff]  ;;  %v1238_v61 = vadd.f32 %v1206_v0, %v1138_v28 }
 0x2c6   : > { %v901_v62 = vld [vmem:[#allocation2 + $0x10e] sm:$0xff]  ;;  %12580 = vst [vmem:[#allocation105_spill] sm:$0xff] %v9012_v48  ;;  %v5077_v58 = vadd.f32 %v4312_v12, %v3643_v16  ;;  %v837_v24 = vmul.f32 %v11294_v8, %v801_v42  ;;  %v1807_v45 = vadd.f32 %v1775_v23, %v1707_v17  ;;  %v1875_v2 = vmul.f32 %v11359_v22, %v9006_v43  ;;  %v12600_v43 = vld [vmem:[#allocation80_spill] sm:$0xff] }
 0x2c7   : > { %v669_v50 = vadd.f32 %v637_v36, %v569_v47  ;;  %v12581_v32 = vld [vmem:[#allocation70_spill] sm:$0xff]  ;;  %v4981_v36 = vadd.f32 %v4949_v38, %v4881_v30  ;;  %v937_v31 = vmul.f32 %v11301_v4, %v901_v62  ;;  %v12583_v53 = vld [vmem:[#allocation71_spill] sm:$0xff]  ;;  %v12584_v38 = vld [vmem:[#allocation76_spill] sm:$0xff] }
 0x2c8   : > { %v1306_v29 = vmul.f32 %v12581_v32, %v5620_v37  ;;  %v1406_v16 = vmul.f32 %v12583_v53, %v5629_v41  ;;  %v2375_v42 = vmul.f32 %v12584_v38, %v11364_v15  ;;  %v12585_v28 = vld [vmem:[#allocation75_spill] sm:$0xff]  ;;  %v9030_v0 = vld [vmem:[#allocation2 + $0x168] sm:$0xff]  ;;  %v12587_v62 = vld [vmem:[#allocation73_spill] sm:$0xff] }
 0x2c9   : > { %v769_v47 = vadd.f32 %v737_v46, %v669_v50  ;;  %v1975_v46 = vmul.f32 %v5658_v51, %v9012_v48  ;;  %v5141_v12 = vadd.f32 %v5077_v58, %v4981_v36  ;;  %v1907_v50 = vadd.f32 %v1875_v2, %v1807_v45  ;;  %12586 = vst [vmem:[#allocation106_spill] sm:$0xff] %v9030_v0  ;;  %v9036_v32 = vld [vmem:[#allocation2 + $0x169] sm:$0xff]  ;;  %v9038_v36 = vld [vmem:[#allocation2 + $0x13d] sm:$0xff] }
 0x2ca   : > { %v1338_v25 = vadd.f32 %v1306_v29, %v1238_v61  ;;  %v2443_v34 = vmul.f32 %v12585_v28, %v11366_v54  ;;  %v1506_v23 = vmul.f32 %v12587_v62, %v11305_v21  ;;  %v2075_v61 = vmul.f32 %v11368_v39, %v9019_v10  ;;  %12588 = vst [vmem:[#allocation107_spill] sm:$0xff] %v9036_v32  ;;  %v9040_v45 = vld [vmem:[#allocation2 + $0x13e] sm:$0xff]  ;;  %v12593_v38 = vld [vmem:[#allocation82_spill] sm:$0xff]  ;;  %v12608_v57 = vld [vmem:[#allocation63_spill] sm:$0xff] }
 0x2cb   : > { %v869_v30 = vadd.f32 %v837_v24, %v769_v47  ;;  %v5173_v58 = vadd.f32 %v5141_v12, %v5109_v60  ;;  %v2007_v29 = vadd.f32 %v1975_v46, %v1907_v50  ;;  %12589 = vst [vmem:[#allocation110_spill] sm:$0xff] %v9038_v36  ;;  %12590 = vst [vmem:[#allocation109_spill] sm:$0xff] %v9040_v45  ;;  %v12591_v53 = vld [vmem:[#allocation77_spill] sm:$0xff]  ;;  %v9050_v46 = vld [vmem:[#allocation2 + $0x16a] sm:$0xff] }
 0x2cc   : > { %v1438_v17 = vadd.f32 %v1406_v16, %v1338_v25  ;;  %v2475_v2 = vadd.f32 %v2443_v34, %v2375_v42  ;;  %v2543_v47 = vmul.f32 %v12591_v53, %v11744_v9  ;;  %v12592_v25 = vld [vmem:[#allocation78_spill] sm:$0xff]  ;;  %v2643_v28 = vmul.f32 %v12593_v38, %v12536_v56  ;;  %12594 = vst [vmem:[#allocation112_spill] sm:$0xff] %v9050_v46  ;;  %v12595_v12 = vld [vmem:[#allocation81_spill] sm:$0xff]  ;;  %v12596_v34 = vld [vmem:[#allocation27_spill] sm:$0xff] }
 0x2cd   : > { %v1606_v16 = vmul.f32 %v12592_v25, %v11746_v52  ;;  %v3044_v60 = vmul.f32 %v12116_v5, %v9030_v0  ;;  %v5212_v50 = vadd.f32 %v12595_v12, %v5173_v58  ;;  %v2107_v62 = vadd.f32 %v2075_v61, %v2007_v29  ;;  %v12598_v25 = vld [vmem:[#allocation18_spill] sm:$0xff]  ;;  %v12599_v38 = vld [vmem:[#allocation23_spill] sm:$0xff]  ;;  %v12602_v61 = vld [vmem:[#allocation24_spill] sm:$0xff] }
 0x2ce   : > { %v1538_v24 = vadd.f32 %v1506_v23, %v1438_v17  ;;  %v2575_v42 = vadd.f32 %v2543_v47, %v2475_v2  ;;  %v3112_v10 = vmul.f32 %v12596_v34, %v9036_v32  ;;  %v969_v53 = vadd.f32 %v937_v31, %v869_v30  ;;  %v12597_v17 = vld [vmem:[#allocation17_spill] sm:$0xff]  ;;  %v9061_v0 = vld [vmem:[#allocation2 + $0x16b] sm:$0xff]  ;;  %v12603_v29 = vld [vmem:[#allocation84_spill] sm:$0xff] }
 0x2cf   : > { %v2175_v23 = vmul.f32 %v12597_v17, %v9038_v36  ;;  %v2275_v48 = vmul.f32 %v12598_v25, %v9040_v45  ;;  %v2743_v18 = vmul.f32 %v12600_v43, %v12599_v38  ;;  %12601 = vst [vmem:[#allocation111_spill] sm:$0xff] %v9061_v0  ;;  %5244 = vst.msk [vmem:[%s6091_s10 + $0xa8] sm:$0xff] %vm171_vm0, %v5212_v50  ;;  %v12604_v31 = vld [vmem:[#allocation28_spill] sm:$0xff]  ;;  %v9069_v32 = vld [vmem:[#allocation2 + $0x16c] sm:$0xff] }
 0x2d0   : > { %v2675_v58 = vadd.f32 %v2643_v28, %v2575_v42  ;;  %v2843_v2 = vmul.f32 %v12603_v29, %v12602_v61  ;;  %v3144_v47 = vadd.f32 %v3112_v10, %v3044_v60  ;;  %v3212_v30 = vmul.f32 %v12604_v31, %v9050_v46  ;;  %12605 = vst [vmem:[#allocation113_spill] sm:$0xff] %v9069_v32  ;;  %v9071_v36 = vld [vmem:[#allocation2 + $0x16d] sm:$0xff]  ;;  %v9079_v42 = vld [vmem:[#allocation2 + $0x198] sm:$0xff]  ;;  %v12614_v61 = vld [vmem:[#allocation29_spill] sm:$0xff] }
 0x2d1   : > { %12606 = vst [vmem:[#allocation114_spill] sm:$0xff] %v9071_v36  ;;  %v2207_v45 = vadd.f32 %v2175_v23, %v2107_v62  ;;  %v2943_v43 = vmul.f32 %v12608_v57, %v12607_v27  ;;  %v12610_v38 = vld [vmem:[#allocation79_spill] sm:$0xff]  ;;  %12612 = vst [vmem:[#allocation116_spill] sm:$0xff] %v9079_v42  ;;  %v9081_v10 = vld [vmem:[#allocation2 + $0x199] sm:$0xff]  ;;  %v1638_v60 = vadd.f32 %v1606_v16, %v1538_v24 }
 0x2d2   : > { %v3713_v56 = vmul.f32 %v12610_v38, %v12609_v40  ;;  %v12611_v28 = vld [vmem:[#allocation83_spill] sm:$0xff]  ;;  %12613 = vst [vmem:[#allocation115_spill] sm:$0xff] %v9081_v10  ;;  %v2775_v29 = vadd.f32 %v2743_v18, %v2675_v58  ;;  %v3244_v46 = vadd.f32 %v3212_v30, %v3144_v47  ;;  %v3312_v31 = vmul.f32 %v12614_v61, %v9061_v0  ;;  %v12616_v57 = vld [vmem:[#allocation30_spill] sm:$0xff]  ;;  %v9093_v34 = vld [vmem:[#allocation2 + $0x19a] sm:$0xff] }
 0x2d3   : > { %v3781_v50 = vmul.f32 %v12611_v28, %v12553_v3  ;;  %v9085_v62 = vld [vmem:[#allocation2 + $0x16e] sm:$0xff]  ;;  %v3412_v23 = vmul.f32 %v12616_v57, %v9069_v32  ;;  %v3512_v38 = vmul.f32 %v12557_v13, %v9071_v36  ;;  %v12618_v3 = vld [vmem:[#allocation85_spill] sm:$0xff]  ;;  %12619 = vst [vmem:[#allocation118_spill] sm:$0xff] %v9093_v34  ;;  %v12620_v16 = vld [vmem:[#allocation40_spill] sm:$0xff]  ;;  %v2307_v61 = vadd.f32 %v2275_v48, %v2207_v45 }
 0x2d4   : > { %12615 = vst [vmem:[#allocation117_spill] sm:$0xff] %v9085_v62  ;;  %v12617_v28 = vld [vmem:[#allocation35_spill] sm:$0xff]  ;;  %v2875_v24 = vadd.f32 %v2843_v2, %v2775_v29  ;;  %v3344_v18 = vadd.f32 %v3312_v31, %v3244_v46  ;;  %v4382_v58 = vmul.f32 %v12620_v16, %v9079_v42  ;;  %v12621_v47 = vld [vmem:[#allocation41_spill] sm:$0xff]  ;;  %v12622_v32 = vld [vmem:[#allocation32_spill] sm:$0xff]  ;;  %v4550_v29 = vmul.f32 %v11971_v35, %v9093_v34 }
 0x2d5   : > { %v3813_v40 = vadd.f32 %v3781_v50, %v3713_v56  ;;  %v3881_v27 = vmul.f32 %v12618_v3, %v12617_v28  ;;  %v4450_v30 = vmul.f32 %v12621_v47, %v9081_v10  ;;  %v334_v0 = vld [vmem:[#allocation2 + $0x110] sm:$0xff]  ;;  %v3612_v57 = vmul.f32 %v12622_v32, %v9085_v62  ;;  %v12623_v56 = vld [vmem:[#allocation36_spill] sm:$0xff]  ;;  %v12624_v50 = vld [vmem:[#allocation90_spill] sm:$0xff] }
 0x2d6   : > { %v3981_v13 = vmul.f32 %v12624_v50, %v12623_v56  ;;  %v9103_v3 = vld [vmem:[#allocation2 + $0x19b] sm:$0xff]  ;;  %v402_v28 = vld [vmem:[#allocation2 + $0x111] sm:$0xff]  ;;  %v2975_v2 = vadd.f32 %v2943_v43, %v2875_v24  ;;  %v3444_v46 = vadd.f32 %v3412_v23, %v3344_v18  ;;  %v12627_v47 = vld [vmem:[#allocation62_spill] sm:$0xff] }
 0x2d7   : > { %v3913_v36 = vadd.f32 %v3881_v27, %v3813_v40  ;;  %12625 = vst [vmem:[#allocation119_spill] sm:$0xff] %v9103_v3  ;;  %v4482_v31 = vadd.f32 %v4450_v30, %v4382_v58  ;;  %v12626_v10 = vld [vmem:[#allocation37_spill] sm:$0xff]  ;;  %v12628_v45 = vld [vmem:[#allocation86_spill] sm:$0xff]  ;;  %v370_v40 = vmul.f32 %v12569_v6, %v334_v0  ;;  %v502_v50 = vld [vmem:[#allocation2 + $0x112] sm:$0xff]  ;;  %v4650_v43 = vmul.f32 %v12571_v59, %v9103_v3 }
 0x2d8   : > { %v4081_v48 = vmul.f32 %v12627_v47, %v12626_v10  ;;  %v4181_v62 = vmul.f32 %v12628_v45, %v11969_v33  ;;  %v9111_v27 = vld [vmem:[#allocation2 + $0x19c] sm:$0xff]  ;;  %v3544_v56 = vadd.f32 %v3512_v38, %v3444_v46  ;;  %v12631_v24 = vld [vmem:[#allocation39_spill] sm:$0xff]  ;;  %v5014_v47 = vadd.f32 %v1638_v60, %v969_v53  ;;  %v12633_v0 = vld [vmem:[#allocation46_spill] sm:$0xff] }
 0x2d9   : > { %v4013_v42 = vadd.f32 %v3981_v13, %v3913_v36  ;;  %12629 = vst [vmem:[#allocation122_spill] sm:$0xff] %v9111_v27  ;;  %v4582_v32 = vadd.f32 %v4550_v29, %v4482_v31  ;;  %v9116_v23 = vld [vmem:[#allocation2 + $0x19d] sm:$0xff]  ;;  %v438_v13 = vmul.f32 %v11908_v14, %v402_v28  ;;  %v5046_v30 = vadd.f32 %v2975_v2, %v2307_v61  ;;  %v602_v45 = vld [vmem:[#allocation2 + $0x113] sm:$0xff] }
 0x2da   : > { %12630 = vst [vmem:[#allocation121_spill] sm:$0xff] %v9116_v23  ;;  %v12632_v18 = vld [vmem:[#allocation53_spill] sm:$0xff]  ;;  %v4750_v6 = vmul.f32 %v12633_v0, %v9111_v27  ;;  %v538_v31 = vmul.f32 %v11411_v1, %v502_v50  ;;  %v702_v29 = vld [vmem:[#allocation2 + $0x114] sm:$0xff]  ;;  %v3644_v3 = vadd.f32 %v3612_v57, %v3544_v56 }
 0x2db   : > { %v4113_v36 = vadd.f32 %v4081_v48, %v4013_v42  ;;  %v4281_v58 = vmul.f32 %v12632_v18, %v12631_v24  ;;  %v4682_v34 = vadd.f32 %v4650_v43, %v4582_v32  ;;  %v9123_v38 = vld [vmem:[#allocation2 + $0x19e] sm:$0xff]  ;;  %v470_v46 = vadd.f32 %v438_v13, %v370_v40  ;;  %v12635_v28 = vld [vmem:[#allocation87_spill] sm:$0xff] }
 0x2dc   : > { %12634 = vst [vmem:[#allocation120_spill] sm:$0xff] %v9123_v38  ;;  %v4850_v42 = vmul.f32 %v11410_v63, %v9116_v23  ;;  %v1039_v53 = vmul.f32 %v12635_v28, %v11287_v55  ;;  %v638_v32 = vmul.f32 %v11284_v26, %v602_v45  ;;  %v802_v2 = vld [vmem:[#allocation2 + $0x115] sm:$0xff]  ;;  %v9133_v40 = vld [vmem:[#allocation2 + $0x140] sm:$0xff]  ;;  %v5110_v56 = vadd.f32 %v5046_v30, %v5014_v47  ;;  %v12639_v45 = vld [vmem:[#allocation6_spill] sm:$0xff] }
 0x2dd   : > { %v4213_v59 = vadd.f32 %v4181_v62, %v4113_v36  ;;  %v4782_v61 = vadd.f32 %v4750_v6, %v4682_v34  ;;  %v570_v60 = vadd.f32 %v538_v31, %v470_v46  ;;  %v12636_v48 = vld [vmem:[#allocation88_spill] sm:$0xff]  ;;  %12637 = vst [vmem:[#allocation42_spill] sm:$0xff] %v9133_v40  ;;  %v9135_v50 = vld [vmem:[#allocation2 + $0x141] sm:$0xff]  ;;  %v4950_v62 = vmul.f32 %v8722_v7, %v9123_v38 }
 0x2de   : > { %v1107_v43 = vmul.f32 %v12636_v48, %v11288_v11  ;;  %12638 = vst [vmem:[#allocation100_spill] sm:$0xff] %v9135_v50  ;;  %v738_v13 = vmul.f32 %v11285_v20, %v702_v29  ;;  %v902_v34 = vld [vmem:[#allocation2 + $0x116] sm:$0xff]  ;;  %v1207_v46 = vmul.f32 %v12639_v45, %v11289_v19  ;;  %v9142_v31 = vld [vmem:[#allocation2 + $0x142] sm:$0xff]  ;;  %v838_v48 = vmul.f32 %v11294_v8, %v802_v2 }
 0x2df   : > { %v4313_v57 = vadd.f32 %v4281_v58, %v4213_v59  ;;  %v4882_v36 = vadd.f32 %v4850_v42, %v4782_v61  ;;  %v670_v6 = vadd.f32 %v638_v32, %v570_v60  ;;  %12640 = vst [vmem:[#allocation51_spill] sm:$0xff] %v9142_v31  ;;  %v1708_v59 = vmul.f32 %v5638_v44, %v9133_v40  ;;  %v12641_v42 = vld [vmem:[#allocation5_spill] sm:$0xff] }
 0x2e0   : > { %v1139_v18 = vadd.f32 %v1107_v43, %v1039_v53  ;;  %v1776_v58 = vmul.f32 %v5650_v49, %v9135_v50  ;;  %v1307_v53 = vmul.f32 %v12641_v42, %v5620_v37  ;;  %v9151_v61 = vld [vmem:[#allocation2 + $0x143] sm:$0xff]  ;;  %v938_v60 = vmul.f32 %v11301_v4, %v902_v34  ;;  %v12648_v34 = vld [vmem:[#allocation7_spill] sm:$0xff] }
 0x2e1   : > { %v5078_v28 = vadd.f32 %v4313_v57, %v3644_v3  ;;  %v4982_v47 = vadd.f32 %v4950_v62, %v4882_v36  ;;  %v770_v30 = vadd.f32 %v738_v13, %v670_v6  ;;  %12642 = vst [vmem:[#allocation43_spill] sm:$0xff] %v9151_v61  ;;  %v12643_v3 = vld [vmem:[#allocation89_spill] sm:$0xff]  ;;  %v1876_v43 = vmul.f32 %v11359_v22, %v9142_v31  ;;  %v12645_v13 = vld [vmem:[#allocation11_spill] sm:$0xff] }
 0x2e2   : > { %v1239_v29 = vadd.f32 %v1207_v46, %v1139_v18  ;;  %v1407_v32 = vmul.f32 %v12643_v3, %v5629_v41  ;;  %v1808_v2 = vadd.f32 %v1776_v58, %v1708_v59  ;;  %v9158_v57 = vld [vmem:[#allocation2 + $0x144] sm:$0xff]  ;;  %v1507_v36 = vmul.f32 %v12645_v13, %v11305_v21  ;;  %v12647_v18 = vld [vmem:[#allocation4_spill] sm:$0xff] }
 0x2e3   : > { %12644 = vst [vmem:[#allocation108_spill] sm:$0xff] %v9158_v57  ;;  %v5142_v45 = vadd.f32 %v5078_v28, %v4982_v47  ;;  %v9162_v6 = vld [vmem:[#allocation2 + $0x145] sm:$0xff]  ;;  %v2376_v46 = vmul.f32 %v12647_v18, %v11364_v15  ;;  %v1607_v42 = vmul.f32 %v12648_v34, %v11746_v52  ;;  %v1976_v59 = vmul.f32 %v5658_v51, %v9151_v61  ;;  %v12653_v61 = vld [vmem:[#allocation8_spill] sm:$0xff] }
 0x2e4   : > { %v1339_v62 = vadd.f32 %v1307_v53, %v1239_v29  ;;  %12646 = vst [vmem:[#allocation47_spill] sm:$0xff] %v9162_v6  ;;  %v1908_v3 = vadd.f32 %v1876_v43, %v1808_v2  ;;  %v9170_v58 = vld [vmem:[#allocation2 + $0x146] sm:$0xff]  ;;  %v9174_v29 = vld [vmem:[#allocation2 + $0x170] sm:$0xff]  ;;  %v870_v31 = vadd.f32 %v838_v48, %v770_v30  ;;  %v2076_v18 = vmul.f32 %v11368_v39, %v9158_v57 }
 0x2e5   : > { %12649 = vst [vmem:[#allocation48_spill] sm:$0xff] %v9170_v58  ;;  %v12650_v28 = vld [vmem:[#allocation10_spill] sm:$0xff]  ;;  %12651 = vst [vmem:[#allocation55_spill] sm:$0xff] %v9174_v29  ;;  %v9176_v53 = vld [vmem:[#allocation2 + $0x171] sm:$0xff]  ;;  %v5174_v13 = vadd.f32 %v5142_v45, %v5110_v56  ;;  %v2176_v43 = vmul.f32 %v12597_v17, %v9162_v6  ;;  %v2544_v40 = vmul.f32 %v12653_v61, %v11744_v9 }
 0x2e6   : > { %v2444_v47 = vmul.f32 %v12650_v28, %v11366_v54  ;;  %12652 = vst [vmem:[#allocation52_spill] sm:$0xff] %v9176_v53  ;;  %v1439_v50 = vadd.f32 %v1407_v32, %v1339_v62  ;;  %v2008_v2 = vadd.f32 %v1976_v59, %v1908_v3  ;;  %v9184_v28 = vld [vmem:[#allocation2 + $0x172] sm:$0xff]  ;;  %v2276_v56 = vmul.f32 %v12598_v25, %v9170_v58  ;;  %v12660_v57 = vld [vmem:[#allocation94_spill] sm:$0xff]  ;;  %v9213_v17 = vld [vmem:[#allocation2 + $0x1a0] sm:$0xff] }
 0x2e7   : > { %12654 = vst [vmem:[#allocation54_spill] sm:$0xff] %v9184_v28  ;;  %v5213_v38 = vadd.f32 %v12595_v12, %v5174_v13  ;;  %v3045_v48 = vmul.f32 %v12116_v5, %v9174_v29  ;;  %v12655_v30 = vld [vmem:[#allocation27_spill] sm:$0xff]  ;;  %v12657_v59 = vld [vmem:[#allocation12_spill] sm:$0xff]  ;;  %v970_v13 = vadd.f32 %v938_v60, %v870_v31  ;;  %12670 = vst [vmem:[#allocation56_spill] sm:$0xff] %v9213_v17 }
 0x2e8   : > { %v2476_v34 = vadd.f32 %v2444_v47, %v2376_v46  ;;  %v3113_v32 = vmul.f32 %v12655_v30, %v9176_v53  ;;  %v1539_v45 = vadd.f32 %v1507_v36, %v1439_v50  ;;  %v2108_v62 = vadd.f32 %v2076_v18, %v2008_v2  ;;  %v12656_v46 = vld [vmem:[#allocation22_spill] sm:$0xff]  ;;  %v9195_v61 = vld [vmem:[#allocation2 + $0x173] sm:$0xff] }
 0x2e9   : > { %v2644_v47 = vmul.f32 %v12657_v59, %v12656_v46  ;;  %12658 = vst [vmem:[#allocation49_spill] sm:$0xff] %v9195_v61  ;;  %5245 = vst.msk [vmem:[%s6091_s10 + $0xb0] sm:$0xff] %vm171_vm0, %v5213_v38  ;;  %v12659_v6 = vld [vmem:[#allocation23_spill] sm:$0xff]  ;;  %v12661_v29 = vld [vmem:[#allocation28_spill] sm:$0xff] }
 0x2ea   : > { %v2576_v3 = vadd.f32 %v2544_v40, %v2476_v34  ;;  %v2744_v58 = vmul.f32 %v12660_v57, %v12659_v6  ;;  %v3145_v23 = vadd.f32 %v3113_v32, %v3045_v48  ;;  %v3213_v27 = vmul.f32 %v12661_v29, %v9184_v28  ;;  %v9203_v25 = vld [vmem:[#allocation2 + $0x174] sm:$0xff]  ;;  %v12666_v34 = vld [vmem:[#allocation25_spill] sm:$0xff]  ;;  %v12673_v6 = vld [vmem:[#allocation34_spill] sm:$0xff] }
 0x2eb   : > { %12662 = vst [vmem:[#allocation60_spill] sm:$0xff] %v9203_v25  ;;  %v9205_v50 = vld [vmem:[#allocation2 + $0x175] sm:$0xff]  ;;  %v12667_v59 = vld [vmem:[#allocation93_spill] sm:$0xff]  ;;  %v2208_v57 = vadd.f32 %v2176_v43, %v2108_v62 }
 0x2ec   : > { %12663 = vst [vmem:[#allocation58_spill] sm:$0xff] %v9205_v50  ;;  %v2676_v40 = vadd.f32 %v2644_v47, %v2576_v3  ;;  %v12664_v36 = vld [vmem:[#allocation24_spill] sm:$0xff]  ;;  %v12665_v18 = vld [vmem:[#allocation91_spill] sm:$0xff]  ;;  %v2944_v53 = vmul.f32 %v12667_v59, %v12666_v34  ;;  %v12668_v38 = vld [vmem:[#allocation33_spill] sm:$0xff]  ;;  %v3245_v48 = vadd.f32 %v3213_v27, %v3145_v23 }
 0x2ed   : > { %v2844_v2 = vmul.f32 %v12665_v18, %v12664_v36  ;;  %v12669_v31 = vld [vmem:[#allocation92_spill] sm:$0xff]  ;;  %v12671_v32 = vld [vmem:[#allocation29_spill] sm:$0xff]  ;;  %v1639_v18 = vadd.f32 %v1607_v42, %v1539_v45  ;;  %v12676_v59 = vld [vmem:[#allocation30_spill] sm:$0xff] }
 0x2ee   : > { %v3714_v60 = vmul.f32 %v12669_v31, %v12668_v38  ;;  %v3313_v28 = vmul.f32 %v12671_v32, %v9195_v61  ;;  %v9217_v29 = vld [vmem:[#allocation2 + $0x176] sm:$0xff]  ;;  %v12674_v3 = vld [vmem:[#allocation97_spill] sm:$0xff]  ;;  %v2776_v36 = vadd.f32 %v2744_v58, %v2676_v40  ;;  %v3413_v34 = vmul.f32 %v12676_v59, %v9203_v25 }
 0x2ef   : > { %12672 = vst [vmem:[#allocation61_spill] sm:$0xff] %v9217_v29  ;;  %v3782_v47 = vmul.f32 %v12674_v3, %v12673_v6  ;;  %v9221_v30 = vld [vmem:[#allocation2 + $0x1a1] sm:$0xff]  ;;  %v12677_v31 = vld [vmem:[#allocation31_spill] sm:$0xff]  ;;  %v12679_v62 = vld [vmem:[#allocation96_spill] sm:$0xff]  ;;  %v4383_v32 = vmul.f32 %v12620_v16, %v9213_v17 }
 0x2f0   : > { %12675 = vst [vmem:[#allocation50_spill] sm:$0xff] %v9221_v30  ;;  %v3513_v38 = vmul.f32 %v12677_v31, %v9205_v50  ;;  %v3345_v43 = vadd.f32 %v3313_v28, %v3245_v48  ;;  %v12678_v23 = vld [vmem:[#allocation35_spill] sm:$0xff]  ;;  %v9231_v12 = vld [vmem:[#allocation2 + $0x1a2] sm:$0xff]  ;;  %v2876_v3 = vadd.f32 %v2844_v2, %v2776_v36  ;;  %v12681_v42 = vld [vmem:[#allocation32_spill] sm:$0xff]  ;;  %v2308_v48 = vadd.f32 %v2276_v56, %v2208_v57 }
 0x2f1   : > { %v3814_v27 = vadd.f32 %v3782_v47, %v3714_v60  ;;  %v3882_v61 = vmul.f32 %v12679_v62, %v12678_v23  ;;  %12680 = vst [vmem:[#allocation57_spill] sm:$0xff] %v9231_v12  ;;  %v3613_v58 = vmul.f32 %v12681_v42, %v9217_v29  ;;  %v12682_v45 = vld [vmem:[#allocation36_spill] sm:$0xff]  ;;  %v12683_v40 = vld [vmem:[#allocation95_spill] sm:$0xff]  ;;  %v12684_v59 = vld [vmem:[#allocation41_spill] sm:$0xff] }
 0x2f2   : > { %v3982_v25 = vmul.f32 %v12683_v40, %v12682_v45  ;;  %v4451_v50 = vmul.f32 %v12684_v59, %v9221_v30  ;;  %v335_v28 = vld [vmem:[#allocation2 + $0x120] sm:$0xff]  ;;  %v3445_v47 = vadd.f32 %v3413_v34, %v3345_v43  ;;  %v2976_v2 = vadd.f32 %v2944_v53, %v2876_v3  ;;  %v12689_v34 = vld [vmem:[#allocation3_spill] sm:$0xff] }
 0x2f3   : > { %v403_v60 = vld [vmem:[#allocation2 + $0x121] sm:$0xff]  ;;  %v3914_v62 = vadd.f32 %v3882_v61, %v3814_v27  ;;  %v4551_v30 = vmul.f32 %v11971_v35, %v9231_v12  ;;  %v371_v61 = vmul.f32 %v12689_v34, %v335_v28 }
 0x2f4   : > { %v12685_v23 = vld [vmem:[#allocation101_spill] sm:$0xff]  ;;  %v4483_v40 = vadd.f32 %v4451_v50, %v4383_v32  ;;  %v3545_v59 = vadd.f32 %v3513_v38, %v3445_v47  ;;  %v439_v57 = vmul.f32 %v11908_v14, %v403_v60  ;;  %v12690_v27 = vld [vmem:[#allocation98_spill] sm:$0xff] }
 0x2f5   : > { %v4082_v17 = vmul.f32 %v12685_v23, %v12626_v10  ;;  %v9241_v16 = vld [vmem:[#allocation2 + $0x1a3] sm:$0xff]  ;;  %v4014_v56 = vadd.f32 %v3982_v25, %v3914_v62  ;;  %v4282_v23 = vmul.f32 %v12690_v27, %v12631_v24  ;;  %v5015_v25 = vadd.f32 %v1639_v18, %v970_v13  ;;  %v12694_v24 = vld [vmem:[#allocation99_spill] sm:$0xff] }
 0x2f6   : > { %12686 = vst [vmem:[#allocation15_spill] sm:$0xff] %v9241_v16  ;;  %v9243_v36 = vld [vmem:[#allocation2 + $0x1a4] sm:$0xff]  ;;  %v4583_v10 = vadd.f32 %v4551_v30, %v4483_v40  ;;  %v471_v28 = vadd.f32 %v439_v57, %v371_v61  ;;  %v3645_v62 = vadd.f32 %v3613_v58, %v3545_v59  ;;  %v5047_v27 = vadd.f32 %v2976_v2, %v2308_v48  ;;  %v9269_v13 = vld [vmem:[#allocation2 + $0x151] sm:$0xff] }
 0x2f7   : > { %12687 = vst [vmem:[#allocation59_spill] sm:$0xff] %v9243_v36  ;;  %v12688_v29 = vld [vmem:[#allocation9_spill] sm:$0xff]  ;;  %v4114_v50 = vadd.f32 %v4082_v17, %v4014_v56  ;;  %v12695_v17 = vld [vmem:[#allocation102_spill] sm:$0xff]  ;;  %12697 = vst [vmem:[#allocation20_spill] sm:$0xff] %v9269_v13 }
 0x2f8   : > { %v4182_v42 = vmul.f32 %v12688_v29, %v11969_v33  ;;  %v503_v45 = vld [vmem:[#allocation2 + $0x122] sm:$0xff]  ;;  %v4751_v29 = vmul.f32 %v12633_v0, %v9243_v36  ;;  %v1040_v36 = vmul.f32 %v12694_v24, %v11287_v55  ;;  %v1108_v56 = vmul.f32 %v12695_v17, %v11288_v11  ;;  %v9267_v0 = vld [vmem:[#allocation2 + $0x150] sm:$0xff] }
 0x2f9   : > { %v603_v43 = vld [vmem:[#allocation2 + $0x123] sm:$0xff]  ;;  %v539_v60 = vmul.f32 %v11411_v1, %v503_v45  ;;  %12696 = vst [vmem:[#allocation19_spill] sm:$0xff] %v9267_v0  ;;  %v12698_v2 = vld [vmem:[#allocation103_spill] sm:$0xff] }
 0x2fa   : > { %v12691_v53 = vld [vmem:[#allocation45_spill] sm:$0xff]  ;;  %v639_v30 = vmul.f32 %v11284_v26, %v603_v43  ;;  %v4214_v40 = vadd.f32 %v4182_v42, %v4114_v50  ;;  %v1140_v24 = vadd.f32 %v1108_v56, %v1040_v36  ;;  %v1208_v61 = vmul.f32 %v12698_v2, %v11289_v19  ;;  %v9278_v57 = vld [vmem:[#allocation2 + $0x152] sm:$0xff] }
 0x2fb   : > { %v4651_v3 = vmul.f32 %v12691_v53, %v9241_v16  ;;  %v9257_v32 = vld [vmem:[#allocation2 + $0x1a5] sm:$0xff]  ;;  %v571_v16 = vadd.f32 %v539_v60, %v471_v28  ;;  %12699 = vst [vmem:[#allocation69_spill] sm:$0xff] %v9278_v57  ;;  %v9284_v50 = vld [vmem:[#allocation2 + $0x153] sm:$0xff] }
 0x2fc   : > { %12692 = vst [vmem:[#allocation65_spill] sm:$0xff] %v9257_v32  ;;  %v9259_v38 = vld [vmem:[#allocation2 + $0x1a6] sm:$0xff]  ;;  %v4851_v59 = vmul.f32 %v11410_v63, %v9257_v32  ;;  %v4314_v58 = vadd.f32 %v4282_v23, %v4214_v40  ;;  %12700 = vst [vmem:[#allocation67_spill] sm:$0xff] %v9284_v50  ;;  %v1240_v28 = vadd.f32 %v1208_v61, %v1140_v24 }
 0x2fd   : > { %12693 = vst [vmem:[#allocation66_spill] sm:$0xff] %v9259_v38  ;;  %v703_v47 = vld [vmem:[#allocation2 + $0x124] sm:$0xff]  ;;  %v4683_v12 = vadd.f32 %v4651_v3, %v4583_v10  ;;  %v4951_v10 = vmul.f32 %v8722_v7, %v9259_v38  ;;  %v671_v45 = vadd.f32 %v639_v30, %v571_v16  ;;  %v5111_v3 = vadd.f32 %v5047_v27, %v5015_v25  ;;  %v9291_v27 = vld [vmem:[#allocation2 + $0x154] sm:$0xff] }
 0x2fe   : > { %v739_v42 = vmul.f32 %v11285_v20, %v703_v47  ;;  %v803_v48 = vld [vmem:[#allocation2 + $0x125] sm:$0xff]  ;;  %v1777_v7 = vmul.f32 %v5650_v49, %v9269_v13  ;;  %v5079_v23 = vadd.f32 %v4314_v58, %v3645_v62  ;;  %v1877_v25 = vmul.f32 %v11359_v22, %v9278_v57  ;;  %12702 = vst [vmem:[#allocation68_spill] sm:$0xff] %v9291_v27  ;;  %v12730_v38 = vld [vmem:[#allocation116_spill] sm:$0xff] }
 0x2ff   : > { %v4783_v18 = vadd.f32 %v4751_v29, %v4683_v12  ;;  %v903_v12 = vld [vmem:[#allocation2 + $0x126] sm:$0xff]  ;;  %v1709_v29 = vmul.f32 %v5638_v44, %v9267_v0  ;;  %v839_v30 = vmul.f32 %v11294_v8, %v803_v48  ;;  %v12705_v48 = vld [vmem:[#allocation107_spill] sm:$0xff] }
 0x300   : > { %v771_v16 = vadd.f32 %v739_v42, %v671_v45  ;;  %v12701_v36 = vld [vmem:[#allocation105_spill] sm:$0xff]  ;;  %v939_v17 = vmul.f32 %v11301_v4, %v903_v12  ;;  %v2445_v24 = vmul.f32 %v12705_v48, %v11366_v54  ;;  %v12707_v12 = vld [vmem:[#allocation110_spill] sm:$0xff] }
 0x301   : > { %v4883_v43 = vadd.f32 %v4851_v59, %v4783_v18  ;;  %v1308_v60 = vmul.f32 %v12701_v36, %v5620_v37  ;;  %v1809_v40 = vadd.f32 %v1777_v7, %v1709_v29  ;;  %v12703_v18 = vld [vmem:[#allocation104_spill] sm:$0xff]  ;;  %v1977_v59 = vmul.f32 %v5658_v51, %v9284_v50  ;;  %v9302_v2 = vld [vmem:[#allocation2 + $0x180] sm:$0xff] }
 0x302   : > { %v1408_v62 = vmul.f32 %v12703_v18, %v5629_v41  ;;  %12706 = vst [vmem:[#allocation64_spill] sm:$0xff] %v9302_v2  ;;  %v871_v61 = vadd.f32 %v839_v30, %v771_v16  ;;  %v1508_v29 = vmul.f32 %v12707_v12, %v11305_v21  ;;  %v2077_v7 = vmul.f32 %v11368_v39, %v9291_v27  ;;  %v12720_v50 = vld [vmem:[#allocation113_spill] sm:$0xff] }
 0x303   : > { %v4983_v47 = vadd.f32 %v4951_v10, %v4883_v43  ;;  %v1340_v56 = vadd.f32 %v1308_v60, %v1240_v28  ;;  %v1909_v58 = vadd.f32 %v1877_v25, %v1809_v40  ;;  %v12704_v10 = vld [vmem:[#allocation106_spill] sm:$0xff]  ;;  %v9310_v60 = vld [vmem:[#allocation2 + $0x155] sm:$0xff]  ;;  %v12728_v13 = vld [vmem:[#allocation117_spill] sm:$0xff] }
 0x304   : > { %v2377_v45 = vmul.f32 %v12704_v10, %v11364_v15  ;;  %v9308_v28 = vld [vmem:[#allocation2 + $0x181] sm:$0xff]  ;;  %12709 = vst [vmem:[#allocation72_spill] sm:$0xff] %v9310_v60  ;;  %v12711_v25 = vld [vmem:[#allocation112_spill] sm:$0xff] }
 0x305   : > { %v5143_v42 = vadd.f32 %v5079_v23, %v4983_v47  ;;  %v1440_v43 = vadd.f32 %v1408_v62, %v1340_v56  ;;  %12708 = vst [vmem:[#allocation74_spill] sm:$0xff] %v9308_v28  ;;  %v2009_v36 = vadd.f32 %v1977_v59, %v1909_v58  ;;  %v9312_v47 = vld [vmem:[#allocation2 + $0x156] sm:$0xff]  ;;  %v2545_v16 = vmul.f32 %v12711_v25, %v11744_v9  ;;  %v12712_v56 = vld [vmem:[#allocation109_spill] sm:$0xff] }
 0x306   : > { %12710 = vst [vmem:[#allocation70_spill] sm:$0xff] %v9312_v47  ;;  %v2477_v40 = vadd.f32 %v2445_v24, %v2377_v45  ;;  %v1608_v18 = vmul.f32 %v12712_v56, %v11746_v52  ;;  %v12713_v62 = vld [vmem:[#allocation111_spill] sm:$0xff]  ;;  %v9322_v59 = vld [vmem:[#allocation2 + $0x182] sm:$0xff]  ;;  %v971_v25 = vadd.f32 %v939_v17, %v871_v61  ;;  %v12724_v17 = vld [vmem:[#allocation28_spill] sm:$0xff] }
 0x307   : > { %v5175_v23 = vadd.f32 %v5143_v42, %v5111_v3  ;;  %v1540_v30 = vadd.f32 %v1508_v29, %v1440_v43  ;;  %v2645_v10 = vmul.f32 %v12713_v62, %v12656_v46  ;;  %v3046_v3 = vmul.f32 %v12116_v5, %v9302_v2  ;;  %12714 = vst [vmem:[#allocation71_spill] sm:$0xff] %v9322_v59  ;;  %v12715_v42 = vld [vmem:[#allocation81_spill] sm:$0xff]  ;;  %v12716_v24 = vld [vmem:[#allocation27_spill] sm:$0xff]  ;;  %v12718_v56 = vld [vmem:[#allocation18_spill] sm:$0xff] }
 0x308   : > { %v2109_v48 = vadd.f32 %v2077_v7, %v2009_v36  ;;  %v2577_v45 = vadd.f32 %v2545_v16, %v2477_v40  ;;  %v3114_v12 = vmul.f32 %v12716_v24, %v9308_v28  ;;  %v12717_v43 = vld [vmem:[#allocation17_spill] sm:$0xff]  ;;  %v2277_v27 = vmul.f32 %v12718_v56, %v9312_v47  ;;  %v12719_v62 = vld [vmem:[#allocation23_spill] sm:$0xff]  ;;  %v12722_v7 = vld [vmem:[#allocation24_spill] sm:$0xff] }
 0x309   : > { %v5214_v58 = vadd.f32 %v12715_v42, %v5175_v23  ;;  %v2177_v29 = vmul.f32 %v12717_v43, %v9310_v60  ;;  %v2745_v57 = vmul.f32 %v12720_v50, %v12719_v62  ;;  %v9333_v2 = vld [vmem:[#allocation2 + $0x183] sm:$0xff]  ;;  %v3214_v61 = vmul.f32 %v12724_v17, %v9322_v59  ;;  %v9365_v62 = vld [vmem:[#allocation2 + $0x1b2] sm:$0xff] }
 0x30a   : > { %12721 = vst [vmem:[#allocation76_spill] sm:$0xff] %v9333_v2  ;;  %v2677_v23 = vadd.f32 %v2645_v10, %v2577_v45  ;;  %v12723_v36 = vld [vmem:[#allocation114_spill] sm:$0xff]  ;;  %v3146_v16 = vadd.f32 %v3114_v12, %v3046_v3  ;;  %v12727_v28 = vld [vmem:[#allocation25_spill] sm:$0xff]  ;;  %v12731_v10 = vld [vmem:[#allocation115_spill] sm:$0xff]  ;;  %v1640_v12 = vadd.f32 %v1608_v18, %v1540_v30 }
 0x30b   : > { %5246 = vst.msk [vmem:[%s6091_s10 + $0xb8] sm:$0xff] %vm171_vm0, %v5214_v58  ;;  %v2845_v40 = vmul.f32 %v12723_v36, %v12722_v7  ;;  %v9341_v42 = vld [vmem:[#allocation2 + $0x184] sm:$0xff]  ;;  %v2209_v47 = vadd.f32 %v2177_v29, %v2109_v48  ;;  %v2945_v50 = vmul.f32 %v12728_v13, %v12727_v28  ;;  %v3783_v58 = vmul.f32 %v12731_v10, %v12673_v6  ;;  %v9351_v45 = vld [vmem:[#allocation2 + $0x1b0] sm:$0xff]  ;;  %v12740_v18 = vld [vmem:[#allocation40_spill] sm:$0xff] }
 0x30c   : > { %12725 = vst [vmem:[#allocation75_spill] sm:$0xff] %v9341_v42  ;;  %v9343_v60 = vld [vmem:[#allocation2 + $0x185] sm:$0xff]  ;;  %12732 = vst [vmem:[#allocation77_spill] sm:$0xff] %v9351_v45  ;;  %v9353_v3 = vld [vmem:[#allocation2 + $0x1b1] sm:$0xff]  ;;  %v2777_v36 = vadd.f32 %v2745_v57, %v2677_v23  ;;  %v3246_v59 = vadd.f32 %v3214_v61, %v3146_v16  ;;  %v4384_v23 = vmul.f32 %v12740_v18, %v9351_v45 }
 0x30d   : > { %12726 = vst [vmem:[#allocation73_spill] sm:$0xff] %v9343_v60  ;;  %v12729_v0 = vld [vmem:[#allocation33_spill] sm:$0xff]  ;;  %12733 = vst [vmem:[#allocation78_spill] sm:$0xff] %v9353_v3  ;;  %v12736_v13 = vld [vmem:[#allocation30_spill] sm:$0xff] }
 0x30e   : > { %v3715_v32 = vmul.f32 %v12730_v38, %v12729_v0  ;;  %v12734_v7 = vld [vmem:[#allocation29_spill] sm:$0xff]  ;;  %v3414_v29 = vmul.f32 %v12736_v13, %v9341_v42  ;;  %v3514_v38 = vmul.f32 %v12677_v31, %v9343_v60  ;;  %v12737_v10 = vld [vmem:[#allocation35_spill] sm:$0xff]  ;;  %v12738_v6 = vld [vmem:[#allocation118_spill] sm:$0xff]  ;;  %12739 = vst [vmem:[#allocation80_spill] sm:$0xff] %v9365_v62  ;;  %v2877_v30 = vadd.f32 %v2845_v40, %v2777_v36 }
 0x30f   : > { %v3314_v17 = vmul.f32 %v12734_v7, %v9333_v2  ;;  %v9357_v48 = vld [vmem:[#allocation2 + $0x186] sm:$0xff]  ;;  %v3883_v28 = vmul.f32 %v12738_v6, %v12737_v10  ;;  %v2309_v7 = vadd.f32 %v2277_v27, %v2209_v47  ;;  %v12742_v42 = vld [vmem:[#allocation32_spill] sm:$0xff]  ;;  %v4552_v36 = vmul.f32 %v11971_v35, %v9365_v62 }
 0x310   : > { %12735 = vst [vmem:[#allocation82_spill] sm:$0xff] %v9357_v48  ;;  %v3815_v0 = vadd.f32 %v3783_v58, %v3715_v32  ;;  %v12741_v16 = vld [vmem:[#allocation41_spill] sm:$0xff]  ;;  %v336_v2 = vld [vmem:[#allocation2 + $0x128] sm:$0xff]  ;;  %v3614_v13 = vmul.f32 %v12742_v42, %v9357_v48  ;;  %v12743_v32 = vld [vmem:[#allocation36_spill] sm:$0xff]  ;;  %v2977_v40 = vadd.f32 %v2945_v50, %v2877_v30 }
 0x311   : > { %v3346_v57 = vadd.f32 %v3314_v17, %v3246_v59  ;;  %v4452_v61 = vmul.f32 %v12741_v16, %v9353_v3  ;;  %v12744_v58 = vld [vmem:[#allocation119_spill] sm:$0xff]  ;;  %v12746_v3 = vld [vmem:[#allocation37_spill] sm:$0xff]  ;;  %v12747_v16 = vld [vmem:[#allocation122_spill] sm:$0xff] }
 0x312   : > { %v3915_v60 = vadd.f32 %v3883_v28, %v3815_v0  ;;  %v3983_v31 = vmul.f32 %v12744_v58, %v12743_v32  ;;  %v9375_v6 = vld [vmem:[#allocation2 + $0x1b3] sm:$0xff]  ;;  %v404_v10 = vld [vmem:[#allocation2 + $0x129] sm:$0xff]  ;;  %v4083_v27 = vmul.f32 %v12747_v16, %v12746_v3  ;;  %v12748_v47 = vld [vmem:[#allocation121_spill] sm:$0xff]  ;;  %v372_v28 = vmul.f32 %v12689_v34, %v336_v2 }
 0x313   : > { %12745 = vst [vmem:[#allocation84_spill] sm:$0xff] %v9375_v6  ;;  %v3446_v59 = vadd.f32 %v3414_v29, %v3346_v57  ;;  %v4484_v17 = vadd.f32 %v4452_v61, %v4384_v23  ;;  %v4183_v48 = vmul.f32 %v12748_v47, %v11969_v33  ;;  %v9383_v0 = vld [vmem:[#allocation2 + $0x1b4] sm:$0xff]  ;;  %v504_v58 = vld [vmem:[#allocation2 + $0x12a] sm:$0xff]  ;;  %v4652_v50 = vmul.f32 %v12691_v53, %v9375_v6 }
 0x314   : > { %v4015_v45 = vadd.f32 %v3983_v31, %v3915_v60  ;;  %12749 = vst [vmem:[#allocation63_spill] sm:$0xff] %v9383_v0  ;;  %v9388_v29 = vld [vmem:[#allocation2 + $0x1b5] sm:$0xff]  ;;  %v440_v31 = vmul.f32 %v11908_v14, %v404_v10  ;;  %v5016_v16 = vadd.f32 %v1640_v12, %v971_v25  ;;  %v5048_v61 = vadd.f32 %v2977_v40, %v2309_v7  ;;  %v604_v47 = vld [vmem:[#allocation2 + $0x12b] sm:$0xff] }
 0x315   : > { %v3546_v32 = vadd.f32 %v3514_v38, %v3446_v59  ;;  %v4584_v42 = vadd.f32 %v4552_v36, %v4484_v17  ;;  %12750 = vst [vmem:[#allocation79_spill] sm:$0xff] %v9388_v29  ;;  %v12751_v30 = vld [vmem:[#allocation39_spill] sm:$0xff]  ;;  %v12752_v57 = vld [vmem:[#allocation120_spill] sm:$0xff]  ;;  %v12753_v2 = vld [vmem:[#allocation46_spill] sm:$0xff]  ;;  %v540_v17 = vmul.f32 %v11411_v1, %v504_v58 }
 0x316   : > { %v4115_v60 = vadd.f32 %v4083_v27, %v4015_v45  ;;  %v4283_v23 = vmul.f32 %v12752_v57, %v12751_v30  ;;  %v4752_v34 = vmul.f32 %v12753_v2, %v9383_v0  ;;  %v9395_v38 = vld [vmem:[#allocation2 + $0x1b6] sm:$0xff]  ;;  %v472_v59 = vadd.f32 %v440_v31, %v372_v28  ;;  %v704_v36 = vld [vmem:[#allocation2 + $0x12c] sm:$0xff] }
 0x317   : > { %v4684_v62 = vadd.f32 %v4652_v50, %v4584_v42  ;;  %12754 = vst [vmem:[#allocation83_spill] sm:$0xff] %v9395_v38  ;;  %v3646_v6 = vadd.f32 %v3614_v13, %v3546_v32  ;;  %v4852_v45 = vmul.f32 %v11410_v63, %v9388_v29  ;;  %v12755_v10 = vld [vmem:[#allocation42_spill] sm:$0xff]  ;;  %v640_v42 = vmul.f32 %v11284_v26, %v604_v47  ;;  %v12756_v27 = vld [vmem:[#allocation100_spill] sm:$0xff] }
 0x318   : > { %v4215_v53 = vadd.f32 %v4183_v48, %v4115_v60  ;;  %v1041_v25 = vmul.f32 %v12755_v10, %v11287_v55  ;;  %v572_v12 = vadd.f32 %v540_v17, %v472_v59  ;;  %v804_v40 = vld [vmem:[#allocation2 + $0x12d] sm:$0xff]  ;;  %v1109_v50 = vmul.f32 %v12756_v27, %v11288_v11  ;;  %v9405_v28 = vld [vmem:[#allocation2 + $0x158] sm:$0xff] }
 0x319   : > { %v4784_v7 = vadd.f32 %v4752_v34, %v4684_v62  ;;  %12757 = vst [vmem:[#allocation85_spill] sm:$0xff] %v9405_v28  ;;  %v9407_v58 = vld [vmem:[#allocation2 + $0x159] sm:$0xff]  ;;  %v9412_v48 = vld [vmem:[%s10258_s1 + $0x30] ss:$0 sm:$0xff]  ;;  %v5112_v62 = vadd.f32 %v5048_v61, %v5016_v16  ;;  %v740_v32 = vmul.f32 %v11285_v20, %v704_v36  ;;  %v1710_v27 = vmul.f32 %v5638_v44, %v9405_v28 }
 0x31a   : > { %12758 = vst [vmem:[#allocation90_spill] sm:$0xff] %v9407_v58  ;;  %v4315_v13 = vadd.f32 %v4283_v23, %v4215_v53  ;;  %v4952_v34 = vmul.f32 %v9412_v48, %v9395_v38  ;;  %v672_v60 = vadd.f32 %v640_v42, %v572_v12  ;;  %v904_v57 = vld [vmem:[#allocation2 + $0x12e] sm:$0xff]  ;;  %v1141_v47 = vadd.f32 %v1109_v50, %v1041_v25  ;;  %v9419_v10 = vld [vmem:[#allocation2 + $0x15a] sm:$0xff] }
 0x31b   : > { %v4884_v31 = vadd.f32 %v4852_v45, %v4784_v7  ;;  %v12759_v59 = vld [vmem:[#allocation51_spill] sm:$0xff]  ;;  %12760 = vst [vmem:[#allocation62_spill] sm:$0xff] %v9419_v10  ;;  %v840_v23 = vmul.f32 %v11294_v8, %v804_v40  ;;  %v1778_v16 = vmul.f32 %v5650_v49, %v9407_v58  ;;  %v9428_v12 = vld [vmem:[#allocation2 + $0x15b] sm:$0xff]  ;;  %v940_v42 = vmul.f32 %v11301_v4, %v904_v57 }
 0x31c   : > { %v1209_v17 = vmul.f32 %v12759_v59, %v11289_v19  ;;  %v5080_v53 = vadd.f32 %v4315_v13, %v3646_v6  ;;  %v772_v36 = vadd.f32 %v740_v32, %v672_v60  ;;  %v12761_v7 = vld [vmem:[#allocation43_spill] sm:$0xff]  ;;  %12762 = vst [vmem:[#allocation86_spill] sm:$0xff] %v9428_v12  ;;  %v12763_v6 = vld [vmem:[#allocation108_spill] sm:$0xff]  ;;  %v1878_v13 = vmul.f32 %v11359_v22, %v9419_v10 }
 0x31d   : > { %v4984_v61 = vadd.f32 %v4952_v34, %v4884_v31  ;;  %v1309_v25 = vmul.f32 %v12761_v7, %v5620_v37  ;;  %v1409_v50 = vmul.f32 %v12763_v6, %v5629_v41  ;;  %v1810_v40 = vadd.f32 %v1778_v16, %v1710_v27  ;;  %v9435_v59 = vld [vmem:[#allocation2 + $0x15c] sm:$0xff]  ;;  %v12765_v32 = vld [vmem:[#allocation47_spill] sm:$0xff] }
 0x31e   : > { %v1241_v45 = vadd.f32 %v1209_v17, %v1141_v47  ;;  %12764 = vst [vmem:[#allocation53_spill] sm:$0xff] %v9435_v59  ;;  %v1509_v31 = vmul.f32 %v12765_v32, %v11305_v21  ;;  %v9439_v60 = vld [vmem:[#allocation2 + $0x15d] sm:$0xff]  ;;  %v12767_v47 = vld [vmem:[#allocation55_spill] sm:$0xff]  ;;  %v1978_v27 = vmul.f32 %v5658_v51, %v9428_v12  ;;  %v872_v10 = vadd.f32 %v840_v23, %v772_v36  ;;  %v12773_v12 = vld [vmem:[#allocation54_spill] sm:$0xff] }
 0x31f   : > { %v5144_v58 = vadd.f32 %v5080_v53, %v4984_v61  ;;  %12766 = vst [vmem:[#allocation87_spill] sm:$0xff] %v9439_v60  ;;  %v2378_v17 = vmul.f32 %v12767_v47, %v11364_v15  ;;  %v12768_v57 = vld [vmem:[#allocation48_spill] sm:$0xff]  ;;  %v1910_v6 = vadd.f32 %v1878_v13, %v1810_v40  ;;  %v2078_v47 = vmul.f32 %v11368_v39, %v9435_v59 }
 0x320   : > { %v1341_v34 = vadd.f32 %v1309_v25, %v1241_v45  ;;  %v1609_v7 = vmul.f32 %v12768_v57, %v11746_v52  ;;  %v9447_v16 = vld [vmem:[#allocation2 + $0x15e] sm:$0xff]  ;;  %v9451_v45 = vld [vmem:[#allocation2 + $0x188] sm:$0xff]  ;;  %v2178_v13 = vmul.f32 %v12717_v43, %v9439_v60  ;;  %v2546_v38 = vmul.f32 %v12773_v12, %v11744_v9  ;;  %v12778_v60 = vld [vmem:[#allocation23_spill] sm:$0xff] }
 0x321   : > { %12769 = vst [vmem:[#allocation88_spill] sm:$0xff] %v9447_v16  ;;  %v12770_v53 = vld [vmem:[#allocation52_spill] sm:$0xff]  ;;  %12771 = vst [vmem:[#allocation6_spill] sm:$0xff] %v9451_v45  ;;  %v9453_v25 = vld [vmem:[#allocation2 + $0x189] sm:$0xff]  ;;  %v5176_v32 = vadd.f32 %v5144_v58, %v5112_v62  ;;  %v2010_v40 = vadd.f32 %v1978_v27, %v1910_v6  ;;  %v2278_v23 = vmul.f32 %v12718_v56, %v9447_v16 }
 0x322   : > { %v2446_v61 = vmul.f32 %v12770_v53, %v11366_v54  ;;  %12772 = vst [vmem:[#allocation5_spill] sm:$0xff] %v9453_v25  ;;  %v1441_v28 = vadd.f32 %v1409_v50, %v1341_v34  ;;  %v9461_v53 = vld [vmem:[#allocation2 + $0x18a] sm:$0xff]  ;;  %v9466_v58 = vld [vmem:[%s10259_s2] ss:$0 sm:$0xff]  ;;  %v3047_v36 = vmul.f32 %v12116_v5, %v9451_v45  ;;  %v3115_v50 = vmul.f32 %v12716_v24, %v9453_v25  ;;  %v12779_v59 = vld [vmem:[#allocation60_spill] sm:$0xff] }
 0x323   : > { %12774 = vst [vmem:[#allocation89_spill] sm:$0xff] %v9461_v53  ;;  %12775 = vst [vmem:[#allocation11_spill] sm:$0xff] %v9466_v58  ;;  %v5215_v62 = vadd.f32 %v9466_v58, %v5176_v32  ;;  %v2110_v12 = vadd.f32 %v2078_v47, %v2010_v40  ;;  %v12776_v6 = vld [vmem:[#allocation49_spill] sm:$0xff]  ;;  %v972_v32 = vadd.f32 %v940_v42, %v872_v10  ;;  %v12780_v45 = vld [vmem:[#allocation28_spill] sm:$0xff] }
 0x324   : > { %v2478_v57 = vadd.f32 %v2446_v61, %v2378_v17  ;;  %v1541_v34 = vadd.f32 %v1509_v31, %v1441_v28  ;;  %v2646_v27 = vmul.f32 %v12776_v6, %v12656_v46  ;;  %v9477_v61 = vld [vmem:[#allocation2 + $0x18b] sm:$0xff]  ;;  %v2746_v16 = vmul.f32 %v12779_v59, %v12778_v60  ;;  %v12783_v31 = vld [vmem:[#allocation24_spill] sm:$0xff]  ;;  %v12786_v6 = vld [vmem:[#allocation61_spill] sm:$0xff] }
 0x325   : > { %12777 = vst [vmem:[#allocation4_spill] sm:$0xff] %v9477_v61  ;;  %5247 = vst.msk [vmem:[%s6091_s10 + $0xc0] sm:$0xff] %vm171_vm0, %v5215_v62  ;;  %v3147_v29 = vadd.f32 %v3115_v50, %v3047_v36  ;;  %v3215_v0 = vmul.f32 %v12780_v45, %v9461_v53  ;;  %v9485_v56 = vld [vmem:[#allocation2 + $0x18c] sm:$0xff]  ;;  %v12787_v62 = vld [vmem:[#allocation33_spill] sm:$0xff]  ;;  %v2210_v59 = vadd.f32 %v2178_v13, %v2110_v12 }
 0x326   : > { %v2578_v17 = vadd.f32 %v2546_v38, %v2478_v57  ;;  %12781 = vst [vmem:[#allocation7_spill] sm:$0xff] %v9485_v56  ;;  %v9487_v28 = vld [vmem:[#allocation2 + $0x18d] sm:$0xff]  ;;  %v12785_v57 = vld [vmem:[#allocation25_spill] sm:$0xff]  ;;  %v12788_v10 = vld [vmem:[#allocation56_spill] sm:$0xff] }
 0x327   : > { %12782 = vst [vmem:[#allocation10_spill] sm:$0xff] %v9487_v28  ;;  %v12784_v47 = vld [vmem:[#allocation58_spill] sm:$0xff]  ;;  %v2946_v25 = vmul.f32 %v12786_v6, %v12785_v57  ;;  %v3716_v42 = vmul.f32 %v12788_v10, %v12787_v62  ;;  %v9495_v43 = vld [vmem:[#allocation2 + $0x1b8] sm:$0xff]  ;;  %v3247_v36 = vadd.f32 %v3215_v0, %v3147_v29  ;;  %v12790_v50 = vld [vmem:[#allocation29_spill] sm:$0xff] }
 0x328   : > { %v2678_v38 = vadd.f32 %v2646_v27, %v2578_v17  ;;  %v2846_v40 = vmul.f32 %v12784_v47, %v12783_v31  ;;  %12789 = vst [vmem:[#allocation8_spill] sm:$0xff] %v9495_v43  ;;  %v3315_v53 = vmul.f32 %v12790_v50, %v9477_v61  ;;  %v9499_v45 = vld [vmem:[#allocation2 + $0x18e] sm:$0xff]  ;;  %v9503_v24 = vld [vmem:[#allocation2 + $0x1b9] sm:$0xff]  ;;  %v1641_v47 = vadd.f32 %v1609_v7, %v1541_v34 }
 0x329   : > { %12791 = vst [vmem:[#allocation12_spill] sm:$0xff] %v9499_v45  ;;  %v12792_v60 = vld [vmem:[#allocation34_spill] sm:$0xff]  ;;  %12794 = vst [vmem:[#allocation94_spill] sm:$0xff] %v9503_v24  ;;  %v12796_v10 = vld [vmem:[#allocation31_spill] sm:$0xff]  ;;  %v4385_v50 = vmul.f32 %v12740_v18, %v9495_v43 }
 0x32a   : > { %v12793_v17 = vld [vmem:[#allocation50_spill] sm:$0xff]  ;;  %v2778_v31 = vadd.f32 %v2746_v16, %v2678_v38  ;;  %v3515_v62 = vmul.f32 %v12796_v10, %v9487_v28  ;;  %v3347_v13 = vadd.f32 %v3315_v53, %v3247_v36  ;;  %v12797_v29 = vld [vmem:[#allocation35_spill] sm:$0xff]  ;;  %v12798_v12 = vld [vmem:[#allocation57_spill] sm:$0xff]  ;;  %v2310_v36 = vadd.f32 %v2278_v23, %v2210_v59 }
 0x32b   : > { %v3784_v27 = vmul.f32 %v12793_v17, %v12792_v60  ;;  %v12795_v6 = vld [vmem:[#allocation30_spill] sm:$0xff]  ;;  %v3884_v61 = vmul.f32 %v12798_v12, %v12797_v29  ;;  %v9513_v58 = vld [vmem:[#allocation2 + $0x1ba] sm:$0xff]  ;;  %v12802_v38 = vld [vmem:[#allocation15_spill] sm:$0xff] }
 0x32c   : > { %v3415_v57 = vmul.f32 %v12795_v6, %v9485_v56  ;;  %12799 = vst [vmem:[#allocation91_spill] sm:$0xff] %v9513_v58  ;;  %v2878_v17 = vadd.f32 %v2846_v40, %v2778_v31  ;;  %v12800_v7 = vld [vmem:[#allocation32_spill] sm:$0xff]  ;;  %v12803_v6 = vld [vmem:[#allocation41_spill] sm:$0xff]  ;;  %v12804_v29 = vld [vmem:[#allocation59_spill] sm:$0xff] }
 0x32d   : > { %v3816_v0 = vadd.f32 %v3784_v27, %v3716_v42  ;;  %v3615_v16 = vmul.f32 %v12800_v7, %v9499_v45  ;;  %v12801_v34 = vld [vmem:[#allocation36_spill] sm:$0xff]  ;;  %v4453_v28 = vmul.f32 %v12803_v6, %v9503_v24  ;;  %v4084_v43 = vmul.f32 %v12804_v29, %v12746_v3  ;;  %v12807_v45 = vld [vmem:[#allocation65_spill] sm:$0xff] }
 0x32e   : > { %v3984_v56 = vmul.f32 %v12802_v38, %v12801_v34  ;;  %v337_v53 = vld [vmem:[#allocation2 + $0x138] sm:$0xff]  ;;  %v3447_v27 = vadd.f32 %v3415_v57, %v3347_v13  ;;  %v2978_v40 = vadd.f32 %v2946_v25, %v2878_v17  ;;  %v4184_v7 = vmul.f32 %v12807_v45, %v11969_v33  ;;  %v12808_v57 = vld [vmem:[#allocation3_spill] sm:$0xff]  ;;  %v12810_v25 = vld [vmem:[#allocation45_spill] sm:$0xff] }
 0x32f   : > { %v405_v42 = vld [vmem:[#allocation2 + $0x139] sm:$0xff]  ;;  %v3916_v12 = vadd.f32 %v3884_v61, %v3816_v0  ;;  %v4485_v38 = vadd.f32 %v4453_v28, %v4385_v50  ;;  %v4553_v24 = vmul.f32 %v11971_v35, %v9513_v58  ;;  %v373_v61 = vmul.f32 %v12808_v57, %v337_v53  ;;  %v12809_v0 = vld [vmem:[#allocation66_spill] sm:$0xff] }
 0x330   : > { %v9523_v18 = vld [vmem:[#allocation2 + $0x1bb] sm:$0xff]  ;;  %v3547_v6 = vadd.f32 %v3515_v62, %v3447_v27  ;;  %v441_v59 = vmul.f32 %v11908_v14, %v405_v42  ;;  %v4284_v29 = vmul.f32 %v12809_v0, %v12751_v30  ;;  %v5049_v0 = vadd.f32 %v2978_v40, %v2310_v36  ;;  %v12813_v30 = vld [vmem:[#allocation19_spill] sm:$0xff]  ;;  %v9549_v33 = vld [vmem:[#allocation2 + $0x168] sm:$0xff] }
 0x331   : > { %12805 = vst [vmem:[#allocation93_spill] sm:$0xff] %v9523_v18  ;;  %v9525_v31 = vld [vmem:[#allocation2 + $0x1bc] sm:$0xff]  ;;  %v4016_v23 = vadd.f32 %v3984_v56, %v3916_v12  ;;  %v4585_v3 = vadd.f32 %v4553_v24, %v4485_v38  ;;  %v4653_v17 = vmul.f32 %v12810_v25, %v9523_v18  ;;  %v5017_v56 = vadd.f32 %v1641_v47, %v972_v32  ;;  %v9551_v32 = vld [vmem:[#allocation2 + $0x169] sm:$0xff] }
 0x332   : > { %12806 = vst [vmem:[#allocation92_spill] sm:$0xff] %v9525_v31  ;;  %v505_v34 = vld [vmem:[#allocation2 + $0x13a] sm:$0xff]  ;;  %v4753_v45 = vmul.f32 %v12753_v2, %v9525_v31  ;;  %v473_v53 = vadd.f32 %v441_v59, %v373_v61  ;;  %v3647_v12 = vadd.f32 %v3615_v16, %v3547_v6  ;;  %v1042_v31 = vmul.f32 %v12813_v30, %v11287_v55  ;;  %v9560_v59 = vld [vmem:[#allocation2 + $0x16a] sm:$0xff] }
 0x333   : > { %v605_v13 = vld [vmem:[#allocation2 + $0x13b] sm:$0xff]  ;;  %v4116_v28 = vadd.f32 %v4084_v43, %v4016_v23  ;;  %v541_v42 = vmul.f32 %v11411_v1, %v505_v34  ;;  %v4685_v58 = vadd.f32 %v4653_v17, %v4585_v3  ;;  %12815 = vst [vmem:[#allocation95_spill] sm:$0xff] %v9549_v33  ;;  %12816 = vst [vmem:[#allocation101_spill] sm:$0xff] %v9551_v32 }
 0x334   : > { %v9539_v50 = vld [vmem:[#allocation2 + $0x1bd] sm:$0xff]  ;;  %v641_v24 = vmul.f32 %v11284_v26, %v605_v13  ;;  %12818 = vst [vmem:[#allocation9_spill] sm:$0xff] %v9560_v59  ;;  %v5113_v17 = vadd.f32 %v5049_v0, %v5017_v56  ;;  %v1879_v56 = vmul.f32 %v11359_v22, %v9560_v59  ;;  %v9573_v0 = vld [vmem:[#allocation2 + $0x16c] sm:$0xff] }
 0x335   : > { %12811 = vst [vmem:[#allocation97_spill] sm:$0xff] %v9539_v50  ;;  %v9541_v62 = vld [vmem:[#allocation2 + $0x1be] sm:$0xff]  ;;  %v4216_v38 = vadd.f32 %v4184_v7, %v4116_v28  ;;  %v573_v18 = vadd.f32 %v541_v42, %v473_v53  ;;  %v4785_v47 = vadd.f32 %v4753_v45, %v4685_v58  ;;  %v4853_v6 = vmul.f32 %v11410_v63, %v9539_v50  ;;  %v9566_v53 = vld [vmem:[#allocation2 + $0x16b] sm:$0xff] }
 0x336   : > { %12812 = vst [vmem:[#allocation96_spill] sm:$0xff] %v9541_v62  ;;  %v705_v27 = vld [vmem:[#allocation2 + $0x13c] sm:$0xff]  ;;  %v4953_v3 = vmul.f32 %v9412_v48, %v9541_v62  ;;  %v1711_v45 = vmul.f32 %v5638_v44, %v9549_v33  ;;  %v1779_v28 = vmul.f32 %v5650_v49, %v9551_v32  ;;  %12819 = vst [vmem:[#allocation98_spill] sm:$0xff] %v9566_v53  ;;  %v12839_v59 = vld [vmem:[#allocation75_spill] sm:$0xff] }
 0x337   : > { %v12814_v43 = vld [vmem:[#allocation20_spill] sm:$0xff]  ;;  %v741_v7 = vmul.f32 %v11285_v20, %v705_v27  ;;  %v4316_v16 = vadd.f32 %v4284_v29, %v4216_v38  ;;  %v673_v34 = vadd.f32 %v641_v24, %v573_v18  ;;  %v12817_v40 = vld [vmem:[#allocation69_spill] sm:$0xff]  ;;  %v4885_v13 = vadd.f32 %v4853_v6, %v4785_v47  ;;  %12821 = vst [vmem:[#allocation99_spill] sm:$0xff] %v9573_v0  ;;  %v12847_v62 = vld [vmem:[#allocation82_spill] sm:$0xff] }
 0x338   : > { %v1110_v23 = vmul.f32 %v12814_v43, %v11288_v11  ;;  %v805_v36 = vld [vmem:[#allocation2 + $0x13d] sm:$0xff]  ;;  %v1210_v61 = vmul.f32 %v12817_v40, %v11289_v19  ;;  %v1811_v43 = vadd.f32 %v1779_v28, %v1711_v45 }
 0x339   : > { %v905_v58 = vld [vmem:[#allocation2 + $0x13e] sm:$0xff]  ;;  %v5081_v29 = vadd.f32 %v4316_v16, %v3647_v12  ;;  %v773_v18 = vadd.f32 %v741_v7, %v673_v34  ;;  %v4985_v24 = vadd.f32 %v4953_v3, %v4885_v13  ;;  %v841_v38 = vmul.f32 %v11294_v8, %v805_v36 }
 0x33a   : > { %v1142_v30 = vadd.f32 %v1110_v23, %v1042_v31  ;;  %v12820_v31 = vld [vmem:[#allocation67_spill] sm:$0xff]  ;;  %v941_v23 = vmul.f32 %v11301_v4, %v905_v58  ;;  %v12822_v6 = vld [vmem:[#allocation68_spill] sm:$0xff]  ;;  %v1979_v7 = vmul.f32 %v5658_v51, %v9566_v53  ;;  %v1911_v34 = vadd.f32 %v1879_v56, %v1811_v43  ;;  %v12846_v33 = vld [vmem:[#allocation25_spill] sm:$0xff] }
 0x33b   : > { %v1310_v27 = vmul.f32 %v12820_v31, %v5620_v37  ;;  %v1410_v12 = vmul.f32 %v12822_v6, %v5629_v41  ;;  %v5145_v16 = vadd.f32 %v5081_v29, %v4985_v24  ;;  %v12823_v3 = vld [vmem:[#allocation64_spill] sm:$0xff]  ;;  %v873_v13 = vadd.f32 %v841_v38, %v773_v18  ;;  %v9592_v24 = vld [vmem:[#allocation2 + $0x16d] sm:$0xff]  ;;  %v12848_v50 = vld [vmem:[#allocation33_spill] sm:$0xff] }
 0x33c   : > { %v1242_v42 = vadd.f32 %v1210_v61, %v1142_v30  ;;  %v2379_v36 = vmul.f32 %v12823_v3, %v11364_v15  ;;  %v12824_v30 = vld [vmem:[#allocation74_spill] sm:$0xff]  ;;  %v9584_v61 = vld [vmem:[#allocation2 + $0x198] sm:$0xff]  ;;  %12828 = vst [vmem:[#allocation105_spill] sm:$0xff] %v9592_v24  ;;  %v12830_v6 = vld [vmem:[#allocation71_spill] sm:$0xff] }
 0x33d   : > { %v2447_v40 = vmul.f32 %v12824_v30, %v11366_v54  ;;  %12825 = vst [vmem:[#allocation102_spill] sm:$0xff] %v9584_v61  ;;  %v12826_v58 = vld [vmem:[#allocation72_spill] sm:$0xff]  ;;  %v5177_v29 = vadd.f32 %v5145_v16, %v5113_v17  ;;  %v9594_v43 = vld [vmem:[#allocation2 + $0x16e] sm:$0xff]  ;;  %v2547_v18 = vmul.f32 %v12830_v6, %v11744_v9  ;;  %v3048_v17 = vmul.f32 %v12116_v5, %v9584_v61 }
 0x33e   : > { %v1342_v47 = vadd.f32 %v1310_v27, %v1242_v42  ;;  %v1510_v28 = vmul.f32 %v12826_v58, %v11305_v21  ;;  %v2079_v42 = vmul.f32 %v11368_v39, %v9573_v0  ;;  %v9590_v31 = vld [vmem:[#allocation2 + $0x199] sm:$0xff]  ;;  %v2011_v27 = vadd.f32 %v1979_v7, %v1911_v34  ;;  %12829 = vst [vmem:[#allocation104_spill] sm:$0xff] %v9594_v43  ;;  %v12834_v16 = vld [vmem:[#allocation11_spill] sm:$0xff] }
 0x33f   : > { %12827 = vst [vmem:[#allocation103_spill] sm:$0xff] %v9590_v31  ;;  %v2479_v56 = vadd.f32 %v2447_v40, %v2379_v36  ;;  %v12832_v3 = vld [vmem:[#allocation76_spill] sm:$0xff]  ;;  %v5216_v34 = vadd.f32 %v12834_v16, %v5177_v29  ;;  %v12835_v40 = vld [vmem:[#allocation27_spill] sm:$0xff]  ;;  %v973_v6 = vadd.f32 %v941_v23, %v873_v13 }
 0x340   : > { %v1442_v45 = vadd.f32 %v1410_v12, %v1342_v47  ;;  %v12831_v47 = vld [vmem:[#allocation70_spill] sm:$0xff]  ;;  %v2647_v30 = vmul.f32 %v12832_v3, %v12656_v46  ;;  %v9604_v7 = vld [vmem:[#allocation2 + $0x19a] sm:$0xff]  ;;  %v2111_v58 = vadd.f32 %v2079_v42, %v2011_v27  ;;  %v3116_v0 = vmul.f32 %v12835_v40, %v9590_v31  ;;  %v12838_v3 = vld [vmem:[#allocation23_spill] sm:$0xff] }
 0x341   : > { %v1610_v12 = vmul.f32 %v12831_v47, %v11746_v52  ;;  %12833 = vst [vmem:[#allocation106_spill] sm:$0xff] %v9604_v7  ;;  %v2579_v36 = vadd.f32 %v2547_v18, %v2479_v56  ;;  %v12837_v47 = vld [vmem:[#allocation18_spill] sm:$0xff]  ;;  %v2747_v32 = vmul.f32 %v12839_v59, %v12838_v3  ;;  %v9615_v61 = vld [vmem:[#allocation2 + $0x19b] sm:$0xff]  ;;  %5248 = vst.msk [vmem:[%s6091_s10 + $0xc8] sm:$0xff] %vm171_vm0, %v5216_v34 }
 0x342   : > { %v1542_v38 = vadd.f32 %v1510_v28, %v1442_v45  ;;  %v12836_v45 = vld [vmem:[#allocation17_spill] sm:$0xff]  ;;  %v2279_v53 = vmul.f32 %v12837_v47, %v9594_v43  ;;  %12840 = vst [vmem:[#allocation107_spill] sm:$0xff] %v9615_v61  ;;  %v12841_v42 = vld [vmem:[#allocation24_spill] sm:$0xff]  ;;  %v3148_v18 = vadd.f32 %v3116_v0, %v3048_v17  ;;  %v2947_v59 = vmul.f32 %v12847_v62, %v12846_v33  ;;  %v9635_v0 = vld [vmem:[#allocation2 + $0x1c9] sm:$0xff] }
 0x343   : > { %v2179_v28 = vmul.f32 %v12836_v45, %v9592_v24  ;;  %v2679_v29 = vadd.f32 %v2647_v30, %v2579_v36  ;;  %v12842_v27 = vld [vmem:[#allocation73_spill] sm:$0xff]  ;;  %v12843_v23 = vld [vmem:[#allocation28_spill] sm:$0xff]  ;;  %v12850_v30 = vld [vmem:[#allocation78_spill] sm:$0xff]  ;;  %12852 = vst [vmem:[#allocation111_spill] sm:$0xff] %v9635_v0 }
 0x344   : > { %v2847_v56 = vmul.f32 %v12842_v27, %v12841_v42  ;;  %v3216_v13 = vmul.f32 %v12843_v23, %v9604_v7  ;;  %v9623_v31 = vld [vmem:[#allocation2 + $0x19c] sm:$0xff]  ;;  %v3785_v34 = vmul.f32 %v12850_v30, %v12792_v60  ;;  %v9633_v36 = vld [vmem:[#allocation2 + $0x1c8] sm:$0xff]  ;;  %v1642_v17 = vadd.f32 %v1610_v12, %v1542_v38  ;;  %v12856_v30 = vld [vmem:[#allocation35_spill] sm:$0xff] }
 0x345   : > { %12844 = vst [vmem:[#allocation110_spill] sm:$0xff] %v9623_v31  ;;  %v9625_v24 = vld [vmem:[#allocation2 + $0x19d] sm:$0xff]  ;;  %v2211_v43 = vadd.f32 %v2179_v28, %v2111_v58  ;;  %12851 = vst [vmem:[#allocation109_spill] sm:$0xff] %v9633_v36  ;;  %v2779_v27 = vadd.f32 %v2747_v32, %v2679_v29  ;;  %v9639_v58 = vld [vmem:[#allocation2 + $0x1ca] sm:$0xff] }
 0x346   : > { %12845 = vst [vmem:[#allocation112_spill] sm:$0xff] %v9625_v24  ;;  %v12849_v3 = vld [vmem:[#allocation77_spill] sm:$0xff]  ;;  %v3248_v7 = vadd.f32 %v3216_v13, %v3148_v18  ;;  %12854 = vst [vmem:[#allocation81_spill] sm:$0xff] %v9639_v58  ;;  %v12855_v62 = vld [vmem:[#allocation30_spill] sm:$0xff] }
 0x347   : > { %v3717_v46 = vmul.f32 %v12849_v3, %v12848_v50  ;;  %v12853_v42 = vld [vmem:[#allocation29_spill] sm:$0xff]  ;;  %v3416_v28 = vmul.f32 %v12855_v62, %v9623_v31  ;;  %v3516_v3 = vmul.f32 %v12796_v10, %v9625_v24  ;;  %v12857_v60 = vld [vmem:[#allocation80_spill] sm:$0xff]  ;;  %v9647_v40 = vld [vmem:[#allocation2 + $0x1cb] sm:$0xff]  ;;  %v2879_v38 = vadd.f32 %v2847_v56, %v2779_v27 }
 0x348   : > { %v3316_v23 = vmul.f32 %v12853_v42, %v9615_v61  ;;  %v3885_v33 = vmul.f32 %v12857_v60, %v12856_v30  ;;  %12858 = vst [vmem:[#allocation113_spill] sm:$0xff] %v9647_v40  ;;  %v9649_v12 = vld [vmem:[#allocation2 + $0x19e] sm:$0xff]  ;;  %v2311_v62 = vadd.f32 %v2279_v53, %v2211_v43  ;;  %v4554_v60 = vmul.f32 %v11971_v35, %v9639_v58  ;;  %v9659_v30 = vld [vmem:[#allocation2 + $0x1cc] sm:$0xff] }
 0x349   : > { %v3817_v50 = vadd.f32 %v3785_v34, %v3717_v46  ;;  %12859 = vst [vmem:[#allocation114_spill] sm:$0xff] %v9649_v12  ;;  %v12860_v29 = vld [vmem:[#allocation40_spill] sm:$0xff]  ;;  %v12861_v13 = vld [vmem:[#allocation41_spill] sm:$0xff]  ;;  %12864 = vst [vmem:[#allocation117_spill] sm:$0xff] %v9659_v30  ;;  %v2979_v56 = vadd.f32 %v2947_v59, %v2879_v38  ;;  %v4754_v59 = vmul.f32 %v12753_v2, %v9659_v30 }
 0x34a   : > { %v3348_v32 = vadd.f32 %v3316_v23, %v3248_v7  ;;  %v4386_v18 = vmul.f32 %v12860_v29, %v9633_v36  ;;  %v4454_v61 = vmul.f32 %v12861_v13, %v9635_v0  ;;  %v338_v31 = vld [vmem:[#allocation2 + $0x140] sm:$0xff]  ;;  %v12862_v24 = vld [vmem:[#allocation36_spill] sm:$0xff]  ;;  %v4654_v36 = vmul.f32 %v12810_v25, %v9647_v40  ;;  %v12872_v25 = vld [vmem:[#allocation83_spill] sm:$0xff] }
 0x34b   : > { %v3917_v42 = vadd.f32 %v3885_v33, %v3817_v50  ;;  %v12863_v46 = vld [vmem:[#allocation84_spill] sm:$0xff]  ;;  %v406_v7 = vld [vmem:[#allocation2 + $0x141] sm:$0xff]  ;;  %v12867_v50 = vld [vmem:[#allocation63_spill] sm:$0xff] }
 0x34c   : > { %v3985_v34 = vmul.f32 %v12863_v46, %v12862_v24  ;;  %v3448_v23 = vadd.f32 %v3416_v28, %v3348_v32  ;;  %v4486_v27 = vadd.f32 %v4454_v61, %v4386_v18  ;;  %v12865_v0 = vld [vmem:[#allocation32_spill] sm:$0xff]  ;;  %v12866_v33 = vld [vmem:[#allocation37_spill] sm:$0xff]  ;;  %v374_v46 = vmul.f32 %v12808_v57, %v338_v31  ;;  %v9670_v28 = vld [vmem:[#allocation2 + $0x1cd] sm:$0xff] }
 0x34d   : > { %v3616_v13 = vmul.f32 %v12865_v0, %v9649_v12  ;;  %v4085_v43 = vmul.f32 %v12867_v50, %v12866_v33  ;;  %v506_v24 = vld [vmem:[#allocation2 + $0x142] sm:$0xff]  ;;  %12868 = vst [vmem:[#allocation116_spill] sm:$0xff] %v9670_v28  ;;  %v442_v61 = vmul.f32 %v11908_v14, %v406_v7  ;;  %v12870_v18 = vld [vmem:[#allocation79_spill] sm:$0xff]  ;;  %v4854_v7 = vmul.f32 %v11410_v63, %v9670_v28 }
 0x34e   : > { %v4017_v53 = vadd.f32 %v3985_v34, %v3917_v42  ;;  %v3548_v58 = vadd.f32 %v3516_v3, %v3448_v23  ;;  %v4586_v35 = vadd.f32 %v4554_v60, %v4486_v27  ;;  %v12869_v32 = vld [vmem:[#allocation38_spill] sm:$0xff]  ;;  %v5018_v42 = vadd.f32 %v1642_v17, %v973_v6  ;;  %v12871_v50 = vld [vmem:[#allocation39_spill] sm:$0xff] }
 0x34f   : > { %v4185_v40 = vmul.f32 %v12870_v18, %v12869_v32  ;;  %v5050_v34 = vadd.f32 %v2979_v56, %v2311_v62  ;;  %v606_v12 = vld [vmem:[#allocation2 + $0x143] sm:$0xff]  ;;  %v4285_v31 = vmul.f32 %v12872_v25, %v12871_v50  ;;  %v9677_v3 = vld [vmem:[#allocation2 + $0x1ce] sm:$0xff]  ;;  %v474_v60 = vadd.f32 %v442_v61, %v374_v46 }
 0x350   : > { %v4117_v38 = vadd.f32 %v4085_v43, %v4017_v53  ;;  %v4686_v57 = vadd.f32 %v4654_v36, %v4586_v35  ;;  %12873 = vst [vmem:[#allocation115_spill] sm:$0xff] %v9677_v3  ;;  %v542_v23 = vmul.f32 %v11411_v1, %v506_v24  ;;  %v706_v27 = vld [vmem:[#allocation2 + $0x144] sm:$0xff]  ;;  %v3648_v30 = vadd.f32 %v3616_v13, %v3548_v58  ;;  %v9687_v43 = vld [vmem:[#allocation2 + $0x170] sm:$0xff] }
 0x351   : > { %v12874_v53 = vld [vmem:[#allocation85_spill] sm:$0xff]  ;;  %v642_v56 = vmul.f32 %v11284_v26, %v606_v12  ;;  %v12875_v35 = vld [vmem:[#allocation90_spill] sm:$0xff]  ;;  %12876 = vst [vmem:[#allocation118_spill] sm:$0xff] %v9687_v43  ;;  %v9689_v24 = vld [vmem:[#allocation2 + $0x171] sm:$0xff]  ;;  %v5114_v13 = vadd.f32 %v5050_v34, %v5018_v42  ;;  %v742_v46 = vmul.f32 %v11285_v20, %v706_v27 }
 0x352   : > { %v4217_v2 = vadd.f32 %v4185_v40, %v4117_v38  ;;  %v1043_v6 = vmul.f32 %v12874_v53, %v11287_v55  ;;  %v4786_v17 = vadd.f32 %v4754_v59, %v4686_v57  ;;  %v574_v62 = vadd.f32 %v542_v23, %v474_v60  ;;  %v806_v25 = vld [vmem:[#allocation2 + $0x145] sm:$0xff]  ;;  %12877 = vst [vmem:[#allocation119_spill] sm:$0xff] %v9689_v24  ;;  %v9696_v60 = vld [vmem:[#allocation2 + $0x172] sm:$0xff] }
 0x353   : > { %v1111_v36 = vmul.f32 %v12875_v35, %v11288_v11  ;;  %v4954_v40 = vmul.f32 %v9412_v48, %v9677_v3  ;;  %v906_v59 = vld [vmem:[#allocation2 + $0x146] sm:$0xff]  ;;  %12879 = vst [vmem:[#allocation122_spill] sm:$0xff] %v9696_v60  ;;  %v842_v53 = vmul.f32 %v11294_v8, %v806_v25  ;;  %v1780_v42 = vmul.f32 %v5650_v49, %v9689_v24 }
 0x354   : > { %v4317_v58 = vadd.f32 %v4285_v31, %v4217_v2  ;;  %v4886_v61 = vadd.f32 %v4854_v7, %v4786_v17  ;;  %v674_v57 = vadd.f32 %v642_v56, %v574_v62  ;;  %v12878_v12 = vld [vmem:[#allocation62_spill] sm:$0xff]  ;;  %v1712_v2 = vmul.f32 %v5638_v44, %v9687_v43  ;;  %v9705_v17 = vld [vmem:[#allocation2 + $0x173] sm:$0xff] }
 0x355   : > { %v1143_v38 = vadd.f32 %v1111_v36, %v1043_v6  ;;  %v1211_v18 = vmul.f32 %v12878_v12, %v11289_v19  ;;  %v12880_v7 = vld [vmem:[#allocation86_spill] sm:$0xff]  ;;  %12881 = vst [vmem:[#allocation121_spill] sm:$0xff] %v9705_v17  ;;  %v942_v62 = vmul.f32 %v11301_v4, %v906_v59  ;;  %v1880_v35 = vmul.f32 %v11359_v22, %v9696_v60  ;;  %v9712_v36 = vld [vmem:[#allocation2 + $0x174] sm:$0xff] }
 0x356   : > { %v5082_v23 = vadd.f32 %v4317_v58, %v3648_v30  ;;  %v4986_v34 = vadd.f32 %v4954_v40, %v4886_v61  ;;  %v774_v31 = vadd.f32 %v742_v46, %v674_v57  ;;  %v1311_v6 = vmul.f32 %v12880_v7, %v5620_v37  ;;  %v12882_v30 = vld [vmem:[#allocation53_spill] sm:$0xff]  ;;  %12883 = vst [vmem:[#allocation120_spill] sm:$0xff] %v9712_v36  ;;  %v12884_v46 = vld [vmem:[#allocation87_spill] sm:$0xff]  ;;  %v12887_v59 = vld [vmem:[#allocation88_spill] sm:$0xff] }
 0x357   : > { %v1243_v27 = vadd.f32 %v1211_v18, %v1143_v38  ;;  %v1411_v56 = vmul.f32 %v12882_v30, %v5629_v41  ;;  %v1812_v25 = vadd.f32 %v1780_v42, %v1712_v2  ;;  %v1511_v61 = vmul.f32 %v12884_v46, %v11305_v21  ;;  %v9716_v57 = vld [vmem:[#allocation2 + $0x175] sm:$0xff]  ;;  %v12886_v38 = vld [vmem:[#allocation6_spill] sm:$0xff] }
 0x358   : > { %v5146_v58 = vadd.f32 %v5082_v23, %v4986_v34  ;;  %12885 = vst [vmem:[#allocation42_spill] sm:$0xff] %v9716_v57  ;;  %v2380_v12 = vmul.f32 %v12886_v38, %v11364_v15  ;;  %v1611_v18 = vmul.f32 %v12887_v59, %v11746_v52  ;;  %v1980_v2 = vmul.f32 %v5658_v51, %v9705_v17  ;;  %v9724_v42 = vld [vmem:[#allocation2 + $0x176] sm:$0xff]  ;;  %v12889_v23 = vld [vmem:[#allocation5_spill] sm:$0xff] }
 0x359   : > { %v1343_v40 = vadd.f32 %v1311_v6, %v1243_v27  ;;  %v1912_v7 = vadd.f32 %v1880_v35, %v1812_v25  ;;  %12888 = vst [vmem:[#allocation100_spill] sm:$0xff] %v9724_v42  ;;  %v2448_v34 = vmul.f32 %v12889_v23, %v11366_v54  ;;  %v9728_v27 = vld [vmem:[#allocation2 + $0x1a0] sm:$0xff]  ;;  %v874_v46 = vadd.f32 %v842_v53, %v774_v31  ;;  %v12894_v31 = vld [vmem:[#allocation27_spill] sm:$0xff] }
 0x35a   : > { %12890 = vst [vmem:[#allocation51_spill] sm:$0xff] %v9728_v27  ;;  %v9730_v6 = vld [vmem:[#allocation2 + $0x1a1] sm:$0xff]  ;;  %v5178_v30 = vadd.f32 %v5146_v58, %v5114_v13  ;;  %v2080_v38 = vmul.f32 %v11368_v39, %v9712_v36  ;;  %v2180_v35 = vmul.f32 %v12836_v45, %v9716_v57  ;;  %v2280_v13 = vmul.f32 %v12837_v47, %v9724_v42  ;;  %v12898_v57 = vld [vmem:[#allocation23_spill] sm:$0xff] }
 0x35b   : > { %12891 = vst [vmem:[#allocation43_spill] sm:$0xff] %v9730_v6  ;;  %v1443_v60 = vadd.f32 %v1411_v56, %v1343_v40  ;;  %v2012_v25 = vadd.f32 %v1980_v2, %v1912_v7  ;;  %v2480_v59 = vadd.f32 %v2448_v34, %v2380_v12  ;;  %v12892_v17 = vld [vmem:[#allocation89_spill] sm:$0xff]  ;;  %v3049_v53 = vmul.f32 %v12116_v5, %v9728_v27  ;;  %v12895_v12 = vld [vmem:[#allocation22_spill] sm:$0xff]  ;;  %v12896_v2 = vld [vmem:[#allocation4_spill] sm:$0xff] }
 0x35c   : > { %v2548_v24 = vmul.f32 %v12892_v17, %v11744_v9  ;;  %v9738_v23 = vld [vmem:[#allocation2 + $0x1a2] sm:$0xff]  ;;  %v5217_v43 = vadd.f32 %v12834_v16, %v5178_v30  ;;  %v3117_v56 = vmul.f32 %v12894_v31, %v9730_v6  ;;  %v2648_v34 = vmul.f32 %v12896_v2, %v12895_v12  ;;  %v12899_v36 = vld [vmem:[#allocation7_spill] sm:$0xff]  ;;  %v12900_v27 = vld [vmem:[#allocation28_spill] sm:$0xff] }
 0x35d   : > { %12893 = vst [vmem:[#allocation108_spill] sm:$0xff] %v9738_v23  ;;  %v1543_v58 = vadd.f32 %v1511_v61, %v1443_v60  ;;  %v2112_v40 = vadd.f32 %v2080_v38, %v2012_v25  ;;  %v9749_v17 = vld [vmem:[#allocation2 + $0x1a3] sm:$0xff]  ;;  %v974_v30 = vadd.f32 %v942_v62, %v874_v46  ;;  %v2748_v42 = vmul.f32 %v12899_v36, %v12898_v57  ;;  %v12903_v61 = vld [vmem:[#allocation24_spill] sm:$0xff]  ;;  %v9767_v31 = vld [vmem:[#allocation2 + $0x1d0] sm:$0xff] }
 0x35e   : > { %v2580_v7 = vadd.f32 %v2548_v24, %v2480_v59  ;;  %12897 = vst [vmem:[#allocation47_spill] sm:$0xff] %v9749_v17  ;;  %5249 = vst.msk [vmem:[%s6091_s10 + $0xd0] sm:$0xff] %vm171_vm0, %v5217_v43  ;;  %v3149_v3 = vadd.f32 %v3117_v56, %v3049_v53  ;;  %v3217_v28 = vmul.f32 %v12900_v27, %v9738_v23  ;;  %v9757_v47 = vld [vmem:[#allocation2 + $0x1a4] sm:$0xff]  ;;  %v12906_v2 = vld [vmem:[#allocation12_spill] sm:$0xff] }
 0x35f   : > { %12901 = vst [vmem:[#allocation55_spill] sm:$0xff] %v9757_v47  ;;  %v9759_v60 = vld [vmem:[#allocation2 + $0x1a5] sm:$0xff]  ;;  %v12908_v62 = vld [vmem:[#allocation8_spill] sm:$0xff]  ;;  %12909 = vst [vmem:[#allocation52_spill] sm:$0xff] %v9767_v31  ;;  %v2212_v36 = vadd.f32 %v2180_v35, %v2112_v40 }
 0x360   : > { %12902 = vst [vmem:[#allocation48_spill] sm:$0xff] %v9759_v60  ;;  %v2680_v24 = vadd.f32 %v2648_v34, %v2580_v7  ;;  %v12904_v38 = vld [vmem:[#allocation10_spill] sm:$0xff]  ;;  %v12905_v59 = vld [vmem:[#allocation25_spill] sm:$0xff]  ;;  %v3249_v53 = vadd.f32 %v3217_v28, %v3149_v3  ;;  %v9775_v16 = vld [vmem:[#allocation2 + $0x1d1] sm:$0xff]  ;;  %v3517_v28 = vmul.f32 %v12796_v10, %v9759_v60 }
 0x361   : > { %v2848_v25 = vmul.f32 %v12904_v38, %v12903_v61  ;;  %v2948_v6 = vmul.f32 %v12906_v2, %v12905_v59  ;;  %v12907_v43 = vld [vmem:[#allocation33_spill] sm:$0xff]  ;;  %v12912_v57 = vld [vmem:[#allocation34_spill] sm:$0xff]  ;;  %12914 = vst [vmem:[#allocation49_spill] sm:$0xff] %v9775_v16  ;;  %v9777_v38 = vld [vmem:[#allocation2 + $0x1d2] sm:$0xff]  ;;  %v1643_v2 = vadd.f32 %v1611_v18, %v1543_v58 }
 0x362   : > { %v3718_v46 = vmul.f32 %v12908_v62, %v12907_v43  ;;  %v12910_v56 = vld [vmem:[#allocation29_spill] sm:$0xff]  ;;  %v12913_v7 = vld [vmem:[#allocation94_spill] sm:$0xff]  ;;  %12915 = vst [vmem:[#allocation60_spill] sm:$0xff] %v9777_v38  ;;  %v2780_v59 = vadd.f32 %v2748_v42, %v2680_v24  ;;  %v12917_v40 = vld [vmem:[#allocation35_spill] sm:$0xff] }
 0x363   : > { %v3317_v23 = vmul.f32 %v12910_v56, %v9749_v17  ;;  %v9771_v27 = vld [vmem:[#allocation2 + $0x1a6] sm:$0xff]  ;;  %v3786_v34 = vmul.f32 %v12913_v7, %v12912_v57  ;;  %v12918_v17 = vld [vmem:[#allocation91_spill] sm:$0xff]  ;;  %v4387_v7 = vmul.f32 %v12860_v29, %v9767_v31  ;;  %v12921_v24 = vld [vmem:[#allocation44_spill] sm:$0xff] }
 0x364   : > { %12911 = vst [vmem:[#allocation54_spill] sm:$0xff] %v9771_v27  ;;  %v12916_v62 = vld [vmem:[#allocation30_spill] sm:$0xff]  ;;  %v3886_v56 = vmul.f32 %v12918_v17, %v12917_v40  ;;  %v9787_v57 = vld [vmem:[#allocation2 + $0x1d3] sm:$0xff]  ;;  %v2880_v61 = vadd.f32 %v2848_v25, %v2780_v59  ;;  %v3617_v18 = vmul.f32 %v12865_v0, %v9771_v27  ;;  %v12920_v42 = vld [vmem:[#allocation41_spill] sm:$0xff]  ;;  %v4555_v60 = vmul.f32 %v12921_v24, %v9777_v38 }
 0x365   : > { %v3417_v43 = vmul.f32 %v12916_v62, %v9757_v47  ;;  %v3349_v3 = vadd.f32 %v3317_v23, %v3249_v53  ;;  %v3818_v35 = vadd.f32 %v3786_v34, %v3718_v46  ;;  %12919 = vst [vmem:[#allocation58_spill] sm:$0xff] %v9787_v57  ;;  %v4455_v58 = vmul.f32 %v12920_v42, %v9775_v16  ;;  %v339_v23 = vld [vmem:[#allocation2 + $0x150] sm:$0xff]  ;;  %v12922_v47 = vld [vmem:[#allocation36_spill] sm:$0xff]  ;;  %v12923_v10 = vld [vmem:[#allocation93_spill] sm:$0xff] }
 0x366   : > { %v407_v46 = vld [vmem:[#allocation2 + $0x151] sm:$0xff]  ;;  %v2312_v53 = vadd.f32 %v2280_v13, %v2212_v36  ;;  %v3986_v31 = vmul.f32 %v12923_v10, %v12922_v47  ;;  %v2980_v25 = vadd.f32 %v2948_v6, %v2880_v61  ;;  %v12926_v16 = vld [vmem:[#allocation45_spill] sm:$0xff] }
 0x367   : > { %v3449_v34 = vadd.f32 %v3417_v43, %v3349_v3  ;;  %v3918_v17 = vadd.f32 %v3886_v56, %v3818_v35  ;;  %v9797_v29 = vld [vmem:[#allocation2 + $0x1d4] sm:$0xff]  ;;  %v4487_v0 = vadd.f32 %v4455_v58, %v4387_v7  ;;  %v4655_v42 = vmul.f32 %v12926_v16, %v9787_v57  ;;  %v12928_v10 = vld [vmem:[#allocation97_spill] sm:$0xff]  ;;  %v12930_v35 = vld [vmem:[#allocation46_spill] sm:$0xff] }
 0x368   : > { %12924 = vst [vmem:[#allocation61_spill] sm:$0xff] %v9797_v29  ;;  %v12925_v59 = vld [vmem:[#allocation92_spill] sm:$0xff]  ;;  %v12927_v40 = vld [vmem:[#allocation3_spill] sm:$0xff]  ;;  %v443_v43 = vmul.f32 %v11908_v14, %v407_v46  ;;  %v4186_v56 = vmul.f32 %v12928_v10, %v12869_v32  ;;  %v4755_v7 = vmul.f32 %v12930_v35, %v9797_v29  ;;  %v5051_v10 = vadd.f32 %v2980_v25, %v2312_v53 }
 0x369   : > { %v4086_v27 = vmul.f32 %v12925_v59, %v12866_v33  ;;  %v507_v62 = vld [vmem:[#allocation2 + $0x152] sm:$0xff]  ;;  %v3549_v38 = vadd.f32 %v3517_v28, %v3449_v34  ;;  %v4018_v24 = vadd.f32 %v3986_v31, %v3918_v17  ;;  %v375_v13 = vmul.f32 %v12927_v40, %v339_v23 }
 0x36a   : > { %v607_v36 = vld [vmem:[#allocation2 + $0x153] sm:$0xff]  ;;  %v4587_v3 = vadd.f32 %v4555_v60, %v4487_v0  ;;  %v5019_v31 = vadd.f32 %v1643_v2, %v974_v30  ;;  %v543_v46 = vmul.f32 %v11411_v1, %v507_v62  ;;  %v9823_v30 = vld [vmem:[#allocation2 + $0x181] sm:$0xff] }
 0x36b   : > { %v12929_v6 = vld [vmem:[#allocation96_spill] sm:$0xff]  ;;  %v4118_v58 = vadd.f32 %v4086_v27, %v4018_v24  ;;  %v475_v23 = vadd.f32 %v443_v43, %v375_v13  ;;  %v3649_v17 = vadd.f32 %v3617_v18, %v3549_v38  ;;  %v643_v32 = vmul.f32 %v11284_v26, %v607_v36  ;;  %v12933_v60 = vld [vmem:[#allocation95_spill] sm:$0xff]  ;;  %v12934_v27 = vld [vmem:[#allocation101_spill] sm:$0xff]  ;;  %12936 = vst [vmem:[#allocation15_spill] sm:$0xff] %v9823_v30 }
 0x36c   : > { %v4286_v61 = vmul.f32 %v12929_v6, %v12871_v50  ;;  %v9811_v59 = vld [vmem:[#allocation2 + $0x1d5] sm:$0xff]  ;;  %v4687_v57 = vadd.f32 %v4655_v42, %v4587_v3  ;;  %v1044_v29 = vmul.f32 %v12933_v60, %v11287_v55  ;;  %v1112_v24 = vmul.f32 %v12934_v27, %v11288_v11  ;;  %v9821_v50 = vld [vmem:[#allocation2 + $0x180] sm:$0xff] }
 0x36d   : > { %12931 = vst [vmem:[#allocation56_spill] sm:$0xff] %v9811_v59  ;;  %v9813_v28 = vld [vmem:[#allocation2 + $0x1d6] sm:$0xff]  ;;  %v4218_v6 = vadd.f32 %v4186_v56, %v4118_v58  ;;  %v575_v0 = vadd.f32 %v543_v46, %v475_v23  ;;  %12935 = vst [vmem:[#allocation57_spill] sm:$0xff] %v9821_v50  ;;  %v4855_v38 = vmul.f32 %v11410_v63, %v9811_v59  ;;  %v12937_v43 = vld [vmem:[#allocation9_spill] sm:$0xff] }
 0x36e   : > { %12932 = vst [vmem:[#allocation50_spill] sm:$0xff] %v9813_v28  ;;  %v707_v34 = vld [vmem:[#allocation2 + $0x154] sm:$0xff]  ;;  %v4787_v2 = vadd.f32 %v4755_v7, %v4687_v57  ;;  %v4955_v62 = vmul.f32 %v9412_v48, %v9813_v28  ;;  %v1144_v13 = vadd.f32 %v1112_v24, %v1044_v29  ;;  %v1212_v36 = vmul.f32 %v12937_v43, %v11289_v19  ;;  %v9832_v56 = vld [vmem:[#allocation2 + $0x182] sm:$0xff] }
 0x36f   : > { %v743_v18 = vmul.f32 %v11285_v20, %v707_v34  ;;  %v4318_v42 = vadd.f32 %v4286_v61, %v4218_v6  ;;  %v675_v53 = vadd.f32 %v643_v32, %v575_v0  ;;  %v807_v25 = vld [vmem:[#allocation2 + $0x155] sm:$0xff]  ;;  %12938 = vst [vmem:[#allocation59_spill] sm:$0xff] %v9832_v56  ;;  %v5115_v58 = vadd.f32 %v5051_v10, %v5019_v31  ;;  %v9838_v46 = vld [vmem:[#allocation2 + $0x183] sm:$0xff] }
 0x370   : > { %v4887_v3 = vadd.f32 %v4855_v38, %v4787_v2  ;;  %v907_v57 = vld [vmem:[#allocation2 + $0x156] sm:$0xff]  ;;  %v1713_v7 = vmul.f32 %v5638_v44, %v9821_v50  ;;  %v1781_v23 = vmul.f32 %v5650_v49, %v9823_v30  ;;  %12939 = vst [vmem:[#allocation65_spill] sm:$0xff] %v9838_v46  ;;  %v1244_v34 = vadd.f32 %v1212_v36, %v1144_v13  ;;  %v12940_v29 = vld [vmem:[#allocation98_spill] sm:$0xff] }
 0x371   : > { %v5083_v61 = vadd.f32 %v4318_v42, %v3649_v17  ;;  %v775_v32 = vadd.f32 %v743_v18, %v675_v53  ;;  %v1312_v6 = vmul.f32 %v12940_v29, %v5620_v37  ;;  %v843_v60 = vmul.f32 %v11294_v8, %v807_v25  ;;  %v12941_v2 = vld [vmem:[#allocation99_spill] sm:$0xff]  ;;  %v9850_v53 = vld [vmem:[#allocation2 + $0x184] sm:$0xff]  ;;  %v12960_v28 = vld [vmem:[#allocation24_spill] sm:$0xff] }
 0x372   : > { %v4987_v0 = vadd.f32 %v4955_v62, %v4887_v3  ;;  %v1813_v27 = vadd.f32 %v1781_v23, %v1713_v7  ;;  %v1881_v31 = vmul.f32 %v11359_v22, %v9832_v56  ;;  %v943_v10 = vmul.f32 %v11301_v4, %v907_v57  ;;  %12942 = vst [vmem:[#allocation66_spill] sm:$0xff] %v9850_v53  ;;  %v9852_v62 = vld [vmem:[#allocation2 + $0x185] sm:$0xff]  ;;  %v12945_v43 = vld [vmem:[#allocation103_spill] sm:$0xff] }
 0x373   : > { %v1344_v24 = vadd.f32 %v1312_v6, %v1244_v34  ;;  %v1412_v38 = vmul.f32 %v12941_v2, %v5629_v41  ;;  %v1981_v17 = vmul.f32 %v5658_v51, %v9838_v46  ;;  %12943 = vst [vmem:[#allocation19_spill] sm:$0xff] %v9852_v62  ;;  %v12944_v25 = vld [vmem:[#allocation102_spill] sm:$0xff]  ;;  %v2449_v36 = vmul.f32 %v12945_v43, %v11366_v54  ;;  %v9858_v3 = vld [vmem:[#allocation2 + $0x1b0] sm:$0xff]  ;;  %v12947_v23 = vld [vmem:[#allocation105_spill] sm:$0xff] }
 0x374   : > { %v5147_v18 = vadd.f32 %v5083_v61, %v4987_v0  ;;  %v1913_v42 = vadd.f32 %v1881_v31, %v1813_v27  ;;  %v2381_v13 = vmul.f32 %v12944_v25, %v11364_v15  ;;  %12946 = vst [vmem:[#allocation20_spill] sm:$0xff] %v9858_v3  ;;  %v875_v57 = vadd.f32 %v843_v60, %v775_v32  ;;  %v12948_v61 = vld [vmem:[#allocation104_spill] sm:$0xff]  ;;  %v9866_v31 = vld [vmem:[#allocation2 + $0x186] sm:$0xff]  ;;  %v12957_v56 = vld [vmem:[#allocation23_spill] sm:$0xff] }
 0x375   : > { %v1444_v7 = vadd.f32 %v1412_v38, %v1344_v24  ;;  %v1512_v34 = vmul.f32 %v12947_v23, %v11305_v21  ;;  %v1612_v29 = vmul.f32 %v12948_v61, %v11746_v52  ;;  %v9864_v6 = vld [vmem:[#allocation2 + $0x1b1] sm:$0xff]  ;;  %12950 = vst [vmem:[#allocation67_spill] sm:$0xff] %v9866_v31  ;;  %v12951_v25 = vld [vmem:[#allocation106_spill] sm:$0xff]  ;;  %v2081_v32 = vmul.f32 %v11368_v39, %v9850_v53 }
 0x376   : > { %12949 = vst [vmem:[#allocation69_spill] sm:$0xff] %v9864_v6  ;;  %v5179_v0 = vadd.f32 %v5147_v18, %v5115_v58  ;;  %v2013_v27 = vadd.f32 %v1981_v17, %v1913_v42  ;;  %v2481_v2 = vadd.f32 %v2449_v36, %v2381_v13  ;;  %v2549_v43 = vmul.f32 %v12951_v25, %v11744_v9  ;;  %v12952_v24 = vld [vmem:[#allocation107_spill] sm:$0xff]  ;;  %v12956_v46 = vld [vmem:[#allocation18_spill] sm:$0xff] }
 0x377   : > { %v2181_v60 = vmul.f32 %v12836_v45, %v9852_v62  ;;  %v2649_v38 = vmul.f32 %v12952_v24, %v12895_v12  ;;  %v3050_v58 = vmul.f32 %v12116_v5, %v9858_v3  ;;  %v9878_v17 = vld [vmem:[#allocation2 + $0x1b2] sm:$0xff]  ;;  %v1544_v13 = vadd.f32 %v1512_v34, %v1444_v7  ;;  %v12958_v30 = vld [vmem:[#allocation110_spill] sm:$0xff] }
 0x378   : > { %12953 = vst [vmem:[#allocation68_spill] sm:$0xff] %v9878_v17  ;;  %v12954_v18 = vld [vmem:[#allocation11_spill] sm:$0xff]  ;;  %v2581_v36 = vadd.f32 %v2549_v43, %v2481_v2  ;;  %v975_v25 = vadd.f32 %v943_v10, %v875_v57  ;;  %v2113_v53 = vadd.f32 %v2081_v32, %v2013_v27  ;;  %v2281_v62 = vmul.f32 %v12956_v46, %v9866_v31  ;;  %v12962_v2 = vld [vmem:[#allocation28_spill] sm:$0xff]  ;;  %v12964_v57 = vld [vmem:[#allocation25_spill] sm:$0xff] }
 0x379   : > { %v5218_v42 = vadd.f32 %v12954_v18, %v5179_v0  ;;  %v12955_v23 = vld [vmem:[#allocation27_spill] sm:$0xff]  ;;  %v2749_v24 = vmul.f32 %v12958_v30, %v12957_v56  ;;  %v12961_v0 = vld [vmem:[#allocation112_spill] sm:$0xff]  ;;  %v3218_v43 = vmul.f32 %v12962_v2, %v9878_v17  ;;  %v12965_v27 = vld [vmem:[#allocation114_spill] sm:$0xff] }
 0x37a   : > { %v3118_v61 = vmul.f32 %v12955_v23, %v9864_v6  ;;  %v9887_v50 = vld [vmem:[#allocation2 + $0x1b3] sm:$0xff]  ;;  %v2681_v3 = vadd.f32 %v2649_v38, %v2581_v36  ;;  %v2849_v7 = vmul.f32 %v12961_v0, %v12960_v28  ;;  %v2949_v32 = vmul.f32 %v12965_v27, %v12964_v57  ;;  %v12966_v31 = vld [vmem:[#allocation33_spill] sm:$0xff]  ;;  %v12968_v59 = vld [vmem:[#allocation34_spill] sm:$0xff] }
 0x37b   : > { %12959 = vst [vmem:[#allocation64_spill] sm:$0xff] %v9887_v50  ;;  %5250 = vst.msk [vmem:[%s6091_s10 + $0xd8] sm:$0xff] %vm171_vm0, %v5218_v42  ;;  %v9895_v10 = vld [vmem:[#allocation2 + $0x1b4] sm:$0xff]  ;;  %v12967_v6 = vld [vmem:[#allocation109_spill] sm:$0xff] }
 0x37c   : > { %v3150_v34 = vadd.f32 %v3118_v61, %v3050_v58  ;;  %12963 = vst [vmem:[#allocation74_spill] sm:$0xff] %v9895_v10  ;;  %v3719_v30 = vmul.f32 %v12967_v6, %v12966_v31  ;;  %v12969_v56 = vld [vmem:[#allocation111_spill] sm:$0xff]  ;;  %v12971_v38 = vld [vmem:[#allocation81_spill] sm:$0xff]  ;;  %v1644_v61 = vadd.f32 %v1612_v29, %v1544_v13  ;;  %v2781_v0 = vadd.f32 %v2749_v24, %v2681_v3  ;;  %v12981_v24 = vld [vmem:[#allocation40_spill] sm:$0xff] }
 0x37d   : > { %v3787_v12 = vmul.f32 %v12969_v56, %v12968_v59  ;;  %v12970_v42 = vld [vmem:[#allocation35_spill] sm:$0xff]  ;;  %v9905_v46 = vld [vmem:[#allocation2 + $0x1e0] sm:$0xff]  ;;  %v2213_v6 = vadd.f32 %v2181_v60, %v2113_v53  ;;  %v12977_v56 = vld [vmem:[#allocation30_spill] sm:$0xff] }
 0x37e   : > { %v3887_v36 = vmul.f32 %v12971_v38, %v12970_v42  ;;  %12972 = vst [vmem:[#allocation72_spill] sm:$0xff] %v9905_v46  ;;  %v9907_v58 = vld [vmem:[#allocation2 + $0x1e1] sm:$0xff]  ;;  %v3250_v17 = vadd.f32 %v3218_v43, %v3150_v34  ;;  %v9911_v27 = vld [vmem:[#allocation2 + $0x1b5] sm:$0xff]  ;;  %v3418_v59 = vmul.f32 %v12977_v56, %v9895_v10  ;;  %v2881_v3 = vadd.f32 %v2849_v7, %v2781_v0 }
 0x37f   : > { %12973 = vst [vmem:[#allocation71_spill] sm:$0xff] %v9907_v58  ;;  %v12974_v28 = vld [vmem:[#allocation29_spill] sm:$0xff]  ;;  %12975 = vst [vmem:[#allocation70_spill] sm:$0xff] %v9911_v27  ;;  %v9917_v31 = vld [vmem:[#allocation2 + $0x1b6] sm:$0xff]  ;;  %v3819_v38 = vadd.f32 %v3787_v12, %v3719_v30  ;;  %v4388_v34 = vmul.f32 %v12981_v24, %v9905_v46 }
 0x380   : > { %v3318_v2 = vmul.f32 %v12974_v28, %v9887_v50  ;;  %v9913_v57 = vld [vmem:[#allocation2 + $0x1e2] sm:$0xff]  ;;  %12978 = vst [vmem:[#allocation75_spill] sm:$0xff] %v9917_v31  ;;  %v340_v53 = vld [vmem:[#allocation2 + $0x158] sm:$0xff]  ;;  %v12983_v60 = vld [vmem:[#allocation31_spill] sm:$0xff] }
 0x381   : > { %12976 = vst [vmem:[#allocation76_spill] sm:$0xff] %v9913_v57  ;;  %v12979_v42 = vld [vmem:[#allocation113_spill] sm:$0xff]  ;;  %v3518_v10 = vmul.f32 %v12983_v60, %v9911_v27  ;;  %v3919_v56 = vadd.f32 %v3887_v36, %v3819_v38  ;;  %v2313_v36 = vadd.f32 %v2281_v62, %v2213_v6  ;;  %v2981_v38 = vadd.f32 %v2949_v32, %v2881_v3 }
 0x382   : > { %v3987_v23 = vmul.f32 %v12979_v42, %v12922_v47  ;;  %v9921_v29 = vld [vmem:[#allocation2 + $0x1e3] sm:$0xff]  ;;  %v3350_v13 = vadd.f32 %v3318_v2, %v3250_v17  ;;  %v12985_v42 = vld [vmem:[#allocation44_spill] sm:$0xff] }
 0x383   : > { %12980 = vst [vmem:[#allocation73_spill] sm:$0xff] %v9921_v29  ;;  %v12982_v43 = vld [vmem:[#allocation41_spill] sm:$0xff]  ;;  %v4556_v47 = vmul.f32 %v12985_v42, %v9913_v57  ;;  %v12987_v2 = vld [vmem:[#allocation32_spill] sm:$0xff] }
 0x384   : > { %v4456_v50 = vmul.f32 %v12982_v43, %v9907_v58  ;;  %v12984_v12 = vld [vmem:[#allocation117_spill] sm:$0xff]  ;;  %v3450_v7 = vadd.f32 %v3418_v59, %v3350_v13  ;;  %v3618_v0 = vmul.f32 %v12987_v2, %v9917_v31  ;;  %v4656_v58 = vmul.f32 %v12926_v16, %v9921_v29  ;;  %v12991_v29 = vld [vmem:[#allocation39_spill] sm:$0xff] }
 0x385   : > { %v4087_v30 = vmul.f32 %v12984_v12, %v12866_v33  ;;  %v9933_v28 = vld [vmem:[#allocation2 + $0x1e4] sm:$0xff]  ;;  %v408_v17 = vld [vmem:[#allocation2 + $0x159] sm:$0xff]  ;;  %v4019_v27 = vadd.f32 %v3987_v23, %v3919_v56  ;;  %v376_v12 = vmul.f32 %v12927_v40, %v340_v53  ;;  %v12992_v16 = vld [vmem:[#allocation115_spill] sm:$0xff]  ;;  %v5052_v53 = vadd.f32 %v2981_v38, %v2313_v36 }
 0x386   : > { %12986 = vst [vmem:[#allocation82_spill] sm:$0xff] %v9933_v28  ;;  %v4488_v46 = vadd.f32 %v4456_v50, %v4388_v34  ;;  %v9939_v43 = vld [vmem:[#allocation2 + $0x1e5] sm:$0xff]  ;;  %v508_v33 = vld [vmem:[#allocation2 + $0x15a] sm:$0xff]  ;;  %v3550_v57 = vadd.f32 %v3518_v10, %v3450_v7  ;;  %v4756_v59 = vmul.f32 %v12930_v35, %v9933_v28  ;;  %v444_v13 = vmul.f32 %v11908_v14, %v408_v17 }
 0x387   : > { %12988 = vst [vmem:[#allocation77_spill] sm:$0xff] %v9939_v43  ;;  %v4119_v31 = vadd.f32 %v4087_v30, %v4019_v27  ;;  %v12989_v50 = vld [vmem:[#allocation38_spill] sm:$0xff]  ;;  %v12990_v34 = vld [vmem:[#allocation116_spill] sm:$0xff]  ;;  %v4287_v42 = vmul.f32 %v12992_v16, %v12991_v29  ;;  %v4856_v62 = vmul.f32 %v11410_v63, %v9939_v43  ;;  %v544_v10 = vmul.f32 %v11411_v1, %v508_v33  ;;  %v12995_v43 = vld [vmem:[#allocation119_spill] sm:$0xff] }
 0x388   : > { %v4588_v60 = vadd.f32 %v4556_v47, %v4488_v46  ;;  %v4187_v2 = vmul.f32 %v12990_v34, %v12989_v50  ;;  %v608_v23 = vld [vmem:[#allocation2 + $0x15b] sm:$0xff]  ;;  %v9951_v6 = vld [vmem:[#allocation2 + $0x1e6] sm:$0xff]  ;;  %v5020_v47 = vadd.f32 %v1644_v61, %v975_v25  ;;  %v476_v46 = vadd.f32 %v444_v13, %v376_v12 }
 0x389   : > { %12993 = vst [vmem:[#allocation78_spill] sm:$0xff] %v9951_v6  ;;  %v708_v56 = vld [vmem:[#allocation2 + $0x15c] sm:$0xff]  ;;  %v3650_v3 = vadd.f32 %v3618_v0, %v3550_v57  ;;  %v12994_v30 = vld [vmem:[#allocation118_spill] sm:$0xff]  ;;  %v644_v34 = vmul.f32 %v11284_v26, %v608_v23  ;;  %v4956_v33 = vmul.f32 %v9412_v48, %v9951_v6 }
 0x38a   : > { %v4688_v32 = vadd.f32 %v4656_v58, %v4588_v60  ;;  %v4219_v27 = vadd.f32 %v4187_v2, %v4119_v31  ;;  %v1045_v17 = vmul.f32 %v12994_v30, %v11287_v55  ;;  %v576_v16 = vadd.f32 %v544_v10, %v476_v46  ;;  %v9959_v60 = vld [vmem:[#allocation2 + $0x188] sm:$0xff]  ;;  %v808_v0 = vld [vmem:[#allocation2 + $0x15d] sm:$0xff] }
 0x38b   : > { %v1113_v58 = vmul.f32 %v12995_v43, %v11288_v11  ;;  %12996 = vst [vmem:[#allocation80_spill] sm:$0xff] %v9959_v60  ;;  %v9961_v25 = vld [vmem:[#allocation2 + $0x189] sm:$0xff]  ;;  %v744_v31 = vmul.f32 %v11285_v20, %v708_v56  ;;  %v908_v36 = vld [vmem:[#allocation2 + $0x15e] sm:$0xff]  ;;  %v5116_v23 = vadd.f32 %v5052_v53, %v5020_v47  ;;  %v844_v30 = vmul.f32 %v11294_v8, %v808_v0 }
 0x38c   : > { %v4788_v7 = vadd.f32 %v4756_v59, %v4688_v32  ;;  %12997 = vst [vmem:[#allocation84_spill] sm:$0xff] %v9961_v25  ;;  %v4319_v61 = vadd.f32 %v4287_v42, %v4219_v27  ;;  %v676_v2 = vadd.f32 %v644_v34, %v576_v16  ;;  %v12998_v12 = vld [vmem:[#allocation122_spill] sm:$0xff]  ;;  %v1714_v42 = vmul.f32 %v5638_v44, %v9959_v60  ;;  %v13000_v10 = vld [vmem:[#allocation121_spill] sm:$0xff]  ;;  %v13003_v34 = vld [vmem:[#allocation120_spill] sm:$0xff] }
 0x38d   : > { %v1145_v38 = vadd.f32 %v1113_v58, %v1045_v17  ;;  %v1213_v59 = vmul.f32 %v12998_v12, %v11289_v19  ;;  %v9968_v13 = vld [vmem:[#allocation2 + $0x18a] sm:$0xff]  ;;  %v1782_v48 = vmul.f32 %v5650_v49, %v9961_v25  ;;  %v1313_v56 = vmul.f32 %v13000_v10, %v5620_v37  ;;  %v13025_v25 = vld [vmem:[#allocation33_spill] sm:$0xff]  ;;  %v13026_v60 = vld [vmem:[#allocation52_spill] sm:$0xff] }
 0x38e   : > { %v4888_v57 = vadd.f32 %v4856_v62, %v4788_v7  ;;  %12999 = vst [vmem:[#allocation63_spill] sm:$0xff] %v9968_v13  ;;  %v5084_v43 = vadd.f32 %v4319_v61, %v3650_v3  ;;  %v776_v46 = vadd.f32 %v744_v31, %v676_v2  ;;  %v9976_v27 = vld [vmem:[#allocation2 + $0x18b] sm:$0xff]  ;;  %v944_v17 = vmul.f32 %v11301_v4, %v908_v36 }
 0x38f   : > { %v1245_v62 = vadd.f32 %v1213_v59, %v1145_v38  ;;  %13001 = vst [vmem:[#allocation79_spill] sm:$0xff] %v9976_v27  ;;  %v1814_v3 = vadd.f32 %v1782_v48, %v1714_v42  ;;  %v1882_v47 = vmul.f32 %v11359_v22, %v9968_v13  ;;  %v9982_v53 = vld [vmem:[#allocation2 + $0x18c] sm:$0xff]  ;;  %v1413_v58 = vmul.f32 %v13003_v34, %v5629_v41  ;;  %v9996_v59 = vld [vmem:[#allocation2 + $0x1b8] sm:$0xff] }
 0x390   : > { %v4988_v32 = vadd.f32 %v4956_v33, %v4888_v57  ;;  %13002 = vst [vmem:[#allocation83_spill] sm:$0xff] %v9982_v53  ;;  %v13004_v61 = vld [vmem:[#allocation51_spill] sm:$0xff]  ;;  %v13005_v31 = vld [vmem:[#allocation42_spill] sm:$0xff]  ;;  %v1982_v0 = vmul.f32 %v5658_v51, %v9976_v27  ;;  %13008 = vst [vmem:[#allocation90_spill] sm:$0xff] %v9996_v59  ;;  %v876_v48 = vadd.f32 %v844_v30, %v776_v46 }
 0x391   : > { %v1345_v16 = vadd.f32 %v1313_v56, %v1245_v62  ;;  %v2382_v33 = vmul.f32 %v13004_v61, %v11364_v15  ;;  %v1513_v57 = vmul.f32 %v13005_v31, %v11305_v21  ;;  %v1914_v2 = vadd.f32 %v1882_v47, %v1814_v3  ;;  %v9992_v36 = vld [vmem:[#allocation2 + $0x18d] sm:$0xff]  ;;  %v13012_v61 = vld [vmem:[#allocation108_spill] sm:$0xff] }
 0x392   : > { %v5148_v7 = vadd.f32 %v5084_v43, %v4988_v32  ;;  %13006 = vst [vmem:[#allocation85_spill] sm:$0xff] %v9992_v36  ;;  %v13007_v38 = vld [vmem:[#allocation43_spill] sm:$0xff]  ;;  %v9998_v43 = vld [vmem:[#allocation2 + $0x1b9] sm:$0xff]  ;;  %v2082_v10 = vmul.f32 %v11368_v39, %v9982_v53  ;;  %v2550_v31 = vmul.f32 %v13012_v61, %v11744_v9  ;;  %v2182_v46 = vmul.f32 %v12836_v45, %v9992_v36 }
 0x393   : > { %v2450_v12 = vmul.f32 %v13007_v38, %v11366_v54  ;;  %13009 = vst [vmem:[#allocation62_spill] sm:$0xff] %v9998_v43  ;;  %v13010_v32 = vld [vmem:[#allocation100_spill] sm:$0xff]  ;;  %v10004_v56 = vld [vmem:[#allocation2 + $0x18e] sm:$0xff]  ;;  %v1445_v3 = vadd.f32 %v1413_v58, %v1345_v16  ;;  %v2014_v47 = vadd.f32 %v1982_v0, %v1914_v2  ;;  %v3051_v30 = vmul.f32 %v12116_v5, %v9996_v59 }
 0x394   : > { %v5180_v42 = vadd.f32 %v5148_v7, %v5116_v23  ;;  %v1613_v62 = vmul.f32 %v13010_v32, %v11746_v52  ;;  %13011 = vst [vmem:[#allocation86_spill] sm:$0xff] %v10004_v56  ;;  %v10008_v38 = vld [vmem:[#allocation2 + $0x1ba] sm:$0xff]  ;;  %v13014_v7 = vld [vmem:[#allocation27_spill] sm:$0xff]  ;;  %v13015_v16 = vld [vmem:[#allocation18_spill] sm:$0xff]  ;;  %v3720_v6 = vmul.f32 %v13026_v60, %v13025_v25 }
 0x395   : > { %v2482_v34 = vadd.f32 %v2450_v12, %v2382_v33  ;;  %13013 = vst [vmem:[#allocation53_spill] sm:$0xff] %v10008_v38  ;;  %v3119_v32 = vmul.f32 %v13014_v7, %v9998_v43  ;;  %v2114_v53 = vadd.f32 %v2082_v10, %v2014_v47  ;;  %v2282_v58 = vmul.f32 %v13015_v16, %v10004_v56  ;;  %v13016_v2 = vld [vmem:[#allocation22_spill] sm:$0xff]  ;;  %v13017_v0 = vld [vmem:[#allocation47_spill] sm:$0xff]  ;;  %v10021_v61 = vld [vmem:[#allocation2 + $0x1bb] sm:$0xff] }
 0x396   : > { %v5219_v23 = vadd.f32 %v12954_v18, %v5180_v42  ;;  %v2650_v12 = vmul.f32 %v13017_v0, %v13016_v2  ;;  %13018 = vst [vmem:[#allocation87_spill] sm:$0xff] %v10021_v61  ;;  %v10025_v18 = vadd.f32 %v944_v17, %v876_v48  ;;  %v13019_v42 = vld [vmem:[#allocation23_spill] sm:$0xff]  ;;  %v13021_v43 = vld [vmem:[#allocation28_spill] sm:$0xff]  ;;  %v1545_v56 = vadd.f32 %v1513_v57, %v1445_v3  ;;  %v13028_v48 = vld [vmem:[#allocation29_spill] sm:$0xff] }
 0x397   : > { %v2582_v33 = vadd.f32 %v2550_v31, %v2482_v34  ;;  %v13020_v36 = vld [vmem:[#allocation55_spill] sm:$0xff]  ;;  %v3151_v27 = vadd.f32 %v3119_v32, %v3051_v30  ;;  %v3219_v10 = vmul.f32 %v13021_v43, %v10008_v38  ;;  %v10031_v47 = vld [vmem:[#allocation2 + $0x1bc] sm:$0xff]  ;;  %v13029_v30 = vld [vmem:[#allocation34_spill] sm:$0xff] }
 0x398   : > { %5251 = vst.msk [vmem:[%s6091_s10 + $0xe0] sm:$0xff] %vm171_vm0, %v5219_v23  ;;  %v2750_v59 = vmul.f32 %v13020_v36, %v13019_v42  ;;  %13022 = vst [vmem:[#allocation6_spill] sm:$0xff] %v10031_v47  ;;  %v13023_v31 = vld [vmem:[#allocation24_spill] sm:$0xff]  ;;  %v10037_v23 = vld [vmem:[#allocation2 + $0x1e8] sm:$0xff]  ;;  %v3319_v36 = vmul.f32 %v13028_v48, %v10021_v61 }
 0x399   : > { %v2682_v34 = vadd.f32 %v2650_v12, %v2582_v33  ;;  %v13024_v13 = vld [vmem:[#allocation48_spill] sm:$0xff]  ;;  %13027 = vst [vmem:[#allocation88_spill] sm:$0xff] %v10037_v23  ;;  %v3251_v17 = vadd.f32 %v3219_v10, %v3151_v27  ;;  %v13030_v32 = vld [vmem:[#allocation49_spill] sm:$0xff]  ;;  %v13031_v38 = vld [vmem:[#allocation35_spill] sm:$0xff]  ;;  %v4389_v16 = vmul.f32 %v12981_v24, %v10037_v23 }
 0x39a   : > { %v2850_v0 = vmul.f32 %v13024_v13, %v13023_v31  ;;  %v3788_v28 = vmul.f32 %v13030_v32, %v13029_v30  ;;  %v13032_v42 = vld [vmem:[#allocation60_spill] sm:$0xff]  ;;  %v10045_v57 = vld [vmem:[#allocation2 + $0x1e9] sm:$0xff]  ;;  %v2214_v13 = vadd.f32 %v2182_v46, %v2114_v53  ;;  %v13035_v12 = vld [vmem:[#allocation25_spill] sm:$0xff] }
 0x39b   : > { %v3888_v43 = vmul.f32 %v13032_v42, %v13031_v38  ;;  %13033 = vst [vmem:[#allocation5_spill] sm:$0xff] %v10045_v57  ;;  %v10047_v3 = vld [vmem:[#allocation2 + $0x1ea] sm:$0xff]  ;;  %v2782_v33 = vadd.f32 %v2750_v59, %v2682_v34  ;;  %v10053_v25 = vld [vmem:[#allocation2 + $0x1bd] sm:$0xff]  ;;  %v3351_v61 = vadd.f32 %v3319_v36, %v3251_v17  ;;  %v1645_v59 = vadd.f32 %v1613_v62, %v1545_v56 }
 0x39c   : > { %13034 = vst [vmem:[#allocation89_spill] sm:$0xff] %v10047_v3  ;;  %v13036_v60 = vld [vmem:[#allocation54_spill] sm:$0xff]  ;;  %13038 = vst [vmem:[#allocation4_spill] sm:$0xff] %v10053_v25  ;;  %v10055_v48 = vld [vmem:[#allocation2 + $0x1be] sm:$0xff]  ;;  %v3820_v32 = vadd.f32 %v3788_v28, %v3720_v6  ;;  %v2314_v62 = vadd.f32 %v2282_v58, %v2214_v13 }
 0x39d   : > { %v2950_v31 = vmul.f32 %v13036_v60, %v13035_v12  ;;  %v13037_v27 = vld [vmem:[#allocation30_spill] sm:$0xff]  ;;  %13039 = vst [vmem:[#allocation7_spill] sm:$0xff] %v10055_v48  ;;  %v13040_v30 = vld [vmem:[#allocation36_spill] sm:$0xff]  ;;  %v2882_v46 = vadd.f32 %v2850_v0, %v2782_v33  ;;  %v13043_v34 = vld [vmem:[#allocation41_spill] sm:$0xff] }
 0x39e   : > { %v3419_v10 = vmul.f32 %v13037_v27, %v10031_v47  ;;  %v13041_v42 = vld [vmem:[#allocation58_spill] sm:$0xff]  ;;  %v4457_v60 = vmul.f32 %v13043_v34, %v10045_v57  ;;  %v13044_v47 = vld [vmem:[#allocation44_spill] sm:$0xff]  ;;  %v13045_v28 = vld [vmem:[#allocation31_spill] sm:$0xff] }
 0x39f   : > { %v3988_v38 = vmul.f32 %v13041_v42, %v13040_v30  ;;  %v10061_v53 = vld [vmem:[#allocation2 + $0x1eb] sm:$0xff]  ;;  %v4557_v12 = vmul.f32 %v13044_v47, %v10047_v3  ;;  %v3519_v6 = vmul.f32 %v13045_v28, %v10053_v25  ;;  %v3920_v42 = vadd.f32 %v3888_v43, %v3820_v32  ;;  %v13046_v30 = vld [vmem:[#allocation37_spill] sm:$0xff]  ;;  %v13049_v56 = vld [vmem:[#allocation32_spill] sm:$0xff] }
 0x3a0   : > { %13042 = vst [vmem:[#allocation10_spill] sm:$0xff] %v10061_v53  ;;  %v341_v17 = vld [vmem:[#allocation2 + $0x168] sm:$0xff]  ;;  %v3451_v27 = vadd.f32 %v3419_v10, %v3351_v61  ;;  %v13047_v7 = vld [vmem:[#allocation61_spill] sm:$0xff]  ;;  %v3619_v0 = vmul.f32 %v13049_v56, %v10055_v48  ;;  %v4489_v33 = vadd.f32 %v4457_v60, %v4389_v16  ;;  %v2982_v25 = vadd.f32 %v2950_v31, %v2882_v46  ;;  %v13052_v58 = vld [vmem:[#allocation56_spill] sm:$0xff] }
 0x3a1   : > { %v409_v36 = vld [vmem:[#allocation2 + $0x169] sm:$0xff]  ;;  %v4088_v23 = vmul.f32 %v13047_v7, %v13046_v30  ;;  %v13050_v57 = vld [vmem:[#allocation45_spill] sm:$0xff]  ;;  %v4020_v61 = vadd.f32 %v3988_v38, %v3920_v42  ;;  %v377_v43 = vmul.f32 %v12927_v40, %v341_v17  ;;  %v4188_v13 = vmul.f32 %v13052_v58, %v12989_v50 }
 0x3a2   : > { %v10071_v24 = vld [vmem:[#allocation2 + $0x1ec] sm:$0xff]  ;;  %v4657_v3 = vmul.f32 %v13050_v57, %v10061_v53  ;;  %v3551_v34 = vadd.f32 %v3519_v6, %v3451_v27  ;;  %v445_v32 = vmul.f32 %v11908_v14, %v409_v36  ;;  %v4589_v28 = vadd.f32 %v4557_v12, %v4489_v33 }
 0x3a3   : > { %13048 = vst [vmem:[#allocation12_spill] sm:$0xff] %v10071_v24  ;;  %v509_v47 = vld [vmem:[#allocation2 + $0x16a] sm:$0xff]  ;;  %v4757_v16 = vmul.f32 %v12930_v35, %v10071_v24  ;;  %v4120_v60 = vadd.f32 %v4088_v23, %v4020_v61  ;;  %v13055_v23 = vld [vmem:[#allocation57_spill] sm:$0xff] }
 0x3a4   : > { %v10077_v10 = vld [vmem:[#allocation2 + $0x1ed] sm:$0xff]  ;;  %v477_v38 = vadd.f32 %v445_v32, %v377_v43  ;;  %v545_v6 = vmul.f32 %v11411_v1, %v509_v47  ;;  %v3651_v17 = vadd.f32 %v3619_v0, %v3551_v34  ;;  %v4689_v53 = vadd.f32 %v4657_v3, %v4589_v28  ;;  %v1679_v32 = vld [vmem:[#allocation2 + $0x198] sm:$0xff] }
 0x3a5   : > { %13051 = vst [vmem:[#allocation8_spill] sm:$0xff] %v10077_v10  ;;  %v609_v7 = vld [vmem:[#allocation2 + $0x16b] sm:$0xff]  ;;  %v4857_v31 = vmul.f32 %v11410_v63, %v10077_v10  ;;  %v4220_v36 = vadd.f32 %v4188_v13, %v4120_v60  ;;  %v1046_v61 = vmul.f32 %v13055_v23, %v11287_v55  ;;  %v1747_v47 = vld [vmem:[#allocation2 + $0x199] sm:$0xff]  ;;  %v5021_v3 = vadd.f32 %v1645_v59, %v10025_v18 }
 0x3a6   : > { %v13053_v48 = vld [vmem:[#allocation50_spill] sm:$0xff]  ;;  %v645_v46 = vmul.f32 %v11284_v26, %v609_v7  ;;  %v577_v33 = vadd.f32 %v545_v6, %v477_v38  ;;  %v4789_v58 = vadd.f32 %v4757_v16, %v4689_v53  ;;  %v5053_v34 = vadd.f32 %v2982_v25, %v2314_v62  ;;  %v13057_v60 = vld [vmem:[#allocation59_spill] sm:$0xff]  ;;  %v1847_v6 = vld [vmem:[#allocation2 + $0x19a] sm:$0xff] }
 0x3a7   : > { %v4288_v27 = vmul.f32 %v13053_v48, %v12991_v29  ;;  %v709_v42 = vld [vmem:[#allocation2 + $0x16c] sm:$0xff]  ;;  %v1214_v38 = vmul.f32 %v13057_v60, %v11289_v19  ;;  %v1715_v59 = vmul.f32 %v5638_v44, %v1679_v32  ;;  %v1783_v62 = vmul.f32 %v5650_v49, %v1747_v47  ;;  %v1947_v16 = vld [vmem:[#allocation2 + $0x19b] sm:$0xff] }
 0x3a8   : > { %v10091_v12 = vld [vmem:[#allocation2 + $0x1ee] sm:$0xff]  ;;  %v745_v28 = vmul.f32 %v11285_v20, %v709_v42  ;;  %v677_v7 = vadd.f32 %v645_v46, %v577_v33  ;;  %v4889_v10 = vadd.f32 %v4857_v31, %v4789_v58  ;;  %v13058_v31 = vld [vmem:[#allocation65_spill] sm:$0xff]  ;;  %v1983_v32 = vmul.f32 %v5658_v51, %v1947_v16 }
 0x3a9   : > { %13054 = vst [vmem:[#allocation94_spill] sm:$0xff] %v10091_v12  ;;  %v13056_v48 = vld [vmem:[#allocation15_spill] sm:$0xff]  ;;  %v4320_v0 = vadd.f32 %v4288_v27, %v4220_v36  ;;  %v1314_v36 = vmul.f32 %v13058_v31, %v5620_v37 }
 0x3aa   : > { %v1114_v43 = vmul.f32 %v13056_v48, %v11288_v11  ;;  %v10104_v23 = vld [vmem:[%s10258_s1 + $0x30] ss:$0 sm:$0xff]  ;;  %v777_v42 = vadd.f32 %v745_v28, %v677_v7  ;;  %v1815_v48 = vadd.f32 %v1783_v62, %v1715_v59  ;;  %v2147_v28 = vld [vmem:[#allocation2 + $0x19d] sm:$0xff] }
 0x3ab   : > { %v4957_v53 = vmul.f32 %v10104_v23, %v10091_v12  ;;  %v809_v18 = vld [vmem:[#allocation2 + $0x16d] sm:$0xff]  ;;  %v5085_v27 = vadd.f32 %v4320_v0, %v3651_v17  ;;  %v2047_v17 = vld [vmem:[#allocation2 + $0x19c] sm:$0xff] }
 0x3ac   : > { %v1146_v13 = vadd.f32 %v1114_v43, %v1046_v61  ;;  %v909_v25 = vld [vmem:[#allocation2 + $0x16e] sm:$0xff]  ;;  %v5117_v61 = vadd.f32 %v5053_v34, %v5021_v3  ;;  %v1883_v43 = vmul.f32 %v11359_v22, %v1847_v6  ;;  %v845_v58 = vmul.f32 %v11294_v8, %v809_v18  ;;  %v13059_v0 = vld [vmem:[#allocation20_spill] sm:$0xff] }
 0x3ad   : > { %v4989_v33 = vadd.f32 %v4957_v53, %v4889_v10  ;;  %v945_v60 = vmul.f32 %v11301_v4, %v909_v25  ;;  %v2383_v7 = vmul.f32 %v13059_v0, %v11364_v15  ;;  %v13060_v10 = vld [vmem:[#allocation69_spill] sm:$0xff]  ;;  %v3016_v34 = vld [vmem:[#allocation2 + $0x1c8] sm:$0xff]  ;;  %v13062_v53 = vld [vmem:[#allocation19_spill] sm:$0xff] }
 0x3ae   : > { %v1246_v46 = vadd.f32 %v1214_v38, %v1146_v13  ;;  %v1915_v24 = vadd.f32 %v1883_v43, %v1815_v48  ;;  %v2451_v3 = vmul.f32 %v13060_v10, %v11366_v54  ;;  %v877_v13 = vadd.f32 %v845_v58, %v777_v42  ;;  %v13061_v38 = vld [vmem:[#allocation66_spill] sm:$0xff]  ;;  %v13063_v25 = vld [vmem:[#allocation67_spill] sm:$0xff] }
 0x3af   : > { %v5149_v47 = vadd.f32 %v5085_v27, %v4989_v33  ;;  %v1414_v6 = vmul.f32 %v13061_v38, %v5629_v41  ;;  %v1514_v18 = vmul.f32 %v13062_v53, %v11305_v21  ;;  %v1614_v59 = vmul.f32 %v13063_v25, %v11746_v52  ;;  %v3084_v62 = vld [vmem:[#allocation2 + $0x1c9] sm:$0xff]  ;;  %v13087_v21 = vld [vmem:[#allocation41_spill] sm:$0xff] }
 0x3b0   : > { %v1346_v12 = vadd.f32 %v1314_v36, %v1246_v46  ;;  %v2015_v27 = vadd.f32 %v1983_v32, %v1915_v24  ;;  %v2247_v46 = vld [vmem:[#allocation2 + $0x19e] sm:$0xff]  ;;  %v2483_v31 = vadd.f32 %v2451_v3, %v2383_v7  ;;  %v3184_v48 = vld [vmem:[#allocation2 + $0x1ca] sm:$0xff]  ;;  %v2083_v43 = vmul.f32 %v11368_v39, %v2047_v17 }
 0x3b1   : > { %v5181_v16 = vadd.f32 %v5149_v47, %v5117_v61  ;;  %v13064_v36 = vld [vmem:[#allocation68_spill] sm:$0xff]  ;;  %v2183_v58 = vmul.f32 %v12836_v45, %v2147_v28  ;;  %v3052_v0 = vmul.f32 %v12116_v5, %v3016_v34  ;;  %v3284_v10 = vld [vmem:[#allocation2 + $0x1cb] sm:$0xff]  ;;  %v10134_v61 = vld [vmem:[%s10259_s2] ss:$0 sm:$0xff]  ;;  %v10140_v38 = vadd.f32 %v945_v60, %v877_v13 }
 0x3b2   : > { %v2551_v33 = vmul.f32 %v13064_v36, %v11744_v9  ;;  %v1446_v42 = vadd.f32 %v1414_v6, %v1346_v12  ;;  %13065 = vst [vmem:[#allocation91_spill] sm:$0xff] %v10134_v61  ;;  %v13066_v47 = vld [vmem:[#allocation64_spill] sm:$0xff]  ;;  %v13067_v3 = vld [vmem:[#allocation27_spill] sm:$0xff]  ;;  %v2115_v17 = vadd.f32 %v2083_v43, %v2015_v27  ;;  %v13068_v28 = vld [vmem:[#allocation18_spill] sm:$0xff] }
 0x3b3   : > { %v5220_v24 = vadd.f32 %v10134_v61, %v5181_v16  ;;  %v2651_v7 = vmul.f32 %v13066_v47, %v13016_v2  ;;  %v3120_v12 = vmul.f32 %v13067_v3, %v3084_v62  ;;  %v2283_v6 = vmul.f32 %v13068_v28, %v2247_v46  ;;  %v13069_v34 = vld [vmem:[#allocation28_spill] sm:$0xff]  ;;  %v3384_v25 = vld [vmem:[#allocation2 + $0x1cc] sm:$0xff]  ;;  %v13073_v2 = vld [vmem:[#allocation33_spill] sm:$0xff] }
 0x3b4   : > { %v2583_v32 = vadd.f32 %v2551_v33, %v2483_v31  ;;  %v3220_v53 = vmul.f32 %v13069_v34, %v3184_v48  ;;  %v13070_v45 = vld [vmem:[#allocation23_spill] sm:$0xff]  ;;  %v13071_v52 = vld [vmem:[#allocation74_spill] sm:$0xff]  ;;  %v13072_v33 = vld [vmem:[#allocation29_spill] sm:$0xff]  ;;  %v1546_v47 = vadd.f32 %v1514_v18, %v1446_v42  ;;  %v2215_v18 = vadd.f32 %v2183_v58, %v2115_v17 }
 0x3b5   : > { %5252 = vst.msk [vmem:[%s6091_s10 + $0xe8] sm:$0xff] %vm171_vm0, %v5220_v24  ;;  %v2751_v16 = vmul.f32 %v13071_v52, %v13070_v45  ;;  %v3152_v31 = vadd.f32 %v3120_v12, %v3052_v0  ;;  %v3320_v5 = vmul.f32 %v13072_v33, %v3284_v10  ;;  %v13074_v62 = vld [vmem:[#allocation72_spill] sm:$0xff]  ;;  %v13075_v13 = vld [vmem:[#allocation34_spill] sm:$0xff]  ;;  %v13076_v27 = vld [vmem:[#allocation71_spill] sm:$0xff] }
 0x3b6   : > { %v2683_v36 = vadd.f32 %v2651_v7, %v2583_v32  ;;  %v3721_v60 = vmul.f32 %v13074_v62, %v13073_v2  ;;  %v3789_v43 = vmul.f32 %v13076_v27, %v13075_v13  ;;  %v13077_v46 = vld [vmem:[#allocation35_spill] sm:$0xff]  ;;  %v13078_v28 = vld [vmem:[#allocation76_spill] sm:$0xff]  ;;  %v13080_v7 = vld [vmem:[#allocation70_spill] sm:$0xff] }
 0x3b7   : > { %v3889_v48 = vmul.f32 %v13078_v28, %v13077_v46  ;;  %v4354_v34 = vld [vmem:[#allocation2 + $0x1f8] sm:$0xff]  ;;  %v3252_v52 = vadd.f32 %v3220_v53, %v3152_v31  ;;  %v13081_v0 = vld [vmem:[#allocation30_spill] sm:$0xff]  ;;  %v13082_v42 = vld [vmem:[#allocation25_spill] sm:$0xff] }
 0x3b8   : > { %v4422_v3 = vld [vmem:[#allocation2 + $0x1f9] sm:$0xff]  ;;  %v2783_v24 = vadd.f32 %v2751_v16, %v2683_v36  ;;  %v3420_v12 = vmul.f32 %v13081_v0, %v3384_v25  ;;  %v13083_v45 = vld [vmem:[#allocation75_spill] sm:$0xff]  ;;  %v3821_v33 = vadd.f32 %v3789_v43, %v3721_v60  ;;  %v1646_v25 = vadd.f32 %v1614_v59, %v1546_v47  ;;  %v13088_v58 = vld [vmem:[#allocation82_spill] sm:$0xff] }
 0x3b9   : > { %v13079_v32 = vld [vmem:[#allocation24_spill] sm:$0xff]  ;;  %v2951_v62 = vmul.f32 %v13083_v45, %v13082_v42  ;;  %v3484_v2 = vld [vmem:[#allocation2 + $0x1cd] sm:$0xff]  ;;  %v13085_v13 = vld [vmem:[#allocation73_spill] sm:$0xff]  ;;  %v3352_v9 = vadd.f32 %v3320_v5, %v3252_v52  ;;  %v4089_v17 = vmul.f32 %v13088_v58, %v13046_v30 }
 0x3ba   : > { %v2851_v39 = vmul.f32 %v13080_v7, %v13079_v32  ;;  %v4522_v10 = vld [vmem:[#allocation2 + $0x1fa] sm:$0xff]  ;;  %v4458_v7 = vmul.f32 %v13087_v21, %v4422_v3  ;;  %v342_v31 = vld [vmem:[#allocation2 + $0x170] sm:$0xff]  ;;  %v3921_v32 = vadd.f32 %v3889_v48, %v3821_v33 }
 0x3bb   : > { %v13084_v27 = vld [vmem:[#allocation36_spill] sm:$0xff]  ;;  %v3452_v43 = vadd.f32 %v3420_v12, %v3352_v9  ;;  %v13090_v0 = vld [vmem:[#allocation31_spill] sm:$0xff]  ;;  %v378_v59 = vmul.f32 %v12927_v40, %v342_v31  ;;  %v13091_v12 = vld [vmem:[#allocation77_spill] sm:$0xff] }
 0x3bc   : > { %v3989_v61 = vmul.f32 %v13085_v13, %v13084_v27  ;;  %v4622_v28 = vld [vmem:[#allocation2 + $0x1fb] sm:$0xff]  ;;  %v2883_v46 = vadd.f32 %v2851_v39, %v2783_v24  ;;  %v410_v60 = vld [vmem:[#allocation2 + $0x171] sm:$0xff]  ;;  %v3520_v13 = vmul.f32 %v13090_v0, %v3484_v2 }
 0x3bd   : > { %v13086_v36 = vld [vmem:[#allocation40_spill] sm:$0xff]  ;;  %v3584_v27 = vld [vmem:[#allocation2 + $0x1ce] sm:$0xff]  ;;  %v4658_v5 = vmul.f32 %v13050_v57, %v4622_v28 }
 0x3be   : > { %v4390_v16 = vmul.f32 %v13086_v36, %v4354_v34  ;;  %v4722_v53 = vld [vmem:[#allocation2 + $0x1fc] sm:$0xff]  ;;  %v2315_v34 = vadd.f32 %v2283_v6, %v2215_v18  ;;  %v4021_v24 = vadd.f32 %v3989_v61, %v3921_v32  ;;  %v2983_v33 = vadd.f32 %v2951_v62, %v2883_v46  ;;  %v510_v58 = vld [vmem:[#allocation2 + $0x172] sm:$0xff]  ;;  %v13092_v6 = vld [vmem:[#allocation78_spill] sm:$0xff] }
 0x3bf   : > { %v13089_v45 = vld [vmem:[#allocation44_spill] sm:$0xff]  ;;  %v4758_v3 = vmul.f32 %v12930_v35, %v4722_v53  ;;  %v3552_v47 = vadd.f32 %v3520_v13, %v3452_v43  ;;  %v3620_v9 = vmul.f32 %v13049_v56, %v3584_v27  ;;  %v4289_v61 = vmul.f32 %v13092_v6, %v12991_v29  ;;  %v1680_v13 = vld [vmem:[#allocation2 + $0x1a0] sm:$0xff]  ;;  %v13096_v6 = vld [vmem:[#allocation79_spill] sm:$0xff] }
 0x3c0   : > { %v4558_v42 = vmul.f32 %v13089_v45, %v4522_v10  ;;  %v4490_v39 = vadd.f32 %v4458_v7, %v4390_v16  ;;  %v4822_v52 = vld [vmem:[#allocation2 + $0x1fd] sm:$0xff]  ;;  %v446_v10 = vmul.f32 %v11908_v14, %v410_v60  ;;  %v4121_v2 = vadd.f32 %v4089_v17, %v4021_v24  ;;  %v610_v17 = vld [vmem:[#allocation2 + $0x173] sm:$0xff] }
 0x3c1   : > { %v4189_v16 = vmul.f32 %v13091_v12, %v12989_v50  ;;  %v4858_v18 = vmul.f32 %v11410_v63, %v4822_v52  ;;  %v3652_v40 = vadd.f32 %v3620_v9, %v3552_v47  ;;  %v4922_v62 = vld [vmem:[#allocation2 + $0x1fe] sm:$0xff]  ;;  %v5022_v53 = vadd.f32 %v1646_v25, %v10140_v38  ;;  %v710_v25 = vld [vmem:[#allocation2 + $0x174] sm:$0xff] }
 0x3c2   : > { %v4590_v48 = vadd.f32 %v4558_v42, %v4490_v39  ;;  %v478_v28 = vadd.f32 %v446_v10, %v378_v59  ;;  %v546_v42 = vmul.f32 %v11411_v1, %v510_v58  ;;  %v13093_v14 = vld [vmem:[#allocation80_spill] sm:$0xff]  ;;  %v5054_v31 = vadd.f32 %v2983_v33, %v2315_v34  ;;  %v1748_v39 = vld [vmem:[#allocation2 + $0x1a1] sm:$0xff]  ;;  %v13095_v1 = vld [vmem:[#allocation63_spill] sm:$0xff] }
 0x3c3   : > { %v4221_v46 = vadd.f32 %v4189_v16, %v4121_v2  ;;  %v1047_v7 = vmul.f32 %v13093_v14, %v11287_v55  ;;  %v13094_v60 = vld [vmem:[#allocation84_spill] sm:$0xff]  ;;  %v4958_v59 = vmul.f32 %v10104_v23, %v4922_v62  ;;  %v1848_v55 = vld [vmem:[#allocation2 + $0x1a2] sm:$0xff]  ;;  %v646_v38 = vmul.f32 %v11284_v26, %v610_v17 }
 0x3c4   : > { %v4690_v32 = vadd.f32 %v4658_v5, %v4590_v48  ;;  %v1115_v43 = vmul.f32 %v13094_v60, %v11288_v11  ;;  %v578_v24 = vadd.f32 %v546_v42, %v478_v28  ;;  %v1215_v48 = vmul.f32 %v13095_v1, %v11289_v19  ;;  %v810_v34 = vld [vmem:[#allocation2 + $0x175] sm:$0xff]  ;;  %v1948_v2 = vld [vmem:[#allocation2 + $0x1a3] sm:$0xff] }
 0x3c5   : > { %v4321_v5 = vadd.f32 %v4289_v61, %v4221_v46  ;;  %v1716_v33 = vmul.f32 %v5638_v44, %v1680_v13  ;;  %v1784_v11 = vmul.f32 %v5650_v49, %v1748_v39  ;;  %v5118_v58 = vadd.f32 %v5054_v31, %v5022_v53  ;;  %v910_v16 = vld [vmem:[#allocation2 + $0x176] sm:$0xff]  ;;  %v13097_v44 = vld [vmem:[#allocation90_spill] sm:$0xff]  ;;  %v13101_v17 = vld [vmem:[#allocation85_spill] sm:$0xff] }
 0x3c6   : > { %v4790_v27 = vadd.f32 %v4758_v3, %v4690_v32  ;;  %v1147_v47 = vadd.f32 %v1115_v43, %v1047_v7  ;;  %v678_v12 = vadd.f32 %v646_v38, %v578_v24  ;;  %v1315_v61 = vmul.f32 %v13096_v6, %v5620_v37  ;;  %v2048_v42 = vld [vmem:[#allocation2 + $0x1a4] sm:$0xff]  ;;  %v3017_v37 = vld [vmem:[#allocation2 + $0x1d0] sm:$0xff]  ;;  %v13105_v1 = vld [vmem:[#allocation16_spill] sm:$0xff] }
 0x3c7   : > { %v5086_v3 = vadd.f32 %v4321_v5, %v3652_v40  ;;  %v1816_v19 = vadd.f32 %v1784_v11, %v1716_v33  ;;  %v1884_v32 = vmul.f32 %v11359_v22, %v1848_v55  ;;  %v746_v26 = vmul.f32 %v11285_v20, %v710_v25  ;;  %v13098_v14 = vld [vmem:[#allocation62_spill] sm:$0xff]  ;;  %v13099_v20 = vld [vmem:[#allocation83_spill] sm:$0xff]  ;;  %v13102_v5 = vld [vmem:[#allocation21_spill] sm:$0xff] }
 0x3c8   : > { %v4890_v52 = vadd.f32 %v4858_v18, %v4790_v27  ;;  %v1247_v9 = vadd.f32 %v1215_v48, %v1147_v47  ;;  %v846_v28 = vmul.f32 %v11294_v8, %v810_v34  ;;  %v2384_v49 = vmul.f32 %v13097_v44, %v11364_v15  ;;  %v3085_v27 = vld [vmem:[#allocation2 + $0x1d1] sm:$0xff]  ;;  %v13100_v8 = vld [vmem:[#allocation13_spill] sm:$0xff]  ;;  %v13106_v48 = vld [vmem:[#allocation26_spill] sm:$0xff] }
 0x3c9   : > { %v1916_v46 = vadd.f32 %v1884_v32, %v1816_v19  ;;  %v1984_v62 = vmul.f32 %v5658_v51, %v1948_v2  ;;  %v2452_v7 = vmul.f32 %v13098_v14, %v11366_v54  ;;  %v946_v22 = vmul.f32 %v11301_v4, %v910_v16  ;;  %v3185_v15 = vld [vmem:[#allocation2 + $0x1d2] sm:$0xff]  ;;  %v2148_v51 = vld [vmem:[#allocation2 + $0x1a5] sm:$0xff] }
 0x3ca   : > { %v4990_v10 = vadd.f32 %v4958_v59, %v4890_v52  ;;  %v1347_v40 = vadd.f32 %v1315_v61, %v1247_v9  ;;  %v1415_v31 = vmul.f32 %v13099_v20, %v5629_v41  ;;  %v1515_v60 = vmul.f32 %v13101_v17, %v13100_v8  ;;  %v13103_v24 = vld [vmem:[#allocation53_spill] sm:$0xff]  ;;  %v3285_v52 = vld [vmem:[#allocation2 + $0x1d3] sm:$0xff]  ;;  %v13108_v34 = vld [vmem:[#allocation22_spill] sm:$0xff] }
 0x3cb   : > { %v778_v43 = vadd.f32 %v746_v26, %v678_v12  ;;  %v2016_v13 = vadd.f32 %v1984_v62, %v1916_v46  ;;  %v2484_v39 = vadd.f32 %v2452_v7, %v2384_v49  ;;  %v2552_v54 = vmul.f32 %v13103_v24, %v13102_v5  ;;  %v13104_v59 = vld [vmem:[#allocation91_spill] sm:$0xff]  ;;  %v13111_v2 = vld [vmem:[#allocation14_spill] sm:$0xff]  ;;  %v13113_v6 = vld [vmem:[#allocation17_spill] sm:$0xff] }
 0x3cc   : > { %v5150_v18 = vadd.f32 %v5086_v3, %v4990_v10  ;;  %v2084_v4 = vmul.f32 %v13105_v1, %v2048_v42  ;;  %v3053_v55 = vmul.f32 %v13106_v48, %v3017_v37  ;;  %v13107_v41 = vld [vmem:[#allocation27_spill] sm:$0xff]  ;;  %v1447_v38 = vadd.f32 %v1415_v31, %v1347_v40  ;;  %v13110_v10 = vld [vmem:[#allocation28_spill] sm:$0xff]  ;;  %v13112_v12 = vld [vmem:[#allocation86_spill] sm:$0xff] }
 0x3cd   : > { %v3121_v3 = vmul.f32 %v13107_v41, %v3085_v27  ;;  %v2584_v25 = vadd.f32 %v2552_v54, %v2484_v39  ;;  %v13109_v33 = vld [vmem:[#allocation87_spill] sm:$0xff]  ;;  %v1615_v16 = vmul.f32 %v13112_v12, %v13111_v2  ;;  %v2184_v61 = vmul.f32 %v13113_v6, %v2148_v51  ;;  %v13114_v32 = vld [vmem:[#allocation29_spill] sm:$0xff]  ;;  %v13116_v40 = vld [vmem:[#allocation6_spill] sm:$0xff] }
 0x3ce   : > { %v5182_v53 = vadd.f32 %v5150_v18, %v5118_v58  ;;  %v2652_v11 = vmul.f32 %v13109_v33, %v13108_v34  ;;  %v3221_v58 = vmul.f32 %v13110_v10, %v3185_v15  ;;  %v3385_v9 = vld [vmem:[#allocation2 + $0x1d4] sm:$0xff]  ;;  %v3321_v18 = vmul.f32 %v13114_v32, %v3285_v52  ;;  %v13117_v62 = vld [vmem:[#allocation33_spill] sm:$0xff]  ;;  %v13119_v27 = vld [vmem:[#allocation30_spill] sm:$0xff] }
 0x3cf   : > { %v3153_v19 = vadd.f32 %v3121_v3, %v3053_v55  ;;  %v2116_v26 = vadd.f32 %v2084_v4, %v2016_v13  ;;  %v13115_v49 = vld [vmem:[#allocation23_spill] sm:$0xff]  ;;  %v13118_v42 = vld [vmem:[#allocation88_spill] sm:$0xff]  ;;  %v4355_v7 = vld [vmem:[#allocation2 + $0x200] sm:$0xff]  ;;  %v878_v13 = vadd.f32 %v846_v28, %v778_v43  ;;  %v1547_v24 = vadd.f32 %v1515_v60, %v1447_v38 }
 0x3d0   : > { %v5221_v47 = vadd.f32 %v13104_v59, %v5182_v53  ;;  %v2684_v44 = vadd.f32 %v2652_v11, %v2584_v25  ;;  %v2752_v46 = vmul.f32 %v13116_v40, %v13115_v49  ;;  %v3722_v14 = vmul.f32 %v13118_v42, %v13117_v62  ;;  %v13120_v20 = vld [vmem:[#allocation34_spill] sm:$0xff]  ;;  %v13121_v31 = vld [vmem:[#allocation5_spill] sm:$0xff]  ;;  %v13122_v17 = vld [vmem:[#allocation35_spill] sm:$0xff] }
 0x3d1   : > { %v3253_v37 = vadd.f32 %v3221_v58, %v3153_v19  ;;  %v3421_v53 = vmul.f32 %v13119_v27, %v3385_v9  ;;  %v3790_v8 = vmul.f32 %v13121_v31, %v13120_v20  ;;  %v13123_v15 = vld [vmem:[#allocation89_spill] sm:$0xff]  ;;  %v13124_v52 = vld [vmem:[#allocation24_spill] sm:$0xff]  ;;  %v13127_v25 = vld [vmem:[#allocation10_spill] sm:$0xff]  ;;  %v4391_v33 = vmul.f32 %v13086_v36, %v4355_v7 }
 0x3d2   : > { %5253 = vst.msk [vmem:[%s6091_s10 + $0xf0] sm:$0xff] %vm171_vm0, %v5221_v47  ;;  %v3890_v51 = vmul.f32 %v13123_v15, %v13122_v17  ;;  %v4423_v39 = vld [vmem:[#allocation2 + $0x201] sm:$0xff]  ;;  %v2784_v54 = vadd.f32 %v2752_v46, %v2684_v44  ;;  %v13125_v47 = vld [vmem:[#allocation4_spill] sm:$0xff]  ;;  %v2216_v10 = vadd.f32 %v2184_v61, %v2116_v26  ;;  %v13131_v44 = vld [vmem:[#allocation7_spill] sm:$0xff]  ;;  %v1647_v40 = vadd.f32 %v1615_v16, %v1547_v24 }
 0x3d3   : > { %v4523_v5 = vld [vmem:[#allocation2 + $0x202] sm:$0xff]  ;;  %v2852_v1 = vmul.f32 %v13125_v47, %v13124_v52  ;;  %v3485_v4 = vld [vmem:[#allocation2 + $0x1d5] sm:$0xff]  ;;  %v3353_v55 = vadd.f32 %v3321_v18, %v3253_v37  ;;  %v3822_v41 = vadd.f32 %v3790_v8, %v3722_v14  ;;  %v4459_v9 = vmul.f32 %v13087_v21, %v4423_v39 }
 0x3d4   : > { %v2248_v48 = vld [vmem:[#allocation2 + $0x1a6] sm:$0xff]  ;;  %v13126_v3 = vld [vmem:[#allocation36_spill] sm:$0xff]  ;;  %v4559_v28 = vmul.f32 %v13089_v45, %v4523_v5  ;;  %v3521_v43 = vmul.f32 %v13090_v0, %v3485_v4  ;;  %v978_v21 = vadd.f32 %v946_v22, %v878_v13 }
 0x3d5   : > { %v3990_v34 = vmul.f32 %v13127_v25, %v13126_v3  ;;  %v4623_v11 = vld [vmem:[#allocation2 + $0x203] sm:$0xff]  ;;  %v2884_v58 = vadd.f32 %v2852_v1, %v2784_v54  ;;  %v3453_v60 = vadd.f32 %v3421_v53, %v3353_v55  ;;  %v3922_v38 = vadd.f32 %v3890_v51, %v3822_v41  ;;  %v13128_v2 = vld [vmem:[#allocation12_spill] sm:$0xff] }
 0x3d6   : > { %v4090_v12 = vmul.f32 %v13128_v2, %v13046_v30  ;;  %v4723_v6 = vld [vmem:[#allocation2 + $0x204] sm:$0xff]  ;;  %v3585_v49 = vld [vmem:[#allocation2 + $0x1d6] sm:$0xff]  ;;  %v4491_v61 = vadd.f32 %v4459_v9, %v4391_v33  ;;  %v4659_v26 = vmul.f32 %v13050_v57, %v4623_v11  ;;  %v5023_v51 = vadd.f32 %v1647_v40, %v978_v21 }
 0x3d7   : > { %v13129_v19 = vld [vmem:[#allocation18_spill] sm:$0xff]  ;;  %v13130_v18 = vld [vmem:[#allocation25_spill] sm:$0xff]  ;;  %v3553_v45 = vadd.f32 %v3521_v43, %v3453_v60  ;;  %v4022_v46 = vadd.f32 %v3990_v34, %v3922_v38  ;;  %v4759_v30 = vmul.f32 %v12930_v35, %v4723_v6  ;;  %v3621_v7 = vmul.f32 %v13049_v56, %v3585_v49  ;;  %v13132_v27 = vld [vmem:[#allocation8_spill] sm:$0xff] }
 0x3d8   : > { %v2284_v32 = vmul.f32 %v13129_v19, %v2248_v48  ;;  %v2952_v36 = vmul.f32 %v13131_v44, %v13130_v18  ;;  %v4823_v62 = vld [vmem:[#allocation2 + $0x205] sm:$0xff]  ;;  %v4591_v14 = vadd.f32 %v4559_v28, %v4491_v61  ;;  %v4190_v53 = vmul.f32 %v13132_v27, %v12989_v50 }
 0x3d9   : > { %v4122_v37 = vadd.f32 %v4090_v12, %v4022_v46  ;;  %v4859_v31 = vmul.f32 %v11410_v63, %v4823_v62  ;;  %v3653_v57 = vadd.f32 %v3621_v7, %v3553_v45  ;;  %v13133_v16 = vld [vmem:[#allocation94_spill] sm:$0xff] }
 0x3da   : > { %v2316_v0 = vadd.f32 %v2284_v32, %v2216_v10  ;;  %v2984_v42 = vadd.f32 %v2952_v36, %v2884_v58  ;;  %v4691_v20 = vadd.f32 %v4659_v26, %v4591_v14  ;;  %v4290_v8 = vmul.f32 %v13133_v16, %v12991_v29  ;;  %v4923_v17 = vld [vmem:[#allocation2 + $0x206] sm:$0xff] }
 0x3db   : > { %v4222_v22 = vadd.f32 %v4190_v53, %v4122_v37  ;;  %v4959_v56 = vmul.f32 %v10104_v23, %v4923_v17 }
 0x3dc   : > { %v4791_v15 = vadd.f32 %v4759_v30, %v4691_v20  ;;  %v5055_v39 = vadd.f32 %v2984_v42, %v2316_v0 }
 0x3dd   : > { %v4322_v35 = vadd.f32 %v4290_v8, %v4222_v22 }
 0x3de   : > { %v4891_v5 = vadd.f32 %v4859_v31, %v4791_v15  ;;  %v5119_v50 = vadd.f32 %v5055_v39, %v5023_v51 }
 0x3df   : > { %v5087_v13 = vadd.f32 %v4322_v35, %v3653_v57 }
 0x3e0   : > { %v4991_v24 = vadd.f32 %v4959_v56, %v4891_v5 }
 0x3e2   : > { %v5151_v54 = vadd.f32 %v5087_v13, %v4991_v24 }
 0x3e4   : > { %v5183_v52 = vadd.f32 %v5151_v54, %v5119_v50 }
 0x3e6   : > { %v5222_v63 = vadd.f32 %v13104_v59, %v5183_v52 }
 0x3e8   : > { %5254 = vst.msk [vmem:[%s6091_s10 + $0xf8] sm:$0xff] %vm171_vm0, %v5222_v63 }
 0x3e9 PF: > { %s13_s12 = sadd.s32 1, %s5352_s12  }
 0x3ea   : > { %p10_p4 = scmp.ge.s32.totalorder %s13_s12, 4  }
 0x3ec   :  { %12 = sbr.rel (!%p10_p4) target bundleno = 1 (0x1), region = 68 }

</bundles_post_ra>
